<compile_context>
chip_gen: v6e
topology: v6e:2x2x1
jax: 0.10.0
libtpu: 0.0.40
codegen_flags: <defaults>
</compile_context>

<pallas_src>
import math

import jax
import jax.numpy as jnp
from jax.experimental import pallas as pl
from jax.experimental.pallas import tpu as pltpu

HIDDEN = 768
NUM_HEADS = 12
HEAD_DIM = HIDDEN // NUM_HEADS      # 64
LN_EPS = 1e-12

# x @ W^T for PyTorch-layout (out_features, in_features) weights:
# contract x's dim 1 with W's dim 1.
_CONTRACT_IN = (((1,), (1,)), ((), ()))


def _cross_attn_kernel(s1_ref, s2_ref, mask_ref,
                       wq_ref, bq_ref, wk_ref, bk_ref, wv_ref, bv_ref,
                       wd_ref, bd_ref, lnw_ref, lnb_ref, o_ref):
    f32, bf16 = jnp.float32, jnp.bfloat16
    Bblk, S1, H = s1_ref.shape
    S2 = s2_ref.shape[1]

    s1 = s1_ref[...]                                    # (Bblk, S1, H) f32
    s2 = s2_ref[...]                                    # (Bblk, S2, H) f32
    mask = mask_ref[...]                                # (Bblk, 1, S2) f32 additive
    s1f = s1.reshape(Bblk * S1, H)                      # fold batch into MXU rows
    s2f = s2.reshape(Bblk * S2, H)

    # Projections over the whole folded block: bf16 MXU, f32 acc, f32 bias.
    # 1/sqrt(head_dim) is already folded into wq/bq (prepare_params).
    q = jax.lax.dot_general(s1f.astype(bf16), wq_ref[...], _CONTRACT_IN,
                            preferred_element_type=f32) + bq_ref[...]
    k = jax.lax.dot_general(s2f.astype(bf16), wk_ref[...], _CONTRACT_IN,
                            preferred_element_type=f32) + bk_ref[...]
    v = jax.lax.dot_general(s2f.astype(bf16), wv_ref[...], _CONTRACT_IN,
                            preferred_element_type=f32) + bv_ref[...]
    q_bf = q.astype(bf16)
    k_bf = k.astype(bf16)
    v_bf = v.astype(bf16)

    ctx_blocks = []
    for b in range(Bblk):          # static unroll over the folded batch rows
        # Head-major (12, S, 64) views: one relayout in, one out per tensor.
        qh = pltpu.einshape(
            "qhd->hqd", q_bf[b * S1:(b + 1) * S1, :].reshape(S1, NUM_HEADS, HEAD_DIM))
        kh = pltpu.einshape(
            "khd->hkd", k_bf[b * S2:(b + 1) * S2, :].reshape(S2, NUM_HEADS, HEAD_DIM))
        vh = pltpu.einshape(
            "khd->hkd", v_bf[b * S2:(b + 1) * S2, :].reshape(S2, NUM_HEADS, HEAD_DIM))

        # 12-way batched bf16 MXU matmul, f32 scores; q already carries 1/sqrt(d).
        scores = jnp.einsum("hqd,hkd->hqk", qh, kh,
                            preferred_element_type=f32) + mask[b]     # (12,S1,S2)
        scores = scores - jnp.max(scores, axis=-1, keepdims=True)
        p = jnp.exp(scores)
        denom = jnp.sum(p, axis=-1, keepdims=True)                    # (12,S1,1)
        # TODO(synk): nn.Dropout(0.1) on attention_probs is identity in eval mode.

        # Unnormalized PV (bf16 MXU, f32 acc); normalize the small (12,S1,64)
        # context with an EUP approx reciprocal instead of dividing the probs.
        ctx_h = jnp.einsum("hqk,hkd->hqd", p.astype(bf16), vh,
                           preferred_element_type=f32)
        ctx_h = ctx_h * pl.reciprocal(denom, approx=True)
        ctx_blocks.append(pltpu.einshape("hqd->qhd", ctx_h).reshape(S1, H))

    ctx = ctx_blocks[0] if Bblk == 1 else jnp.concatenate(ctx_blocks, axis=0)

    # BertSelfOutput.dense on the folded block (bf16 MXU / f32 acc).
    dense = jax.lax.dot_general(ctx.astype(bf16), wd_ref[...], _CONTRACT_IN,
                                preferred_element_type=f32) + bd_ref[...]
    # TODO(synk): nn.Dropout(0.1) in BertSelfOutput is identity in eval mode.

    # Residual + TF-style LayerNorm (eps inside sqrt), all f32.
    x = dense + s1f
    mu = jnp.mean(x, axis=-1, keepdims=True)
    xc = x - mu
    var = jnp.mean(xc * xc, axis=-1, keepdims=True)
    xn = xc * jax.lax.rsqrt(var + LN_EPS)
    out = lnw_ref[...] * xn + lnb_ref[...]
    o_ref[...] = out.reshape(Bblk, S1, H).astype(o_ref.dtype)


def prepare_params(wq, bq, wk, bk, wv, bv, wd, bd, ln_w, ln_b):
    """One-time parameter prep (out of the per-call path):
    - weights keep PyTorch (out, in) layout, cast to bf16 once,
    - 1/sqrt(head_dim)=1/8 folded into the query projection (exact pow-2 scale),
    - biases / LayerNorm params become (1, 768) f32 rows."""
    bf16, f32 = jnp.bfloat16, jnp.float32
    row = lambda x: jnp.asarray(x, f32).reshape(1, HIDDEN)
    inv_sqrt_d = 1.0 / math.sqrt(HEAD_DIM)          # 1/8, exact in fp
    return {
        "wq": (jnp.asarray(wq, f32) * inv_sqrt_d).astype(bf16),
        "wk": jnp.asarray(wk, f32).astype(bf16),
        "wv": jnp.asarray(wv, f32).astype(bf16),
        "wd": jnp.asarray(wd, f32).astype(bf16),
        "bq": row(bq) * inv_sqrt_d,
        "bk": row(bk), "bv": row(bv), "bd": row(bd),
        "ln_w": row(ln_w), "ln_b": row(ln_b),
    }


def _auto_batch_block(B, S1):
    """Fold enough batch rows that the projection/dense matmuls see ~>=256 MXU
    rows, but keep >=2 grid steps when B>1 (v7x: 2 TensorCores) and bound the
    in-kernel static unroll."""
    bblk = min(B, max(1, pl.cdiv(256, S1)), 16)
    if B > 1:
        bblk = min(bblk, pl.cdiv(B, 2))
    return max(1, bblk)


def _vmem_limit_bytes():
    try:
        cap = pltpu.get_tpu_info().vmem_capacity_bytes
    except Exception:
        cap = 64 * 1024 * 1024
    return int(cap * 3 // 4)        # ~48 MiB on v7x, ~96 MiB on v5e/v6e


def bert_cross_attention(s1, s2, s2_attention_mask, params, batch_block=None):
    """s1: (B, S1, 768); s2: (B, S2, 768);
    s2_attention_mask: additive BERT extended mask, shape (B, 1, 1, S2)
    (0 = attend, -10000 = masked); params: output of prepare_params()."""
    B, S1, H = s1.shape
    _, S2, _ = s2.shape
    assert H == HIDDEN
    s1 = jnp.asarray(s1, jnp.float32)
    s2 = jnp.asarray(s2, jnp.float32)
    mask = jnp.asarray(s2_attention_mask, jnp.float32).reshape(B, 1, S2)

    bblk = batch_block if batch_block else _auto_batch_block(B, S1)
    nb = pl.cdiv(B, bblk)
    Bp = nb * bblk
    if Bp != B:                      # pad batch to a multiple of the block
        pad = Bp - B
        s1 = jnp.pad(s1, ((0, pad), (0, 0), (0, 0)))
        s2 = jnp.pad(s2, ((0, pad), (0, 0), (0, 0)))
        mask = jnp.pad(mask, ((0, pad), (0, 0), (0, 0)))

    # Constant params: index_map is always block (0,0) -> single-buffer them.
    const2d = lambda shape: pl.BlockSpec(shape, lambda b: (0, 0),
                                         pipeline_mode=pl.Buffered(1))

    grid_spec = pltpu.PrefetchScalarGridSpec(
        num_scalar_prefetch=0,
        grid=(nb,),
        in_specs=[
            pl.BlockSpec((bblk, S1, HIDDEN), lambda b: (b, 0, 0)),  # s1
            pl.BlockSpec((bblk, S2, HIDDEN), lambda b: (b, 0, 0)),  # s2
            pl.BlockSpec((bblk, 1, S2), lambda b: (b, 0, 0)),       # mask
            const2d((HIDDEN, HIDDEN)), const2d((1, HIDDEN)),        # wq, bq
            const2d((HIDDEN, HIDDEN)), const2d((1, HIDDEN)),        # wk, bk
            const2d((HIDDEN, HIDDEN)), const2d((1, HIDDEN)),        # wv, bv
            const2d((HIDDEN, HIDDEN)), const2d((1, HIDDEN)),        # wd, bd
            const2d((1, HIDDEN)), const2d((1, HIDDEN)),             # ln_w, ln_b
        ],
        out_specs=pl.BlockSpec((bblk, S1, HIDDEN), lambda b: (b, 0, 0)),
    )
    out = pl.pallas_call(
        _cross_attn_kernel,
        out_shape=jax.ShapeDtypeStruct((Bp, S1, HIDDEN), jnp.float32),
        grid_spec=grid_spec,
        compiler_params=pltpu.CompilerParams(
            dimension_semantics=("parallel",),
            vmem_limit_bytes=_vmem_limit_bytes()),
    )(s1, s2, mask,
      params["wq"], params["bq"], params["wk"], params["bk"],
      params["wv"], params["bv"], params["wd"], params["bd"],
      params["ln_w"], params["ln_b"])
    return out[:B] if Bp != B else out


def _reference(s1, s2, ext_mask, p):
    """Plain-JAX reference mirroring the kernel's precision choices
    (bf16 weights/operands, f32 accumulation, deferred softmax normalization)."""
    B, S1, H = s1.shape
    S2 = s2.shape[1]
    f32, bf16 = jnp.float32, jnp.bfloat16
    rt = lambda x: x.astype(bf16).astype(f32)       # bf16 round-trip

    def lin(x, w_bf, b2d):
        return jnp.einsum("bsh,oh->bso", rt(x), w_bf.astype(f32)) + b2d.reshape(1, 1, H)

    q = lin(s1, p["wq"], p["bq"]).reshape(B, S1, NUM_HEADS, HEAD_DIM).transpose(0, 2, 1, 3)
    k = lin(s2, p["wk"], p["bk"]).reshape(B, S2, NUM_HEADS, HEAD_DIM).transpose(0, 2, 1, 3)
    v = lin(s2, p["wv"], p["bv"]).reshape(B, S2, NUM_HEADS, HEAD_DIM).transpose(0, 2, 1, 3)
    scores = jnp.einsum("bhqd,bhkd->bhqk", rt(q), rt(k))   # 1/sqrt(d) already in wq/bq
    scores = scores + ext_mask                              # (B,1,1,S2) broadcasts
    scores = scores - scores.max(-1, keepdims=True)
    probs = jnp.exp(scores)
    denom = probs.sum(-1, keepdims=True)
    ctx = jnp.einsum("bhqk,bhkd->bhqd", rt(probs), rt(v)) / denom
    ctx = ctx.transpose(0, 2, 1, 3).reshape(B, S1, H)
    dense = jnp.einsum("bsh,oh->bso", rt(ctx), p["wd"].astype(f32)) + p["bd"].reshape(1, 1, H)
    x = dense + s1
    mu = x.mean(-1, keepdims=True)
    xc = x - mu
    var = (xc * xc).mean(-1, keepdims=True)
    xn = xc / jnp.sqrt(var + LN_EPS)
    return p["ln_w"].reshape(1, 1, H) * xn + p["ln_b"].reshape(1, 1, H)


if __name__ == "__main__":
    key = jax.random.PRNGKey(0)
    ks = jax.random.split(key, 12)
    B, S1, S2 = 4, 8, 16

    bound = 1.0 / math.sqrt(HIDDEN)
    u = lambda k, shape: jax.random.uniform(k, shape, jnp.float32, -bound, bound)
    wq, bq = u(ks[0], (HIDDEN, HIDDEN)), u(ks[1], (HIDDEN,))
    wk, bk = u(ks[2], (HIDDEN, HIDDEN)), u(ks[3], (HIDDEN,))
    wv, bv = u(ks[4], (HIDDEN, HIDDEN)), u(ks[5], (HIDDEN,))
    wd, bd = u(ks[6], (HIDDEN, HIDDEN)), u(ks[7], (HIDDEN,))
    ln_w = 1.0 + 0.1 * jax.random.normal(ks[8], (HIDDEN,), jnp.float32)
    ln_b = 0.1 * jax.random.normal(ks[9], (HIDDEN,), jnp.float32)

    s1 = jax.random.normal(ks[10], (B, S1, HIDDEN), jnp.float32)
    s2 = jax.random.normal(ks[11], (B, S2, HIDDEN), jnp.float32)
    # BERT extended attention mask (B,1,1,S2): 0 = attend, -10000 = masked.
    lens = jnp.array([S2, S2 - 5, S2 - 1, 3])
    keep = (jnp.arange(S2)[None, :] < lens[:, None]).astype(jnp.float32)
    ext_mask = ((1.0 - keep) * -10000.0).reshape(B, 1, 1, S2)

    params = prepare_params(wq, bq, wk, bk, wv, bv, wd, bd, ln_w, ln_b)

    out = bert_cross_attention(s1, s2, ext_mask, params)
    out = jax.block_until_ready(out)

    ref = _reference(s1, s2, ext_mask, params)
    assert out.shape == (B, S1, HIDDEN)
    max_err = float(jnp.max(jnp.abs(out - ref)))
    assert jnp.allclose(out, ref, atol=2e-2, rtol=2e-2), f"max abs err {max_err}"

    print("KERNEL_OK")
</pallas_src>

<mosaic_0001>
module attributes {stable_mosaic.version = 11 : i64} {
  func.func @_cross_attn_kernel(%arg0: i32, %arg1: memref<2x8x768xf32, #tpu.memory_space<vmem>>, %arg2: memref<2x16x768xf32, #tpu.memory_space<vmem>>, %arg3: memref<2x1x16xf32, #tpu.memory_space<vmem>>, %arg4: memref<768x768xbf16, #tpu.memory_space<vmem>>, %arg5: memref<1x768xf32, #tpu.memory_space<vmem>>, %arg6: memref<768x768xbf16, #tpu.memory_space<vmem>>, %arg7: memref<1x768xf32, #tpu.memory_space<vmem>>, %arg8: memref<768x768xbf16, #tpu.memory_space<vmem>>, %arg9: memref<1x768xf32, #tpu.memory_space<vmem>>, %arg10: memref<768x768xbf16, #tpu.memory_space<vmem>>, %arg11: memref<1x768xf32, #tpu.memory_space<vmem>>, %arg12: memref<1x768xf32, #tpu.memory_space<vmem>>, %arg13: memref<1x768xf32, #tpu.memory_space<vmem>>, %arg14: memref<2x8x768xf32, #tpu.memory_space<vmem>>) attributes {dimension_semantics = [#tpu.dimension_semantics<parallel>], iteration_bounds = array<i64: 2>, scalar_prefetch = 0 : i64, scratch_operands = 0 : i64, tpu.core_type = #tpu.core_type<tc>, window_params = [{transform_indices = @transform_0, window_bounds = array<i64: 2, 8, 768>}, {transform_indices = @transform_1, window_bounds = array<i64: 2, 16, 768>}, {transform_indices = @transform_2, window_bounds = array<i64: 2, 1, 16>}, {pipeline_mode = #tpu.pipeline_mode<synchronous>, transform_indices = @transform_3, window_bounds = array<i64: 768, 768>}, {pipeline_mode = #tpu.pipeline_mode<synchronous>, transform_indices = @transform_4, window_bounds = array<i64: 1, 768>}, {pipeline_mode = #tpu.pipeline_mode<synchronous>, transform_indices = @transform_5, window_bounds = array<i64: 768, 768>}, {pipeline_mode = #tpu.pipeline_mode<synchronous>, transform_indices = @transform_6, window_bounds = array<i64: 1, 768>}, {pipeline_mode = #tpu.pipeline_mode<synchronous>, transform_indices = @transform_7, window_bounds = array<i64: 768, 768>}, {pipeline_mode = #tpu.pipeline_mode<synchronous>, transform_indices = @transform_8, window_bounds = array<i64: 1, 768>}, {pipeline_mode = #tpu.pipeline_mode<synchronous>, transform_indices = @transform_9, window_bounds = array<i64: 768, 768>}, {pipeline_mode = #tpu.pipeline_mode<synchronous>, transform_indices = @transform_10, window_bounds = array<i64: 1, 768>}, {pipeline_mode = #tpu.pipeline_mode<synchronous>, transform_indices = @transform_11, window_bounds = array<i64: 1, 768>}, {pipeline_mode = #tpu.pipeline_mode<synchronous>, transform_indices = @transform_12, window_bounds = array<i64: 1, 768>}, {transform_indices = @transform_13, window_bounds = array<i64: 2, 8, 768>}]} {
    %c0 = arith.constant 0 : index
    %c0_0 = arith.constant 0 : index
    %c0_1 = arith.constant 0 : index
    %0 = vector.load %arg1[%c0, %c0_0, %c0_1] : memref<2x8x768xf32, #tpu.memory_space<vmem>>, vector<2x8x768xf32>
    %c0_2 = arith.constant 0 : index
    %c0_3 = arith.constant 0 : index
    %c0_4 = arith.constant 0 : index
    %1 = vector.load %arg2[%c0_2, %c0_3, %c0_4] : memref<2x16x768xf32, #tpu.memory_space<vmem>>, vector<2x16x768xf32>
    %c0_5 = arith.constant 0 : index
    %c0_6 = arith.constant 0 : index
    %c0_7 = arith.constant 0 : index
    %2 = vector.load %arg3[%c0_5, %c0_6, %c0_7] : memref<2x1x16xf32, #tpu.memory_space<vmem>>, vector<2x1x16xf32>
    %3 = vector.shape_cast %0 : vector<2x8x768xf32> to vector<16x768xf32>
    %4 = vector.shape_cast %1 : vector<2x16x768xf32> to vector<32x768xf32>
    %5 = arith.truncf %3 : vector<16x768xf32> to vector<16x768xbf16>
    %c0_8 = arith.constant 0 : index
    %c0_9 = arith.constant 0 : index
    %6 = vector.load %arg4[%c0_8, %c0_9] : memref<768x768xbf16, #tpu.memory_space<vmem>>, vector<768x768xbf16>
    %cst = arith.constant dense<0.000000e+00> : vector<16x768xf32>
    %7 = tpu.matmul %5, %6, %cst {dimension_numbers = #tpu.dot_dimension_numbers<[1], [1], [0], [0], [0, 0, 1, 0], [], []>} : vector<16x768xbf16>, vector<768x768xbf16>, vector<16x768xf32> -> vector<16x768xf32>
    %c0_10 = arith.constant 0 : index
    %c0_11 = arith.constant 0 : index
    %8 = vector.load %arg5[%c0_10, %c0_11] : memref<1x768xf32, #tpu.memory_space<vmem>>, vector<1x768xf32>
    %9 = vector.broadcast %8 : vector<1x768xf32> to vector<16x768xf32>
    %10 = arith.addf %7, %9 : vector<16x768xf32>
    %11 = arith.truncf %4 : vector<32x768xf32> to vector<32x768xbf16>
    %c0_12 = arith.constant 0 : index
    %c0_13 = arith.constant 0 : index
    %12 = vector.load %arg6[%c0_12, %c0_13] : memref<768x768xbf16, #tpu.memory_space<vmem>>, vector<768x768xbf16>
    %cst_14 = arith.constant dense<0.000000e+00> : vector<32x768xf32>
    %13 = tpu.matmul %11, %12, %cst_14 {dimension_numbers = #tpu.dot_dimension_numbers<[1], [1], [0], [0], [0, 0, 1, 0], [], []>} : vector<32x768xbf16>, vector<768x768xbf16>, vector<32x768xf32> -> vector<32x768xf32>
    %c0_15 = arith.constant 0 : index
    %c0_16 = arith.constant 0 : index
    %14 = vector.load %arg7[%c0_15, %c0_16] : memref<1x768xf32, #tpu.memory_space<vmem>>, vector<1x768xf32>
    %15 = vector.broadcast %14 : vector<1x768xf32> to vector<32x768xf32>
    %16 = arith.addf %13, %15 : vector<32x768xf32>
    %17 = arith.truncf %4 : vector<32x768xf32> to vector<32x768xbf16>
    %c0_17 = arith.constant 0 : index
    %c0_18 = arith.constant 0 : index
    %18 = vector.load %arg8[%c0_17, %c0_18] : memref<768x768xbf16, #tpu.memory_space<vmem>>, vector<768x768xbf16>
    %cst_19 = arith.constant dense<0.000000e+00> : vector<32x768xf32>
    %19 = tpu.matmul %17, %18, %cst_19 {dimension_numbers = #tpu.dot_dimension_numbers<[1], [1], [0], [0], [0, 0, 1, 0], [], []>} : vector<32x768xbf16>, vector<768x768xbf16>, vector<32x768xf32> -> vector<32x768xf32>
    %c0_20 = arith.constant 0 : index
    %c0_21 = arith.constant 0 : index
    %20 = vector.load %arg9[%c0_20, %c0_21] : memref<1x768xf32, #tpu.memory_space<vmem>>, vector<1x768xf32>
    %21 = vector.broadcast %20 : vector<1x768xf32> to vector<32x768xf32>
    %22 = arith.addf %19, %21 : vector<32x768xf32>
    %23 = arith.truncf %10 : vector<16x768xf32> to vector<16x768xbf16>
    %24 = arith.truncf %16 : vector<32x768xf32> to vector<32x768xbf16>
    %25 = arith.truncf %22 : vector<32x768xf32> to vector<32x768xbf16>
    %26 = vector.extract_strided_slice %23 {offsets = [0, 0], sizes = [8, 768], strides = [1, 1]} : vector<16x768xbf16> to vector<8x768xbf16>
    %27 = vector.shape_cast %26 : vector<8x768xbf16> to vector<8x12x64xbf16>
    %28 = tpu.transpose %27, [1, 0, 2] : vector<8x12x64xbf16> -> vector<12x8x64xbf16>
    %29 = vector.extract_strided_slice %24 {offsets = [0, 0], sizes = [16, 768], strides = [1, 1]} : vector<32x768xbf16> to vector<16x768xbf16>
    %30 = vector.shape_cast %29 : vector<16x768xbf16> to vector<16x12x64xbf16>
    %31 = tpu.transpose %30, [1, 0, 2] : vector<16x12x64xbf16> -> vector<12x16x64xbf16>
    %32 = vector.extract_strided_slice %25 {offsets = [0, 0], sizes = [16, 768], strides = [1, 1]} : vector<32x768xbf16> to vector<16x768xbf16>
    %33 = vector.shape_cast %32 : vector<16x768xbf16> to vector<16x12x64xbf16>
    %34 = tpu.transpose %33, [1, 0, 2] : vector<16x12x64xbf16> -> vector<12x16x64xbf16>
    "tpu.trace_start"() <{level = 10 : i32, message = "hqd,hkd->hqk"}> : () -> ()
    %cst_22 = arith.constant dense<0.000000e+00> : vector<12x8x16xf32>
    %35 = tpu.matmul %28, %31, %cst_22 {dimension_numbers = #tpu.dot_dimension_numbers<[2], [2], [1], [1], [0, 0, 0, 1, 1, 1], [0], [0]>} : vector<12x8x64xbf16>, vector<12x16x64xbf16>, vector<12x8x16xf32> -> vector<12x8x16xf32>
    "tpu.trace_stop"() : () -> ()
    %36 = vector.extract_strided_slice %2 {offsets = [0, 0, 0], sizes = [1, 1, 16], strides = [1, 1, 1]} : vector<2x1x16xf32> to vector<1x1x16xf32>
    %37 = vector.shape_cast %36 : vector<1x1x16xf32> to vector<1x16xf32>
    %38 = vector.shape_cast %37 : vector<1x16xf32> to vector<1x1x16xf32>
    %39 = vector.broadcast %38 : vector<1x1x16xf32> to vector<12x8x16xf32>
    %40 = arith.addf %35, %39 : vector<12x8x16xf32>
    %cst_23 = arith.constant dense<0xFF800000> : vector<12x8xf32>
    %41 = vector.multi_reduction <maximumf>, %40, %cst_23 [2] : vector<12x8x16xf32> to vector<12x8xf32>
    %42 = vector.shape_cast %41 : vector<12x8xf32> to vector<12x8x1xf32>
    %43 = vector.broadcast %42 : vector<12x8x1xf32> to vector<12x8x16xf32>
    %44 = arith.subf %40, %43 : vector<12x8x16xf32>
    %45 = math.exp %44 : vector<12x8x16xf32>
    %cst_24 = arith.constant dense<0.000000e+00> : vector<12x8xf32>
    %46 = vector.multi_reduction <add>, %45, %cst_24 [2] : vector<12x8x16xf32> to vector<12x8xf32>
    %47 = vector.shape_cast %46 : vector<12x8xf32> to vector<12x8x1xf32>
    %48 = arith.truncf %45 : vector<12x8x16xf32> to vector<12x8x16xbf16>
    "tpu.trace_start"() <{level = 10 : i32, message = "hqk,hkd->hqd"}> : () -> ()
    %cst_25 = arith.constant dense<0.000000e+00> : vector<12x8x64xf32>
    %49 = tpu.matmul %48, %34, %cst_25 {dimension_numbers = #tpu.dot_dimension_numbers<[2], [1], [1], [2], [0, 0, 0, 1, 1, 2], [0], [0]>} : vector<12x8x16xbf16>, vector<12x16x64xbf16>, vector<12x8x64xf32> -> vector<12x8x64xf32>
    "tpu.trace_stop"() : () -> ()
    %50 = tpu.reciprocal %47 {approx = true} : vector<12x8x1xf32> -> vector<12x8x1xf32>
    %51 = vector.broadcast %50 : vector<12x8x1xf32> to vector<12x8x64xf32>
    %52 = arith.mulf %49, %51 : vector<12x8x64xf32>
    %53 = tpu.transpose %52, [1, 0, 2] : vector<12x8x64xf32> -> vector<8x12x64xf32>
    %54 = vector.shape_cast %53 : vector<8x12x64xf32> to vector<8x768xf32>
    %55 = vector.extract_strided_slice %23 {offsets = [8, 0], sizes = [8, 768], strides = [1, 1]} : vector<16x768xbf16> to vector<8x768xbf16>
    %56 = vector.shape_cast %55 : vector<8x768xbf16> to vector<8x12x64xbf16>
    %57 = tpu.transpose %56, [1, 0, 2] : vector<8x12x64xbf16> -> vector<12x8x64xbf16>
    %58 = vector.extract_strided_slice %24 {offsets = [16, 0], sizes = [16, 768], strides = [1, 1]} : vector<32x768xbf16> to vector<16x768xbf16>
    %59 = vector.shape_cast %58 : vector<16x768xbf16> to vector<16x12x64xbf16>
    %60 = tpu.transpose %59, [1, 0, 2] : vector<16x12x64xbf16> -> vector<12x16x64xbf16>
    %61 = vector.extract_strided_slice %25 {offsets = [16, 0], sizes = [16, 768], strides = [1, 1]} : vector<32x768xbf16> to vector<16x768xbf16>
    %62 = vector.shape_cast %61 : vector<16x768xbf16> to vector<16x12x64xbf16>
    %63 = tpu.transpose %62, [1, 0, 2] : vector<16x12x64xbf16> -> vector<12x16x64xbf16>
    "tpu.trace_start"() <{level = 10 : i32, message = "hqd,hkd->hqk"}> : () -> ()
    %cst_26 = arith.constant dense<0.000000e+00> : vector<12x8x16xf32>
    %64 = tpu.matmul %57, %60, %cst_26 {dimension_numbers = #tpu.dot_dimension_numbers<[2], [2], [1], [1], [0, 0, 0, 1, 1, 1], [0], [0]>} : vector<12x8x64xbf16>, vector<12x16x64xbf16>, vector<12x8x16xf32> -> vector<12x8x16xf32>
    "tpu.trace_stop"() : () -> ()
    %65 = vector.extract_strided_slice %2 {offsets = [1, 0, 0], sizes = [1, 1, 16], strides = [1, 1, 1]} : vector<2x1x16xf32> to vector<1x1x16xf32>
    %66 = vector.shape_cast %65 : vector<1x1x16xf32> to vector<1x16xf32>
    %67 = vector.shape_cast %66 : vector<1x16xf32> to vector<1x1x16xf32>
    %68 = vector.broadcast %67 : vector<1x1x16xf32> to vector<12x8x16xf32>
    %69 = arith.addf %64, %68 : vector<12x8x16xf32>
    %cst_27 = arith.constant dense<0xFF800000> : vector<12x8xf32>
    %70 = vector.multi_reduction <maximumf>, %69, %cst_27 [2] : vector<12x8x16xf32> to vector<12x8xf32>
    %71 = vector.shape_cast %70 : vector<12x8xf32> to vector<12x8x1xf32>
    %72 = vector.broadcast %71 : vector<12x8x1xf32> to vector<12x8x16xf32>
    %73 = arith.subf %69, %72 : vector<12x8x16xf32>
    %74 = math.exp %73 : vector<12x8x16xf32>
    %cst_28 = arith.constant dense<0.000000e+00> : vector<12x8xf32>
    %75 = vector.multi_reduction <add>, %74, %cst_28 [2] : vector<12x8x16xf32> to vector<12x8xf32>
    %76 = vector.shape_cast %75 : vector<12x8xf32> to vector<12x8x1xf32>
    %77 = arith.truncf %74 : vector<12x8x16xf32> to vector<12x8x16xbf16>
    "tpu.trace_start"() <{level = 10 : i32, message = "hqk,hkd->hqd"}> : () -> ()
    %cst_29 = arith.constant dense<0.000000e+00> : vector<12x8x64xf32>
    %78 = tpu.matmul %77, %63, %cst_29 {dimension_numbers = #tpu.dot_dimension_numbers<[2], [1], [1], [2], [0, 0, 0, 1, 1, 2], [0], [0]>} : vector<12x8x16xbf16>, vector<12x16x64xbf16>, vector<12x8x64xf32> -> vector<12x8x64xf32>
    "tpu.trace_stop"() : () -> ()
    %79 = tpu.reciprocal %76 {approx = true} : vector<12x8x1xf32> -> vector<12x8x1xf32>
    %80 = vector.broadcast %79 : vector<12x8x1xf32> to vector<12x8x64xf32>
    %81 = arith.mulf %78, %80 : vector<12x8x64xf32>
    %82 = tpu.transpose %81, [1, 0, 2] : vector<12x8x64xf32> -> vector<8x12x64xf32>
    %83 = vector.shape_cast %82 : vector<8x12x64xf32> to vector<8x768xf32>
    %84 = tpu.concatenate %54, %83 in 0 : vector<8x768xf32>, vector<8x768xf32> -> vector<16x768xf32>
    %85 = arith.truncf %84 : vector<16x768xf32> to vector<16x768xbf16>
    %c0_30 = arith.constant 0 : index
    %c0_31 = arith.constant 0 : index
    %86 = vector.load %arg10[%c0_30, %c0_31] : memref<768x768xbf16, #tpu.memory_space<vmem>>, vector<768x768xbf16>
    %cst_32 = arith.constant dense<0.000000e+00> : vector<16x768xf32>
    %87 = tpu.matmul %85, %86, %cst_32 {dimension_numbers = #tpu.dot_dimension_numbers<[1], [1], [0], [0], [0, 0, 1, 0], [], []>} : vector<16x768xbf16>, vector<768x768xbf16>, vector<16x768xf32> -> vector<16x768xf32>
    %c0_33 = arith.constant 0 : index
    %c0_34 = arith.constant 0 : index
    %88 = vector.load %arg11[%c0_33, %c0_34] : memref<1x768xf32, #tpu.memory_space<vmem>>, vector<1x768xf32>
    %89 = vector.broadcast %88 : vector<1x768xf32> to vector<16x768xf32>
    %90 = arith.addf %87, %89 : vector<16x768xf32>
    %91 = arith.addf %90, %3 : vector<16x768xf32>
    %cst_35 = arith.constant dense<0.000000e+00> : vector<16xf32>
    %92 = vector.multi_reduction <add>, %91, %cst_35 [1] : vector<16x768xf32> to vector<16xf32>
    %93 = vector.shape_cast %92 : vector<16xf32> to vector<16x1xf32>
    %cst_36 = arith.constant 7.680000e+02 : f32
    %94 = vector.broadcast %cst_36 : f32 to vector<16x1xf32>
    %95 = arith.divf %93, %94 : vector<16x1xf32>
    %96 = vector.broadcast %95 : vector<16x1xf32> to vector<16x768xf32>
    %97 = arith.subf %91, %96 : vector<16x768xf32>
    %98 = arith.mulf %97, %97 : vector<16x768xf32>
    %cst_37 = arith.constant dense<0.000000e+00> : vector<16xf32>
    %99 = vector.multi_reduction <add>, %98, %cst_37 [1] : vector<16x768xf32> to vector<16xf32>
    %100 = vector.shape_cast %99 : vector<16xf32> to vector<16x1xf32>
    %cst_38 = arith.constant 7.680000e+02 : f32
    %101 = vector.broadcast %cst_38 : f32 to vector<16x1xf32>
    %102 = arith.divf %100, %101 : vector<16x1xf32>
    %cst_39 = arith.constant 9.99999996E-13 : f32
    %103 = vector.broadcast %cst_39 : f32 to vector<16x1xf32>
    %104 = arith.addf %102, %103 : vector<16x1xf32>
    %105 = math.rsqrt %104 : vector<16x1xf32>
    %106 = vector.broadcast %105 : vector<16x1xf32> to vector<16x768xf32>
    %107 = arith.mulf %97, %106 : vector<16x768xf32>
    %c0_40 = arith.constant 0 : index
    %c0_41 = arith.constant 0 : index
    %108 = vector.load %arg12[%c0_40, %c0_41] : memref<1x768xf32, #tpu.memory_space<vmem>>, vector<1x768xf32>
    %109 = vector.broadcast %108 : vector<1x768xf32> to vector<16x768xf32>
    %110 = arith.mulf %109, %107 : vector<16x768xf32>
    %c0_42 = arith.constant 0 : index
    %c0_43 = arith.constant 0 : index
    %111 = vector.load %arg13[%c0_42, %c0_43] : memref<1x768xf32, #tpu.memory_space<vmem>>, vector<1x768xf32>
    %112 = vector.broadcast %111 : vector<1x768xf32> to vector<16x768xf32>
    %113 = arith.addf %110, %112 : vector<16x768xf32>
    %114 = vector.shape_cast %113 : vector<16x768xf32> to vector<2x8x768xf32>
    %c0_44 = arith.constant 0 : index
    %c0_45 = arith.constant 0 : index
    %c0_46 = arith.constant 0 : index
    %115 = vector.load %arg14[%c0_44, %c0_45, %c0_46] : memref<2x8x768xf32, #tpu.memory_space<vmem>>, vector<2x8x768xf32>
    tpu.vector_store %arg14[%c0_44, %c0_45, %c0_46], %114 {strides = array<i32>} : memref<2x8x768xf32, #tpu.memory_space<vmem>>, vector<2x8x768xf32>,
    return
  }
  func.func @transform_0(%arg0: i32) -> (i32, i32, i32) {
    %c0_i32 = arith.constant 0 : i32
    %c0_i32_0 = arith.constant 0 : i32
    %c0_i32_1 = arith.constant 0 : i32
    return %arg0, %c0_i32, %c0_i32_0 : i32, i32, i32
  }
  func.func @transform_1(%arg0: i32) -> (i32, i32, i32) {
    %c0_i32 = arith.constant 0 : i32
    %c0_i32_0 = arith.constant 0 : i32
    %c0_i32_1 = arith.constant 0 : i32
    return %arg0, %c0_i32, %c0_i32_0 : i32, i32, i32
  }
  func.func @transform_2(%arg0: i32) -> (i32, i32, i32) {
    %c0_i32 = arith.constant 0 : i32
    %c0_i32_0 = arith.constant 0 : i32
    %c0_i32_1 = arith.constant 0 : i32
    return %arg0, %c0_i32, %c0_i32_0 : i32, i32, i32
  }
  func.func @transform_3(%arg0: i32) -> (i32, i32) {
    %c0_i32 = arith.constant 0 : i32
    %c0_i32_0 = arith.constant 0 : i32
    %c0_i32_1 = arith.constant 0 : i32
    return %c0_i32, %c0_i32_0 : i32, i32
  }
  func.func @transform_4(%arg0: i32) -> (i32, i32) {
    %c0_i32 = arith.constant 0 : i32
    %c0_i32_0 = arith.constant 0 : i32
    %c0_i32_1 = arith.constant 0 : i32
    return %c0_i32, %c0_i32_0 : i32, i32
  }
  func.func @transform_5(%arg0: i32) -> (i32, i32) {
    %c0_i32 = arith.constant 0 : i32
    %c0_i32_0 = arith.constant 0 : i32
    %c0_i32_1 = arith.constant 0 : i32
    return %c0_i32, %c0_i32_0 : i32, i32
  }
  func.func @transform_6(%arg0: i32) -> (i32, i32) {
    %c0_i32 = arith.constant 0 : i32
    %c0_i32_0 = arith.constant 0 : i32
    %c0_i32_1 = arith.constant 0 : i32
    return %c0_i32, %c0_i32_0 : i32, i32
  }
  func.func @transform_7(%arg0: i32) -> (i32, i32) {
    %c0_i32 = arith.constant 0 : i32
    %c0_i32_0 = arith.constant 0 : i32
    %c0_i32_1 = arith.constant 0 : i32
    return %c0_i32, %c0_i32_0 : i32, i32
  }
  func.func @transform_8(%arg0: i32) -> (i32, i32) {
    %c0_i32 = arith.constant 0 : i32
    %c0_i32_0 = arith.constant 0 : i32
    %c0_i32_1 = arith.constant 0 : i32
    return %c0_i32, %c0_i32_0 : i32, i32
  }
  func.func @transform_9(%arg0: i32) -> (i32, i32) {
    %c0_i32 = arith.constant 0 : i32
    %c0_i32_0 = arith.constant 0 : i32
    %c0_i32_1 = arith.constant 0 : i32
    return %c0_i32, %c0_i32_0 : i32, i32
  }
  func.func @transform_10(%arg0: i32) -> (i32, i32) {
    %c0_i32 = arith.constant 0 : i32
    %c0_i32_0 = arith.constant 0 : i32
    %c0_i32_1 = arith.constant 0 : i32
    return %c0_i32, %c0_i32_0 : i32, i32
  }
  func.func @transform_11(%arg0: i32) -> (i32, i32) {
    %c0_i32 = arith.constant 0 : i32
    %c0_i32_0 = arith.constant 0 : i32
    %c0_i32_1 = arith.constant 0 : i32
    return %c0_i32, %c0_i32_0 : i32, i32
  }
  func.func @transform_12(%arg0: i32) -> (i32, i32) {
    %c0_i32 = arith.constant 0 : i32
    %c0_i32_0 = arith.constant 0 : i32
    %c0_i32_1 = arith.constant 0 : i32
    return %c0_i32, %c0_i32_0 : i32, i32
  }
  func.func @transform_13(%arg0: i32) -> (i32, i32, i32) {
    %c0_i32 = arith.constant 0 : i32
    %c0_i32_0 = arith.constant 0 : i32
    %c0_i32_1 = arith.constant 0 : i32
    return %arg0, %c0_i32, %c0_i32_0 : i32, i32, i32
  }
}

</mosaic_0001>

<bundles_post_ra>
// kernel: tpu_custom_call.1
= control target key start
LH: loop header
LB: loop body
LE: loop exit
PB: predicated region body
PF: predicated region fallthrough
CT: control target
= control target key end

     0   :  { %s23532_s0 = inlined_call_operand.hbm [shape: f32[4,8,768], index: 0, kind: input, shape index: {}]   ;;  %s23533_s1 = inlined_call_operand.hbm [shape: f32[4,16,768], index: 1, kind: input, shape index: {}]   ;;  %s23534_s2 = inlined_call_operand.hbm [shape: f32[4,1,16], index: 2, kind: input, shape index: {}]   ;;  %s23535_s3 = inlined_call_operand.hbm [shape: bf16[768,768], index: 3, kind: input, shape index: {}]   ;;  %s23536_s4 = inlined_call_operand.hbm [shape: f32[1,768], index: 4, kind: input, shape index: {}]   ;;  %s23537_s5 = inlined_call_operand.hbm [shape: bf16[768,768], index: 5, kind: input, shape index: {}]   ;;  %s23538_s6 = inlined_call_operand.hbm [shape: f32[1,768], index: 6, kind: input, shape index: {}]   ;;  %s23539_s7 = inlined_call_operand.hbm [shape: bf16[768,768], index: 7, kind: input, shape index: {}]   ;;  %s23540_s8 = inlined_call_operand.hbm [shape: f32[1,768], index: 8, kind: input, shape index: {}]   ;;  %s23541_s9 = inlined_call_operand.hbm [shape: bf16[768,768], index: 9, kind: input, shape index: {}]   ;;  %s23542_s10 = inlined_call_operand.hbm [shape: f32[1,768], index: 10, kind: input, shape index: {}]   ;;  %s23543_s11 = inlined_call_operand.hbm [shape: f32[1,768], index: 11, kind: input, shape index: {}]   ;;  %s23544_s12 = inlined_call_operand.hbm [shape: f32[1,768], index: 12, kind: input, shape index: {}]   ;;  %s23545_s13 = inlined_call_operand.hbm [shape: f32[4,8,768], index: 13, kind: output, shape index: {}]  }
   0x1   :  { %23620 = sst [smem:[#allocation79_spill]] %s23533_s1 }
   0x2   :  { %23621 = sst [smem:[#allocation80_spill]] %s23535_s3 }
   0x3   :  { %23622 = sst [smem:[#allocation81_spill]] %s23537_s5 }
   0x4   :  { %23623 = sst [smem:[#allocation82_spill]] %s23539_s7 }
   0x5   :  { %23624 = sst [smem:[#allocation83_spill]] %s23541_s9 }
   0x6   :  { %23625 = sst [smem:[#allocation84_spill]] %s23543_s11 }
   0x7   :  { %18 = vsyncpa [#allocation3], 0 }
   0x8   :  { %20 = vsyncpa [#allocation3 + $0x1], 0 }
   0x9   :  { %21 = vsyncpa [#allocation6], 0 }
   0xa   :  { %23 = vsyncpa [#allocation6 + $0x1], 0 }
   0xb   :  { %24 = vsyncpa [#allocation9], 0 }
   0xc   :  { %25 = vsyncpa [#allocation12], 0 }
   0xd   :  { %26 = vsyncpa [#allocation15], 0 }
   0xe   :  { %27 = vsyncpa [#allocation18], 0 }
   0xf   :  { %28 = vsyncpa [#allocation21], 0 }
  0x10   :  { %29 = vsyncpa [#allocation4], 0 }
  0x11   :  { %31 = vsyncpa [#allocation4 + $0x1], 0  ;;  %s20727_s25 = smov 0   ;;  %s20729_s26 = smov 0  }
  0x12   :  { %s20731_s27 = smov 0   ;;  %s20733_s28 = smov 0  }
  0x13 LB: > { %23626 = sst [smem:[#allocation32_spill]] %s20615_s25  ;;  %s20629_s29 = smov [#allocation8]   ;;  %s20627_s28 = sphi %s20733_s28, %s23817_s28   ;;  %s20623_s27 = sphi %s20731_s27, %s23819_s27   ;;  %s20619_s26 = sphi %s20729_s26, %s23821_s26   ;;  %s20615_s25 = sphi %s20727_s25, %s23820_s25  }
  0x14   : > { %23627 = sst [smem:[#allocation33_spill]] %s20623_s27  ;;  %s368_s30 = sshll.u32 %s20629_s29, 4  ;;  %s369_s30 = int_to_ptr.vmem [resolvable:$true] %s368_s30 }
  0x15   : > { %s20748_s14 = sadd.s32 4294967295, %s20627_s28   ;;  %p16400_p0 = scmp.ge.s32.totalorder %s20627_s28, 1 }
  0x16   : > { %p23551_p1 = scmp.eq.s32.totalorder %s20748_s14, 0  ;;  %p356_p2 = scmp.lt.s32.totalorder %s20627_s28, 3 }
  0x17   : > { %s20630_s16 = smov [#allocation11]   ;;  %s20631_s19 = smov [#allocation14]  }
  0x18   : > { %p20753_p3 = pnand %p16400_p0, %p356_p2  ;;  %s392_s17 = sshll.u32 %s20630_s16, 4  ;;  %s20766_s17 = int_to_ptr.vmem [resolvable:$true] %s392_s17 }
  0x19   : > { %s416_s20 = sshll.u32 %s20631_s19, 4  ;;  %s20206_s22 = scalar_lea.vmem %s369_s30, 36864  ;;  %s20768_s20 = int_to_ptr.vmem [resolvable:$true] %s416_s20 }
  0x1a   : > { %s23628_s15 = scalar_select %p20753_p3, 1, 0 }
  0x1b   : > { %p18198_p5 = pneg %p20753_p3  ;;  %p20207_p8 = scmp.ne.s32.totalorder %s369_s30, %s20206_s22 }
  0x1c   : > { %p20214_p11 = scmp.lt.s32.totalorder %s369_s30, %s369_s30  ;;  %p20215_p12 = scmp.lt.s32.totalorder %s20206_s22, %s20206_s22 }
  0x1d   : > { %p20762_p6 = pnand %p18198_p5, %p23551_p1 }
  0x1e   : > { %p20216_p13 = por %p20215_p12, %p20214_p11 }
  0x1f   : > { %s23629_s18 = scalar_select %p20762_p6, 1, 0 }
  0x20   : > { %p20772_p7 = pneg %p20762_p6 }
  0x22   : > { %s23630_s21 = scalar_select %p20772_p7, 1, 0 }
  0x23   : > { %p20209_p9 = pnand %p20207_p8, %p20772_p7 }
  0x25   : > { %p20210_p10 = pneg %p20209_p9 }
  0x27   : > { %p20217_p0 = pnand %p20216_p13, %p20210_p10 }
  0x29   : > { %20220 = shalt.err (!%p20217_p0)
}
  0x2a   : > { %s20632_s23 = smov 384   ;;  %s20633_s24 = smov 24  }
  0x2b   : > { %s23631_s3 = sld [smem:[#allocation80_spill]]  ;;  %s20232_s19 = scalar_lea.vmem %s20766_s17, 36864 }
  0x2c   : > { %p20233_p2 = scmp.ne.s32.totalorder %s20766_s17, %s20232_s19  ;;  %p20240_p9 = scmp.lt.s32.totalorder %s20766_s17, %s20766_s17 }
  0x2d   : > { %p20241_p10 = scmp.lt.s32.totalorder %s20232_s19, %s20232_s19 }
  0x2e   : > { %p20235_p5 = pnand %p20233_p2, %p20772_p7 }
  0x2f   : > { %p20242_p11 = por %p20241_p10, %p20240_p9 }
  0x30   : > { %p20236_p8 = pneg %p20235_p5 }
  0x31   : > { %18201 = dma.hbm_to_vmem [thread:$0]  (!%p20762_p6), %s23631_s3, 36864, %s369_s30, [#allocation9], %s20632_s23, %s20632_s23, %s20633_s24  }
  0x32   : > { %p20243_p12 = pnand %p20242_p11, %p20236_p8 }
  0x34   : > { %20246 = shalt.err (!%p20243_p12)
}
  0x35   : > { %s23632_s5 = sld [smem:[#allocation81_spill]]  ;;  %s20258_s30 = scalar_lea.vmem %s20768_s20, 36864 }
  0x36   : > { %p20259_p13 = scmp.ne.s32.totalorder %s20768_s20, %s20258_s30  ;;  %p20266_p5 = scmp.lt.s32.totalorder %s20768_s20, %s20768_s20 }
  0x37   : > { %p20267_p8 = scmp.lt.s32.totalorder %s20258_s30, %s20258_s30 }
  0x38   : > { %p20261_p0 = pnand %p20259_p13, %p20772_p7 }
  0x39   : > { %p20268_p9 = por %p20267_p8, %p20266_p5 }
  0x3a   : > { %p20262_p2 = pneg %p20261_p0 }
  0x3b   : > { %18207 = dma.hbm_to_vmem [thread:$0]  (!%p20762_p6), %s23632_s5, 36864, %s20766_s17, [#allocation12], %s20632_s23, %s20632_s23, %s20633_s24  }
  0x3c   : > { %p20269_p10 = pnand %p20268_p9, %p20262_p2 }
  0x3e   : > { %20272 = shalt.err (!%p20269_p10)
}
  0x3f   : > { %s23633_s7 = sld [smem:[#allocation82_spill]]  ;;  %s20634_s17 = smov [#allocation17]  }
  0x40   : > { %s440_s22 = sshll.u32 %s20634_s17, 4  ;;  %s20635_s29 = smov [#allocation20]   ;;  %s441_s22 = int_to_ptr.vmem [resolvable:$true] %s440_s22 }
  0x41   : > { %s465_s3 = sshll.u32 %s20635_s29, 4  ;;  %s20284_s30 = scalar_lea.vmem %s441_s22, 36864  ;;  %s466_s3 = int_to_ptr.vmem [resolvable:$true] %s465_s3 }
  0x42   : > { %p20285_p11 = scmp.ne.s32.totalorder %s441_s22, %s20284_s30  ;;  %p20292_p0 = scmp.lt.s32.totalorder %s441_s22, %s441_s22 }
  0x43   : > { %p20293_p2 = scmp.lt.s32.totalorder %s20284_s30, %s20284_s30 }
  0x44   : > { %p20287_p12 = pnand %p20285_p11, %p20772_p7 }
  0x45   : > { %18213 = dma.hbm_to_vmem [thread:$0]  (!%p20762_p6), %s23633_s7, 36864, %s20768_s20, [#allocation15], %s20632_s23, %s20632_s23, %s20633_s24  }
  0x46   : > { %p20288_p13 = pneg %p20287_p12  ;;  %p20294_p5 = por %p20293_p2, %p20292_p0 }
  0x48   : > { %p20295_p8 = pnand %p20294_p5, %p20288_p13 }
  0x4a   : > { %20298 = shalt.err (!%p20295_p8)
}
  0x4b   : > { %s23634_s9 = sld [smem:[#allocation83_spill]]  ;;  %s20310_s19 = scalar_lea.vmem %s466_s3, 96 }
  0x4c   : > { %p20311_p9 = scmp.ne.s32.totalorder %s466_s3, %s20310_s19  ;;  %p20318_p12 = scmp.lt.s32.totalorder %s466_s3, %s466_s3 }
  0x4d   : > { %p20319_p0 = scmp.lt.s32.totalorder %s20310_s19, %s20310_s19 }
  0x4e   : > { %p20313_p10 = pnand %p20311_p9, %p20772_p7 }
  0x4f   : > { %p20320_p13 = por %p20319_p0, %p20318_p12 }
  0x50   : > { %p20314_p11 = pneg %p20313_p10 }
  0x51   : > { %18219 = dma.hbm_to_vmem [thread:$0]  (!%p20762_p6), %s23634_s9, 36864, %s441_s22, [#allocation18], %s20632_s23, %s20632_s23, %s20633_s24  }
  0x52   : > { %p20321_p2 = pnand %p20320_p13, %p20314_p11 }
  0x54   : > { %20324 = shalt.err (!%p20321_p2)
}
  0x55   : > { %s23635_s11 = sld [smem:[#allocation84_spill]]  ;;  %s16399_s23 = sadd.s32 4294967294, %s20627_s28  }
  0x56   : > { %s20835_s24 = sadd.s32 1, %s20627_s28   ;;  %s44_s22 = sadd.s32 1, %s20623_s27 }
  0x57   : > { %23636 = sst [smem:[#allocation34_spill]] %s20835_s24  ;;  %s41_s30 = ssub.s32 %s20627_s28, %s20835_s24 }
  0x58   : > { %p51_p5 = scmp.ne.s32.totalorder %s20623_s27, %s20619_s26  ;;  %p42_p8 = scmp.eq.s32.totalorder %s41_s30, 0 }
  0x59   : > { %p52_p9 = scmp.eq.s32.totalorder %s20627_s28, 0  ;;  %p57_p10 = scmp.ne.s32.totalorder %s20619_s26, %s20615_s25 }
  0x5a   : > { %p343_p11 = scmp.eq.s32.totalorder %s20748_s14, 1  ;;  %p349_p2 = scmp.eq.s32.totalorder %s16399_s23, 1 }
  0x5b   : > { %18225 = dma.hbm_to_vmem [thread:$0]  (!%p20762_p6), %s23635_s11, 96, %s466_s3, [#allocation21]  }
  0x5c   : > { %s20847_s20 = scalar_select %p42_p8, %s20623_s27, %s44_s22  }
  0x5d   : > { %p53_p12 = por %p52_p9, %p51_p5  ;;  %p20851_p0 = por %p23551_p1, %p57_p10 }
  0x5e   : > { %23637 = sst [smem:[#allocation35_spill]] %s20847_s20  ;;  %p20855_p13 = por %p343_p11, %p51_p5 }
  0x5f   : > { %s23638_s3 = scalar_select %p20851_p0, 1, 0 }
  0x60   : > { %s23639_s16 = scalar_select %p20855_p13, 1, 0 }
  0x61   : > { %p18253_p4 = scmp.lt.s32.totalorder %s20627_s28, 2  ;;  %s20861_s19 = sand.u32 1, %s20623_s27  }
  0x62   : > { %p20863_p3 = por %p349_p2, %p57_p10  ;;  %s509_s22 = sand.u32 1, %s20627_s28  }
  0x63   : > { %p20867_p8 = pnand %p18253_p4, %p53_p12  ;;  %s18145_s30 = smul.u32 192, %s20861_s19 }
  0x64   : > { %s23640_s17 = scalar_select %p20863_p3, 1, 0 }
  0x65   : > { %s23642_s29 = scalar_select %p20867_p8, 1, 0 }
  0x66   : > { %23641 = sst [smem:[#allocation36_spill]] %s23640_s17  ;;  %s18146_s5 = smul.u32 3072, %s20627_s28 }
  0x67   : > { %s513_s7 = scalar_lea.vmem [#allocation5], %s18145_s30  ;;  %s23643_s1 = sld [smem:[#allocation79_spill]] }
  0x68   : > { %s521_s9 = sshll.u32 %s513_s7, 4  ;;  %s20881_s27 = scalar_lea.sflag [#allocation6], %s509_s22  ;;  %s20879_s9 = int_to_ptr.vmem [resolvable:$true] %s521_s9 }
  0x69   : > { %p20887_p5 = pneg %p20867_p8 }
  0x6b   : > { %s23644_s17 = scalar_select %p20887_p5, 1, 0 }
  0x6d   : > { %s20877_s20 = scalar_lea.hbm %s23643_s1, %s18146_s5  ;;  %s20330_s11 = scalar_lea.hbm %s23643_s1, 6144 }
  0x6e   : > { %s20325_s24 = scalar_lea.hbm %s20877_s20, 3072  ;;  %p20331_p11 = scmp.lt.s32.totalorder %s20877_s20, %s23643_s1 }
  0x6f   : > { %p20326_p4 = scmp.ne.s32.totalorder %s20877_s20, %s20325_s24  ;;  %p20332_p12 = scmp.lt.s32.totalorder %s20330_s11, %s20325_s24 }
  0x71   : > { %p20328_p9 = pnand %p20887_p5, %p20326_p4  ;;  %p20333_p2 = por %p20332_p12, %p20331_p11 }
  0x73   : > { %p20329_p10 = pneg %p20328_p9 }
  0x75   : > { %p20334_p1 = pnand %p20333_p2, %p20329_p10 }
  0x77   : > { %20337 = shalt.err (!%p20334_p1)
}
  0x78   : > { %s20338_s22 = scalar_lea.vmem %s20879_s9, 3072  ;;  %s20636_s25 = smov [#allocation5]  }
  0x79   : > { %p20339_p3 = scmp.ne.s32.totalorder %s20879_s9, %s20338_s22  ;;  %s20343_s5 = sshll.u32 %s20636_s25, 4  ;;  %s20344_s5 = int_to_ptr.vmem [resolvable:$false] %s20343_s5 }
  0x7a   : > { %s20345_s7 = scalar_lea.vmem %s20344_s5, 6144  ;;  %p20346_p13 = scmp.lt.s32.totalorder %s20879_s9, %s20344_s5 }
  0x7b   : > { %p20341_p4 = pnand %p20339_p3, %p20887_p5  ;;  %p20347_p0 = scmp.lt.s32.totalorder %s20345_s7, %s20338_s22 }
  0x7d   : > { %p20342_p9 = pneg %p20341_p4  ;;  %p20348_p6 = por %p20347_p0, %p20346_p13 }
  0x7f   : > { %p20349_p7 = pnand %p20348_p6, %p20342_p9 }
  0x81   : > { %20352 = shalt.err (!%p20349_p7)
}
  0x82   : > { %s23563_s24 = smov 768   ;;  %s20638_s11 = smov 48  }
  0x83   : > { %18235 = dma.hbm_to_vmem [thread:$0]  (!%p20867_p8), %s20877_s20, 3072, %s20879_s9, %s20881_s27, %s23563_s24, %s23563_s24, %s20638_s11  }
  0x84   : > { %s20639_s25 = smov [#allocation10]   ;;  %s20640_s23 = smov [#allocation13]  }
  0x85   : > { %s382_s30 = sshll.u32 %s20639_s25, 4  ;;  %s406_s22 = sshll.u32 %s20640_s23, 4  ;;  %s383_s30 = int_to_ptr.vmem [resolvable:$true] %s382_s30  ;;  %s407_s22 = int_to_ptr.vmem [resolvable:$true] %s406_s22 }
  0x86   : > { %s20364_s5 = scalar_lea.vmem %s383_s30, 96  ;;  %p23645_p3 = scmp.ne.s32.totalorder %s23630_s21, 0 }
  0x87   : > { %p20365_p1 = scmp.ne.s32.totalorder %s383_s30, %s20364_s5  ;;  %p20372_p0 = scmp.lt.s32.totalorder %s383_s30, %s383_s30 }
  0x88   : > { %p20373_p13 = scmp.lt.s32.totalorder %s20364_s5, %s20364_s5 }
  0x89   : > { %p20367_p6 = pnand %p20365_p1, %p23645_p3 }
  0x8a   : > { %p20374_p10 = por %p20373_p13, %p20372_p0 }
  0x8b   : > { %p20368_p7 = pneg %p20367_p6 }
  0x8d   : > { %p20375_p11 = pnand %p20374_p10, %p20368_p7 }
  0x8f   : > { %20378 = shalt.err (!%p20375_p11)
}
  0x90   : > { %p23646_p12 = scmp.ne.s32.totalorder %s23629_s18, 0  ;;  %s20390_s9 = scalar_lea.vmem %s407_s22, 96 }
  0x91   : > { %p20391_p2 = scmp.ne.s32.totalorder %s407_s22, %s20390_s9  ;;  %p20398_p1 = scmp.lt.s32.totalorder %s407_s22, %s407_s22 }
  0x92   : > { %18204 = dma.hbm_to_vmem [thread:$0]  (!%p23646_p12), %s23536_s4, 96, %s383_s30, [#allocation9]  }
  0x93   : > { %p20393_p4 = pnand %p20391_p2, %p23645_p3  ;;  %p20399_p6 = scmp.lt.s32.totalorder %s20390_s9, %s20390_s9 }
  0x95   : > { %p20394_p9 = pneg %p20393_p4  ;;  %p20400_p8 = por %p20399_p6, %p20398_p1 }
  0x97   : > { %p20401_p5 = pnand %p20400_p8, %p20394_p9 }
  0x99   : > { %20404 = shalt.err (!%p20401_p5)
}
  0x9a   : > { %18210 = dma.hbm_to_vmem [thread:$0]  (!%p23646_p12), %s23538_s6, 96, %s407_s22, [#allocation12]  }
  0x9b   : > { %s20641_s1 = smov [#allocation16]   ;;  %s20642_s23 = smov [#allocation19]  }
  0x9c   : > { %s430_s30 = sshll.u32 %s20641_s1, 4  ;;  %s454_s5 = sshll.u32 %s20642_s23, 4  ;;  %s431_s30 = int_to_ptr.vmem [resolvable:$true] %s430_s30  ;;  %s455_s5 = int_to_ptr.vmem [resolvable:$true] %s454_s5 }
  0x9d   : > { %s20416_s7 = scalar_lea.vmem %s431_s30, 96  ;;  %p20424_p10 = scmp.lt.s32.totalorder %s431_s30, %s431_s30 }
  0x9e   : > { %p20417_p7 = scmp.ne.s32.totalorder %s431_s30, %s20416_s7  ;;  %p20425_p8 = scmp.lt.s32.totalorder %s20416_s7, %s20416_s7 }
  0xa0   : > { %p20419_p0 = pnand %p20417_p7, %p23645_p3  ;;  %p20426_p5 = por %p20425_p8, %p20424_p10 }
  0xa2   : > { %p20420_p13 = pneg %p20419_p0 }
  0xa4   : > { %p20427_p11 = pnand %p20426_p5, %p20420_p13 }
  0xa6   : > { %20430 = shalt.err (!%p20427_p11)
}
  0xa7   : > { %18216 = dma.hbm_to_vmem [thread:$0]  (!%p23646_p12), %s23540_s8, 96, %s431_s30, [#allocation15]  }
  0xa8   : > { %s20442_s22 = scalar_lea.vmem %s455_s5, 96  ;;  %p20450_p1 = scmp.lt.s32.totalorder %s455_s5, %s455_s5 }
  0xa9   : > { %p20443_p2 = scmp.ne.s32.totalorder %s455_s5, %s20442_s22  ;;  %p20451_p6 = scmp.lt.s32.totalorder %s20442_s22, %s20442_s22 }
  0xab   : > { %p20445_p4 = pnand %p20443_p2, %p23645_p3  ;;  %p20452_p7 = por %p20451_p6, %p20450_p1 }
  0xad   : > { %p20446_p9 = pneg %p20445_p4 }
  0xaf   : > { %p20453_p0 = pnand %p20452_p7, %p20446_p9 }
  0xb1   : > { %20456 = shalt.err (!%p20453_p0)
}
  0xb2   : > { %18222 = dma.hbm_to_vmem [thread:$0]  (!%p23646_p12), %s23542_s10, 96, %s455_s5, [#allocation18]  }
  0xb3   : > { %s20643_s30 = smov [#allocation22]   ;;  %s18143_s7 = smul.u32 96, %s20861_s19 }
  0xb4   : > { %s476_s23 = sshll.u32 %s20643_s30, 4  ;;  %s477_s23 = int_to_ptr.vmem [resolvable:$true] %s476_s23 }
  0xb5   : > { %s20468_s9 = scalar_lea.vmem %s477_s23, 96  ;;  %p20476_p5 = scmp.lt.s32.totalorder %s477_s23, %s477_s23 }
  0xb6   : > { %p20469_p13 = scmp.ne.s32.totalorder %s477_s23, %s20468_s9  ;;  %p20477_p11 = scmp.lt.s32.totalorder %s20468_s9, %s20468_s9 }
  0xb8   : > { %p20471_p10 = pnand %p20469_p13, %p23645_p3  ;;  %p20478_p2 = por %p20477_p11, %p20476_p5 }
  0xba   : > { %p20472_p8 = pneg %p20471_p10 }
  0xbc   : > { %p20479_p4 = pnand %p20478_p2, %p20472_p8 }
  0xbe   : > { %20482 = shalt.err (!%p20479_p4)
}
  0xbf   : > { %18228 = dma.hbm_to_vmem [thread:$0]  (!%p23646_p12), %s23544_s12, 96, %s477_s23, [#allocation21]  }
  0xc0   : > { %s18144_s5 = smul.u32 1536, %s20627_s28  ;;  %s491_s25 = scalar_lea.vmem [#allocation2], %s18143_s7 }
  0xc1   : > { %s499_s21 = sshll.u32 %s491_s25, 4  ;;  %s488_s18 = scalar_lea.sflag [#allocation3], %s20861_s19  ;;  %s20956_s21 = int_to_ptr.vmem [resolvable:$true] %s499_s21 }
  0xc2   : > { %s20954_s9 = scalar_lea.hbm %s23532_s0, %s18144_s5  ;;  %p23647_p9 = scmp.ne.s32.totalorder %s23644_s17, 0 }
  0xc3   : > { %s20483_s20 = scalar_lea.hbm %s20954_s9, 1536  ;;  %s20488_s22 = scalar_lea.hbm %s23532_s0, 3072 }
  0xc4   : > { %p20484_p3 = scmp.ne.s32.totalorder %s20954_s9, %s20483_s20  ;;  %p20489_p6 = scmp.lt.s32.totalorder %s20954_s9, %s23532_s0 }
  0xc5   : > { %p20490_p7 = scmp.lt.s32.totalorder %s20488_s22, %s20483_s20 }
  0xc6   : > { %p20486_p1 = pnand %p20484_p3, %p23647_p9 }
  0xc7   : > { %p20491_p0 = por %p20490_p7, %p20489_p6 }
  0xc8   : > { %p20487_p12 = pneg %p20486_p1 }
  0xca   : > { %p20492_p13 = pnand %p20491_p0, %p20487_p12 }
  0xcc   : > { %20495 = shalt.err (!%p20492_p13)
}
  0xcd   : > { %s20496_s24 = scalar_lea.vmem %s20956_s21, 1536  ;;  %s20644_s5 = smov [#allocation2]  }
  0xce   : > { %p20497_p10 = scmp.ne.s32.totalorder %s20956_s21, %s20496_s24  ;;  %s20501_s30 = sshll.u32 %s20644_s5, 4  ;;  %s20502_s30 = int_to_ptr.vmem [resolvable:$false] %s20501_s30 }
  0xcf   : > { %s20503_s23 = scalar_lea.vmem %s20502_s30, 3072  ;;  %p20504_p11 = scmp.lt.s32.totalorder %s20956_s21, %s20502_s30 }
  0xd0   : > { %p20499_p8 = pnand %p20497_p10, %p23647_p9  ;;  %p20505_p2 = scmp.lt.s32.totalorder %s20503_s23, %s20496_s24 }
  0xd2   : > { %p20500_p5 = pneg %p20499_p8  ;;  %p20506_p4 = por %p20505_p2, %p20504_p11 }
  0xd4   : > { %p20507_p3 = pnand %p20506_p4, %p20500_p5 }
  0xd6   : > { %20510 = shalt.err (!%p20507_p3)
}
  0xd7   : > { %p23648_p1 = scmp.ne.s32.totalorder %s23642_s29, 0  ;;  %s23649_s1 = smov 768  }
  0xd8   : > { %s17726_s20 = sshll.u32 %s20627_s28, 5  ;;  %s23650_s24 = sshll.u32 %s20861_s19, 1 }
  0xd9   : > { %18232 = dma.hbm_to_vmem [thread:$0]  (!%p23648_p1), %s20954_s9, 1536, %s20956_s21, %s488_s18, %s23649_s1, %s23649_s1, %s20638_s11  }
  0xda   : > { %s20986_s25 = scalar_lea.hbm %s23534_s2, %s17726_s20  ;;  %s535_s5 = scalar_lea.vmem [#allocation7], %s23650_s24 }
  0xdb   : > { %s542_s30 = sshll.u32 %s535_s5, 4  ;;  %s20511_s23 = scalar_lea.hbm %s20986_s25, 32  ;;  %s20990_s30 = int_to_ptr.vmem [resolvable:$true] %s542_s30 }
  0xdc   : > { %p20512_p12 = scmp.ne.s32.totalorder %s20986_s25, %s20511_s23  ;;  %s20516_s9 = scalar_lea.hbm %s23534_s2, 64 }
  0xdd   : > { %p20517_p0 = scmp.lt.s32.totalorder %s20986_s25, %s23534_s2  ;;  %p20518_p13 = scmp.lt.s32.totalorder %s20516_s9, %s20511_s23 }
  0xde   : > { %p20514_p6 = pnand %p20512_p12, %p23647_p9 }
  0xdf   : > { %p20519_p10 = por %p20518_p13, %p20517_p0 }
  0xe0   : > { %p20515_p7 = pneg %p20514_p6 }
  0xe2   : > { %p20520_p8 = pnand %p20519_p10, %p20515_p7 }
  0xe4   : > { %20523 = shalt.err (!%p20520_p8)
}
  0xe5   : > { %s20524_s19 = scalar_lea.vmem %s20990_s30, 32  ;;  %s20645_s20 = smov [#allocation7]  }
  0xe6   : > { %p20525_p5 = scmp.ne.s32.totalorder %s20990_s30, %s20524_s19  ;;  %s20529_s7 = sshll.u32 %s20645_s20, 4  ;;  %s20530_s7 = int_to_ptr.vmem [resolvable:$false] %s20529_s7 }
  0xe7   : > { %s20531_s22 = scalar_lea.vmem %s20530_s7, 64  ;;  %p20532_p4 = scmp.lt.s32.totalorder %s20990_s30, %s20530_s7 }
  0xe8   : > { %p20527_p11 = pnand %p20525_p5, %p23647_p9  ;;  %p20533_p3 = scmp.lt.s32.totalorder %s20531_s22, %s20524_s19 }
  0xea   : > { %p20528_p2 = pneg %p20527_p11  ;;  %p20534_p12 = por %p20533_p3, %p20532_p4 }
  0xec   : > { %p20535_p6 = pnand %p20534_p12, %p20528_p2 }
  0xee   : > { %20538 = shalt.err (!%p20535_p6)
}
  0xef   : > { %s20646_s24 = smov 16   ;;  %s20647_s5 = smov 1  }
  0xf0   : > { %18238 = dma.hbm_to_vmem [thread:$0]  (!%p23648_p1), %s20986_s25, 32, %s20990_s30, %s20881_s27, %s20646_s24, %s20646_s24, %s20647_s5  }
  0xf1   : > { %p23651_p9 = scmp.ne.s32.totalorder %s23628_s15, 0 }
  0xf3   : > { %554 = sbr.rel (%p23651_p9) target bundleno = 4431 (0x114f), region = 72 }
  0xf8   : > { %s21016_s17 = sand.u32 1, %s20619_s26   ;;  %p23652_p7 = scmp.ne.s32.totalorder %s23638_s3, 0 }
  0xf9   : > { %s18147_s23 = smul.u32 96, %s21016_s17  ;;  %s557_s11 = scalar_lea.sflag [#allocation3], %s21016_s17 }
  0xfb   : > { %s21022_s21 = scalar_lea.vmem [#allocation2], %s18147_s23 }
  0xfc   : > { %20582 = dma.done.wait (%p23652_p7), %s557_s11, 1536  }
  0xfd   : > { %20584 = vsyncadd (%p23652_p7), %s557_s11, 4294965760  ;;  %s565_s27 = sand.u32 1, %s20748_s14   ;;  %s18148_s15 = smul.u32 192, %s21016_s17 }
  0xfe   : > { %s566_s29 = scalar_lea.sflag [#allocation6], %s565_s27 }
  0xff   : > { %s21030_s25 = scalar_lea.vmem [#allocation5], %s18148_s15 }
 0x100   : > { %20586 = dma.done.wait (%p23652_p7), %s566_s29, 3104  }
 0x101   : > { %20588 = vsyncadd (%p23652_p7), %s566_s29, 4294964192  ;;  %s16422_s30 = sshll.u32 %s21016_s17, 1  ;;  %p23653_p1 = scmp.eq.s32.totalorder %s20748_s14, 0 }
 0x102   : > { %s21037_s9 = scalar_lea.vmem [#allocation7], %s16422_s30 }
 0x103   : > { %20590 = dma.done.wait (%p23653_p1), [#allocation9], 36960   ;;  %p23654_p0 = pmov %p23653_p1 }
 0x105   : > { %20592 = vsyncadd (%p23654_p0), [#allocation9], 4294930336  ;;  %p23655_p13 = pmov %p23654_p0 }
 0x106   : > { %p23656_p10 = pmov %p23654_p0 }
 0x107   : > { %20594 = dma.done.wait (%p23655_p13), [#allocation12], 36960  }
 0x108   : > { %20596 = vsyncadd (%p23656_p10), [#allocation12], 4294930336  ;;  %p23657_p8 = pmov %p23654_p0 }
 0x109   : > { %p23658_p5 = pmov %p23654_p0 }
 0x10a   : > { %20598 = dma.done.wait (%p23657_p8), [#allocation15], 36960  }
 0x10b   : > { %20600 = vsyncadd (%p23658_p5), [#allocation15], 4294930336  ;;  %p23659_p11 = pmov %p23654_p0 }
 0x10c   : > { %p23660_p2 = pmov %p23654_p0 }
 0x10d   : > { %20602 = dma.done.wait (%p23659_p11), [#allocation18], 36960  }
 0x10e   : > { %20604 = vsyncadd (%p23660_p2), [#allocation18], 4294930336  ;;  %p23661_p4 = pmov %p23654_p0 }
 0x10f   : > { %p23662_p3 = pmov %p23654_p0 }
 0x110   : > { %20606 = dma.done.wait (%p23661_p4), [#allocation21], 192  }
 0x111   : > { %20608 = vsyncadd (%p23662_p3), [#allocation21], 4294967104  ;;  %v18351_v0 = vld [vmem:[#allocation8 + $0x154] ss:$24 sps:$4 sm:$0xff]   ;;  %v18355_v2 = vld [vmem:[#allocation8 + $0x150] ss:$24 sps:$4 sm:$0xff]  }
 0x112   : > { %v18353_v1 = vld [vmem:[#allocation8 + $0x15c] ss:$24 sps:$4 sm:$0xff]   ;;  %2480 = vmatprep.subr.bf16.mxu0 %v18351_v0  ;;  %v18356_v3 = vld [vmem:[#allocation8 + $0x158] ss:$24 sps:$4 sm:$0xff]   ;;  %v18359_v5 = vld [vmem:[#allocation8 + $0x12c] ss:$24 sps:$4 sm:$0xff]  }
 0x113   : > { %2523 = vmatprep.subr.bf16.mxu1 %v18353_v1  ;;  %v18357_v4 = vld [vmem:[#allocation8 + $0x124] ss:$24 sps:$4 sm:$0xff]   ;;  %2481 = vmatpush1.bf16.xpose.msra.mxu0 %v18355_v2  ;;  %v18361_v6 = vld [vmem:[#allocation8 + $0x120] ss:$24 sps:$4 sm:$0xff]   ;;  %v18363_v8 = vld [vmem:[#allocation8 + $0xf4] ss:$24 sps:$4 sm:$0xff]  }
 0x114   : > { %2524 = vmatpush1.bf16.xpose.msra.mxu1 %v18356_v3  ;;  %2482 = vmatprep.subr.bf16.mxu0 %v18357_v4  ;;  %v18362_v7 = vld [vmem:[#allocation8 + $0x128] ss:$24 sps:$4 sm:$0xff]   ;;  %v18365_v9 = vld [vmem:[#allocation8 + $0xfc] ss:$24 sps:$4 sm:$0xff]   ;;  %v18368_v11 = vld [vmem:[#allocation8 + $0xf8] ss:$24 sps:$4 sm:$0xff]  }
 0x115   : > { %2525 = vmatprep.subr.bf16.mxu1 %v18359_v5  ;;  %v18367_v10 = vld [vmem:[#allocation8 + $0xf0] ss:$24 sps:$4 sm:$0xff]   ;;  %v18369_v12 = vld [vmem:[#allocation8 + $0xc4] ss:$24 sps:$4 sm:$0xff]   ;;  %v18373_v14 = vld [vmem:[#allocation8 + $0xc0] ss:$24 sps:$4 sm:$0xff]  }
 0x116   : > { %v18371_v13 = vld [vmem:[#allocation8 + $0xcc] ss:$24 sps:$4 sm:$0xff]   ;;  %v18374_v15 = vld [vmem:[#allocation8 + $0xc8] ss:$24 sps:$4 sm:$0xff]   ;;  %v18377_v17 = vld [vmem:[#allocation8 + $0x9c] ss:$24 sps:$4 sm:$0xff]  }
 0x117   : > { %v18375_v16 = vld [vmem:[#allocation8 + $0x94] ss:$24 sps:$4 sm:$0xff]   ;;  %v18379_v18 = vld [vmem:[#allocation8 + $0x90] ss:$24 sps:$4 sm:$0xff]   ;;  %v18381_v20 = vld [vmem:[#allocation8 + $0x64] ss:$24 sps:$4 sm:$0xff]  }
 0x118   : > { %v18380_v19 = vld [vmem:[#allocation8 + $0x98] ss:$24 sps:$4 sm:$0xff]   ;;  %v18383_v21 = vld [vmem:[#allocation8 + $0x6c] ss:$24 sps:$4 sm:$0xff]   ;;  %v18386_v23 = vld [vmem:[#allocation8 + $0x68] ss:$24 sps:$4 sm:$0xff]  }
 0x119   : > { %v18385_v22 = vld [vmem:[#allocation8 + $0x60] ss:$24 sps:$4 sm:$0xff]   ;;  %v18387_v24 = vld [vmem:[#allocation8 + $0x34] ss:$24 sps:$4 sm:$0xff]   ;;  %v677_v26 = vld [vmem:[%s21022_s21 + $0x8] sm:$0xff]  ;;  %s20649_s3 = smov 64  }
 0x11a   : > { %v18389_v25 = vld [vmem:[#allocation8 + $0x3c] ss:$24 sps:$4 sm:$0xff]   ;;  %v685_v30 = vld [vmem:[%s21022_s21 + $0x48] sm:$0xff]  ;;  %v18392_v33 = vld [vmem:[#allocation8 + $0x38] ss:$24 sps:$4 sm:$0xff]   ;;  %vm8961_vm0 = vcmask 523264  }
 0x11b   : > { %2483 = vmatpush1.bf16.xpose.msra.mxu0 %v18361_v6  ;;  %v683_v27 = vld [vmem:[%s21022_s21 + $0x38] sm:$0xff]  ;;  %v18391_v32 = vld [vmem:[#allocation8 + $0x30] ss:$24 sps:$4 sm:$0xff]   ;;  %v18393_v34 = vld [vmem:[#allocation8 + $0x4] ss:$24 sps:$4 sm:$0xff]   ;;  %vm20653_vm1 = vmmov 0  }
 0x11c   : > { %2526 = vmatpush1.bf16.xpose.msra.mxu1 %v18362_v7  ;;  %2484 = vmatprep.subr.bf16.mxu0 %v18363_v8  ;;  %v21061_v28 = vpack.c.bf16 %v683_v27, %v677_v26  ;;  %v679_v29 = vld [vmem:[%s21022_s21 + $0x18] sm:$0xff]  ;;  %v18395_v35 = vld [vmem:[#allocation8 + $0xc] ss:$24 sps:$4 sm:$0xff]   ;;  %v18398_v37 = vld [vmem:[#allocation8 + $0x8] ss:$24 sps:$4 sm:$0xff]   ;;  %vm9514_vm2 = vcmask 130048  }
 0x11d   : > { %2527 = vmatprep.subr.bf16.mxu1 %v18365_v9  ;;  %v21065_v31 = vpack.c.bf16 %v685_v30, %v679_v29  ;;  %v18397_v36 = vld [vmem:[#allocation8] ss:$24 sps:$4 sm:$0xff]   ;;  %v18399_v38 = vld [vmem:[#allocation8 + $0x2d4] ss:$24 sps:$4 sm:$0xff]   ;;  %v18403_v40 = vld [vmem:[#allocation8 + $0x2d0] ss:$24 sps:$4 sm:$0xff]  }
 0x11e   : > { %2512 = vmatprep.mubr.bf16.mxu0 %v21061_v28  ;;  %v18401_v39 = vld [vmem:[#allocation8 + $0x2dc] ss:$24 sps:$4 sm:$0xff]   ;;  %v18404_v41 = vld [vmem:[#allocation8 + $0x2d8] ss:$24 sps:$4 sm:$0xff]   ;;  %v18407_v43 = vld [vmem:[#allocation8 + $0x2ac] ss:$24 sps:$4 sm:$0xff]  }
 0x11f   : > { %2555 = vmatprep.mubr.bf16.mxu1 %v21065_v31  ;;  %v18405_v42 = vld [vmem:[#allocation8 + $0x2a4] ss:$24 sps:$4 sm:$0xff]   ;;  %v18409_v44 = vld [vmem:[#allocation8 + $0x2a0] ss:$24 sps:$4 sm:$0xff]   ;;  %v18411_v46 = vld [vmem:[#allocation8 + $0x274] ss:$24 sps:$4 sm:$0xff]  }
 0x120   : > { %v18410_v45 = vld [vmem:[#allocation8 + $0x2a8] ss:$24 sps:$4 sm:$0xff]   ;;  %v18413_v47 = vld [vmem:[#allocation8 + $0x27c] ss:$24 sps:$4 sm:$0xff]   ;;  %v18416_v49 = vld [vmem:[#allocation8 + $0x278] ss:$24 sps:$4 sm:$0xff]  }
 0x121   : > { %v18415_v48 = vld [vmem:[#allocation8 + $0x270] ss:$24 sps:$4 sm:$0xff]   ;;  %v18417_v50 = vld [vmem:[#allocation8 + $0x244] ss:$24 sps:$4 sm:$0xff]   ;;  %v18421_v52 = vld [vmem:[#allocation8 + $0x240] ss:$24 sps:$4 sm:$0xff]  }
 0x122   : > { %v18419_v51 = vld [vmem:[#allocation8 + $0x24c] ss:$24 sps:$4 sm:$0xff]   ;;  %v18422_v53 = vld [vmem:[#allocation8 + $0x248] ss:$24 sps:$4 sm:$0xff]   ;;  %v18425_v55 = vld [vmem:[#allocation8 + $0x21c] ss:$24 sps:$4 sm:$0xff]  }
 0x123   : > { %2485 = vmatpush1.bf16.xpose.msra.mxu0 %v18367_v10  ;;  %v18423_v54 = vld [vmem:[#allocation8 + $0x214] ss:$24 sps:$4 sm:$0xff]   ;;  %v18427_v56 = vld [vmem:[#allocation8 + $0x210] ss:$24 sps:$4 sm:$0xff]   ;;  %v18429_v58 = vld [vmem:[#allocation8 + $0x1e4] ss:$24 sps:$4 sm:$0xff]  }
 0x124   : > { %2528 = vmatpush1.bf16.xpose.msra.mxu1 %v18368_v11  ;;  %2486 = vmatprep.subr.bf16.mxu0 %v18369_v12  ;;  %v18428_v57 = vld [vmem:[#allocation8 + $0x218] ss:$24 sps:$4 sm:$0xff]   ;;  %v18431_v59 = vld [vmem:[#allocation8 + $0x1ec] ss:$24 sps:$4 sm:$0xff]   ;;  %v18434_v61 = vld [vmem:[#allocation8 + $0x1e8] ss:$24 sps:$4 sm:$0xff]  }
 0x125   : > { %2529 = vmatprep.subr.bf16.mxu1 %v18371_v13  ;;  %v18433_v60 = vld [vmem:[#allocation8 + $0x1e0] ss:$24 sps:$4 sm:$0xff]   ;;  %v18435_v62 = vld [vmem:[#allocation8 + $0x1b4] ss:$24 sps:$4 sm:$0xff]   ;;  %v18439_v0 = vld [vmem:[#allocation8 + $0x1b0] ss:$24 sps:$4 sm:$0xff]  }
 0x126   : > { %v18437_v63 = vld [vmem:[#allocation8 + $0x1bc] ss:$24 sps:$4 sm:$0xff]   ;;  %v18440_v1 = vld [vmem:[#allocation8 + $0x1b8] ss:$24 sps:$4 sm:$0xff]   ;;  %v18443_v3 = vld [vmem:[#allocation8 + $0x18c] ss:$24 sps:$4 sm:$0xff]  }
 0x127   : > { %v18441_v2 = vld [vmem:[#allocation8 + $0x184] ss:$24 sps:$4 sm:$0xff]   ;;  %v18445_v4 = vld [vmem:[#allocation8 + $0x180] ss:$24 sps:$4 sm:$0xff]   ;;  %v18452_v7 = vld [vmem:[#allocation8 + $0x454] ss:$24 sps:$4 sm:$0xff]  }
 0x128   : > { %v18446_v5 = vld [vmem:[#allocation8 + $0x188] ss:$24 sps:$4 sm:$0xff]   ;;  %v18449_v6 = vld [vmem:[#allocation8 + $0x164] ss:$24 sps:$4 sm:$0xff]   ;;  %v682_v9 = vld [vmem:[%s21022_s21 + $0x30] sm:$0xff]  ;;  %s18149_s18 = smul.u32 1536, %s20748_s14 }
 0x129   : > { %v676_v8 = vld [vmem:[%s21022_s21] sm:$0xff]  ;;  %v678_v10 = vld [vmem:[%s21022_s21 + $0x10] sm:$0xff]  ;;  %v681_v12 = vld [vmem:[%s21022_s21 + $0x28] sm:$0xff]  ;;  %s670_s1 = scalar_lea.vmem [#allocation23], %s18147_s23  ;;  %s16174_s22 = scalar_lea.sflag [#allocation4], %s21016_s17 }
 0x12a   : > { %v684_v11 = vld [vmem:[%s21022_s21 + $0x40] sm:$0xff]  ;;  %v687_v13 = vld [vmem:[%s21022_s21 + $0x58] sm:$0xff]  ;;  %v18462_v26 = vld [vmem:[#allocation8 + $0x3f0] ss:$24 sps:$4 sm:$0xff]   ;;  %s16188_s19 = sshll.u32 %s670_s1, 4  ;;  %s23487_s7 = scalar_lea.hbm %s23545_s13, %s18149_s18  ;;  %s23489_s19 = int_to_ptr.vmem [resolvable:$true] %s16188_s19 }
 0x12b   : > { %2487 = vmatpush1.bf16.xpose.msra.mxu0 %v18373_v14  ;;  %v18447_v14 = vld [vmem:[#allocation8 + $0x160] ss:$24 sps:$4 sm:$0xff]   ;;  %v18467_v27 = vld [vmem:[#allocation8 + $0xd4] ss:$24 sps:$4 sm:$0xff]   ;;  %v18470_v29 = vld [vmem:[#allocation8 + $0x3c4] ss:$24 sps:$4 sm:$0xff]  }
 0x12c   : > { %2530 = vmatpush1.bf16.xpose.msra.mxu1 %v18374_v15  ;;  %2488 = vmatprep.subr.bf16.mxu0 %v18375_v16  ;;  %v18450_v15 = vld [vmem:[#allocation8 + $0x450] ss:$24 sps:$4 sm:$0xff]   ;;  %v21075_v16 = vpack.c.bf16 %v682_v9, %v676_v8  ;;  %v18528_v8 = vld [vmem:[#allocation8 + $0x4e0] ss:$24 sps:$4 sm:$0xff]   ;;  %v18533_v9 = vld [vmem:[#allocation8 + $0x1c4] ss:$24 sps:$4 sm:$0xff]  }
 0x12d   : > { %2531 = vmatprep.subr.bf16.mxu1 %v18377_v17  ;;  %v21077_v17 = vpack.c.bf16 %v684_v11, %v678_v10  ;;  %v18465_v30 = vld [vmem:[#allocation8 + $0xd0] ss:$24 sps:$4 sm:$0xff]   ;;  %v18536_v10 = vld [vmem:[#allocation8 + $0x4b4] ss:$24 sps:$4 sm:$0xff]   ;;  %v18531_v11 = vld [vmem:[#allocation8 + $0x1c0] ss:$24 sps:$4 sm:$0xff]  }
 0x12e   : > { %s20539_s24 = scalar_lea.vmem %s23489_s19, 1536  ;;  %p23812_p6 = scmp.ne.s32.totalorder %s23639_s16, 0 }
 0x12f   : > { %p20540_p12 = scmp.ne.s32.totalorder %s23489_s19, %s20539_s24  ;;  %s20654_s5 = smov [#allocation23]  }
 0x130   : > { %s20543_s23 = sshll.u32 %s20654_s5, 4  ;;  %s20544_s23 = int_to_ptr.vmem [resolvable:$false] %s20543_s23 }
 0x131   : > { %p20541_p9 = pnand %p20540_p12, %p23812_p6  ;;  %s20545_s11 = scalar_lea.vmem %s20544_s23, 3072 }
 0x132   : > { %p20546_p1 = scmp.lt.s32.totalorder %s23489_s19, %s20544_s23  ;;  %p20547_p0 = scmp.lt.s32.totalorder %s20545_s11, %s20539_s24 }
 0x133   : > { %2489 = vmatpush1.bf16.xpose.msra.mxu0 %v18379_v18  ;;  %v18455_v18 = vld [vmem:[#allocation8 + $0x134] ss:$24 sps:$4 sm:$0xff]   ;;  %p20542_p7 = pneg %p20541_p9 }
 0x134   : > { %2532 = vmatpush1.bf16.xpose.msra.mxu1 %v18380_v19  ;;  %2490 = vmatprep.subr.bf16.mxu0 %v18381_v20  ;;  %v18458_v19 = vld [vmem:[#allocation8 + $0x424] ss:$24 sps:$4 sm:$0xff]   ;;  %v21079_v20 = vpack.c.bf16 %v687_v13, %v681_v12  ;;  %v18534_v12 = vld [vmem:[#allocation8 + $0x4b0] ss:$24 sps:$4 sm:$0xff]   ;;  %v18539_v13 = vld [vmem:[#allocation8 + $0x194] ss:$24 sps:$4 sm:$0xff]   ;;  %p20548_p13 = por %p20547_p0, %p20546_p1 }
 0x135   : > { %2533 = vmatprep.subr.bf16.mxu1 %v18383_v21  ;;  %v18453_v21 = vld [vmem:[#allocation8 + $0x130] ss:$24 sps:$4 sm:$0xff]  }
 0x136   : > { %p20549_p10 = pnand %p20548_p13, %p20542_p7 }
 0x13b   : > { %2491 = vmatpush1.bf16.xpose.msra.mxu0 %v18385_v22  ;;  %v18456_v22 = vld [vmem:[#allocation8 + $0x420] ss:$24 sps:$4 sm:$0xff]  }
 0x13c   : > { %2534 = vmatpush1.bf16.xpose.msra.mxu1 %v18386_v23  ;;  %2492 = vmatprep.subr.bf16.mxu0 %v18387_v24  ;;  %v18461_v23 = vld [vmem:[#allocation8 + $0x104] ss:$24 sps:$4 sm:$0xff]   ;;  %v18464_v24 = vld [vmem:[#allocation8 + $0x3f4] ss:$24 sps:$4 sm:$0xff]  }
 0x13d   : > { %2535 = vmatprep.subr.bf16.mxu1 %v18389_v25  ;;  %v18459_v25 = vld [vmem:[#allocation8 + $0x100] ss:$24 sps:$4 sm:$0xff]  }
 0x143   : > { %2493 = vmatpush1.bf16.xpose.msra.mxu0 %v18391_v32  ;;  %v18468_v32 = vld [vmem:[#allocation8 + $0x3c0] ss:$24 sps:$4 sm:$0xff]  }
 0x144   : > { %2536 = vmatpush1.bf16.xpose.msra.mxu1 %v18392_v33  ;;  %2494 = vmatprep.subr.bf16.mxu0 %v18393_v34  ;;  %v18473_v33 = vld [vmem:[#allocation8 + $0xa4] ss:$24 sps:$4 sm:$0xff]   ;;  %v18476_v34 = vld [vmem:[#allocation8 + $0x394] ss:$24 sps:$4 sm:$0xff]  }
 0x145   : > { %2537 = vmatprep.subr.bf16.mxu1 %v18395_v35  ;;  %v18471_v35 = vld [vmem:[#allocation8 + $0xa0] ss:$24 sps:$4 sm:$0xff]  }
 0x14b   : > { %2495 = vmatpush1.bf16.xpose.msra.mxu0 %v18397_v36  ;;  %v18474_v36 = vld [vmem:[#allocation8 + $0x390] ss:$24 sps:$4 sm:$0xff]  }
 0x14c   : > { %2538 = vmatpush1.bf16.xpose.msra.mxu1 %v18398_v37  ;;  %2496 = vmatprep.subr.bf16.mxu0 %v18399_v38  ;;  %v18479_v37 = vld [vmem:[#allocation8 + $0x74] ss:$24 sps:$4 sm:$0xff]   ;;  %v18482_v38 = vld [vmem:[#allocation8 + $0x364] ss:$24 sps:$4 sm:$0xff]  }
 0x14d   : > { %2539 = vmatprep.subr.bf16.mxu1 %v18401_v39  ;;  %v18477_v39 = vld [vmem:[#allocation8 + $0x70] ss:$24 sps:$4 sm:$0xff]  }
 0x153   : > { %2497 = vmatpush2.bf16.xpose.msra.mxu0 %v18403_v40  ;;  %v18480_v40 = vld [vmem:[#allocation8 + $0x360] ss:$24 sps:$4 sm:$0xff]  }
 0x154   : > { %2540 = vmatpush2.bf16.xpose.msra.mxu1 %v18404_v41  ;;  %2498 = vmatprep.subr.bf16.mxu0 %v18405_v42  ;;  %v18485_v41 = vld [vmem:[#allocation8 + $0x44] ss:$24 sps:$4 sm:$0xff]   ;;  %v18488_v42 = vld [vmem:[#allocation8 + $0x334] ss:$24 sps:$4 sm:$0xff]  }
 0x155   : > { %2541 = vmatprep.subr.bf16.mxu1 %v18407_v43  ;;  %v18483_v43 = vld [vmem:[#allocation8 + $0x40] ss:$24 sps:$4 sm:$0xff]  }
 0x15b   : > { %2499 = vmatpush2.bf16.xpose.msra.mxu0 %v18409_v44  ;;  %v18486_v44 = vld [vmem:[#allocation8 + $0x330] ss:$24 sps:$4 sm:$0xff]  }
 0x15c   : > { %2542 = vmatpush2.bf16.xpose.msra.mxu1 %v18410_v45  ;;  %2500 = vmatprep.subr.bf16.mxu0 %v18411_v46  ;;  %v18491_v45 = vld [vmem:[#allocation8 + $0x14] ss:$24 sps:$4 sm:$0xff]   ;;  %v18494_v46 = vld [vmem:[#allocation8 + $0x304] ss:$24 sps:$4 sm:$0xff]  }
 0x15d   : > { %2543 = vmatprep.subr.bf16.mxu1 %v18413_v47  ;;  %v18489_v47 = vld [vmem:[#allocation8 + $0x10] ss:$24 sps:$4 sm:$0xff]  }
 0x163   : > { %2501 = vmatpush2.bf16.xpose.msra.mxu0 %v18415_v48  ;;  %v18492_v48 = vld [vmem:[#allocation8 + $0x300] ss:$24 sps:$4 sm:$0xff]  }
 0x164   : > { %2544 = vmatpush2.bf16.xpose.msra.mxu1 %v18416_v49  ;;  %2502 = vmatprep.subr.bf16.mxu0 %v18417_v50  ;;  %v18497_v49 = vld [vmem:[#allocation8 + $0x2e4] ss:$24 sps:$4 sm:$0xff]   ;;  %v18500_v50 = vld [vmem:[#allocation8 + $0x5d4] ss:$24 sps:$4 sm:$0xff]  }
 0x165   : > { %2545 = vmatprep.subr.bf16.mxu1 %v18419_v51  ;;  %v18495_v51 = vld [vmem:[#allocation8 + $0x2e0] ss:$24 sps:$4 sm:$0xff]  }
 0x16b   : > { %2503 = vmatpush2.bf16.xpose.msra.mxu0 %v18421_v52  ;;  %v18498_v52 = vld [vmem:[#allocation8 + $0x5d0] ss:$24 sps:$4 sm:$0xff]  }
 0x16c   : > { %2546 = vmatpush2.bf16.xpose.msra.mxu1 %v18422_v53  ;;  %2504 = vmatprep.subr.bf16.mxu0 %v18423_v54  ;;  %v18503_v53 = vld [vmem:[#allocation8 + $0x2b4] ss:$24 sps:$4 sm:$0xff]   ;;  %v18506_v54 = vld [vmem:[#allocation8 + $0x5a4] ss:$24 sps:$4 sm:$0xff]  }
 0x16d   : > { %2547 = vmatprep.subr.bf16.mxu1 %v18425_v55  ;;  %v18501_v55 = vld [vmem:[#allocation8 + $0x2b0] ss:$24 sps:$4 sm:$0xff]  }
 0x173   : > { %2505 = vmatpush2.bf16.xpose.msra.mxu0 %v18427_v56  ;;  %v18504_v56 = vld [vmem:[#allocation8 + $0x5a0] ss:$24 sps:$4 sm:$0xff]  }
 0x174   : > { %2548 = vmatpush2.bf16.xpose.msra.mxu1 %v18428_v57  ;;  %2506 = vmatprep.subr.bf16.mxu0 %v18429_v58  ;;  %v18509_v57 = vld [vmem:[#allocation8 + $0x284] ss:$24 sps:$4 sm:$0xff]   ;;  %v18512_v58 = vld [vmem:[#allocation8 + $0x574] ss:$24 sps:$4 sm:$0xff]  }
 0x175   : > { %2549 = vmatprep.subr.bf16.mxu1 %v18431_v59  ;;  %v18507_v59 = vld [vmem:[#allocation8 + $0x280] ss:$24 sps:$4 sm:$0xff]  }
 0x17b   : > { %2507 = vmatpush2.bf16.xpose.msra.mxu0 %v18433_v60  ;;  %v18510_v60 = vld [vmem:[#allocation8 + $0x570] ss:$24 sps:$4 sm:$0xff]  }
 0x17c   : > { %2550 = vmatpush2.bf16.xpose.msra.mxu1 %v18434_v61  ;;  %2508 = vmatprep.subr.bf16.mxu0 %v18435_v62  ;;  %v18515_v61 = vld [vmem:[#allocation8 + $0x254] ss:$24 sps:$4 sm:$0xff]   ;;  %v18518_v62 = vld [vmem:[#allocation8 + $0x544] ss:$24 sps:$4 sm:$0xff]  }
 0x17d   : > { %2551 = vmatprep.subr.bf16.mxu1 %v18437_v63  ;;  %v18513_v63 = vld [vmem:[#allocation8 + $0x250] ss:$24 sps:$4 sm:$0xff]  }
 0x183   : > { %2509 = vmatpush2.bf16.xpose.msra.mxu0 %v18439_v0  ;;  %v18516_v0 = vld [vmem:[#allocation8 + $0x540] ss:$24 sps:$4 sm:$0xff]  }
 0x184   : > { %2552 = vmatpush2.bf16.xpose.msra.mxu1 %v18440_v1  ;;  %2510 = vmatprep.subr.bf16.mxu0 %v18441_v2  ;;  %v18521_v1 = vld [vmem:[#allocation8 + $0x224] ss:$24 sps:$4 sm:$0xff]   ;;  %v18524_v2 = vld [vmem:[#allocation8 + $0x514] ss:$24 sps:$4 sm:$0xff]  }
 0x185   : > { %2553 = vmatprep.subr.bf16.mxu1 %v18443_v3  ;;  %v18519_v3 = vld [vmem:[#allocation8 + $0x220] ss:$24 sps:$4 sm:$0xff]  }
 0x18b   : > { %2511 = vmatpush2.bf16.xpose.msra.mxu0 %v18445_v4  ;;  %v18522_v4 = vld [vmem:[#allocation8 + $0x510] ss:$24 sps:$4 sm:$0xff]  }
 0x18c   : > { %2554 = vmatpush2.bf16.xpose.msra.mxu1 %v18446_v5  ;;  %2566 = vmatprep.subr.bf16.mxu0 %v18449_v6  ;;  %v18527_v5 = vld [vmem:[#allocation8 + $0x1f4] ss:$24 sps:$4 sm:$0xff]   ;;  %v18530_v6 = vld [vmem:[#allocation8 + $0x4e4] ss:$24 sps:$4 sm:$0xff]  }
 0x18d   : > { %2609 = vmatprep.subr.bf16.mxu1 %v18452_v7  ;;  %v18525_v7 = vld [vmem:[#allocation8 + $0x1f0] ss:$24 sps:$4 sm:$0xff]  }
 0x192   : > { %2513 = vmatmul.mubr.bf16.vlgmr.msra.gmra.mxu0 %v21075_v16 }
 0x193   : > { %2556 = vmatmul.mubr.bf16.vlgmr.msra.gmra.mxu1 %v21077_v17  ;;  %2567 = vmatpush1.bf16.xpose.msra.mxu0 %v18447_v14  ;;  %v18542_v14 = vld [vmem:[#allocation8 + $0x484] ss:$24 sps:$4 sm:$0xff]  }
 0x194   : > { %2610 = vmatpush1.bf16.xpose.msra.mxu1 %v18450_v15  ;;  %2568 = vmatprep.subr.bf16.mxu0 %v18455_v18  ;;  %v18537_v15 = vld [vmem:[#allocation8 + $0x190] ss:$24 sps:$4 sm:$0xff]   ;;  %v18540_v18 = vld [vmem:[#allocation8 + $0x480] ss:$24 sps:$4 sm:$0xff]  }
 0x195   : > { %2611 = vmatprep.subr.bf16.mxu1 %v18458_v19  ;;  %2598 = vmatprep.mubr.bf16.mxu0 %v21079_v20  ;;  %v18545_v19 = vld [vmem:[#allocation8 + $0x45c] ss:$24 sps:$4 sm:$0xff]  }
 0x196   : > { %2641 = vmatprep.mubr.bf16.mxu1 %v21061_v28 }
 0x19b   : > { %2569 = vmatpush1.bf16.xpose.msra.mxu0 %v18453_v21  ;;  %v18548_v21 = vld [vmem:[#allocation8 + $0x464] ss:$24 sps:$4 sm:$0xff]  }
 0x19c   : > { %2612 = vmatpush1.bf16.xpose.msra.mxu1 %v18456_v22  ;;  %2570 = vmatprep.subr.bf16.mxu0 %v18461_v23  ;;  %v680_v22 = vld [vmem:[%s21022_s21 + $0x20] sm:$0xff]  ;;  %v686_v23 = vld [vmem:[%s21022_s21 + $0x50] sm:$0xff] }
 0x19d   : > { %2613 = vmatprep.subr.bf16.mxu1 %v18464_v24  ;;  %v18543_v24 = vld [vmem:[#allocation8 + $0x458] ss:$24 sps:$4 sm:$0xff]  }
 0x1a3   : > { %2571 = vmatpush1.bf16.xpose.msra.mxu0 %v18459_v25  ;;  %v18546_v25 = vld [vmem:[#allocation8 + $0x460] ss:$24 sps:$4 sm:$0xff]  }
 0x1a4   : > { %2614 = vmatpush1.bf16.xpose.msra.mxu1 %v18462_v26  ;;  %2572 = vmatprep.subr.bf16.mxu0 %v18467_v27  ;;  %v21087_v26 = vpack.c.bf16 %v686_v23, %v680_v22  ;;  %v18551_v27 = vld [vmem:[#allocation8 + $0x42c] ss:$24 sps:$4 sm:$0xff]   ;;  %v18612_v22 = vld [vmem:[#allocation8 + $0x550] ss:$24 sps:$4 sm:$0xff]   ;;  %v18617_v23 = vld [vmem:[#allocation8 + $0x51c] ss:$24 sps:$4 sm:$0xff]  }
 0x1a5   : > { %2615 = vmatprep.subr.bf16.mxu1 %v18470_v29  ;;  %v18554_v29 = vld [vmem:[#allocation8 + $0x434] ss:$24 sps:$4 sm:$0xff]  }
 0x1ab   : > { %2573 = vmatpush1.bf16.xpose.msra.mxu0 %v18465_v30  ;;  %v18549_v30 = vld [vmem:[#allocation8 + $0x428] ss:$24 sps:$4 sm:$0xff]  }
 0x1ac   : > { %2616 = vmatpush1.bf16.xpose.msra.mxu1 %v18468_v32  ;;  %2574 = vmatprep.subr.bf16.mxu0 %v18473_v33  ;;  %v18552_v32 = vld [vmem:[#allocation8 + $0x430] ss:$24 sps:$4 sm:$0xff]   ;;  %v18557_v33 = vld [vmem:[#allocation8 + $0x3fc] ss:$24 sps:$4 sm:$0xff]  }
 0x1ad   : > { %2617 = vmatprep.subr.bf16.mxu1 %v18476_v34  ;;  %v18560_v34 = vld [vmem:[#allocation8 + $0x404] ss:$24 sps:$4 sm:$0xff]  }
 0x1b3   : > { %2575 = vmatpush1.bf16.xpose.msra.mxu0 %v18471_v35  ;;  %v18555_v35 = vld [vmem:[#allocation8 + $0x3f8] ss:$24 sps:$4 sm:$0xff]  }
 0x1b4   : > { %2618 = vmatpush1.bf16.xpose.msra.mxu1 %v18474_v36  ;;  %2576 = vmatprep.subr.bf16.mxu0 %v18479_v37  ;;  %v18558_v36 = vld [vmem:[#allocation8 + $0x400] ss:$24 sps:$4 sm:$0xff]   ;;  %v18563_v37 = vld [vmem:[#allocation8 + $0x3cc] ss:$24 sps:$4 sm:$0xff]  }
 0x1b5   : > { %2619 = vmatprep.subr.bf16.mxu1 %v18482_v38  ;;  %v18566_v38 = vld [vmem:[#allocation8 + $0x3d4] ss:$24 sps:$4 sm:$0xff]  }
 0x1bb   : > { %2577 = vmatpush1.bf16.xpose.msra.mxu0 %v18477_v39  ;;  %v18561_v39 = vld [vmem:[#allocation8 + $0x3c8] ss:$24 sps:$4 sm:$0xff]  }
 0x1bc   : > { %2620 = vmatpush1.bf16.xpose.msra.mxu1 %v18480_v40  ;;  %2578 = vmatprep.subr.bf16.mxu0 %v18485_v41  ;;  %v18564_v40 = vld [vmem:[#allocation8 + $0x3d0] ss:$24 sps:$4 sm:$0xff]   ;;  %v18569_v41 = vld [vmem:[#allocation8 + $0x39c] ss:$24 sps:$4 sm:$0xff]  }
 0x1bd   : > { %2621 = vmatprep.subr.bf16.mxu1 %v18488_v42  ;;  %v18572_v42 = vld [vmem:[#allocation8 + $0x3a4] ss:$24 sps:$4 sm:$0xff]  }
 0x1c3   : > { %2579 = vmatpush1.bf16.xpose.msra.mxu0 %v18483_v43  ;;  %v18567_v43 = vld [vmem:[#allocation8 + $0x398] ss:$24 sps:$4 sm:$0xff]  }
 0x1c4   : > { %2622 = vmatpush1.bf16.xpose.msra.mxu1 %v18486_v44  ;;  %2580 = vmatprep.subr.bf16.mxu0 %v18491_v45  ;;  %v18570_v44 = vld [vmem:[#allocation8 + $0x3a0] ss:$24 sps:$4 sm:$0xff]   ;;  %v18575_v45 = vld [vmem:[#allocation8 + $0x36c] ss:$24 sps:$4 sm:$0xff]  }
 0x1c5   : > { %2623 = vmatprep.subr.bf16.mxu1 %v18494_v46  ;;  %v18578_v46 = vld [vmem:[#allocation8 + $0x374] ss:$24 sps:$4 sm:$0xff]  }
 0x1cb   : > { %2581 = vmatpush1.bf16.xpose.msra.mxu0 %v18489_v47  ;;  %v18573_v47 = vld [vmem:[#allocation8 + $0x368] ss:$24 sps:$4 sm:$0xff]  }
 0x1cc   : > { %2624 = vmatpush1.bf16.xpose.msra.mxu1 %v18492_v48  ;;  %2582 = vmatprep.subr.bf16.mxu0 %v18497_v49  ;;  %v18576_v48 = vld [vmem:[#allocation8 + $0x370] ss:$24 sps:$4 sm:$0xff]   ;;  %v18581_v49 = vld [vmem:[#allocation8 + $0x33c] ss:$24 sps:$4 sm:$0xff]  }
 0x1cd   : > { %2625 = vmatprep.subr.bf16.mxu1 %v18500_v50  ;;  %v18584_v50 = vld [vmem:[#allocation8 + $0x344] ss:$24 sps:$4 sm:$0xff]  }
 0x1d3   : > { %2583 = vmatpush2.bf16.xpose.msra.mxu0 %v18495_v51  ;;  %v18579_v51 = vld [vmem:[#allocation8 + $0x338] ss:$24 sps:$4 sm:$0xff]  }
 0x1d4   : > { %2626 = vmatpush2.bf16.xpose.msra.mxu1 %v18498_v52  ;;  %2584 = vmatprep.subr.bf16.mxu0 %v18503_v53  ;;  %v18582_v52 = vld [vmem:[#allocation8 + $0x340] ss:$24 sps:$4 sm:$0xff]   ;;  %v18587_v53 = vld [vmem:[#allocation8 + $0x30c] ss:$24 sps:$4 sm:$0xff]  }
 0x1d5   : > { %2627 = vmatprep.subr.bf16.mxu1 %v18506_v54  ;;  %v18590_v54 = vld [vmem:[#allocation8 + $0x314] ss:$24 sps:$4 sm:$0xff]  }
 0x1db   : > { %2585 = vmatpush2.bf16.xpose.msra.mxu0 %v18501_v55  ;;  %v18585_v55 = vld [vmem:[#allocation8 + $0x308] ss:$24 sps:$4 sm:$0xff]  }
 0x1dc   : > { %2628 = vmatpush2.bf16.xpose.msra.mxu1 %v18504_v56  ;;  %2586 = vmatprep.subr.bf16.mxu0 %v18509_v57  ;;  %v18588_v56 = vld [vmem:[#allocation8 + $0x310] ss:$24 sps:$4 sm:$0xff]   ;;  %v1010_v57 = vlaneseq }
 0x1dd   : > { %2629 = vmatprep.subr.bf16.mxu1 %v18512_v58  ;;  %v18593_v58 = vld [vmem:[#allocation8 + $0x5dc] ss:$24 sps:$4 sm:$0xff]  }
 0x1e3   : > { %2587 = vmatpush2.bf16.xpose.msra.mxu0 %v18507_v59  ;;  %v18596_v59 = vld [vmem:[#allocation8 + $0x5e4] ss:$24 sps:$4 sm:$0xff]  }
 0x1e4   : > { %2630 = vmatpush2.bf16.xpose.msra.mxu1 %v18510_v60  ;;  %2588 = vmatprep.subr.bf16.mxu0 %v18515_v61  ;;  %v21093_v60 = vshrl.u32 %v1010_v57, 7  ;;  %v1008_v61 = vld [vmem:[#allocation10] sm:$0x3f] }
 0x1e5   : > { %2631 = vmatprep.subr.bf16.mxu1 %v18518_v62  ;;  %v18591_v62 = vld [vmem:[#allocation8 + $0x5d8] ss:$24 sps:$4 sm:$0xff]   ;;  %v18660_v57 = vld [vmem:[#allocation8 + $0x6c8] ss:$24 sps:$4 sm:$0xff]  }
 0x1eb   : > { %2589 = vmatpush2.bf16.xpose.msra.mxu0 %v18513_v63  ;;  %v18594_v63 = vld [vmem:[#allocation8 + $0x5e0] ss:$24 sps:$4 sm:$0xff]  }
 0x1ec   : > { %2632 = vmatpush2.bf16.xpose.msra.mxu1 %v18516_v0  ;;  %2590 = vmatprep.subr.bf16.mxu0 %v18521_v1  ;;  %v21096_v0 = vsub.s32 1, %v21093_v60  ;;  %v18599_v1 = vld [vmem:[#allocation8 + $0x5ac] ss:$24 sps:$4 sm:$0xff]  }
 0x1ed   : > { %2633 = vmatprep.subr.bf16.mxu1 %v18524_v2  ;;  %v18602_v2 = vld [vmem:[#allocation8 + $0x5b4] ss:$24 sps:$4 sm:$0xff]  }
 0x1ee   : > { %23663 = vst [vmem:[#allocation37_spill] sm:$0xff] %v21096_v0 }
 0x1f3   : > { %2591 = vmatpush2.bf16.xpose.msra.mxu0 %v18519_v3  ;;  %v21099_v3 = vrot.slane %v1008_v61, %v21096_v0  ;;  %v18671_v61 = vld [vmem:[#allocation8 + $0x664] ss:$24 sps:$4 sm:$0xff]  }
 0x1f4   : > { %2634 = vmatpush2.bf16.xpose.msra.mxu1 %v18522_v4  ;;  %2592 = vmatprep.subr.bf16.mxu0 %v18527_v5 }
 0x1f5   : > { %2635 = vmatprep.subr.bf16.mxu1 %v18530_v6 }
 0x1fb   : > { %2593 = vmatpush2.bf16.xpose.msra.mxu0 %v18525_v7 }
 0x1fc   : > { %2636 = vmatpush2.bf16.xpose.msra.mxu1 %v18528_v8  ;;  %2594 = vmatprep.subr.bf16.mxu0 %v18533_v9  ;;  %v18597_v9 = vld [vmem:[#allocation8 + $0x5a8] ss:$24 sps:$4 sm:$0xff]  }
 0x1fd   : > { %2637 = vmatprep.subr.bf16.mxu1 %v18536_v10  ;;  %v18600_v10 = vld [vmem:[#allocation8 + $0x5b0] ss:$24 sps:$4 sm:$0xff]  }
 0x203   : > { %2595 = vmatpush2.bf16.xpose.msra.mxu0 %v18531_v11 }
 0x204   : > { %2638 = vmatpush2.bf16.xpose.msra.mxu1 %v18534_v12  ;;  %2596 = vmatprep.subr.bf16.mxu0 %v18539_v13  ;;  %v18605_v12 = vld [vmem:[#allocation8 + $0x57c] ss:$24 sps:$4 sm:$0xff]  }
 0x205   : > { %2639 = vmatprep.subr.bf16.mxu1 %v18542_v14  ;;  %v18608_v13 = vld [vmem:[#allocation8 + $0x584] ss:$24 sps:$4 sm:$0xff]   ;;  %v18603_v14 = vld [vmem:[#allocation8 + $0x578] ss:$24 sps:$4 sm:$0xff]  }
 0x20b   : > { %2597 = vmatpush2.bf16.xpose.msra.mxu0 %v18537_v15  ;;  %v18606_v15 = vld [vmem:[#allocation8 + $0x580] ss:$24 sps:$4 sm:$0xff]  }
 0x20c   : > { %2640 = vmatpush2.bf16.xpose.msra.mxu1 %v18540_v18  ;;  %2652 = vmatprep.subr.bf16.mxu0 %v18545_v19  ;;  %v18611_v18 = vld [vmem:[#allocation8 + $0x54c] ss:$24 sps:$4 sm:$0xff]  }
 0x20d   : > { %2695 = vmatprep.subr.bf16.mxu1 %v18548_v21  ;;  %v18614_v19 = vld [vmem:[#allocation8 + $0x554] ss:$24 sps:$4 sm:$0xff]   ;;  %v18609_v21 = vld [vmem:[#allocation8 + $0x548] ss:$24 sps:$4 sm:$0xff]  }
 0x212   : > { %2599 = vmatmul.mubr.bf16.vlgmr.msra.gmra.mxu0 %v21087_v26 }
 0x213   : > { %2642 = vmatmul.mubr.bf16.vlgmr.msra.gmra.mxu1 %v21075_v16  ;;  %2653 = vmatpush1.bf16.xpose.msra.mxu0 %v18543_v24  ;;  %v18620_v24 = vld [vmem:[#allocation8 + $0x524] ss:$24 sps:$4 sm:$0xff]  }
 0x214   : > { %2696 = vmatpush1.bf16.xpose.msra.mxu1 %v18546_v25  ;;  %2654 = vmatprep.subr.bf16.mxu0 %v18551_v27  ;;  %v18615_v25 = vld [vmem:[#allocation8 + $0x518] ss:$24 sps:$4 sm:$0xff]  }
 0x215   : > { %2697 = vmatprep.subr.bf16.mxu1 %v18554_v29  ;;  %2684 = vmatprep.mubr.bf16.mxu0 %v21065_v31  ;;  %v18618_v27 = vld [vmem:[#allocation8 + $0x520] ss:$24 sps:$4 sm:$0xff]   ;;  %v18623_v29 = vld [vmem:[#allocation8 + $0x4ec] ss:$24 sps:$4 sm:$0xff]  }
 0x216   : > { %2727 = vmatprep.mubr.bf16.mxu1 %v21079_v20 }
 0x21b   : > { %2655 = vmatpush1.bf16.xpose.msra.mxu0 %v18549_v30  ;;  %v18626_v30 = vld [vmem:[#allocation8 + $0x4f4] ss:$24 sps:$4 sm:$0xff]  }
 0x21c   : > { %2698 = vmatpush1.bf16.xpose.msra.mxu1 %v18552_v32  ;;  %2656 = vmatprep.subr.bf16.mxu0 %v18557_v33  ;;  %v18621_v32 = vld [vmem:[#allocation8 + $0x4e8] ss:$24 sps:$4 sm:$0xff]  }
 0x21d   : > { %2699 = vmatprep.subr.bf16.mxu1 %v18560_v34  ;;  %v18624_v33 = vld [vmem:[#allocation8 + $0x4f0] ss:$24 sps:$4 sm:$0xff]   ;;  %v18629_v34 = vld [vmem:[#allocation8 + $0x4bc] ss:$24 sps:$4 sm:$0xff]  }
 0x223   : > { %2657 = vmatpush1.bf16.xpose.msra.mxu0 %v18555_v35  ;;  %v18632_v35 = vld [vmem:[#allocation8 + $0x4c4] ss:$24 sps:$4 sm:$0xff]  }
 0x224   : > { %2700 = vmatpush1.bf16.xpose.msra.mxu1 %v18558_v36  ;;  %2658 = vmatprep.subr.bf16.mxu0 %v18563_v37  ;;  %v18627_v36 = vld [vmem:[#allocation8 + $0x4b8] ss:$24 sps:$4 sm:$0xff]  }
 0x225   : > { %2701 = vmatprep.subr.bf16.mxu1 %v18566_v38  ;;  %v18630_v37 = vld [vmem:[#allocation8 + $0x4c0] ss:$24 sps:$4 sm:$0xff]   ;;  %v18635_v38 = vld [vmem:[#allocation8 + $0x48c] ss:$24 sps:$4 sm:$0xff]  }
 0x22b   : > { %2659 = vmatpush1.bf16.xpose.msra.mxu0 %v18561_v39  ;;  %v18638_v39 = vld [vmem:[#allocation8 + $0x494] ss:$24 sps:$4 sm:$0xff]  }
 0x22c   : > { %2702 = vmatpush1.bf16.xpose.msra.mxu1 %v18564_v40  ;;  %2660 = vmatprep.subr.bf16.mxu0 %v18569_v41  ;;  %v18633_v40 = vld [vmem:[#allocation8 + $0x488] ss:$24 sps:$4 sm:$0xff]  }
 0x22d   : > { %2703 = vmatprep.subr.bf16.mxu1 %v18572_v42  ;;  %v18636_v41 = vld [vmem:[#allocation8 + $0x490] ss:$24 sps:$4 sm:$0xff]   ;;  %v18641_v42 = vld [vmem:[#allocation8 + $0x754] ss:$24 sps:$4 sm:$0xff]  }
 0x233   : > { %2661 = vmatpush1.bf16.xpose.msra.mxu0 %v18567_v43  ;;  %v18644_v43 = vld [vmem:[#allocation8 + $0x75c] ss:$24 sps:$4 sm:$0xff]  }
 0x234   : > { %2704 = vmatpush1.bf16.xpose.msra.mxu1 %v18570_v44  ;;  %2662 = vmatprep.subr.bf16.mxu0 %v18575_v45  ;;  %v18639_v44 = vld [vmem:[#allocation8 + $0x750] ss:$24 sps:$4 sm:$0xff]  }
 0x235   : > { %2705 = vmatprep.subr.bf16.mxu1 %v18578_v46  ;;  %v18642_v45 = vld [vmem:[#allocation8 + $0x758] ss:$24 sps:$4 sm:$0xff]   ;;  %v18647_v46 = vld [vmem:[#allocation8 + $0x724] ss:$24 sps:$4 sm:$0xff]  }
 0x23b   : > { %2663 = vmatpush1.bf16.xpose.msra.mxu0 %v18573_v47  ;;  %v18650_v47 = vld [vmem:[#allocation8 + $0x72c] ss:$24 sps:$4 sm:$0xff]  }
 0x23c   : > { %2706 = vmatpush1.bf16.xpose.msra.mxu1 %v18576_v48  ;;  %2664 = vmatprep.subr.bf16.mxu0 %v18581_v49  ;;  %v18645_v48 = vld [vmem:[#allocation8 + $0x720] ss:$24 sps:$4 sm:$0xff]  }
 0x23d   : > { %2707 = vmatprep.subr.bf16.mxu1 %v18584_v50  ;;  %v18648_v49 = vld [vmem:[#allocation8 + $0x728] ss:$24 sps:$4 sm:$0xff]   ;;  %v18653_v50 = vld [vmem:[#allocation8 + $0x6f4] ss:$24 sps:$4 sm:$0xff]  }
 0x243   : > { %2665 = vmatpush1.bf16.xpose.msra.mxu0 %v18579_v51  ;;  %v18656_v51 = vld [vmem:[#allocation8 + $0x6fc] ss:$24 sps:$4 sm:$0xff]  }
 0x244   : > { %2708 = vmatpush1.bf16.xpose.msra.mxu1 %v18582_v52  ;;  %2666 = vmatprep.subr.bf16.mxu0 %v18587_v53  ;;  %v18651_v52 = vld [vmem:[#allocation8 + $0x6f0] ss:$24 sps:$4 sm:$0xff]  }
 0x245   : > { %2709 = vmatprep.subr.bf16.mxu1 %v18590_v54  ;;  %v18654_v53 = vld [vmem:[#allocation8 + $0x6f8] ss:$24 sps:$4 sm:$0xff]   ;;  %v18659_v54 = vld [vmem:[#allocation8 + $0x6c4] ss:$24 sps:$4 sm:$0xff]  }
 0x24b   : > { %2667 = vmatpush1.bf16.xpose.msra.mxu0 %v18585_v55  ;;  %v18662_v55 = vld [vmem:[#allocation8 + $0x6cc] ss:$24 sps:$4 sm:$0xff]  }
 0x24c   : > { %2710 = vmatpush1.bf16.xpose.msra.mxu1 %v18588_v56  ;;  %2668 = vmatprep.subr.bf16.mxu0 %v18593_v58  ;;  %v18657_v56 = vld [vmem:[#allocation8 + $0x6c0] ss:$24 sps:$4 sm:$0xff]   ;;  %v18665_v58 = vld [vmem:[#allocation8 + $0x694] ss:$24 sps:$4 sm:$0xff]  }
 0x24d   : > { %2711 = vmatprep.subr.bf16.mxu1 %v18596_v59  ;;  %v18666_v59 = vld [vmem:[#allocation8 + $0x698] ss:$24 sps:$4 sm:$0xff]  }
 0x252   : > { %v21101_v4 = vpop.f32.mrf.mxu0 }
 0x253   : > { %v21103_v5 = vpop.f32.mrf.mxu1  ;;  %2669 = vmatpush2.bf16.xpose.msra.mxu0 %v18591_v62  ;;  %v18674_v62 = vld [vmem:[#allocation8 + $0x66c] ss:$24 sps:$4 sm:$0xff]  }
 0x254   : > { %2712 = vmatpush2.bf16.xpose.msra.mxu1 %v18594_v63  ;;  %v2516_v6 = vpop.f32.mrf.mxu0  ;;  %2670 = vmatprep.subr.bf16.mxu0 %v18599_v1  ;;  %v18669_v63 = vld [vmem:[#allocation8 + $0x660] ss:$24 sps:$4 sm:$0xff]  }
 0x255   : > { %v2559_v7 = vpop.f32.mrf.mxu1  ;;  %2713 = vmatprep.subr.bf16.mxu1 %v18602_v2  ;;  %v2517_v8 = vadd.f32 %v2516_v6, %v21099_v3  ;;  %v18672_v1 = vld [vmem:[#allocation8 + $0x668] ss:$24 sps:$4 sm:$0xff]   ;;  %v18677_v2 = vld [vmem:[#allocation8 + $0x634] ss:$24 sps:$4 sm:$0xff]  }
 0x256   : > { %v18680_v6 = vld [vmem:[#allocation8 + $0x63c] ss:$24 sps:$4 sm:$0xff]  }
 0x257   : > { %v21106_v11 = vadd.f32 %v2559_v7, %v2517_v8  ;;  %v18675_v7 = vld [vmem:[#allocation8 + $0x630] ss:$24 sps:$4 sm:$0xff]  }
 0x258   : > { %v18678_v8 = vld [vmem:[#allocation8 + $0x638] ss:$24 sps:$4 sm:$0xff]  }
 0x25b   : > { %2671 = vmatpush2.bf16.xpose.msra.mxu0 %v18597_v9  ;;  %v18683_v9 = vld [vmem:[#allocation8 + $0x604] ss:$24 sps:$4 sm:$0xff]  }
 0x25c   : > { %2714 = vmatpush2.bf16.xpose.msra.mxu1 %v18600_v10  ;;  %2672 = vmatprep.subr.bf16.mxu0 %v18605_v12  ;;  %v18686_v10 = vld [vmem:[#allocation8 + $0x60c] ss:$24 sps:$4 sm:$0xff]   ;;  %v18681_v12 = vld [vmem:[#allocation8 + $0x600] ss:$24 sps:$4 sm:$0xff]  }
 0x25d   : > { %2715 = vmatprep.subr.bf16.mxu1 %v18608_v13  ;;  %v18684_v13 = vld [vmem:[#allocation8 + $0x608] ss:$24 sps:$4 sm:$0xff]  }
 0x263   : > { %2673 = vmatpush2.bf16.xpose.msra.mxu0 %v18603_v14  ;;  %v18689_v14 = vld [vmem:[#allocation8 + $0x8d4] ss:$24 sps:$4 sm:$0xff]  }
 0x264   : > { %2716 = vmatpush2.bf16.xpose.msra.mxu1 %v18606_v15  ;;  %2674 = vmatprep.subr.bf16.mxu0 %v18611_v18  ;;  %v18692_v15 = vld [vmem:[#allocation8 + $0x8dc] ss:$24 sps:$4 sm:$0xff]   ;;  %v21112_v18 = vpop.f32.mrf.mxu0 }
 0x265   : > { %2717 = vmatprep.subr.bf16.mxu1 %v18614_v19  ;;  %v18687_v19 = vld [vmem:[#allocation8 + $0x8d0] ss:$24 sps:$4 sm:$0xff]  }
 0x26b   : > { %2675 = vmatpush2.bf16.xpose.msra.mxu0 %v18609_v21  ;;  %v18690_v21 = vld [vmem:[#allocation8 + $0x8d8] ss:$24 sps:$4 sm:$0xff]  }
 0x26c   : > { %2718 = vmatpush2.bf16.xpose.msra.mxu1 %v18612_v22  ;;  %2676 = vmatprep.subr.bf16.mxu0 %v18617_v23  ;;  %v21114_v22 = vpop.f32.mrf.mxu0  ;;  %v18695_v23 = vld [vmem:[#allocation8 + $0x8a4] ss:$24 sps:$4 sm:$0xff]  }
 0x26d   : > { %2719 = vmatprep.subr.bf16.mxu1 %v18620_v24  ;;  %v18698_v24 = vld [vmem:[#allocation8 + $0x8ac] ss:$24 sps:$4 sm:$0xff]  }
 0x273   : > { %2677 = vmatpush2.bf16.xpose.msra.mxu0 %v18615_v25 }
 0x274   : > { %2720 = vmatpush2.bf16.xpose.msra.mxu1 %v18618_v27  ;;  %2678 = vmatprep.subr.bf16.mxu0 %v18623_v29 }
 0x275   : > { %2721 = vmatprep.subr.bf16.mxu1 %v18626_v30  ;;  %v18693_v30 = vld [vmem:[#allocation8 + $0x8a0] ss:$24 sps:$4 sm:$0xff]  }
 0x27b   : > { %2679 = vmatpush2.bf16.xpose.msra.mxu0 %v18621_v32  ;;  %v18696_v32 = vld [vmem:[#allocation8 + $0x8a8] ss:$24 sps:$4 sm:$0xff]  }
 0x27c   : > { %2722 = vmatpush2.bf16.xpose.msra.mxu1 %v18624_v33  ;;  %2680 = vmatprep.subr.bf16.mxu0 %v18629_v34  ;;  %v18701_v33 = vld [vmem:[#allocation8 + $0x874] ss:$24 sps:$4 sm:$0xff]  }
 0x27d   : > { %2723 = vmatprep.subr.bf16.mxu1 %v18632_v35  ;;  %v18704_v34 = vld [vmem:[#allocation8 + $0x87c] ss:$24 sps:$4 sm:$0xff]   ;;  %v18699_v35 = vld [vmem:[#allocation8 + $0x870] ss:$24 sps:$4 sm:$0xff]  }
 0x283   : > { %2681 = vmatpush2.bf16.xpose.msra.mxu0 %v18627_v36  ;;  %v18702_v36 = vld [vmem:[#allocation8 + $0x878] ss:$24 sps:$4 sm:$0xff]  }
 0x284   : > { %2724 = vmatpush2.bf16.xpose.msra.mxu1 %v18630_v37  ;;  %2682 = vmatprep.subr.bf16.mxu0 %v18635_v38  ;;  %v18707_v37 = vld [vmem:[#allocation8 + $0x844] ss:$24 sps:$4 sm:$0xff]  }
 0x285   : > { %2725 = vmatprep.subr.bf16.mxu1 %v18638_v39  ;;  %v18710_v38 = vld [vmem:[#allocation8 + $0x84c] ss:$24 sps:$4 sm:$0xff]   ;;  %v18705_v39 = vld [vmem:[#allocation8 + $0x840] ss:$24 sps:$4 sm:$0xff]  }
 0x28b   : > { %2683 = vmatpush2.bf16.xpose.msra.mxu0 %v18633_v40  ;;  %v18708_v40 = vld [vmem:[#allocation8 + $0x848] ss:$24 sps:$4 sm:$0xff]  }
 0x28c   : > { %2726 = vmatpush2.bf16.xpose.msra.mxu1 %v18636_v41  ;;  %2738 = vmatprep.subr.bf16.mxu0 %v18641_v42  ;;  %v18716_v41 = vld [vmem:[#allocation8 + $0x81c] ss:$24 sps:$4 sm:$0xff]   ;;  %v18711_v42 = vld [vmem:[#allocation8 + $0x810] ss:$24 sps:$4 sm:$0xff]  }
 0x28d   : > { %2781 = vmatprep.subr.bf16.mxu1 %v18644_v43  ;;  %v18714_v43 = vld [vmem:[#allocation8 + $0x818] ss:$24 sps:$4 sm:$0xff]  }
 0x292   : > { %2685 = vmatmul.mubr.bf16.vlgmr.msra.gmra.mxu0 %v21077_v17 }
 0x293   : > { %2728 = vmatmul.mubr.bf16.vlgmr.msra.gmra.mxu1 %v21087_v26  ;;  %2739 = vmatpush1.bf16.xpose.msra.mxu0 %v18639_v44  ;;  %v18719_v44 = vld [vmem:[#allocation8 + $0x7e4] ss:$24 sps:$4 sm:$0xff]  }
 0x294   : > { %2782 = vmatpush1.bf16.xpose.msra.mxu1 %v18642_v45  ;;  %2740 = vmatprep.subr.bf16.mxu0 %v18647_v46  ;;  %v18722_v45 = vld [vmem:[#allocation8 + $0x7ec] ss:$24 sps:$4 sm:$0xff]   ;;  %v18717_v46 = vld [vmem:[#allocation8 + $0x7e0] ss:$24 sps:$4 sm:$0xff]  }
 0x295   : > { %2783 = vmatprep.subr.bf16.mxu1 %v18650_v47  ;;  %2770 = vmatprep.mubr.bf16.mxu0 %v21061_v28  ;;  %v18668_v28 = vld [vmem:[#allocation8 + $0x69c] ss:$24 sps:$4 sm:$0xff]   ;;  %v18720_v47 = vld [vmem:[#allocation8 + $0x7e8] ss:$24 sps:$4 sm:$0xff]  }
 0x296   : > { %2813 = vmatprep.mubr.bf16.mxu1 %v21065_v31  ;;  %v18663_v31 = vld [vmem:[#allocation8 + $0x690] ss:$24 sps:$4 sm:$0xff]  }
 0x29b   : > { %2741 = vmatpush1.bf16.xpose.msra.mxu0 %v18645_v48  ;;  %v18725_v48 = vld [vmem:[#allocation8 + $0x7b4] ss:$24 sps:$4 sm:$0xff]  }
 0x29c   : > { %2784 = vmatpush1.bf16.xpose.msra.mxu1 %v18648_v49  ;;  %2742 = vmatprep.subr.bf16.mxu0 %v18653_v50  ;;  %v18728_v49 = vld [vmem:[#allocation8 + $0x7bc] ss:$24 sps:$4 sm:$0xff]   ;;  %v18723_v50 = vld [vmem:[#allocation8 + $0x7b0] ss:$24 sps:$4 sm:$0xff]  }
 0x29d   : > { %2785 = vmatprep.subr.bf16.mxu1 %v18656_v51  ;;  %v18726_v51 = vld [vmem:[#allocation8 + $0x7b8] ss:$24 sps:$4 sm:$0xff]  }
 0x2a3   : > { %2743 = vmatpush1.bf16.xpose.msra.mxu0 %v18651_v52  ;;  %v18731_v52 = vld [vmem:[#allocation8 + $0x784] ss:$24 sps:$4 sm:$0xff]  }
 0x2a4   : > { %2786 = vmatpush1.bf16.xpose.msra.mxu1 %v18654_v53  ;;  %2744 = vmatprep.subr.bf16.mxu0 %v18659_v54  ;;  %v18734_v53 = vld [vmem:[#allocation8 + $0x78c] ss:$24 sps:$4 sm:$0xff]   ;;  %v18729_v54 = vld [vmem:[#allocation8 + $0x780] ss:$24 sps:$4 sm:$0xff]  }
 0x2a5   : > { %2787 = vmatprep.subr.bf16.mxu1 %v18662_v55  ;;  %v18732_v55 = vld [vmem:[#allocation8 + $0x788] ss:$24 sps:$4 sm:$0xff]  }
 0x2ab   : > { %2745 = vmatpush1.bf16.xpose.msra.mxu0 %v18657_v56  ;;  %v18737_v56 = vld [vmem:[#allocation8 + $0x764] ss:$24 sps:$4 sm:$0xff]  }
 0x2ac   : > { %2788 = vmatpush1.bf16.xpose.msra.mxu1 %v18660_v57  ;;  %2746 = vmatprep.subr.bf16.mxu0 %v18665_v58  ;;  %v18740_v57 = vld [vmem:[#allocation11 + $0x154] ss:$24 sps:$4 sm:$0xff]  }
 0x2ad   : > { %2789 = vmatprep.subr.bf16.mxu1 %v18668_v28  ;;  %v18735_v58 = vld [vmem:[#allocation8 + $0x760] ss:$24 sps:$4 sm:$0xff]  }
 0x2ae   : > { %v18738_v28 = vld [vmem:[#allocation11 + $0x150] ss:$24 sps:$4 sm:$0xff]  }
 0x2b3   : > { %2747 = vmatpush1.bf16.xpose.msra.mxu0 %v18663_v31  ;;  %v689_v31 = vld [vmem:[%s21030_s25 + $0x8] sm:$0xff] }
 0x2b4   : > { %2790 = vmatpush1.bf16.xpose.msra.mxu1 %v18666_v59  ;;  %2748 = vmatprep.subr.bf16.mxu0 %v18671_v61  ;;  %v695_v59 = vld [vmem:[%s21030_s25 + $0x38] sm:$0xff] }
 0x2b5   : > { %2791 = vmatprep.subr.bf16.mxu1 %v18674_v62  ;;  %v18743_v61 = vld [vmem:[#allocation8 + $0x734] ss:$24 sps:$4 sm:$0xff]  }
 0x2b6   : > { %v18746_v62 = vld [vmem:[#allocation11 + $0x124] ss:$24 sps:$4 sm:$0xff]  }
 0x2bb   : > { %2749 = vmatpush1.bf16.xpose.msra.mxu0 %v18669_v63  ;;  %v21123_v63 = vpack.c.bf16 %v695_v59, %v689_v31  ;;  %v18794_v31 = vld [vmem:[#allocation11 + $0x2a4] ss:$24 sps:$4 sm:$0xff]  }
 0x2bc   : > { %2792 = vmatpush1.bf16.xpose.msra.mxu1 %v18672_v1  ;;  %2750 = vmatprep.subr.bf16.mxu0 %v18677_v2  ;;  %v18741_v1 = vld [vmem:[#allocation8 + $0x730] ss:$24 sps:$4 sm:$0xff]  }
 0x2bd   : > { %2793 = vmatprep.subr.bf16.mxu1 %v18680_v6  ;;  %v18744_v2 = vld [vmem:[#allocation11 + $0x120] ss:$24 sps:$4 sm:$0xff]  }
 0x2be   : > { %v18749_v6 = vld [vmem:[#allocation8 + $0x704] ss:$24 sps:$4 sm:$0xff]  }
 0x2c3   : > { %2751 = vmatpush1.bf16.xpose.msra.mxu0 %v18675_v7  ;;  %v18752_v7 = vld [vmem:[#allocation11 + $0xf4] ss:$24 sps:$4 sm:$0xff]  }
 0x2c4   : > { %2794 = vmatpush1.bf16.xpose.msra.mxu1 %v18678_v8  ;;  %2752 = vmatprep.subr.bf16.mxu0 %v18683_v9  ;;  %v18747_v8 = vld [vmem:[#allocation8 + $0x700] ss:$24 sps:$4 sm:$0xff]   ;;  %v18755_v9 = vld [vmem:[#allocation8 + $0x6d4] ss:$24 sps:$4 sm:$0xff]  }
 0x2c5   : > { %2795 = vmatprep.subr.bf16.mxu1 %v18686_v10  ;;  %v18753_v10 = vld [vmem:[#allocation8 + $0x6d0] ss:$24 sps:$4 sm:$0xff]  }
 0x2cb   : > { %2753 = vmatpush1.bf16.xpose.msra.mxu0 %v18681_v12  ;;  %v18761_v12 = vld [vmem:[#allocation8 + $0x6a4] ss:$24 sps:$4 sm:$0xff]  }
 0x2cc   : > { %2796 = vmatpush1.bf16.xpose.msra.mxu1 %v18684_v13  ;;  %2754 = vmatprep.subr.bf16.mxu0 %v18689_v14  ;;  %v18764_v13 = vld [vmem:[#allocation11 + $0x94] ss:$24 sps:$4 sm:$0xff]  }
 0x2cd   : > { %2797 = vmatprep.subr.bf16.mxu1 %v18692_v15  ;;  %v18759_v14 = vld [vmem:[#allocation8 + $0x6a0] ss:$24 sps:$4 sm:$0xff]  }
 0x2ce   : > { %v18762_v15 = vld [vmem:[#allocation11 + $0x90] ss:$24 sps:$4 sm:$0xff]  }
 0x2d2   : > { %v21116_v25 = vpop.f32.mrf.mxu0 }
 0x2d3   : > { %2755 = vmatpush2.bf16.xpose.msra.mxu0 %v18687_v19  ;;  %v18767_v19 = vld [vmem:[#allocation8 + $0x674] ss:$24 sps:$4 sm:$0xff]  }
 0x2d4   : > { %2798 = vmatpush2.bf16.xpose.msra.mxu1 %v18690_v21  ;;  %v2602_v27 = vpop.f32.mrf.mxu0  ;;  %2756 = vmatprep.subr.bf16.mxu0 %v18695_v23  ;;  %v18770_v21 = vld [vmem:[#allocation11 + $0x64] ss:$24 sps:$4 sm:$0xff]  }
 0x2d5   : > { %2799 = vmatprep.subr.bf16.mxu1 %v18698_v24  ;;  %v21119_v29 = vadd.f32 %v2602_v27, %v21106_v11  ;;  %v18713_v11 = vld [vmem:[#allocation8 + $0x814] ss:$24 sps:$4 sm:$0xff]   ;;  %v18765_v23 = vld [vmem:[#allocation8 + $0x670] ss:$24 sps:$4 sm:$0xff]   ;;  %v18773_v27 = vld [vmem:[#allocation8 + $0x644] ss:$24 sps:$4 sm:$0xff]  }
 0x2d6   : > { %v18768_v24 = vld [vmem:[#allocation11 + $0x60] ss:$24 sps:$4 sm:$0xff]  }
 0x2d7   : > { %23664 = vst [vmem:[#allocation38_spill] sm:$0xff] %v21119_v29 }
 0x2db   : > { %2757 = vmatpush2.bf16.xpose.msra.mxu0 %v18693_v30  ;;  %v18776_v30 = vld [vmem:[#allocation11 + $0x34] ss:$24 sps:$4 sm:$0xff]  }
 0x2dc   : > { %2800 = vmatpush2.bf16.xpose.msra.mxu1 %v18696_v32  ;;  %2758 = vmatprep.subr.bf16.mxu0 %v18701_v33  ;;  %v21129_v32 = vpop.f32.mrf.mxu1  ;;  %v18771_v33 = vld [vmem:[#allocation8 + $0x640] ss:$24 sps:$4 sm:$0xff]  }
 0x2dd   : > { %2801 = vmatprep.subr.bf16.mxu1 %v18704_v34  ;;  %v18774_v34 = vld [vmem:[#allocation11 + $0x30] ss:$24 sps:$4 sm:$0xff]  }
 0x2e3   : > { %2759 = vmatpush2.bf16.xpose.msra.mxu0 %v18699_v35  ;;  %v18779_v35 = vld [vmem:[#allocation8 + $0x614] ss:$24 sps:$4 sm:$0xff]  }
 0x2e4   : > { %2802 = vmatpush2.bf16.xpose.msra.mxu1 %v18702_v36  ;;  %2760 = vmatprep.subr.bf16.mxu0 %v18707_v37  ;;  %v18782_v36 = vld [vmem:[#allocation11 + $0x4] ss:$24 sps:$4 sm:$0xff]   ;;  %v21131_v37 = vpop.f32.mrf.mxu1 }
 0x2e5   : > { %2803 = vmatprep.subr.bf16.mxu1 %v18710_v38  ;;  %23665 = vst [vmem:[#allocation39_spill] sm:$0xff] %v21131_v37  ;;  %v21336_v37 = vsub.s32 4, %v21093_v60 }
 0x2e6   : > { %v2643_v38 = vpop.f32.mrf.mxu1 }
 0x2e7   : > { %23684 = vst [vmem:[#allocation58_spill] sm:$0xff] %v21336_v37 }
 0x2eb   : > { %2761 = vmatpush2.bf16.xpose.msra.mxu0 %v18705_v39  ;;  %v21134_v39 = vsub.s32 0, %v21093_v60 }
 0x2ec   : > { %2804 = vmatpush2.bf16.xpose.msra.mxu1 %v18708_v40  ;;  %2762 = vmatprep.subr.bf16.mxu0 %v18713_v11  ;;  %v18777_v40 = vld [vmem:[#allocation8 + $0x610] ss:$24 sps:$4 sm:$0xff]  }
 0x2ed   : > { %2805 = vmatprep.subr.bf16.mxu1 %v18716_v41  ;;  %23666 = vst [vmem:[#allocation40_spill] sm:$0xff] %v21134_v39  ;;  %v18780_v11 = vld [vmem:[#allocation11] ss:$24 sps:$4 sm:$0xff]   ;;  %v2645_v41 = vpop.f32.mrf.mxu1 }
 0x2f3   : > { %2763 = vmatpush2.bf16.xpose.msra.mxu0 %v18711_v42  ;;  %v18785_v42 = vld [vmem:[#allocation8 + $0x8e4] ss:$24 sps:$4 sm:$0xff]  }
 0x2f4   : > { %2806 = vmatpush2.bf16.xpose.msra.mxu1 %v18714_v43  ;;  %2764 = vmatprep.subr.bf16.mxu0 %v18719_v44  ;;  %v18788_v43 = vld [vmem:[#allocation11 + $0x2d4] ss:$24 sps:$4 sm:$0xff]   ;;  %v21137_v44 = vsub.s32 2, %v21093_v60 }
 0x2f5   : > { %2807 = vmatprep.subr.bf16.mxu1 %v18722_v45  ;;  %v21139_v45 = vld [vmem:[#allocation10] sm:$0x3f] }
 0x2f6   : > { %23667 = vst [vmem:[#allocation41_spill] sm:$0xff] %v21137_v44 }
 0x2fb   : > { %2765 = vmatpush2.bf16.xpose.msra.mxu0 %v18717_v46  ;;  %v21143_v46 = vrot.slane %v21139_v45, %v21134_v39 }
 0x2fc   : > { %2808 = vmatpush2.bf16.xpose.msra.mxu1 %v18720_v47  ;;  %2766 = vmatprep.subr.bf16.mxu0 %v18725_v48  ;;  %v21146_v47 = vsub.s32 3, %v21093_v60  ;;  %v21148_v48 = vpop.f32.mrf.mxu0 }
 0x2fd   : > { %2809 = vmatprep.subr.bf16.mxu1 %v18728_v49  ;;  %v21150_v49 = vpop.f32.mrf.mxu1 }
 0x2fe   : > { %23668 = vst [vmem:[#allocation42_spill] sm:$0xff] %v21146_v47 }
 0x303   : > { %2767 = vmatpush2.bf16.xpose.msra.mxu0 %v18723_v50  ;;  %v21154_v50 = vrot.slane %v21139_v45, %v21137_v44 }
 0x304   : > { %2810 = vmatpush2.bf16.xpose.msra.mxu1 %v18726_v51  ;;  %2768 = vmatprep.subr.bf16.mxu0 %v18731_v52  ;;  %v2515_v51 = vadd.f32 %v21101_v4, %v21143_v46  ;;  %v21160_v52 = vrot.slane %v21139_v45, %v21146_v47 }
 0x305   : > { %2811 = vmatprep.subr.bf16.mxu1 %v18734_v53  ;;  %v18783_v53 = vld [vmem:[#allocation8 + $0x8e0] ss:$24 sps:$4 sm:$0xff]   ;;  %v2644_v59 = vadd.f32 %v2643_v38, %v21154_v50  ;;  %v18809_v38 = vld [vmem:[#allocation8 + $0x824] ss:$24 sps:$4 sm:$0xff]  }
 0x306   : > { %23669 = vst [vmem:[#allocation43_spill] sm:$0xff] %v21160_v52  ;;  %v2558_v4 = vadd.f32 %v21103_v5, %v2515_v51  ;;  %v18813_v51 = vld [vmem:[#allocation8 + $0x7f0] ss:$24 sps:$4 sm:$0xff]  }
 0x30b   : > { %2769 = vmatpush2.bf16.xpose.msra.mxu0 %v18729_v54  ;;  %v18786_v54 = vld [vmem:[#allocation11 + $0x2d0] ss:$24 sps:$4 sm:$0xff]  }
 0x30c   : > { %2812 = vmatpush2.bf16.xpose.msra.mxu1 %v18732_v55  ;;  %2824 = vmatprep.subr.bf16.mxu0 %v18737_v56  ;;  %v20648_v55 = vmov 1983009808  }
 0x30d   : > { %4639 = vmatprep.subr.bf16.mxu1 %v18740_v57  ;;  %v7407_v56 = vunpack.c.l.s4 %v20648_v55  ;;  %v21162_v57 = vpop.f32.mrf.mxu0  ;;  %v18824_v55 = vld [vmem:[#allocation11 + $0x1b4] ss:$24 sps:$4 sm:$0xff]  }
 0x30e   : > { %23670 = vst [vmem:[#allocation44_spill] sm:$0xff] %v21162_v57 }
 0x312   : > { %2771 = vmatmul.mubr.bf16.vlgmr.msra.gmra.mxu0 %v21075_v16  ;;  %v18750_v16 = vld [vmem:[#allocation11 + $0xf0] ss:$24 sps:$4 sm:$0xff]  }
 0x313   : > { %2814 = vmatmul.mubr.bf16.vlgmr.msra.gmra.mxu1 %v21077_v17  ;;  %2825 = vmatpush1.bf16.xpose.msra.mxu0 %v18735_v58  ;;  %v18758_v17 = vld [vmem:[#allocation11 + $0xc4] ss:$24 sps:$4 sm:$0xff]   ;;  %v21164_v58 = vpop.f32.mrf.mxu1 }
 0x314   : > { %4640 = vmatpush1.bf16.xpose.msra.mxu1 %v18738_v28  ;;  %2826 = vmatprep.subr.bf16.mxu0 %v18743_v61  ;;  %23671 = vst [vmem:[#allocation45_spill] sm:$0xff] %v21164_v58  ;;  %v18791_v28 = vld [vmem:[#allocation8 + $0x8b4] ss:$24 sps:$4 sm:$0xff]  }
 0x315   : > { %4641 = vmatprep.subr.bf16.mxu1 %v18746_v62  ;;  %2856 = vmatprep.mubr.bf16.mxu0 %v21079_v20  ;;  %v18756_v20 = vld [vmem:[#allocation11 + $0xc0] ss:$24 sps:$4 sm:$0xff]   ;;  %v19085_v58 = vld [vmem:[#allocation11 + $0x584] ss:$24 sps:$4 sm:$0xff]  }
 0x316   : > { %4671 = vmatprep.mubr.bf16.mxu1 %v21123_v63 }
 0x31b   : > { %2827 = vmatpush1.bf16.xpose.msra.mxu0 %v18741_v1  ;;  %v2646_v1 = vadd.f32 %v2645_v41, %v21160_v52  ;;  %v18810_v41 = vld [vmem:[#allocation11 + $0x210] ss:$24 sps:$4 sm:$0xff]   ;;  %v19088_v52 = vld [vmem:[#allocation11 + $0x874] ss:$24 sps:$4 sm:$0xff]  }
 0x31c   : > { %4642 = vmatpush1.bf16.xpose.msra.mxu1 %v18744_v2  ;;  %2828 = vmatprep.subr.bf16.mxu0 %v18749_v6  ;;  %v7408_v6 = vunpack.c.0.s8 %v7407_v56  ;;  %v18819_v56 = vld [vmem:[#allocation8 + $0x7c0] ss:$24 sps:$4 sm:$0xff]  }
 0x31d   : > { %4643 = vmatprep.subr.bf16.mxu1 %v18752_v7 }
 0x31e   : > { %v21177_v5 = vsub.s32 %v7408_v6, %v21093_v60  ;;  %v694_v6 = vld [vmem:[%s21030_s25 + $0x30] sm:$0xff] }
 0x320   : > { %23672 = vst [vmem:[#allocation46_spill] sm:$0xff] %v21177_v5 }
 0x323   : > { %2829 = vmatpush1.bf16.xpose.msra.mxu0 %v18747_v8 }
 0x324   : > { %4644 = vmatpush1.bf16.xpose.msra.mxu1 %v18750_v16  ;;  %2830 = vmatprep.subr.bf16.mxu0 %v18755_v9  ;;  %v21170_v16 = vadd.f32 %v21116_v25, %v2558_v4  ;;  %v18833_v4 = vld [vmem:[#allocation11 + $0x15c] ss:$24 sps:$4 sm:$0xff]  }
 0x325   : > { %4645 = vmatprep.subr.bf16.mxu1 %v18758_v17 }
 0x32b   : > { %2831 = vmatpush1.bf16.xpose.msra.mxu0 %v18753_v10 }
 0x32c   : > { %4646 = vmatpush1.bf16.xpose.msra.mxu1 %v18756_v20  ;;  %2832 = vmatprep.subr.bf16.mxu0 %v18761_v12  ;;  %v18789_v12 = vld [vmem:[#allocation8 + $0x8b0] ss:$24 sps:$4 sm:$0xff]  }
 0x32d   : > { %4647 = vmatprep.subr.bf16.mxu1 %v18764_v13  ;;  %v18792_v13 = vld [vmem:[#allocation11 + $0x2a0] ss:$24 sps:$4 sm:$0xff]  }
 0x333   : > { %2833 = vmatpush1.bf16.xpose.msra.mxu0 %v18759_v14  ;;  %v18797_v14 = vld [vmem:[#allocation8 + $0x884] ss:$24 sps:$4 sm:$0xff]  }
 0x334   : > { %4648 = vmatpush1.bf16.xpose.msra.mxu1 %v18762_v15  ;;  %2834 = vmatprep.subr.bf16.mxu0 %v18767_v19  ;;  %v18800_v15 = vld [vmem:[#allocation11 + $0x274] ss:$24 sps:$4 sm:$0xff]  }
 0x335   : > { %4649 = vmatprep.subr.bf16.mxu1 %v18770_v21 }
 0x33b   : > { %2835 = vmatpush1.bf16.xpose.msra.mxu0 %v18765_v23  ;;  %v18989_v23 = vld [vmem:[#allocation11 + $0x574] ss:$24 sps:$4 sm:$0xff]  }
 0x33c   : > { %4650 = vmatpush1.bf16.xpose.msra.mxu1 %v18768_v24  ;;  %2836 = vmatprep.subr.bf16.mxu0 %v18773_v27  ;;  %v18795_v27 = vld [vmem:[#allocation8 + $0x880] ss:$24 sps:$4 sm:$0xff]  }
 0x33d   : > { %4651 = vmatprep.subr.bf16.mxu1 %v18776_v30  ;;  %v18798_v30 = vld [vmem:[#allocation11 + $0x270] ss:$24 sps:$4 sm:$0xff]  }
 0x343   : > { %2837 = vmatpush1.bf16.xpose.msra.mxu0 %v18771_v33  ;;  %v18803_v33 = vld [vmem:[#allocation8 + $0x854] ss:$24 sps:$4 sm:$0xff]  }
 0x344   : > { %4652 = vmatpush1.bf16.xpose.msra.mxu1 %v18774_v34  ;;  %2838 = vmatprep.subr.bf16.mxu0 %v18779_v35  ;;  %v18806_v34 = vld [vmem:[#allocation11 + $0x244] ss:$24 sps:$4 sm:$0xff]  }
 0x345   : > { %4653 = vmatprep.subr.bf16.mxu1 %v18782_v36  ;;  %v18801_v35 = vld [vmem:[#allocation8 + $0x850] ss:$24 sps:$4 sm:$0xff]  }
 0x346   : > { %v18804_v36 = vld [vmem:[#allocation11 + $0x240] ss:$24 sps:$4 sm:$0xff]  }
 0x34b   : > { %2839 = vmatpush1.bf16.xpose.msra.mxu0 %v18777_v40  ;;  %v18812_v40 = vld [vmem:[#allocation11 + $0x214] ss:$24 sps:$4 sm:$0xff]  }
 0x34c   : > { %4654 = vmatpush1.bf16.xpose.msra.mxu1 %v18780_v11  ;;  %2840 = vmatprep.subr.bf16.mxu0 %v18785_v42  ;;  %v18807_v11 = vld [vmem:[#allocation8 + $0x820] ss:$24 sps:$4 sm:$0xff]   ;;  %v18815_v42 = vld [vmem:[#allocation8 + $0x7f4] ss:$24 sps:$4 sm:$0xff]  }
 0x34d   : > { %4655 = vmatprep.subr.bf16.mxu1 %v18788_v43  ;;  %v18818_v43 = vld [vmem:[#allocation11 + $0x1e4] ss:$24 sps:$4 sm:$0xff]  }
 0x352   : > { %v2686_v61 = vpop.f32.mrf.mxu0 }
 0x353   : > { %v2729_v62 = vpop.f32.mrf.mxu1  ;;  %v2687_v2 = vadd.f32 %v2686_v61, %v2644_v59  ;;  %2841 = vmatpush2.bf16.xpose.msra.mxu0 %v18783_v53  ;;  %v18816_v53 = vld [vmem:[#allocation11 + $0x1e0] ss:$24 sps:$4 sm:$0xff]   ;;  %v18830_v59 = vld [vmem:[#allocation11 + $0x184] ss:$24 sps:$4 sm:$0xff]  }
 0x354   : > { %4656 = vmatpush2.bf16.xpose.msra.mxu1 %v18786_v54  ;;  %v2688_v7 = vpop.f32.mrf.mxu0  ;;  %2842 = vmatprep.subr.bf16.mxu0 %v18791_v28  ;;  %v18821_v54 = vld [vmem:[#allocation8 + $0x7c4] ss:$24 sps:$4 sm:$0xff]   ;;  %v18822_v28 = vld [vmem:[#allocation11 + $0x1b0] ss:$24 sps:$4 sm:$0xff]  }
 0x355   : > { %v2731_v8 = vpop.f32.mrf.mxu1  ;;  %4657 = vmatprep.subr.bf16.mxu1 %v18794_v31  ;;  %v21172_v9 = vadd.f32 %v2729_v62, %v2687_v2  ;;  %v2689_v17 = vadd.f32 %v2688_v7, %v2646_v1  ;;  %v18827_v31 = vld [vmem:[#allocation8 + $0x794] ss:$24 sps:$4 sm:$0xff]   ;;  %v18825_v61 = vld [vmem:[#allocation8 + $0x790] ss:$24 sps:$4 sm:$0xff]   ;;  %v688_v2 = vld [vmem:[%s21030_s25] sm:$0xff] }
 0x356   : > { %v18828_v62 = vld [vmem:[#allocation11 + $0x180] ss:$24 sps:$4 sm:$0xff]   ;;  %v18836_v1 = vld [vmem:[#allocation11 + $0x164] ss:$24 sps:$4 sm:$0xff]  }
 0x357   : > { %v17297_v10 = vpack.c.bf16 %v21172_v9, %v21170_v16  ;;  %v21179_v20 = vadd.f32 %v2731_v8, %v2689_v17  ;;  %v701_v7 = vld [vmem:[%s21030_s25 + $0x68] sm:$0xff]  ;;  %v21196_v8 = vpack.c.bf16 %v694_v6, %v688_v2  ;;  %v707_v17 = vld [vmem:[%s21030_s25 + $0x98] sm:$0xff] }
 0x358   : > { %v18864_v2 = vld [vmem:[#allocation11 + $0x70] ss:$24 sps:$4 sm:$0xff]   ;;  %v18869_v6 = vld [vmem:[#allocation11 + $0x3c] ss:$24 sps:$4 sm:$0xff]  }
 0x359   : > { %23673 = vst [vmem:[#allocation47_spill] sm:$0xff] %v21179_v20  ;;  %v17298_v19 = vpack.c.bf16 %v21179_v20, %v21119_v29  ;;  %v21184_v25 = vrot.slane %v17297_v10, %v21177_v5  ;;  %v691_v10 = vld [vmem:[%s21030_s25 + $0x18] sm:$0xff]  ;;  %v18995_v20 = vld [vmem:[#allocation11 + $0x544] ss:$24 sps:$4 sm:$0xff]  }
 0x35a   : > { %v19079_v29 = vld [vmem:[#allocation11 + $0x5b4] ss:$24 sps:$4 sm:$0xff]  }
 0x35b   : > { %23674 = vst [vmem:[#allocation48_spill] sm:$0xff] %v21184_v25  ;;  %v21187_v21 = vrot.slane %v17298_v19, %v21177_v5  ;;  %2843 = vmatpush2.bf16.xpose.msra.mxu0 %v18789_v12  ;;  %v697_v12 = vld [vmem:[%s21030_s25 + $0x48] sm:$0xff]  ;;  %v18842_v19 = vld [vmem:[#allocation11 + $0x134] ss:$24 sps:$4 sm:$0xff]   ;;  %v18987_v5 = vld [vmem:[#allocation11 + $0x570] ss:$24 sps:$4 sm:$0xff]  }
 0x35c   : > { %4658 = vmatpush2.bf16.xpose.msra.mxu1 %v18792_v13  ;;  %2844 = vmatprep.subr.bf16.mxu0 %v18797_v14  ;;  %v18831_v13 = vld [vmem:[#allocation11 + $0x158] ss:$24 sps:$4 sm:$0xff]  }
 0x35d   : > { %23675 = vst [vmem:[#allocation49_spill] sm:$0xff] %v21187_v21  ;;  %4659 = vmatprep.subr.bf16.mxu1 %v18800_v15  ;;  %v18834_v14 = vld [vmem:[#allocation11 + $0x160] ss:$24 sps:$4 sm:$0xff]   ;;  %v18839_v15 = vld [vmem:[#allocation11 + $0x12c] ss:$24 sps:$4 sm:$0xff]  }
 0x35e   : > { %v18992_v21 = vld [vmem:[#allocation11 + $0x57c] ss:$24 sps:$4 sm:$0xff]  }
 0x363   : > { %2845 = vmatpush2.bf16.xpose.msra.mxu0 %v18795_v27  ;;  %v21201_v27 = vpack.c.bf16 %v707_v17, %v701_v7  ;;  %v18872_v7 = vld [vmem:[#allocation11 + $0x44] ss:$24 sps:$4 sm:$0xff]   ;;  %v18867_v17 = vld [vmem:[#allocation11 + $0x38] ss:$24 sps:$4 sm:$0xff]  }
 0x364   : > { %4660 = vmatpush2.bf16.xpose.msra.mxu1 %v18798_v30  ;;  %2846 = vmatprep.subr.bf16.mxu0 %v18803_v33  ;;  %v21203_v30 = vpack.c.bf16 %v697_v12, %v691_v10  ;;  %v700_v33 = vld [vmem:[%s21030_s25 + $0x60] sm:$0xff]  ;;  %v18875_v12 = vld [vmem:[#allocation11 + $0xc] ss:$24 sps:$4 sm:$0xff]  }
 0x365   : > { %4661 = vmatprep.subr.bf16.mxu1 %v18806_v34  ;;  %v706_v34 = vld [vmem:[%s21030_s25 + $0x90] sm:$0xff]  ;;  %v18870_v10 = vld [vmem:[#allocation11 + $0x40] ss:$24 sps:$4 sm:$0xff]  }
 0x36b   : > { %2847 = vmatpush2.bf16.xpose.msra.mxu0 %v18801_v35  ;;  %v21211_v35 = vpack.c.bf16 %v706_v34, %v700_v33  ;;  %v18884_v33 = vld [vmem:[#allocation11 + $0x2e4] ss:$24 sps:$4 sm:$0xff]   ;;  %v21219_v34 = vpop.f32.mrf.mxu0 }
 0x36c   : > { %4662 = vmatpush2.bf16.xpose.msra.mxu1 %v18804_v36  ;;  %2848 = vmatprep.subr.bf16.mxu0 %v18809_v38  ;;  %v693_v36 = vld [vmem:[%s21030_s25 + $0x28] sm:$0xff]  ;;  %v699_v38 = vld [vmem:[%s21030_s25 + $0x58] sm:$0xff] }
 0x36d   : > { %4663 = vmatprep.subr.bf16.mxu1 %v18812_v40  ;;  %v18837_v40 = vld [vmem:[#allocation11 + $0x128] ss:$24 sps:$4 sm:$0xff]  }
 0x373   : > { %2849 = vmatpush2.bf16.xpose.msra.mxu0 %v18807_v11  ;;  %v18840_v11 = vld [vmem:[#allocation11 + $0x130] ss:$24 sps:$4 sm:$0xff]  }
 0x374   : > { %4664 = vmatpush2.bf16.xpose.msra.mxu1 %v18810_v41  ;;  %2850 = vmatprep.subr.bf16.mxu0 %v18815_v42  ;;  %v18845_v41 = vld [vmem:[#allocation11 + $0xfc] ss:$24 sps:$4 sm:$0xff]   ;;  %v21215_v42 = vpack.c.bf16 %v699_v38, %v693_v36  ;;  %v21221_v36 = vpop.f32.mrf.mxu1  ;;  %v21224_v38 = vsub.s32 5, %v21093_v60 }
 0x375   : > { %4665 = vmatprep.subr.bf16.mxu1 %v18818_v43  ;;  %v18843_v43 = vld [vmem:[#allocation11 + $0xf8] ss:$24 sps:$4 sm:$0xff]  }
 0x376   : > { %23676 = vst [vmem:[#allocation50_spill] sm:$0xff] %v21224_v38 }
 0x37b   : > { %2851 = vmatpush2.bf16.xpose.msra.mxu0 %v18813_v51  ;;  %v18846_v51 = vld [vmem:[#allocation11 + $0x100] ss:$24 sps:$4 sm:$0xff]  }
 0x37c   : > { %4666 = vmatpush2.bf16.xpose.msra.mxu1 %v18816_v53  ;;  %2852 = vmatprep.subr.bf16.mxu0 %v18821_v54  ;;  %v18851_v53 = vld [vmem:[#allocation11 + $0xcc] ss:$24 sps:$4 sm:$0xff]  }
 0x37d   : > { %4667 = vmatprep.subr.bf16.mxu1 %v18824_v55  ;;  %v18854_v54 = vld [vmem:[#allocation11 + $0xd4] ss:$24 sps:$4 sm:$0xff]   ;;  %v18849_v55 = vld [vmem:[#allocation11 + $0xc8] ss:$24 sps:$4 sm:$0xff]  }
 0x383   : > { %2853 = vmatpush2.bf16.xpose.msra.mxu0 %v18819_v56  ;;  %v18852_v56 = vld [vmem:[#allocation11 + $0xd0] ss:$24 sps:$4 sm:$0xff]  }
 0x384   : > { %4668 = vmatpush2.bf16.xpose.msra.mxu1 %v18822_v28  ;;  %2854 = vmatprep.subr.bf16.mxu0 %v18827_v31  ;;  %v18857_v28 = vld [vmem:[#allocation11 + $0x9c] ss:$24 sps:$4 sm:$0xff]  }
 0x385   : > { %4669 = vmatprep.subr.bf16.mxu1 %v18830_v59  ;;  %v18860_v31 = vld [vmem:[#allocation11 + $0xa4] ss:$24 sps:$4 sm:$0xff]   ;;  %v18855_v59 = vld [vmem:[#allocation11 + $0x98] ss:$24 sps:$4 sm:$0xff]  }
 0x38b   : > { %2855 = vmatpush2.bf16.xpose.msra.mxu0 %v18825_v61  ;;  %v18858_v61 = vld [vmem:[#allocation11 + $0xa0] ss:$24 sps:$4 sm:$0xff]  }
 0x38c   : > { %4670 = vmatpush2.bf16.xpose.msra.mxu1 %v18828_v62  ;;  %4692 = vmatprep.subr.bf16.mxu0 %v18833_v4  ;;  %v18863_v62 = vld [vmem:[#allocation11 + $0x6c] ss:$24 sps:$4 sm:$0xff]  }
 0x38d   : > { %4745 = vmatprep.subr.bf16.mxu1 %v18836_v1  ;;  %v18866_v4 = vld [vmem:[#allocation11 + $0x74] ss:$24 sps:$4 sm:$0xff]   ;;  %v18861_v1 = vld [vmem:[#allocation11 + $0x68] ss:$24 sps:$4 sm:$0xff]  }
 0x392   : > { %2857 = vmatmul.mubr.bf16.vlgmr.msra.gmra.mxu0 %v21087_v26  ;;  %v18848_v26 = vld [vmem:[#allocation11 + $0x104] ss:$24 sps:$4 sm:$0xff]  }
 0x393   : > { %4672 = vmatmul.mubr.bf16.vlgmr.msra.gmra.mxu1 %v21196_v8  ;;  %4693 = vmatpush1.bf16.xpose.msra.mxu0 %v18831_v13  ;;  %v18878_v13 = vld [vmem:[#allocation11 + $0x14] ss:$24 sps:$4 sm:$0xff]  }
 0x394   : > { %4746 = vmatpush1.bf16.xpose.msra.mxu1 %v18834_v14  ;;  %4694 = vmatprep.subr.bf16.mxu0 %v18839_v15  ;;  %v18873_v14 = vld [vmem:[#allocation11 + $0x8] ss:$24 sps:$4 sm:$0xff]  }
 0x395   : > { %4747 = vmatprep.subr.bf16.mxu1 %v18842_v19  ;;  %4681 = vmatprep.mubr.bf16.mxu1 %v21201_v27  ;;  %v18876_v15 = vld [vmem:[#allocation11 + $0x10] ss:$24 sps:$4 sm:$0xff]   ;;  %v18881_v19 = vld [vmem:[#allocation11 + $0x2dc] ss:$24 sps:$4 sm:$0xff]  }
 0x396   : > { %4724 = vmatprep.mubr.bf16.mxu0 %v21203_v30 }
 0x39b   : > { %4682 = vmatmul.mubr.bf16.gmra.mxu1 %v21211_v35  ;;  %4695 = vmatpush1.bf16.xpose.msra.mxu0 %v18837_v40  ;;  %v18879_v40 = vld [vmem:[#allocation11 + $0x2d8] ss:$24 sps:$4 sm:$0xff]  }
 0x39c   : > { %4748 = vmatpush1.bf16.xpose.msra.mxu1 %v18840_v11  ;;  %4696 = vmatprep.subr.bf16.mxu0 %v18845_v41  ;;  %v18882_v11 = vld [vmem:[#allocation11 + $0x2e0] ss:$24 sps:$4 sm:$0xff]   ;;  %v21226_v41 = vpop.f32.mrf.mxu0 }
 0x39d   : > { %4749 = vmatprep.subr.bf16.mxu1 %v18848_v26  ;;  %4777 = vmatprep.mubr.bf16.mxu1 %v21215_v42  ;;  %23677 = vst [vmem:[#allocation51_spill] sm:$0xff] %v21226_v41  ;;  %v21228_v26 = vpop.f32.mrf.mxu1 }
 0x39e   : > { %23678 = vst [vmem:[#allocation52_spill] sm:$0xff] %v21228_v26  ;;  %v19010_v26 = vld [vmem:[#allocation11 + $0x4ec] ss:$24 sps:$4 sm:$0xff]  }
 0x3a3   : > { %4697 = vmatpush1.bf16.xpose.msra.mxu0 %v18843_v43  ;;  %v18887_v43 = vld [vmem:[#allocation11 + $0x2ac] ss:$24 sps:$4 sm:$0xff]  }
 0x3a4   : > { %4750 = vmatpush1.bf16.xpose.msra.mxu1 %v18846_v51  ;;  %4698 = vmatprep.subr.bf16.mxu0 %v18851_v53  ;;  %v18890_v51 = vld [vmem:[#allocation11 + $0x2b4] ss:$24 sps:$4 sm:$0xff]   ;;  %v21232_v53 = vrot.slane %v21139_v45, %v21224_v38  ;;  %v18891_v45 = vld [vmem:[#allocation11 + $0x278] ss:$24 sps:$4 sm:$0xff]  }
 0x3a5   : > { %4751 = vmatprep.subr.bf16.mxu1 %v18854_v54 }
 0x3a6   : > { %23679 = vst [vmem:[#allocation53_spill] sm:$0xff] %v21232_v53 }
 0x3ab   : > { %4699 = vmatpush1.bf16.xpose.msra.mxu0 %v18849_v55 }
 0x3ac   : > { %4752 = vmatpush1.bf16.xpose.msra.mxu1 %v18852_v56  ;;  %4700 = vmatprep.subr.bf16.mxu0 %v18857_v28 }
 0x3ad   : > { %4753 = vmatprep.subr.bf16.mxu1 %v18860_v31 }
 0x3b3   : > { %4701 = vmatpush1.bf16.xpose.msra.mxu0 %v18855_v59 }
 0x3b4   : > { %4754 = vmatpush1.bf16.xpose.msra.mxu1 %v18858_v61  ;;  %4702 = vmatprep.subr.bf16.mxu0 %v18863_v62  ;;  %v18885_v61 = vld [vmem:[#allocation11 + $0x2a8] ss:$24 sps:$4 sm:$0xff]  }
 0x3b5   : > { %4755 = vmatprep.subr.bf16.mxu1 %v18866_v4  ;;  %v18888_v62 = vld [vmem:[#allocation11 + $0x2b0] ss:$24 sps:$4 sm:$0xff]   ;;  %v18893_v4 = vld [vmem:[#allocation11 + $0x27c] ss:$24 sps:$4 sm:$0xff]  }
 0x3bb   : > { %4703 = vmatpush1.bf16.xpose.msra.mxu0 %v18861_v1  ;;  %v18896_v1 = vld [vmem:[#allocation11 + $0x284] ss:$24 sps:$4 sm:$0xff]  }
 0x3bc   : > { %4756 = vmatpush1.bf16.xpose.msra.mxu1 %v18864_v2  ;;  %4704 = vmatprep.subr.bf16.mxu0 %v18869_v6  ;;  %v18894_v2 = vld [vmem:[#allocation11 + $0x280] ss:$24 sps:$4 sm:$0xff]   ;;  %v18899_v6 = vld [vmem:[#allocation11 + $0x24c] ss:$24 sps:$4 sm:$0xff]  }
 0x3bd   : > { %4757 = vmatprep.subr.bf16.mxu1 %v18872_v7  ;;  %v18902_v7 = vld [vmem:[#allocation11 + $0x254] ss:$24 sps:$4 sm:$0xff]  }
 0x3c3   : > { %4705 = vmatpush1.bf16.xpose.msra.mxu0 %v18867_v17  ;;  %v18897_v17 = vld [vmem:[#allocation11 + $0x248] ss:$24 sps:$4 sm:$0xff]  }
 0x3c4   : > { %4758 = vmatpush1.bf16.xpose.msra.mxu1 %v18870_v10  ;;  %4706 = vmatprep.subr.bf16.mxu0 %v18875_v12  ;;  %v18900_v10 = vld [vmem:[#allocation11 + $0x250] ss:$24 sps:$4 sm:$0xff]   ;;  %v18905_v12 = vld [vmem:[#allocation11 + $0x21c] ss:$24 sps:$4 sm:$0xff]  }
 0x3c5   : > { %4759 = vmatprep.subr.bf16.mxu1 %v18878_v13  ;;  %v18908_v13 = vld [vmem:[#allocation11 + $0x224] ss:$24 sps:$4 sm:$0xff]  }
 0x3cb   : > { %4707 = vmatpush1.bf16.xpose.msra.mxu0 %v18873_v14  ;;  %v18903_v14 = vld [vmem:[#allocation11 + $0x218] ss:$24 sps:$4 sm:$0xff]  }
 0x3cc   : > { %4760 = vmatpush1.bf16.xpose.msra.mxu1 %v18876_v15  ;;  %4708 = vmatprep.subr.bf16.mxu0 %v18881_v19  ;;  %v18906_v15 = vld [vmem:[#allocation11 + $0x220] ss:$24 sps:$4 sm:$0xff]   ;;  %v18911_v19 = vld [vmem:[#allocation11 + $0x1ec] ss:$24 sps:$4 sm:$0xff]  }
 0x3cd   : > { %4761 = vmatprep.subr.bf16.mxu1 %v18884_v33  ;;  %v18914_v33 = vld [vmem:[#allocation11 + $0x1f4] ss:$24 sps:$4 sm:$0xff]  }
 0x3d2   : > { %v21234_v54 = vpop.f32.mrf.mxu0 }
 0x3d3   : > { %v21236_v55 = vpop.f32.mrf.mxu1  ;;  %4709 = vmatpush2.bf16.xpose.msra.mxu0 %v18879_v40  ;;  %v18909_v40 = vld [vmem:[#allocation11 + $0x1e8] ss:$24 sps:$4 sm:$0xff]  }
 0x3d4   : > { %4762 = vmatpush2.bf16.xpose.msra.mxu1 %v18882_v11  ;;  %v2774_v56 = vpop.f32.mrf.mxu0  ;;  %4710 = vmatprep.subr.bf16.mxu0 %v18887_v43  ;;  %v18912_v11 = vld [vmem:[#allocation11 + $0x1f0] ss:$24 sps:$4 sm:$0xff]   ;;  %v18917_v43 = vld [vmem:[#allocation11 + $0x1bc] ss:$24 sps:$4 sm:$0xff]  }
 0x3d5   : > { %v2817_v28 = vpop.f32.mrf.mxu1  ;;  %4763 = vmatprep.subr.bf16.mxu1 %v18890_v51  ;;  %v2775_v31 = vadd.f32 %v2774_v56, %v21232_v53  ;;  %v18920_v51 = vld [vmem:[#allocation11 + $0x1c4] ss:$24 sps:$4 sm:$0xff]   ;;  %v18915_v56 = vld [vmem:[#allocation11 + $0x1b8] ss:$24 sps:$4 sm:$0xff]  }
 0x3d7   : > { %v21239_v59 = vadd.f32 %v2817_v28, %v2775_v31  ;;  %v18918_v28 = vld [vmem:[#allocation11 + $0x1c0] ss:$24 sps:$4 sm:$0xff]   ;;  %v18923_v31 = vld [vmem:[#allocation11 + $0x18c] ss:$24 sps:$4 sm:$0xff]  }
 0x3db   : > { %4711 = vmatpush2.bf16.xpose.msra.mxu0 %v18885_v61  ;;  %v18926_v61 = vld [vmem:[#allocation11 + $0x194] ss:$24 sps:$4 sm:$0xff]  }
 0x3dc   : > { %4764 = vmatpush2.bf16.xpose.msra.mxu1 %v18888_v62  ;;  %4712 = vmatprep.subr.bf16.mxu0 %v18893_v4  ;;  %v18921_v62 = vld [vmem:[#allocation11 + $0x188] ss:$24 sps:$4 sm:$0xff]  }
 0x3dd   : > { %4765 = vmatprep.subr.bf16.mxu1 %v18896_v1  ;;  %v18924_v4 = vld [vmem:[#allocation11 + $0x190] ss:$24 sps:$4 sm:$0xff]   ;;  %v18929_v1 = vld [vmem:[#allocation11 + $0x454] ss:$24 sps:$4 sm:$0xff]  }
 0x3e3   : > { %4713 = vmatpush2.bf16.xpose.msra.mxu0 %v18891_v45  ;;  %v18932_v45 = vld [vmem:[#allocation11 + $0x45c] ss:$24 sps:$4 sm:$0xff]  }
 0x3e4   : > { %4766 = vmatpush2.bf16.xpose.msra.mxu1 %v18894_v2  ;;  %4714 = vmatprep.subr.bf16.mxu0 %v18899_v6  ;;  %v690_v2 = vld [vmem:[%s21030_s25 + $0x10] sm:$0xff]  ;;  %v696_v6 = vld [vmem:[%s21030_s25 + $0x40] sm:$0xff] }
 0x3e5   : > { %4767 = vmatprep.subr.bf16.mxu1 %v18902_v7  ;;  %v692_v7 = vld [vmem:[%s21030_s25 + $0x20] sm:$0xff] }
 0x3eb   : > { %4715 = vmatpush2.bf16.xpose.msra.mxu0 %v18897_v17  ;;  %v698_v17 = vld [vmem:[%s21030_s25 + $0x50] sm:$0xff] }
 0x3ec   : > { %4768 = vmatpush2.bf16.xpose.msra.mxu1 %v18900_v10  ;;  %4716 = vmatprep.subr.bf16.mxu0 %v18905_v12  ;;  %v703_v10 = vld [vmem:[%s21030_s25 + $0x78] sm:$0xff]  ;;  %v709_v12 = vld [vmem:[%s21030_s25 + $0xa8] sm:$0xff] }
 0x3ed   : > { %4769 = vmatprep.subr.bf16.mxu1 %v18908_v13  ;;  %v21247_v13 = vpack.c.bf16 %v696_v6, %v690_v2  ;;  %v18936_v2 = vld [vmem:[#allocation11 + $0x428] ss:$24 sps:$4 sm:$0xff]   ;;  %v18941_v6 = vld [vmem:[#allocation11 + $0x3f4] ss:$24 sps:$4 sm:$0xff]  }
 0x3f3   : > { %4717 = vmatpush2.bf16.xpose.msra.mxu0 %v18903_v14  ;;  %v21249_v14 = vpack.c.bf16 %v698_v17, %v692_v7  ;;  %v18944_v7 = vld [vmem:[#allocation11 + $0x3fc] ss:$24 sps:$4 sm:$0xff]   ;;  %v18939_v17 = vld [vmem:[#allocation11 + $0x3f0] ss:$24 sps:$4 sm:$0xff]  }
 0x3f4   : > { %4770 = vmatpush2.bf16.xpose.msra.mxu1 %v18906_v15  ;;  %4718 = vmatprep.subr.bf16.mxu0 %v18911_v19  ;;  %v705_v15 = vld [vmem:[%s21030_s25 + $0x88] sm:$0xff]  ;;  %v711_v19 = vld [vmem:[%s21030_s25 + $0xb8] sm:$0xff] }
 0x3f5   : > { %4771 = vmatprep.subr.bf16.mxu1 %v18914_v33  ;;  %v18927_v33 = vld [vmem:[#allocation11 + $0x450] ss:$24 sps:$4 sm:$0xff]  }
 0x3fb   : > { %4719 = vmatpush2.bf16.xpose.msra.mxu0 %v18909_v40  ;;  %v18930_v40 = vld [vmem:[#allocation11 + $0x458] ss:$24 sps:$4 sm:$0xff]  }
 0x3fc   : > { %4772 = vmatpush2.bf16.xpose.msra.mxu1 %v18912_v11  ;;  %4720 = vmatprep.subr.bf16.mxu0 %v18917_v43  ;;  %v21253_v11 = vpack.c.bf16 %v709_v12, %v703_v10  ;;  %v18935_v43 = vld [vmem:[#allocation11 + $0x424] ss:$24 sps:$4 sm:$0xff]   ;;  %v18942_v10 = vld [vmem:[#allocation11 + $0x3f8] ss:$24 sps:$4 sm:$0xff]  }
 0x3fd   : > { %4773 = vmatprep.subr.bf16.mxu1 %v18920_v51  ;;  %v18938_v51 = vld [vmem:[#allocation11 + $0x42c] ss:$24 sps:$4 sm:$0xff]  }
 0x3fe   : > { %v18947_v12 = vld [vmem:[#allocation11 + $0x3c4] ss:$24 sps:$4 sm:$0xff]  }
 0x403   : > { %4721 = vmatpush2.bf16.xpose.msra.mxu0 %v18915_v56  ;;  %v21255_v56 = vpack.c.bf16 %v711_v19, %v705_v15  ;;  %v18950_v15 = vld [vmem:[#allocation11 + $0x3cc] ss:$24 sps:$4 sm:$0xff]   ;;  %v18945_v19 = vld [vmem:[#allocation11 + $0x3c0] ss:$24 sps:$4 sm:$0xff]  }
 0x404   : > { %4774 = vmatpush2.bf16.xpose.msra.mxu1 %v18918_v28  ;;  %4722 = vmatprep.subr.bf16.mxu0 %v18923_v31  ;;  %v702_v28 = vld [vmem:[%s21030_s25 + $0x70] sm:$0xff]  ;;  %v708_v31 = vld [vmem:[%s21030_s25 + $0xa0] sm:$0xff] }
 0x405   : > { %4775 = vmatprep.subr.bf16.mxu1 %v18926_v61  ;;  %v704_v61 = vld [vmem:[%s21030_s25 + $0x80] sm:$0xff] }
 0x40b   : > { %4723 = vmatpush2.bf16.xpose.msra.mxu0 %v18921_v62  ;;  %v710_v62 = vld [vmem:[%s21030_s25 + $0xb0] sm:$0xff] }
 0x40c   : > { %4776 = vmatpush2.bf16.xpose.msra.mxu1 %v18924_v4  ;;  %4798 = vmatprep.subr.bf16.mxu0 %v18929_v1  ;;  %v21265_v4 = vpack.c.bf16 %v708_v31, %v702_v28  ;;  %v21267_v1 = vpack.c.bf16 %v710_v62, %v704_v61  ;;  %v18954_v28 = vld [vmem:[#allocation11 + $0x398] ss:$24 sps:$4 sm:$0xff]   ;;  %v18959_v31 = vld [vmem:[#allocation11 + $0x364] ss:$24 sps:$4 sm:$0xff]  }
 0x40d   : > { %4851 = vmatprep.subr.bf16.mxu1 %v18932_v45  ;;  %v18933_v45 = vld [vmem:[#allocation11 + $0x420] ss:$24 sps:$4 sm:$0xff]   ;;  %v18962_v61 = vld [vmem:[#allocation11 + $0x36c] ss:$24 sps:$4 sm:$0xff]  }
 0x40e   : > { %v18957_v62 = vld [vmem:[#allocation11 + $0x360] ss:$24 sps:$4 sm:$0xff]  }
 0x412   : > { %4725 = vmatmul.mubr.bf16.vlgmr.msra.gmra.mxu0 %v21247_v13 }
 0x413   : > { %4778 = vmatmul.mubr.bf16.vlgmr.msra.gmra.mxu1 %v21249_v14  ;;  %4799 = vmatpush1.bf16.xpose.msra.mxu0 %v18927_v33  ;;  %v18948_v33 = vld [vmem:[#allocation11 + $0x3c8] ss:$24 sps:$4 sm:$0xff]  }
 0x414   : > { %4852 = vmatpush1.bf16.xpose.msra.mxu1 %v18930_v40  ;;  %4734 = vmatprep.mubr.bf16.mxu0 %v21253_v11  ;;  %v18953_v40 = vld [vmem:[#allocation11 + $0x394] ss:$24 sps:$4 sm:$0xff]  }
 0x415   : > { %4800 = vmatprep.subr.bf16.mxu0 %v18935_v43  ;;  %4853 = vmatprep.subr.bf16.mxu1 %v18938_v51  ;;  %v18956_v43 = vld [vmem:[#allocation11 + $0x39c] ss:$24 sps:$4 sm:$0xff]   ;;  %v18951_v51 = vld [vmem:[#allocation11 + $0x390] ss:$24 sps:$4 sm:$0xff]  }
 0x416   : > { %4787 = vmatprep.mubr.bf16.mxu1 %v21255_v56 }
 0x41a   : > { %4735 = vmatmul.mubr.bf16.gmra.mxu0 %v21265_v4 }
 0x41b   : > { %4788 = vmatmul.mubr.bf16.gmra.mxu1 %v21267_v1  ;;  %4801 = vmatpush1.bf16.xpose.msra.mxu0 %v18933_v45  ;;  %v18960_v45 = vld [vmem:[#allocation11 + $0x368] ss:$24 sps:$4 sm:$0xff]  }
 0x41c   : > { %4854 = vmatpush1.bf16.xpose.msra.mxu1 %v18936_v2  ;;  %4802 = vmatprep.subr.bf16.mxu0 %v18941_v6  ;;  %v18965_v2 = vld [vmem:[#allocation11 + $0x334] ss:$24 sps:$4 sm:$0xff]  }
 0x41d   : > { %4855 = vmatprep.subr.bf16.mxu1 %v18944_v7  ;;  %4830 = vmatprep.mubr.bf16.mxu0 %v21123_v63  ;;  %v18968_v6 = vld [vmem:[#allocation11 + $0x33c] ss:$24 sps:$4 sm:$0xff]   ;;  %v18963_v7 = vld [vmem:[#allocation11 + $0x330] ss:$24 sps:$4 sm:$0xff]  }
 0x41e   : > { %4883 = vmatprep.mubr.bf16.mxu1 %v21203_v30 }
 0x423   : > { %4803 = vmatpush1.bf16.xpose.msra.mxu0 %v18939_v17  ;;  %v18966_v17 = vld [vmem:[#allocation11 + $0x338] ss:$24 sps:$4 sm:$0xff]  }
 0x424   : > { %4856 = vmatpush1.bf16.xpose.msra.mxu1 %v18942_v10  ;;  %4804 = vmatprep.subr.bf16.mxu0 %v18947_v12  ;;  %v18971_v10 = vld [vmem:[#allocation11 + $0x304] ss:$24 sps:$4 sm:$0xff]  }
 0x425   : > { %4857 = vmatprep.subr.bf16.mxu1 %v18950_v15  ;;  %v18974_v12 = vld [vmem:[#allocation11 + $0x30c] ss:$24 sps:$4 sm:$0xff]   ;;  %v18969_v15 = vld [vmem:[#allocation11 + $0x300] ss:$24 sps:$4 sm:$0xff]  }
 0x42b   : > { %4805 = vmatpush1.bf16.xpose.msra.mxu0 %v18945_v19  ;;  %v18972_v19 = vld [vmem:[#allocation11 + $0x308] ss:$24 sps:$4 sm:$0xff]  }
 0x42c   : > { %4858 = vmatpush1.bf16.xpose.msra.mxu1 %v18948_v33  ;;  %4806 = vmatprep.subr.bf16.mxu0 %v18953_v40  ;;  %v18977_v33 = vld [vmem:[#allocation11 + $0x5d4] ss:$24 sps:$4 sm:$0xff]  }
 0x42d   : > { %4859 = vmatprep.subr.bf16.mxu1 %v18956_v43  ;;  %v18980_v40 = vld [vmem:[#allocation11 + $0x5dc] ss:$24 sps:$4 sm:$0xff]   ;;  %v21273_v43 = vpop.f32.mrf.mxu0 }
 0x433   : > { %4807 = vmatpush1.bf16.xpose.msra.mxu0 %v18951_v51  ;;  %v21275_v51 = vpop.f32.mrf.mxu1 }
 0x434   : > { %4860 = vmatpush1.bf16.xpose.msra.mxu1 %v18954_v28  ;;  %4808 = vmatprep.subr.bf16.mxu0 %v18959_v31  ;;  %v18975_v28 = vld [vmem:[#allocation11 + $0x5d0] ss:$24 sps:$4 sm:$0xff]  }
 0x435   : > { %4861 = vmatprep.subr.bf16.mxu1 %v18962_v61  ;;  %v18978_v31 = vld [vmem:[#allocation11 + $0x5d8] ss:$24 sps:$4 sm:$0xff]   ;;  %v21277_v61 = vpop.f32.mrf.mxu0 }
 0x436   : > { %23680 = vst [vmem:[#allocation54_spill] sm:$0xff] %v21277_v61 }
 0x43b   : > { %4809 = vmatpush1.bf16.xpose.msra.mxu0 %v18957_v62  ;;  %v21279_v62 = vpop.f32.mrf.mxu1 }
 0x43c   : > { %4862 = vmatpush1.bf16.xpose.msra.mxu1 %v18960_v45  ;;  %4810 = vmatprep.subr.bf16.mxu0 %v18965_v2  ;;  %23681 = vst [vmem:[#allocation55_spill] sm:$0xff] %v21279_v62  ;;  %v18983_v45 = vld [vmem:[#allocation11 + $0x5a4] ss:$24 sps:$4 sm:$0xff]  }
 0x43d   : > { %4863 = vmatprep.subr.bf16.mxu1 %v18968_v6  ;;  %v18986_v2 = vld [vmem:[#allocation11 + $0x5ac] ss:$24 sps:$4 sm:$0xff]  }
 0x43e   : > { %v19007_v62 = vld [vmem:[#allocation11 + $0x4e4] ss:$24 sps:$4 sm:$0xff]  }
 0x443   : > { %4811 = vmatpush1.bf16.xpose.msra.mxu0 %v18963_v7 }
 0x444   : > { %4864 = vmatpush1.bf16.xpose.msra.mxu1 %v18966_v17  ;;  %4812 = vmatprep.subr.bf16.mxu0 %v18971_v10 }
 0x445   : > { %4865 = vmatprep.subr.bf16.mxu1 %v18974_v12 }
 0x44b   : > { %4813 = vmatpush1.bf16.xpose.msra.mxu0 %v18969_v15  ;;  %v21290_v15 = vld [vmem:[#allocation13] sm:$0x3f] }
 0x44c   : > { %4866 = vmatpush1.bf16.xpose.msra.mxu1 %v18972_v19  ;;  %4814 = vmatprep.subr.bf16.mxu0 %v18977_v33  ;;  %v18981_v33 = vld [vmem:[#allocation11 + $0x5a0] ss:$24 sps:$4 sm:$0xff]  }
 0x44d   : > { %4867 = vmatprep.subr.bf16.mxu1 %v18980_v40  ;;  %v18984_v40 = vld [vmem:[#allocation11 + $0x5a8] ss:$24 sps:$4 sm:$0xff]  }
 0x452   : > { %v21281_v6 = vpop.f32.mrf.mxu0 }
 0x453   : > { %v21283_v7 = vpop.f32.mrf.mxu1  ;;  %4815 = vmatpush2.bf16.xpose.msra.mxu0 %v18975_v28  ;;  %v21298_v28 = vrot.slane %v21290_v15, %v21134_v39  ;;  %v18990_v39 = vld [vmem:[#allocation11 + $0x578] ss:$24 sps:$4 sm:$0xff]  }
 0x454   : > { %4868 = vmatpush2.bf16.xpose.msra.mxu1 %v18978_v31  ;;  %v2860_v17 = vpop.f32.mrf.mxu0  ;;  %4816 = vmatprep.subr.bf16.mxu0 %v18983_v45  ;;  %v21302_v45 = vrot.slane %v21290_v15, %v21096_v0  ;;  %v18998_v0 = vld [vmem:[#allocation11 + $0x54c] ss:$24 sps:$4 sm:$0xff]  }
 0x455   : > { %v21285_v10 = vpop.f32.mrf.mxu1  ;;  %4869 = vmatprep.subr.bf16.mxu1 %v18986_v2  ;;  %v21288_v12 = vadd.f32 %v2860_v17, %v21239_v59 }
 0x457   : > { %23682 = vst [vmem:[#allocation56_spill] sm:$0xff] %v21288_v12  ;;  %v21292_v19 = vpop.f32.mrf.mxu1 }
 0x459   : > { %v21294_v24 = vpop.f32.mrf.mxu1 }
 0x45a   : > { %v4680_v41 = vadd.f32 %v21294_v24, %v21302_v45 }
 0x45b   : > { %v4683_v31 = vpop.f32.mrf.mxu1  ;;  %4817 = vmatpush2.bf16.xpose.msra.mxu0 %v18981_v33  ;;  %v18993_v33 = vld [vmem:[#allocation11 + $0x540] ss:$24 sps:$4 sm:$0xff]  }
 0x45c   : > { %4870 = vmatpush2.bf16.xpose.msra.mxu1 %v18984_v40  ;;  %v21305_v59 = vadd.f32 %v4683_v31, %v21298_v28  ;;  %4818 = vmatprep.subr.bf16.mxu0 %v18989_v23  ;;  %v18996_v40 = vld [vmem:[#allocation11 + $0x548] ss:$24 sps:$4 sm:$0xff]   ;;  %v19001_v23 = vld [vmem:[#allocation11 + $0x514] ss:$24 sps:$4 sm:$0xff]  }
 0x45d   : > { %4871 = vmatprep.subr.bf16.mxu1 %v18992_v21  ;;  %v4685_v2 = vpop.f32.mrf.mxu1  ;;  %v19004_v21 = vld [vmem:[#allocation11 + $0x51c] ss:$24 sps:$4 sm:$0xff]   ;;  %v18999_v31 = vld [vmem:[#allocation11 + $0x510] ss:$24 sps:$4 sm:$0xff]  }
 0x45e   : > { %v21308_v17 = vadd.f32 %v4685_v2, %v21302_v45  ;;  %v19002_v2 = vld [vmem:[#allocation11 + $0x518] ss:$24 sps:$4 sm:$0xff]  }
 0x45f   : > { %v4687_v25 = vpop.f32.mrf.mxu1 }
 0x460   : > { %v21311_v12 = vadd.f32 %v4687_v25, %v21298_v28  ;;  %v19011_v25 = vld [vmem:[#allocation11 + $0x4b0] ss:$24 sps:$4 sm:$0xff]  }
 0x463   : > { %4819 = vmatpush2.bf16.xpose.msra.mxu0 %v18987_v5  ;;  %v19005_v5 = vld [vmem:[#allocation11 + $0x4e0] ss:$24 sps:$4 sm:$0xff]  }
 0x464   : > { %4872 = vmatpush2.bf16.xpose.msra.mxu1 %v18990_v39  ;;  %4820 = vmatprep.subr.bf16.mxu0 %v18995_v20  ;;  %v19008_v39 = vld [vmem:[#allocation11 + $0x4e8] ss:$24 sps:$4 sm:$0xff]   ;;  %v19013_v20 = vld [vmem:[#allocation11 + $0x4b4] ss:$24 sps:$4 sm:$0xff]  }
 0x465   : > { %4873 = vmatprep.subr.bf16.mxu1 %v18998_v0  ;;  %v19016_v0 = vld [vmem:[#allocation11 + $0x4bc] ss:$24 sps:$4 sm:$0xff]  }
 0x46b   : > { %4821 = vmatpush2.bf16.xpose.msra.mxu0 %v18993_v33  ;;  %v19014_v33 = vld [vmem:[#allocation11 + $0x4b8] ss:$24 sps:$4 sm:$0xff]  }
 0x46c   : > { %4874 = vmatpush2.bf16.xpose.msra.mxu1 %v18996_v40  ;;  %4822 = vmatprep.subr.bf16.mxu0 %v19001_v23  ;;  %v19019_v40 = vld [vmem:[#allocation11 + $0x484] ss:$24 sps:$4 sm:$0xff]  }
 0x46d   : > { %4875 = vmatprep.subr.bf16.mxu1 %v19004_v21  ;;  %v19022_v23 = vld [vmem:[#allocation11 + $0x48c] ss:$24 sps:$4 sm:$0xff]   ;;  %v19017_v21 = vld [vmem:[#allocation11 + $0x480] ss:$24 sps:$4 sm:$0xff]  }
 0x473   : > { %4823 = vmatpush2.bf16.xpose.msra.mxu0 %v18999_v31  ;;  %v19020_v31 = vld [vmem:[#allocation11 + $0x488] ss:$24 sps:$4 sm:$0xff]  }
 0x474   : > { %4876 = vmatpush2.bf16.xpose.msra.mxu1 %v19002_v2  ;;  %4824 = vmatprep.subr.bf16.mxu0 %v19007_v62  ;;  %v19025_v62 = vld [vmem:[#allocation11 + $0x464] ss:$24 sps:$4 sm:$0xff]   ;;  %v19023_v2 = vld [vmem:[#allocation11 + $0x460] ss:$24 sps:$4 sm:$0xff]  }
 0x475   : > { %4877 = vmatprep.subr.bf16.mxu1 %v19010_v26  ;;  %v19028_v26 = vld [vmem:[#allocation11 + $0x754] ss:$24 sps:$4 sm:$0xff]  }
 0x47b   : > { %4825 = vmatpush2.bf16.xpose.msra.mxu0 %v19005_v5  ;;  %v19026_v5 = vld [vmem:[#allocation11 + $0x750] ss:$24 sps:$4 sm:$0xff]  }
 0x47c   : > { %4878 = vmatpush2.bf16.xpose.msra.mxu1 %v19008_v39  ;;  %4826 = vmatprep.subr.bf16.mxu0 %v19013_v20  ;;  %v19031_v39 = vld [vmem:[#allocation11 + $0x434] ss:$24 sps:$4 sm:$0xff]   ;;  %v19034_v20 = vld [vmem:[#allocation11 + $0x724] ss:$24 sps:$4 sm:$0xff]  }
 0x47d   : > { %4879 = vmatprep.subr.bf16.mxu1 %v19016_v0  ;;  %v19029_v0 = vld [vmem:[#allocation11 + $0x430] ss:$24 sps:$4 sm:$0xff]  }
 0x483   : > { %4827 = vmatpush2.bf16.xpose.msra.mxu0 %v19011_v25  ;;  %v19032_v25 = vld [vmem:[#allocation11 + $0x720] ss:$24 sps:$4 sm:$0xff]  }
 0x484   : > { %4880 = vmatpush2.bf16.xpose.msra.mxu1 %v19014_v33  ;;  %4828 = vmatprep.subr.bf16.mxu0 %v19019_v40  ;;  %v19037_v33 = vld [vmem:[#allocation11 + $0x404] ss:$24 sps:$4 sm:$0xff]   ;;  %v19040_v40 = vld [vmem:[#allocation11 + $0x6f4] ss:$24 sps:$4 sm:$0xff]  }
 0x485   : > { %4881 = vmatprep.subr.bf16.mxu1 %v19022_v23  ;;  %v19035_v23 = vld [vmem:[#allocation11 + $0x400] ss:$24 sps:$4 sm:$0xff]  }
 0x48b   : > { %4829 = vmatpush2.bf16.xpose.msra.mxu0 %v19017_v21  ;;  %v19038_v21 = vld [vmem:[#allocation11 + $0x6f0] ss:$24 sps:$4 sm:$0xff]  }
 0x48c   : > { %4882 = vmatpush2.bf16.xpose.msra.mxu1 %v19020_v31  ;;  %4904 = vmatprep.subr.bf16.mxu0 %v19025_v62  ;;  %v19043_v31 = vld [vmem:[#allocation11 + $0x3d4] ss:$24 sps:$4 sm:$0xff]   ;;  %v19046_v62 = vld [vmem:[#allocation11 + $0x6c4] ss:$24 sps:$4 sm:$0xff]  }
 0x48d   : > { %4957 = vmatprep.subr.bf16.mxu1 %v19028_v26  ;;  %v19041_v26 = vld [vmem:[#allocation11 + $0x3d0] ss:$24 sps:$4 sm:$0xff]  }
 0x492   : > { %4831 = vmatmul.mubr.bf16.vlgmr.msra.gmra.mxu0 %v21196_v8 }
 0x493   : > { %4884 = vmatmul.mubr.bf16.vlgmr.msra.gmra.mxu1 %v21247_v13  ;;  %4905 = vmatpush1.bf16.xpose.msra.mxu0 %v19023_v2  ;;  %v19044_v2 = vld [vmem:[#allocation11 + $0x6c0] ss:$24 sps:$4 sm:$0xff]  }
 0x494   : > { %4958 = vmatpush1.bf16.xpose.msra.mxu1 %v19026_v5  ;;  %4906 = vmatprep.subr.bf16.mxu0 %v19031_v39  ;;  %v19049_v5 = vld [vmem:[#allocation11 + $0x3a4] ss:$24 sps:$4 sm:$0xff]   ;;  %v19052_v39 = vld [vmem:[#allocation11 + $0x694] ss:$24 sps:$4 sm:$0xff]  }
 0x495   : > { %4959 = vmatprep.subr.bf16.mxu1 %v19034_v20  ;;  %4840 = vmatprep.mubr.bf16.mxu0 %v21201_v27  ;;  %v19047_v20 = vld [vmem:[#allocation11 + $0x3a0] ss:$24 sps:$4 sm:$0xff]  }
 0x496   : > { %4893 = vmatprep.mubr.bf16.mxu1 %v21253_v11 }
 0x49a   : > { %4841 = vmatmul.mubr.bf16.gmra.mxu0 %v21211_v35 }
 0x49b   : > { %4894 = vmatmul.mubr.bf16.gmra.mxu1 %v21265_v4  ;;  %4907 = vmatpush1.bf16.xpose.msra.mxu0 %v19029_v0  ;;  %v19050_v0 = vld [vmem:[#allocation11 + $0x690] ss:$24 sps:$4 sm:$0xff]  }
 0x49c   : > { %4960 = vmatpush1.bf16.xpose.msra.mxu1 %v19032_v25  ;;  %4908 = vmatprep.subr.bf16.mxu0 %v19037_v33  ;;  %v19055_v25 = vld [vmem:[#allocation11 + $0x374] ss:$24 sps:$4 sm:$0xff]   ;;  %v19058_v33 = vld [vmem:[#allocation11 + $0x664] ss:$24 sps:$4 sm:$0xff]  }
 0x49d   : > { %4961 = vmatprep.subr.bf16.mxu1 %v19040_v40  ;;  %4936 = vmatprep.mubr.bf16.mxu0 %v21215_v42  ;;  %v19053_v40 = vld [vmem:[#allocation11 + $0x370] ss:$24 sps:$4 sm:$0xff]  }
 0x49e   : > { %4989 = vmatprep.mubr.bf16.mxu1 %v21123_v63 }
 0x4a3   : > { %4909 = vmatpush1.bf16.xpose.msra.mxu0 %v19035_v23  ;;  %v19056_v23 = vld [vmem:[#allocation11 + $0x660] ss:$24 sps:$4 sm:$0xff]  }
 0x4a4   : > { %4962 = vmatpush1.bf16.xpose.msra.mxu1 %v19038_v21  ;;  %4910 = vmatprep.subr.bf16.mxu0 %v19043_v31  ;;  %v19061_v21 = vld [vmem:[#allocation11 + $0x344] ss:$24 sps:$4 sm:$0xff]   ;;  %v19064_v31 = vld [vmem:[#allocation11 + $0x634] ss:$24 sps:$4 sm:$0xff]  }
 0x4a5   : > { %4963 = vmatprep.subr.bf16.mxu1 %v19046_v62  ;;  %v19059_v62 = vld [vmem:[#allocation11 + $0x340] ss:$24 sps:$4 sm:$0xff]  }
 0x4ab   : > { %4911 = vmatpush1.bf16.xpose.msra.mxu0 %v19041_v26  ;;  %v19062_v26 = vld [vmem:[#allocation11 + $0x630] ss:$24 sps:$4 sm:$0xff]  }
 0x4ac   : > { %4964 = vmatpush1.bf16.xpose.msra.mxu1 %v19044_v2  ;;  %4912 = vmatprep.subr.bf16.mxu0 %v19049_v5  ;;  %v19067_v2 = vld [vmem:[#allocation11 + $0x314] ss:$24 sps:$4 sm:$0xff]   ;;  %v19070_v5 = vld [vmem:[#allocation11 + $0x604] ss:$24 sps:$4 sm:$0xff]  }
 0x4ad   : > { %4965 = vmatprep.subr.bf16.mxu1 %v19052_v39  ;;  %v19065_v39 = vld [vmem:[#allocation11 + $0x310] ss:$24 sps:$4 sm:$0xff]  }
 0x4b3   : > { %4913 = vmatpush1.bf16.xpose.msra.mxu0 %v19047_v20  ;;  %v19068_v20 = vld [vmem:[#allocation11 + $0x600] ss:$24 sps:$4 sm:$0xff]  }
 0x4b4   : > { %4966 = vmatpush1.bf16.xpose.msra.mxu1 %v19050_v0  ;;  %4914 = vmatprep.subr.bf16.mxu0 %v19055_v25  ;;  %v19073_v0 = vld [vmem:[#allocation11 + $0x5e4] ss:$24 sps:$4 sm:$0xff]   ;;  %v19076_v25 = vld [vmem:[#allocation11 + $0x8d4] ss:$24 sps:$4 sm:$0xff]  }
 0x4b5   : > { %4967 = vmatprep.subr.bf16.mxu1 %v19058_v33  ;;  %v21321_v33 = vpop.f32.mrf.mxu0 }
 0x4bb   : > { %4915 = vmatpush1.bf16.xpose.msra.mxu0 %v19053_v40  ;;  %v4689_v40 = vpop.f32.mrf.mxu1 }
 0x4bc   : > { %4968 = vmatpush1.bf16.xpose.msra.mxu1 %v19056_v23  ;;  %4916 = vmatprep.subr.bf16.mxu0 %v19061_v21  ;;  %v19071_v23 = vld [vmem:[#allocation11 + $0x5e0] ss:$24 sps:$4 sm:$0xff]   ;;  %v19074_v21 = vld [vmem:[#allocation11 + $0x8d0] ss:$24 sps:$4 sm:$0xff]  }
 0x4bd   : > { %4969 = vmatprep.subr.bf16.mxu1 %v19064_v31  ;;  %v21323_v31 = vpop.f32.mrf.mxu0 }
 0x4be   : > { %23683 = vst [vmem:[#allocation57_spill] sm:$0xff] %v21323_v31  ;;  %v4676_v31 = vadd.f32 %v21285_v10, %v21302_v45 }
 0x4c3   : > { %4917 = vmatpush1.bf16.xpose.msra.mxu0 %v19059_v62  ;;  %v19082_v62 = vld [vmem:[#allocation11 + $0x8a4] ss:$24 sps:$4 sm:$0xff]  }
 0x4c4   : > { %4970 = vmatpush1.bf16.xpose.msra.mxu1 %v19062_v26  ;;  %4918 = vmatprep.subr.bf16.mxu0 %v19067_v2 }
 0x4c5   : > { %4971 = vmatprep.subr.bf16.mxu1 %v19070_v5  ;;  %v4674_v5 = vadd.f32 %v21283_v7, %v21298_v28  ;;  %v19077_v7 = vld [vmem:[#allocation11 + $0x5b0] ss:$24 sps:$4 sm:$0xff]  }
 0x4cb   : > { %4919 = vmatpush1.bf16.xpose.msra.mxu0 %v19065_v39 }
 0x4cc   : > { %4972 = vmatpush1.bf16.xpose.msra.mxu1 %v19068_v20  ;;  %4920 = vmatprep.subr.bf16.mxu0 %v19073_v0  ;;  %v4678_v0 = vadd.f32 %v21292_v19, %v21298_v28 }
 0x4cd   : > { %4973 = vmatprep.subr.bf16.mxu1 %v19076_v25 }
 0x4d2   : > { %v4726_v26 = vpop.f32.mrf.mxu0 }
 0x4d3   : > { %v4779_v2 = vpop.f32.mrf.mxu1  ;;  %4921 = vmatpush2.bf16.xpose.msra.mxu0 %v19071_v23  ;;  %v4727_v25 = vadd.f32 %v4726_v26, %v4674_v5  ;;  %v19080_v23 = vld [vmem:[#allocation11 + $0x8a0] ss:$24 sps:$4 sm:$0xff]  }
 0x4d4   : > { %4974 = vmatpush2.bf16.xpose.msra.mxu1 %v19074_v21  ;;  %v4728_v39 = vpop.f32.mrf.mxu0  ;;  %4922 = vmatprep.subr.bf16.mxu0 %v19079_v29  ;;  %v2519_v21 = vadd.f32 %v21112_v18, %v21143_v46  ;;  %v2648_v46 = vadd.f32 %v21150_v49, %v21154_v50 }
 0x4d5   : > { %v4781_v20 = vpop.f32.mrf.mxu1  ;;  %4975 = vmatprep.subr.bf16.mxu1 %v19082_v62  ;;  %v4780_v19 = vadd.f32 %v4779_v2, %v4727_v25  ;;  %v4729_v28 = vadd.f32 %v4728_v39, %v4676_v31 }
 0x4d6   : > { %v4730_v61 = vpop.f32.mrf.mxu0  ;;  %v2562_v18 = vadd.f32 %v21129_v32, %v2519_v21  ;;  %v2691_v39 = vadd.f32 %v21219_v34, %v2648_v46  ;;  %v20180_v32 = vld [vmem:[#allocation10] sm:$0x3f] }
 0x4d7   : > { %v4783_v53 = vpop.f32.mrf.mxu1  ;;  %v4731_v57 = vadd.f32 %v4730_v61, %v4678_v0  ;;  %v1029_v25 = vrot.slane %v20180_v32, %v21336_v37  ;;  %v19118_v32 = vld [vmem:[#allocation11 + $0x784] ss:$24 sps:$4 sm:$0xff]  }
 0x4d8   : > { %v4732_v29 = vpop.f32.mrf.mxu0 }
 0x4d9   : > { %v4785_v62 = vpop.f32.mrf.mxu1  ;;  %v4784_v26 = vadd.f32 %v4783_v53, %v4731_v57  ;;  %v4733_v5 = vadd.f32 %v4732_v29, %v4680_v41  ;;  %v4782_v41 = vadd.f32 %v4781_v20, %v4729_v28  ;;  %v19083_v20 = vld [vmem:[#allocation11 + $0x580] ss:$24 sps:$4 sm:$0xff]   ;;  %v19091_v29 = vld [vmem:[#allocation11 + $0x554] ss:$24 sps:$4 sm:$0xff]   ;;  %v2777_v34 = vadd.f32 %v21273_v43, %v1029_v25 }
 0x4da   : > { %v4736_v10 = vpop.f32.mrf.mxu0 }
 0x4db   : > { %v4789_v38 = vpop.f32.mrf.mxu1  ;;  %v21338_v24 = vpack.c.bf16 %v4784_v26, %v4780_v19  ;;  %v4786_v61 = vadd.f32 %v4785_v62, %v4733_v5  ;;  %v4737_v0 = vadd.f32 %v4736_v10, %v21305_v59  ;;  %4923 = vmatpush2.bf16.xpose.msra.mxu0 %v19077_v7  ;;  %v2605_v59 = vadd.f32 %v21148_v48, %v2562_v18  ;;  %v19086_v7 = vld [vmem:[#allocation11 + $0x870] ss:$24 sps:$4 sm:$0xff]   ;;  %v19094_v48 = vld [vmem:[#allocation11 + $0x844] ss:$24 sps:$4 sm:$0xff]   ;;  %v19100_v18 = vld [vmem:[#allocation11 + $0x814] ss:$24 sps:$4 sm:$0xff]  }
 0x4dc   : > { %4976 = vmatpush2.bf16.xpose.msra.mxu1 %v19080_v23  ;;  %v4738_v31 = vpop.f32.mrf.mxu0  ;;  %4924 = vmatprep.subr.bf16.mxu0 %v19085_v58  ;;  %v4690_v58 = vadd.f32 %v4689_v40, %v21302_v45  ;;  %v2734_v40 = vadd.f32 %v21221_v36, %v2691_v39  ;;  %v2820_v43 = vadd.f32 %v21275_v51, %v2777_v34  ;;  %v19089_v10 = vld [vmem:[#allocation11 + $0x550] ss:$24 sps:$4 sm:$0xff]   ;;  %v19115_v39 = vld [vmem:[#allocation11 + $0x494] ss:$24 sps:$4 sm:$0xff]  }
 0x4dd   : > { %23685 = vst [vmem:[#allocation59_spill] sm:$0xff] %v21338_v24  ;;  %v4791_v57 = vpop.f32.mrf.mxu1  ;;  %4977 = vmatprep.subr.bf16.mxu1 %v19088_v52  ;;  %v4739_v53 = vadd.f32 %v4738_v31, %v21308_v17  ;;  %v4790_v2 = vadd.f32 %v4789_v38, %v4737_v0  ;;  %7726 = vrot.lane.b32.xlu0 %v21338_v24, %s20649_s3  ;;  %v19097_v0 = vld [vmem:[#allocation11 + $0x524] ss:$24 sps:$4 sm:$0xff]   ;;  %v19131_v34 = vld [vmem:[#allocation11 + $0x6f8] ss:$24 sps:$4 sm:$0xff]  }
 0x4de   : > { %v4740_v49 = vpop.f32.mrf.mxu0  ;;  %v21351_v52 = vpack.c.bf16 %v4786_v61, %v4782_v41  ;;  %v21358_v45 = vpack.c.bf16 %v2605_v59, %v21170_v16  ;;  %v21370_v16 = vpack.c.bf16 %v2734_v40, %v21172_v9  ;;  %v19092_v61 = vld [vmem:[#allocation11 + $0x840] ss:$24 sps:$4 sm:$0xff]   ;;  %v19106_v31 = vld [vmem:[#allocation11 + $0x7e4] ss:$24 sps:$4 sm:$0xff]   ;;  %v19110_v59 = vld [vmem:[#allocation11 + $0x7b0] ss:$24 sps:$4 sm:$0xff]  }
 0x4df   : > { %v4793_v50 = vpop.f32.mrf.mxu1  ;;  %v4741_v17 = vadd.f32 %v4740_v49, %v21311_v12  ;;  %v4792_v38 = vadd.f32 %v4791_v57, %v4739_v53  ;;  %v2773_v12 = vadd.f32 %v21234_v54, %v1029_v25  ;;  %v2863_v54 = vadd.f32 %v21321_v33, %v2820_v43  ;;  %v19095_v9 = vld [vmem:[#allocation11 + $0x520] ss:$24 sps:$4 sm:$0xff]   ;;  %v19103_v33 = vld [vmem:[#allocation11 + $0x4f4] ss:$24 sps:$4 sm:$0xff]   ;;  %v19109_v41 = vld [vmem:[#allocation11 + $0x4c4] ss:$24 sps:$4 sm:$0xff]  }
 0x4e0   : > { %v4742_v23 = vpop.f32.mrf.mxu0  ;;  %v19104_v57 = vld [vmem:[#allocation11 + $0x7e0] ss:$24 sps:$4 sm:$0xff]   ;;  %v19112_v53 = vld [vmem:[#allocation11 + $0x7b4] ss:$24 sps:$4 sm:$0xff]   ;;  %v19113_v25 = vld [vmem:[#allocation11 + $0x490] ss:$24 sps:$4 sm:$0xff]  }
 0x4e1   : > { %v4795_v21 = vpop.f32.mrf.mxu1  ;;  %v4743_v62 = vadd.f32 %v4742_v23, %v4690_v58  ;;  %v4794_v19 = vadd.f32 %v4793_v50, %v4741_v17  ;;  %7729 = vrot.lane.b32.xlu0 %v21351_v52, %s20649_s3  ;;  %v2816_v36 = vadd.f32 %v21236_v55, %v2773_v12  ;;  %v19098_v55 = vld [vmem:[#allocation11 + $0x810] ss:$24 sps:$4 sm:$0xff]   ;;  %v19116_v49 = vld [vmem:[#allocation11 + $0x780] ss:$24 sps:$4 sm:$0xff]   ;;  %v19121_v50 = vld [vmem:[#allocation11 + $0x75c] ss:$24 sps:$4 sm:$0xff]  }
 0x4e2   : > { %v19124_v58 = vld [vmem:[#allocation11 + $0x764] ss:$24 sps:$4 sm:$0xff]   ;;  %v19119_v17 = vld [vmem:[#allocation11 + $0x758] ss:$24 sps:$4 sm:$0xff]   ;;  %v19125_v23 = vld [vmem:[#allocation11 + $0x728] ss:$24 sps:$4 sm:$0xff]  }
 0x4e3   : > { %v21362_v28 = vpack.c.bf16 %v4794_v19, %v4790_v2  ;;  %v4796_v26 = vadd.f32 %v4795_v21, %v4743_v62  ;;  %4925 = vmatpush2.bf16.xpose.msra.mxu0 %v19083_v20  ;;  %v2859_v46 = vadd.f32 %v21281_v6, %v2816_v36  ;;  %v19101_v6 = vld [vmem:[#allocation11 + $0x4f0] ss:$24 sps:$4 sm:$0xff]   ;;  %v19107_v2 = vld [vmem:[#allocation11 + $0x4c0] ss:$24 sps:$4 sm:$0xff]   ;;  %v19127_v20 = vld [vmem:[#allocation11 + $0x72c] ss:$24 sps:$4 sm:$0xff]  }
 0x4e4   : > { %4978 = vmatpush2.bf16.xpose.msra.mxu1 %v19086_v7  ;;  %4926 = vmatprep.subr.bf16.mxu0 %v19091_v29  ;;  %v19130_v7 = vld [vmem:[#allocation11 + $0x734] ss:$24 sps:$4 sm:$0xff]   ;;  %v19128_v21 = vld [vmem:[#allocation11 + $0x730] ss:$24 sps:$4 sm:$0xff]   ;;  %v19134_v62 = vld [vmem:[#allocation11 + $0x700] ss:$24 sps:$4 sm:$0xff]  }
 0x4e5   : > { %23686 = vst [vmem:[#allocation60_spill] sm:$0xff] %v21362_v28  ;;  %4979 = vmatprep.subr.bf16.mxu1 %v19094_v48  ;;  %v21365_v5 = vpack.c.bf16 %v4796_v26, %v4792_v38  ;;  %7384 = vrot.lane.b32.xlu0 %v21358_v45, %s20649_s3  ;;  %v21377_v51 = vpack.c.bf16 %v2863_v54, %v2859_v46  ;;  %v19122_v38 = vld [vmem:[#allocation11 + $0x760] ss:$24 sps:$4 sm:$0xff]   ;;  %v19133_v29 = vld [vmem:[#allocation11 + $0x6fc] ss:$24 sps:$4 sm:$0xff]  }
 0x4e6   : > { %v19136_v48 = vld [vmem:[#allocation11 + $0x704] ss:$24 sps:$4 sm:$0xff]   ;;  %v19142_v40 = vld [vmem:[#allocation11 + $0x6d4] ss:$24 sps:$4 sm:$0xff]   ;;  %v19137_v12 = vld [vmem:[#allocation11 + $0x6c8] ss:$24 sps:$4 sm:$0xff]  }
 0x4e7   : > { %23687 = vst [vmem:[#allocation61_spill] sm:$0xff] %v21365_v5  ;;  %v19139_v19 = vld [vmem:[#allocation11 + $0x6cc] ss:$24 sps:$4 sm:$0xff]   ;;  %v19140_v26 = vld [vmem:[#allocation11 + $0x6d0] ss:$24 sps:$4 sm:$0xff]  }
 0x4e8   : > { %v19145_v43 = vld [vmem:[#allocation11 + $0x69c] ss:$24 sps:$4 sm:$0xff]   ;;  %v19143_v54 = vld [vmem:[#allocation11 + $0x698] ss:$24 sps:$4 sm:$0xff]  }
 0x4e9   : > { %7392 = vrot.lane.b32.xlu0 %v21370_v16, %s20649_s3  ;;  %v19148_v36 = vld [vmem:[#allocation11 + $0x6a4] ss:$24 sps:$4 sm:$0xff]   ;;  %v19152_v46 = vld [vmem:[#allocation11 + $0x670] ss:$24 sps:$4 sm:$0xff]  }
 0x4ea   : > { %v23707_v5 = vld [vmem:[#allocation49_spill] sm:$0xff] }
 0x4eb   : > { %4927 = vmatpush2.bf16.xpose.msra.mxu0 %v19089_v10  ;;  %v19146_v10 = vld [vmem:[#allocation11 + $0x6a0] ss:$24 sps:$4 sm:$0xff]  }
 0x4ec   : > { %4980 = vmatpush2.bf16.xpose.msra.mxu1 %v19092_v61  ;;  %4928 = vmatprep.subr.bf16.mxu0 %v19097_v0  ;;  %v19151_v61 = vld [vmem:[#allocation11 + $0x66c] ss:$24 sps:$4 sm:$0xff]  }
 0x4ed   : > { %4981 = vmatprep.subr.bf16.mxu1 %v19100_v18  ;;  %7400 = vrot.lane.b32.xlu0 %v21377_v51, %s20649_s3  ;;  %v19154_v0 = vld [vmem:[#allocation11 + $0x674] ss:$24 sps:$4 sm:$0xff]   ;;  %v19149_v18 = vld [vmem:[#allocation11 + $0x668] ss:$24 sps:$4 sm:$0xff]  }
 0x4f3   : > { %4929 = vmatpush2.bf16.xpose.msra.mxu0 %v19095_v9  ;;  %v19157_v9 = vld [vmem:[#allocation11 + $0x63c] ss:$24 sps:$4 sm:$0xff]  }
 0x4f4   : > { %4982 = vmatpush2.bf16.xpose.msra.mxu1 %v19098_v55  ;;  %4930 = vmatprep.subr.bf16.mxu0 %v19103_v33  ;;  %v19160_v55 = vld [vmem:[#allocation11 + $0x644] ss:$24 sps:$4 sm:$0xff]   ;;  %v19155_v33 = vld [vmem:[#allocation11 + $0x638] ss:$24 sps:$4 sm:$0xff]  }
 0x4f5   : > { %4983 = vmatprep.subr.bf16.mxu1 %v19106_v31  ;;  %v19158_v31 = vld [vmem:[#allocation11 + $0x640] ss:$24 sps:$4 sm:$0xff]  }
 0x4fb   : > { %4931 = vmatpush2.bf16.xpose.msra.mxu0 %v19101_v6  ;;  %v19163_v6 = vld [vmem:[#allocation11 + $0x60c] ss:$24 sps:$4 sm:$0xff]  }
 0x4fc   : > { %4984 = vmatpush2.bf16.xpose.msra.mxu1 %v19104_v57  ;;  %4932 = vmatprep.subr.bf16.mxu0 %v19109_v41  ;;  %v19166_v57 = vld [vmem:[#allocation11 + $0x614] ss:$24 sps:$4 sm:$0xff]   ;;  %v19161_v41 = vld [vmem:[#allocation11 + $0x608] ss:$24 sps:$4 sm:$0xff]  }
 0x4fd   : > { %4985 = vmatprep.subr.bf16.mxu1 %v19112_v53  ;;  %v19164_v53 = vld [vmem:[#allocation11 + $0x610] ss:$24 sps:$4 sm:$0xff]  }
 0x503   : > { %4933 = vmatpush2.bf16.xpose.msra.mxu0 %v19107_v2  ;;  %v19169_v2 = vld [vmem:[#allocation11 + $0x8dc] ss:$24 sps:$4 sm:$0xff]  }
 0x504   : > { %4986 = vmatpush2.bf16.xpose.msra.mxu1 %v19110_v59  ;;  %4934 = vmatprep.subr.bf16.mxu0 %v19115_v39  ;;  %v19172_v59 = vld [vmem:[#allocation11 + $0x8e4] ss:$24 sps:$4 sm:$0xff]  }
 0x505   : > { %4987 = vmatprep.subr.bf16.mxu1 %v19118_v32  ;;  %v19167_v32 = vld [vmem:[#allocation11 + $0x8d8] ss:$24 sps:$4 sm:$0xff]  }
 0x50b   : > { %4935 = vmatpush2.bf16.xpose.msra.mxu0 %v19113_v25  ;;  %v19170_v25 = vld [vmem:[#allocation11 + $0x8e0] ss:$24 sps:$4 sm:$0xff]  }
 0x50c   : > { %4988 = vmatpush2.bf16.xpose.msra.mxu1 %v19116_v49  ;;  %5010 = vmatprep.subr.bf16.mxu0 %v19121_v50  ;;  %v19175_v49 = vld [vmem:[#allocation11 + $0x8ac] ss:$24 sps:$4 sm:$0xff]  }
 0x50d   : > { %5063 = vmatprep.subr.bf16.mxu1 %v19124_v58  ;;  %v19178_v50 = vld [vmem:[#allocation11 + $0x8b4] ss:$24 sps:$4 sm:$0xff]  }
 0x512   : > { %4937 = vmatmul.mubr.bf16.vlgmr.msra.gmra.mxu0 %v21249_v14 }
 0x513   : > { %4990 = vmatmul.mubr.bf16.vlgmr.msra.gmra.mxu1 %v21196_v8  ;;  %5011 = vmatpush1.bf16.xpose.msra.mxu0 %v19119_v17 }
 0x514   : > { %5064 = vmatpush1.bf16.xpose.msra.mxu1 %v19122_v38  ;;  %4946 = vmatprep.mubr.bf16.mxu0 %v21255_v56 }
 0x515   : > { %5012 = vmatprep.subr.bf16.mxu0 %v19127_v20  ;;  %5065 = vmatprep.subr.bf16.mxu1 %v19130_v7 }
 0x516   : > { %4999 = vmatprep.mubr.bf16.mxu1 %v21201_v27 }
 0x51a   : > { %4947 = vmatmul.mubr.bf16.gmra.mxu0 %v21267_v1 }
 0x51b   : > { %5000 = vmatmul.mubr.bf16.gmra.mxu1 %v21211_v35  ;;  %5013 = vmatpush1.bf16.xpose.msra.mxu0 %v19125_v23 }
 0x51c   : > { %5066 = vmatpush1.bf16.xpose.msra.mxu1 %v19128_v21  ;;  %5014 = vmatprep.subr.bf16.mxu0 %v19133_v29 }
 0x51d   : > { %5067 = vmatprep.subr.bf16.mxu1 %v19136_v48  ;;  %5042 = vmatprep.mubr.bf16.mxu0 %v21203_v30  ;;  %v19173_v48 = vld [vmem:[#allocation11 + $0x8a8] ss:$24 sps:$4 sm:$0xff]  }
 0x51e   : > { %5095 = vmatprep.mubr.bf16.mxu1 %v21215_v42 }
 0x523   : > { %5015 = vmatpush1.bf16.xpose.msra.mxu0 %v19131_v34  ;;  %v19176_v34 = vld [vmem:[#allocation11 + $0x8b0] ss:$24 sps:$4 sm:$0xff]  }
 0x524   : > { %5068 = vmatpush1.bf16.xpose.msra.mxu1 %v19134_v62  ;;  %5016 = vmatprep.subr.bf16.mxu0 %v19139_v19 }
 0x525   : > { %5069 = vmatprep.subr.bf16.mxu1 %v19142_v40  ;;  %v19181_v40 = vld [vmem:[#allocation11 + $0x87c] ss:$24 sps:$4 sm:$0xff]  }
 0x52b   : > { %5017 = vmatpush1.bf16.xpose.msra.mxu0 %v19137_v12  ;;  %v19184_v12 = vld [vmem:[#allocation11 + $0x884] ss:$24 sps:$4 sm:$0xff]  }
 0x52c   : > { %5070 = vmatpush1.bf16.xpose.msra.mxu1 %v19140_v26  ;;  %5018 = vmatprep.subr.bf16.mxu0 %v19145_v43  ;;  %v21413_v26 = vrot.slane %v21290_v15, %v21137_v44 }
 0x52d   : > { %5071 = vmatprep.subr.bf16.mxu1 %v19148_v36 }
 0x533   : > { %5019 = vmatpush1.bf16.xpose.msra.mxu0 %v19143_v54  ;;  %v21417_v54 = vrot.slane %v21290_v15, %v21146_v47 }
 0x534   : > { %5072 = vmatpush1.bf16.xpose.msra.mxu1 %v19146_v10  ;;  %5020 = vmatprep.subr.bf16.mxu0 %v19151_v61 }
 0x535   : > { %5073 = vmatprep.subr.bf16.mxu1 %v19154_v0 }
 0x53b   : > { %5021 = vmatpush1.bf16.xpose.msra.mxu0 %v19149_v18 }
 0x53c   : > { %5074 = vmatpush1.bf16.xpose.msra.mxu1 %v19152_v46  ;;  %5022 = vmatprep.subr.bf16.mxu0 %v19157_v9 }
 0x53d   : > { %5075 = vmatprep.subr.bf16.mxu1 %v19160_v55 }
 0x543   : > { %5023 = vmatpush1.bf16.xpose.msra.mxu0 %v19155_v33 }
 0x544   : > { %5076 = vmatpush1.bf16.xpose.msra.mxu1 %v19158_v31  ;;  %5024 = vmatprep.subr.bf16.mxu0 %v19163_v6  ;;  %v19179_v6 = vld [vmem:[#allocation11 + $0x878] ss:$24 sps:$4 sm:$0xff]  }
 0x545   : > { %5077 = vmatprep.subr.bf16.mxu1 %v19166_v57  ;;  %v19182_v57 = vld [vmem:[#allocation11 + $0x880] ss:$24 sps:$4 sm:$0xff]  }
 0x54b   : > { %5025 = vmatpush1.bf16.xpose.msra.mxu0 %v19161_v41 }
 0x54c   : > { %5078 = vmatpush1.bf16.xpose.msra.mxu1 %v19164_v53  ;;  %5026 = vmatprep.subr.bf16.mxu0 %v19169_v2  ;;  %v19187_v2 = vld [vmem:[#allocation11 + $0x84c] ss:$24 sps:$4 sm:$0xff]  }
 0x54d   : > { %5079 = vmatprep.subr.bf16.mxu1 %v19172_v59  ;;  %v19190_v59 = vld [vmem:[#allocation11 + $0x854] ss:$24 sps:$4 sm:$0xff]  }
 0x54f   : > { %v21389_v39 = vpop.permute.xlu0 %7726 }
 0x552   : > { %v21391_v58 = vpop.f32.mrf.mxu0 }
 0x553   : > { %v21393_v17 = vpop.f32.mrf.mxu1  ;;  %5027 = vmatpush2.bf16.xpose.msra.mxu0 %v19167_v32  ;;  %v21395_v38 = vpop.permute.xlu0 %7729 }
 0x554   : > { %5080 = vmatpush2.bf16.xpose.msra.mxu1 %v19170_v25  ;;  %v21397_v20 = vpop.f32.mrf.mxu0  ;;  %5028 = vmatprep.subr.bf16.mxu0 %v19175_v49  ;;  %v19185_v49 = vld [vmem:[#allocation11 + $0x848] ss:$24 sps:$4 sm:$0xff]  }
 0x555   : > { %v21399_v7 = vpop.f32.mrf.mxu1  ;;  %5081 = vmatprep.subr.bf16.mxu1 %v19178_v50  ;;  %v19188_v50 = vld [vmem:[#allocation11 + $0x850] ss:$24 sps:$4 sm:$0xff]  }
 0x556   : > { %v21401_v23 = vpop.f32.mrf.mxu0 }
 0x557   : > { %v21403_v21 = vpop.f32.mrf.mxu1  ;;  %v21405_v29 = vpop.permute.xlu0 %7384 }
 0x558   : > { %v21407_v62 = vpop.f32.mrf.mxu0  ;;  %v10614_v0 = vrot.slane %v21405_v29, 4 }
 0x559   : > { %v21409_v19 = vpop.f32.mrf.mxu1 }
 0x55a   : > { %v4842_v43 = vpop.f32.mrf.mxu0 }
 0x55b   : > { %v4895_v36 = vpop.f32.mrf.mxu1  ;;  %5029 = vmatpush2.bf16.xpose.msra.mxu0 %v19173_v48  ;;  %v21419_v10 = vpop.permute.xlu0 %7392  ;;  %v4843_v61 = vadd.f32 %v4842_v43, %v21413_v26  ;;  %v19193_v48 = vld [vmem:[#allocation11 + $0x81c] ss:$24 sps:$4 sm:$0xff]   ;;  %v19199_v43 = vld [vmem:[#allocation11 + $0x7ec] ss:$24 sps:$4 sm:$0xff]  }
 0x55c   : > { %5082 = vmatpush2.bf16.xpose.msra.mxu1 %v19176_v34  ;;  %v10618_v18 = vrot.slane %v21419_v10, 4  ;;  %5030 = vmatprep.subr.bf16.mxu0 %v19181_v40  ;;  %v4844_v46 = vpop.f32.mrf.mxu0  ;;  %v19196_v34 = vld [vmem:[#allocation11 + $0x824] ss:$24 sps:$4 sm:$0xff]   ;;  %v19191_v40 = vld [vmem:[#allocation11 + $0x818] ss:$24 sps:$4 sm:$0xff]  }
 0x55d   : > { %5083 = vmatprep.subr.bf16.mxu1 %v19184_v12  ;;  %v4897_v9 = vpop.f32.mrf.mxu1  ;;  %v4845_v55 = vadd.f32 %v4844_v46, %v21417_v54  ;;  %v21425_v33 = vadd.f32 %v4895_v36, %v4843_v61  ;;  %v19194_v12 = vld [vmem:[#allocation11 + $0x820] ss:$24 sps:$4 sm:$0xff]   ;;  %v19202_v36 = vld [vmem:[#allocation11 + $0x7f4] ss:$24 sps:$4 sm:$0xff]   ;;  %v19208_v46 = vld [vmem:[#allocation11 + $0x7c4] ss:$24 sps:$4 sm:$0xff]  }
 0x55e   : > { %v21427_v15 = vcombine.low %v10614_v0, %v10618_v18  ;;  %v4846_v31 = vpop.f32.mrf.mxu0  ;;  %v19197_v61 = vld [vmem:[#allocation11 + $0x7e8] ss:$24 sps:$4 sm:$0xff]   ;;  %v19205_v18 = vld [vmem:[#allocation11 + $0x7bc] ss:$24 sps:$4 sm:$0xff]  }
 0x55f   : > { %v4847_v41 = vadd.f32 %v4846_v31, %v21413_v26  ;;  %v21430_v53 = vadd.f32 %v4897_v9, %v4845_v55  ;;  %v4899_v32 = vpop.f32.mrf.mxu1  ;;  %v19200_v0 = vld [vmem:[#allocation11 + $0x7f0] ss:$24 sps:$4 sm:$0xff]   ;;  %v19206_v55 = vld [vmem:[#allocation11 + $0x7c0] ss:$24 sps:$4 sm:$0xff]   ;;  %v19211_v31 = vld [vmem:[#allocation11 + $0x78c] ss:$24 sps:$4 sm:$0xff]  }
 0x560   : > { %v19203_v9 = vld [vmem:[#allocation11 + $0x7b8] ss:$24 sps:$4 sm:$0xff]  }
 0x561   : > { %v21432_v25 = vadd.f32 %v4899_v32, %v4847_v41  ;;  %v19212_v41 = vld [vmem:[#allocation11 + $0x790] ss:$24 sps:$4 sm:$0xff]  }
 0x562   : > { %v19215_v32 = vld [vmem:[#allocation14 + $0x150] ss:$24 sps:$4 sm:$0xff]  }
 0x563   : > { %5031 = vmatpush2.bf16.xpose.msra.mxu0 %v19179_v6  ;;  %v19214_v6 = vld [vmem:[#allocation11 + $0x794] ss:$24 sps:$4 sm:$0xff]  }
 0x564   : > { %5084 = vmatpush2.bf16.xpose.msra.mxu1 %v19182_v57  ;;  %5032 = vmatprep.subr.bf16.mxu0 %v19187_v2  ;;  %v19209_v57 = vld [vmem:[#allocation11 + $0x788] ss:$24 sps:$4 sm:$0xff]   ;;  %v19217_v2 = vld [vmem:[#allocation14 + $0x154] ss:$24 sps:$4 sm:$0xff]  }
 0x565   : > { %5085 = vmatprep.subr.bf16.mxu1 %v19190_v59  ;;  %v19220_v59 = vld [vmem:[#allocation14 + $0x15c] ss:$24 sps:$4 sm:$0xff]  }
 0x56b   : > { %5033 = vmatpush2.bf16.xpose.msra.mxu0 %v19185_v49  ;;  %v19218_v49 = vld [vmem:[#allocation14 + $0x158] ss:$24 sps:$4 sm:$0xff]  }
 0x56c   : > { %5086 = vmatpush2.bf16.xpose.msra.mxu1 %v19188_v50  ;;  %5034 = vmatprep.subr.bf16.mxu0 %v19193_v48  ;;  %v19223_v50 = vld [vmem:[#allocation14 + $0x124] ss:$24 sps:$4 sm:$0xff]  }
 0x56d   : > { %5087 = vmatprep.subr.bf16.mxu1 %v19196_v34  ;;  %v19226_v48 = vld [vmem:[#allocation14 + $0x12c] ss:$24 sps:$4 sm:$0xff]   ;;  %v19221_v34 = vld [vmem:[#allocation14 + $0x120] ss:$24 sps:$4 sm:$0xff]  }
 0x573   : > { %5035 = vmatpush2.bf16.xpose.msra.mxu0 %v19191_v40  ;;  %v19224_v40 = vld [vmem:[#allocation14 + $0x128] ss:$24 sps:$4 sm:$0xff]  }
 0x574   : > { %5088 = vmatpush2.bf16.xpose.msra.mxu1 %v19194_v12  ;;  %5036 = vmatprep.subr.bf16.mxu0 %v19199_v43  ;;  %v19229_v12 = vld [vmem:[#allocation14 + $0xf4] ss:$24 sps:$4 sm:$0xff]  }
 0x575   : > { %5089 = vmatprep.subr.bf16.mxu1 %v19202_v36  ;;  %v19232_v43 = vld [vmem:[#allocation14 + $0xfc] ss:$24 sps:$4 sm:$0xff]   ;;  %v19227_v36 = vld [vmem:[#allocation14 + $0xf0] ss:$24 sps:$4 sm:$0xff]  }
 0x57b   : > { %5037 = vmatpush2.bf16.xpose.msra.mxu0 %v19197_v61  ;;  %v19230_v61 = vld [vmem:[#allocation14 + $0xf8] ss:$24 sps:$4 sm:$0xff]  }
 0x57c   : > { %5090 = vmatpush2.bf16.xpose.msra.mxu1 %v19200_v0  ;;  %5038 = vmatprep.subr.bf16.mxu0 %v19205_v18  ;;  %v19235_v0 = vld [vmem:[#allocation14 + $0xc4] ss:$24 sps:$4 sm:$0xff]  }
 0x57d   : > { %5091 = vmatprep.subr.bf16.mxu1 %v19208_v46  ;;  %v19238_v18 = vld [vmem:[#allocation14 + $0xcc] ss:$24 sps:$4 sm:$0xff]   ;;  %v19233_v46 = vld [vmem:[#allocation14 + $0xc0] ss:$24 sps:$4 sm:$0xff]  }
 0x583   : > { %5039 = vmatpush2.bf16.xpose.msra.mxu0 %v19203_v9  ;;  %v19236_v9 = vld [vmem:[#allocation14 + $0xc8] ss:$24 sps:$4 sm:$0xff]  }
 0x584   : > { %5092 = vmatpush2.bf16.xpose.msra.mxu1 %v19206_v55  ;;  %5040 = vmatprep.subr.bf16.mxu0 %v19211_v31  ;;  %v19241_v55 = vld [vmem:[#allocation14 + $0x94] ss:$24 sps:$4 sm:$0xff]  }
 0x585   : > { %5093 = vmatprep.subr.bf16.mxu1 %v19214_v6  ;;  %v19244_v31 = vld [vmem:[#allocation14 + $0x9c] ss:$24 sps:$4 sm:$0xff]   ;;  %v19239_v6 = vld [vmem:[#allocation14 + $0x90] ss:$24 sps:$4 sm:$0xff]  }
 0x58b   : > { %5041 = vmatpush2.bf16.xpose.msra.mxu0 %v19209_v57  ;;  %v19242_v57 = vld [vmem:[#allocation14 + $0x98] ss:$24 sps:$4 sm:$0xff]  }
 0x58c   : > { %5094 = vmatpush2.bf16.xpose.msra.mxu1 %v19212_v41  ;;  %6876 = vmatprep.subr.bf16.mxu0 %v19217_v2  ;;  %v19247_v41 = vld [vmem:[#allocation14 + $0x64] ss:$24 sps:$4 sm:$0xff]  }
 0x58d   : > { %6929 = vmatprep.subr.bf16.mxu1 %v19220_v59  ;;  %v19250_v2 = vld [vmem:[#allocation14 + $0x6c] ss:$24 sps:$4 sm:$0xff]   ;;  %v19245_v59 = vld [vmem:[#allocation14 + $0x60] ss:$24 sps:$4 sm:$0xff]  }
 0x592   : > { %5043 = vmatmul.mubr.bf16.vlgmr.msra.gmra.mxu0 %v21247_v13 }
 0x593   : > { %5096 = vmatmul.mubr.bf16.vlgmr.msra.gmra.mxu1 %v21249_v14  ;;  %6877 = vmatpush1.bf16.xpose.msra.mxu0 %v19215_v32  ;;  %v19248_v32 = vld [vmem:[#allocation14 + $0x68] ss:$24 sps:$4 sm:$0xff]  }
 0x594   : > { %6930 = vmatpush1.bf16.xpose.msra.mxu1 %v19218_v49  ;;  %5052 = vmatprep.mubr.bf16.mxu0 %v21253_v11  ;;  %v19253_v49 = vld [vmem:[#allocation14 + $0x34] ss:$24 sps:$4 sm:$0xff]  }
 0x595   : > { %6878 = vmatprep.subr.bf16.mxu0 %v19223_v50  ;;  %6931 = vmatprep.subr.bf16.mxu1 %v19226_v48  ;;  %v19256_v50 = vld [vmem:[#allocation14 + $0x3c] ss:$24 sps:$4 sm:$0xff]   ;;  %v19251_v48 = vld [vmem:[#allocation14 + $0x30] ss:$24 sps:$4 sm:$0xff]  }
 0x596   : > { %5105 = vmatprep.mubr.bf16.mxu1 %v21255_v56 }
 0x59a   : > { %5053 = vmatmul.mubr.bf16.gmra.mxu0 %v21265_v4 }
 0x59b   : > { %5106 = vmatmul.mubr.bf16.gmra.mxu1 %v21267_v1  ;;  %6879 = vmatpush1.bf16.xpose.msra.mxu0 %v19221_v34  ;;  %v19254_v34 = vld [vmem:[#allocation14 + $0x38] ss:$24 sps:$4 sm:$0xff]  }
 0x59c   : > { %6932 = vmatpush1.bf16.xpose.msra.mxu1 %v19224_v40  ;;  %6880 = vmatprep.subr.bf16.mxu0 %v19229_v12  ;;  %v19259_v40 = vld [vmem:[#allocation14 + $0x4] ss:$24 sps:$4 sm:$0xff]  }
 0x59d   : > { %6933 = vmatprep.subr.bf16.mxu1 %v19232_v43  ;;  %6908 = vmatprep.mubr.bf16.mxu0 %v21123_v63  ;;  %v19262_v12 = vld [vmem:[#allocation14 + $0xc] ss:$24 sps:$4 sm:$0xff]   ;;  %v19257_v43 = vld [vmem:[#allocation14] ss:$24 sps:$4 sm:$0xff]  }
 0x59e   : > { %6961 = vmatprep.mubr.bf16.mxu1 %v21203_v30 }
 0x5a3   : > { %6881 = vmatpush1.bf16.xpose.msra.mxu0 %v19227_v36  ;;  %v19260_v36 = vld [vmem:[#allocation14 + $0x8] ss:$24 sps:$4 sm:$0xff]  }
 0x5a4   : > { %6934 = vmatpush1.bf16.xpose.msra.mxu1 %v19230_v61  ;;  %6882 = vmatprep.subr.bf16.mxu0 %v19235_v0  ;;  %v19265_v61 = vld [vmem:[#allocation14 + $0x2d4] ss:$24 sps:$4 sm:$0xff]  }
 0x5a5   : > { %6935 = vmatprep.subr.bf16.mxu1 %v19238_v18  ;;  %v19268_v0 = vld [vmem:[#allocation14 + $0x2dc] ss:$24 sps:$4 sm:$0xff]   ;;  %v19263_v18 = vld [vmem:[#allocation14 + $0x2d0] ss:$24 sps:$4 sm:$0xff]  }
 0x5ab   : > { %6883 = vmatpush1.bf16.xpose.msra.mxu0 %v19233_v46  ;;  %v19266_v46 = vld [vmem:[#allocation14 + $0x2d8] ss:$24 sps:$4 sm:$0xff]  }
 0x5ac   : > { %6936 = vmatpush1.bf16.xpose.msra.mxu1 %v19236_v9  ;;  %6884 = vmatprep.subr.bf16.mxu0 %v19241_v55  ;;  %v4848_v9 = vpop.f32.mrf.mxu0  ;;  %v4901_v55 = vpop.f32.mrf.mxu1 }
 0x5ad   : > { %6937 = vmatprep.subr.bf16.mxu1 %v19244_v31  ;;  %v19271_v31 = vld [vmem:[#allocation14 + $0x2a4] ss:$24 sps:$4 sm:$0xff]  }
 0x5b3   : > { %6885 = vmatpush1.bf16.xpose.msra.mxu0 %v19239_v6  ;;  %v19274_v6 = vld [vmem:[#allocation14 + $0x2ac] ss:$24 sps:$4 sm:$0xff]  }
 0x5b4   : > { %6938 = vmatpush1.bf16.xpose.msra.mxu1 %v19242_v57  ;;  %6886 = vmatprep.subr.bf16.mxu0 %v19247_v41  ;;  %v4833_v57 = vadd.f32 %v21391_v58, %v21413_v26  ;;  %v4837_v41 = vadd.f32 %v21401_v23, %v21413_v26  ;;  %v4835_v23 = vadd.f32 %v21397_v20, %v21417_v54 }
 0x5b5   : > { %6939 = vmatprep.subr.bf16.mxu1 %v19250_v2 }
 0x5b6   : > { %v4890_v58 = vadd.f32 %v21403_v21, %v4837_v41  ;;  %v20181_v21 = vld [vmem:[#allocation13] sm:$0x3f] }
 0x5bb   : > { %6887 = vmatpush1.bf16.xpose.msra.mxu0 %v19245_v59 }
 0x5bc   : > { %6940 = vmatpush1.bf16.xpose.msra.mxu1 %v19248_v32  ;;  %6888 = vmatprep.subr.bf16.mxu0 %v19253_v49  ;;  %v4839_v32 = vadd.f32 %v21407_v62, %v21417_v54  ;;  %v2521_v62 = vadd.f32 %v21114_v22, %v21099_v3 }
 0x5bd   : > { %6941 = vmatprep.subr.bf16.mxu1 %v19256_v50 }
 0x5c3   : > { %6889 = vmatpush1.bf16.xpose.msra.mxu0 %v19251_v48  ;;  %v4886_v48 = vadd.f32 %v21393_v17, %v4833_v57  ;;  %v19277_v17 = vld [vmem:[#allocation14 + $0x274] ss:$24 sps:$4 sm:$0xff]   ;;  %v23689_v57 = vld [vmem:[#allocation50_spill] sm:$0xff] }
 0x5c4   : > { %6942 = vmatpush1.bf16.xpose.msra.mxu1 %v19254_v34  ;;  %6890 = vmatprep.subr.bf16.mxu0 %v19259_v40  ;;  %v21470_v41 = vrot.slane %v20181_v21, %v23689_v57 }
 0x5c5   : > { %6943 = vmatprep.subr.bf16.mxu1 %v19262_v12 }
 0x5cb   : > { %6891 = vmatpush1.bf16.xpose.msra.mxu0 %v19257_v43  ;;  %v19269_v43 = vld [vmem:[#allocation14 + $0x2a0] ss:$24 sps:$4 sm:$0xff]  }
 0x5cc   : > { %6944 = vmatpush1.bf16.xpose.msra.mxu1 %v19260_v36  ;;  %6892 = vmatprep.subr.bf16.mxu0 %v19265_v61  ;;  %v19272_v36 = vld [vmem:[#allocation14 + $0x2a8] ss:$24 sps:$4 sm:$0xff]   ;;  %v4892_v61 = vadd.f32 %v21409_v19, %v4839_v32  ;;  %v4849_v19 = vadd.f32 %v4848_v9, %v21417_v54  ;;  %v23693_v9 = vld [vmem:[#allocation44_spill] sm:$0xff] }
 0x5cd   : > { %6945 = vmatprep.subr.bf16.mxu1 %v19268_v0 }
 0x5d2   : > { %v4938_v2 = vpop.f32.mrf.mxu0 }
 0x5d3   : > { %v21446_v59 = vpop.f32.mrf.mxu1  ;;  %6893 = vmatpush2.bf16.xpose.msra.mxu0 %v19263_v18  ;;  %v4939_v40 = vadd.f32 %v4938_v2, %v4886_v48 }
 0x5d4   : > { %6946 = vmatpush2.bf16.xpose.msra.mxu1 %v19266_v46  ;;  %v4940_v49 = vpop.f32.mrf.mxu0  ;;  %6894 = vmatprep.subr.bf16.mxu0 %v19271_v31  ;;  %v21464_v46 = vrot.slane %v20181_v21, %v21336_v37  ;;  %v19280_v31 = vld [vmem:[#allocation14 + $0x27c] ss:$24 sps:$4 sm:$0xff]  }
 0x5d5   : > { %v21450_v50 = vpop.f32.mrf.mxu1  ;;  %6947 = vmatprep.subr.bf16.mxu1 %v19274_v6  ;;  %v4888_v6 = vadd.f32 %v21399_v7, %v4835_v23 }
 0x5d6   : > { %v4942_v26 = vpop.f32.mrf.mxu0 }
 0x5d7   : > { %v21456_v34 = vpop.f32.mrf.mxu1  ;;  %v4943_v12 = vadd.f32 %v4942_v26, %v4890_v58  ;;  %v23690_v58 = vld [vmem:[#allocation39_spill] sm:$0xff]  ;;  %v4941_v23 = vadd.f32 %v4940_v49, %v4888_v6  ;;  %v4902_v6 = vadd.f32 %v4901_v55, %v4849_v19  ;;  %v23698_v55 = vld [vmem:[#allocation38_spill] sm:$0xff] }
 0x5d8   : > { %v4944_v0 = vpop.f32.mrf.mxu0  ;;  %v2564_v26 = vadd.f32 %v23690_v58, %v2521_v62  ;;  %v19275_v58 = vld [vmem:[#allocation14 + $0x270] ss:$24 sps:$4 sm:$0xff]  }
 0x5d9   : > { %v21461_v18 = vpop.f32.mrf.mxu1  ;;  %v21466_v20 = vpack.c.bf16 %v4943_v12, %v4939_v40  ;;  %v4945_v2 = vadd.f32 %v4944_v0, %v4892_v61  ;;  %v23691_v40 = vld [vmem:[#allocation43_spill] sm:$0xff]  ;;  %v23692_v12 = vld [vmem:[#allocation45_spill] sm:$0xff] }
 0x5da   : > { %v4948_v3 = vpop.f32.mrf.mxu0  ;;  %v2650_v7 = vadd.f32 %v23692_v12, %v23691_v40 }
 0x5db   : > { %23688 = vst [vmem:[#allocation62_spill] sm:$0xff] %v21466_v20  ;;  %v5001_v22 = vpop.f32.mrf.mxu1  ;;  %v4949_v32 = vadd.f32 %v4948_v3, %v21425_v33  ;;  %6895 = vmatpush2.bf16.xpose.msra.mxu0 %v19269_v43  ;;  %7732 = vrot.lane.b32.xlu1 %v21466_v20, %s20649_s3  ;;  %v2607_v43 = vadd.f32 %v23693_v9, %v2564_v26 }
 0x5dc   : > { %6948 = vmatpush2.bf16.xpose.msra.mxu1 %v19272_v36  ;;  %v21475_v48 = vadd.f32 %v5001_v22, %v21464_v46  ;;  %v4950_v61 = vpop.f32.mrf.mxu0  ;;  %6896 = vmatprep.subr.bf16.mxu0 %v19277_v17  ;;  %v23694_v36 = vld [vmem:[#allocation51_spill] sm:$0xff]  ;;  %v21488_v21 = vpack.c.bf16 %v4945_v2, %v4941_v23  ;;  %v19278_v17 = vld [vmem:[#allocation14 + $0x278] ss:$24 sps:$4 sm:$0xff]  }
 0x5dd   : > { %v5003_v0 = vpop.f32.mrf.mxu1  ;;  %v4951_v54 = vadd.f32 %v4950_v61, %v21430_v53  ;;  %6949 = vmatprep.subr.bf16.mxu1 %v19280_v31  ;;  %v2693_v62 = vadd.f32 %v23694_v36, %v2650_v7  ;;  %v23695_v53 = vld [vmem:[#allocation53_spill] sm:$0xff]  ;;  %v23696_v31 = vld [vmem:[#allocation54_spill] sm:$0xff]  ;;  %v21501_v19 = vpack.c.bf16 %v2607_v43, %v23698_v55  ;;  %v23701_v36 = vld [vmem:[#allocation55_spill] sm:$0xff] }
 0x5de   : > { %v21484_v33 = vadd.f32 %v5003_v0, %v21470_v41  ;;  %v4952_v3 = vpop.f32.mrf.mxu0  ;;  %v2779_v12 = vadd.f32 %v23696_v31, %v23695_v53  ;;  %v19283_v7 = vld [vmem:[#allocation14 + $0x244] ss:$24 sps:$4 sm:$0xff]   ;;  %v19281_v43 = vld [vmem:[#allocation14 + $0x240] ss:$24 sps:$4 sm:$0xff]   ;;  %v19287_v31 = vld [vmem:[#allocation14 + $0x210] ss:$24 sps:$4 sm:$0xff]  }
 0x5df   : > { %v5005_v49 = vpop.f32.mrf.mxu1  ;;  %v4953_v22 = vadd.f32 %v4952_v3, %v21432_v25  ;;  %7735 = vrot.lane.b32.xlu1 %v21488_v21, %s20649_s3  ;;  %v19286_v61 = vld [vmem:[#allocation14 + $0x24c] ss:$24 sps:$4 sm:$0xff]   ;;  %v23699_v25 = vld [vmem:[#allocation52_spill] sm:$0xff]  ;;  %v19284_v53 = vld [vmem:[#allocation14 + $0x248] ss:$24 sps:$4 sm:$0xff]  }
 0x5e0   : > { %v21492_v40 = vadd.f32 %v5005_v49, %v21464_v46  ;;  %v4954_v26 = vpop.f32.mrf.mxu0  ;;  %v2736_v0 = vadd.f32 %v23699_v25, %v2693_v62  ;;  %v2822_v3 = vadd.f32 %v23701_v36, %v2779_v12  ;;  %v19292_v62 = vld [vmem:[#allocation14 + $0x21c] ss:$24 sps:$4 sm:$0xff]   ;;  %v19290_v12 = vld [vmem:[#allocation14 + $0x218] ss:$24 sps:$4 sm:$0xff]  }
 0x5e1   : > { %v21498_v2 = vpack.c.bf16 %v4953_v22, %v4949_v32  ;;  %v4955_v23 = vadd.f32 %v4954_v26, %v4902_v6  ;;  %v23702_v32 = vld [vmem:[#allocation47_spill] sm:$0xff]  ;;  %v23703_v6 = vld [vmem:[#allocation57_spill] sm:$0xff] }
 0x5e2   : > { %v21510_v49 = vpack.c.bf16 %v2736_v0, %v23702_v32  ;;  %v2865_v22 = vadd.f32 %v23703_v6, %v2822_v3  ;;  %v19295_v26 = vld [vmem:[#allocation14 + $0x1e4] ss:$24 sps:$4 sm:$0xff]   ;;  %v19301_v55 = vld [vmem:[#allocation14 + $0x1b4] ss:$24 sps:$4 sm:$0xff]   ;;  %v19299_v0 = vld [vmem:[#allocation14 + $0x1b0] ss:$24 sps:$4 sm:$0xff]  }
 0x5e3   : > { %23697 = vst [vmem:[#allocation39_spill] sm:$0xff] %v21498_v2  ;;  %v21504_v9 = vpack.c.bf16 %v4955_v23, %v4951_v54  ;;  %6897 = vmatpush2.bf16.xpose.msra.mxu0 %v19275_v58  ;;  %7388 = vrot.lane.b32.xlu1 %v21501_v19, %s20649_s3  ;;  %v19289_v54 = vld [vmem:[#allocation14 + $0x214] ss:$24 sps:$4 sm:$0xff]   ;;  %v19293_v23 = vld [vmem:[#allocation14 + $0x1e0] ss:$24 sps:$4 sm:$0xff]  }
 0x5e4   : > { %6950 = vmatpush2.bf16.xpose.msra.mxu1 %v19278_v17  ;;  %6898 = vmatprep.subr.bf16.mxu0 %v19283_v7  ;;  %v23704_v58 = vld [vmem:[#allocation56_spill] sm:$0xff]  ;;  %v19298_v7 = vld [vmem:[#allocation14 + $0x1ec] ss:$24 sps:$4 sm:$0xff]   ;;  %v19305_v6 = vld [vmem:[#allocation14 + $0x180] ss:$24 sps:$4 sm:$0xff]  }
 0x5e5   : > { %23700 = vst [vmem:[#allocation43_spill] sm:$0xff] %v21504_v9  ;;  %6951 = vmatprep.subr.bf16.mxu1 %v19286_v61  ;;  %v21516_v17 = vpack.c.bf16 %v2865_v22, %v23704_v58  ;;  %v19296_v61 = vld [vmem:[#allocation14 + $0x1e8] ss:$24 sps:$4 sm:$0xff]   ;;  %v19304_v25 = vld [vmem:[#allocation14 + $0x1bc] ss:$24 sps:$4 sm:$0xff]  }
 0x5e6   : > { %v19302_v36 = vld [vmem:[#allocation14 + $0x1b8] ss:$24 sps:$4 sm:$0xff]   ;;  %v19307_v3 = vld [vmem:[#allocation14 + $0x184] ss:$24 sps:$4 sm:$0xff]   ;;  %v19308_v22 = vld [vmem:[#allocation14 + $0x188] ss:$24 sps:$4 sm:$0xff]  }
 0x5e7   : > { %7396 = vrot.lane.b32.xlu1 %v21510_v49, %s20649_s3  ;;  %v19310_v32 = vld [vmem:[#allocation14 + $0x18c] ss:$24 sps:$4 sm:$0xff]  }
 0x5e8   : > { %v19319_v58 = vld [vmem:[#allocation14 + $0x134] ss:$24 sps:$4 sm:$0xff]  }
 0x5eb   : > { %6899 = vmatpush2.bf16.xpose.msra.mxu0 %v19281_v43  ;;  %7403 = vrot.lane.b32.xlu1 %v21516_v17, %s20649_s3  ;;  %v19313_v43 = vld [vmem:[#allocation14 + $0x164] ss:$24 sps:$4 sm:$0xff]  }
 0x5ec   : > { %6952 = vmatpush2.bf16.xpose.msra.mxu1 %v19284_v53  ;;  %6900 = vmatprep.subr.bf16.mxu0 %v19289_v54  ;;  %v19316_v53 = vld [vmem:[#allocation14 + $0x454] ss:$24 sps:$4 sm:$0xff]   ;;  %v19311_v54 = vld [vmem:[#allocation14 + $0x160] ss:$24 sps:$4 sm:$0xff]  }
 0x5ed   : > { %6953 = vmatprep.subr.bf16.mxu1 %v19292_v62  ;;  %v19314_v62 = vld [vmem:[#allocation14 + $0x450] ss:$24 sps:$4 sm:$0xff]  }
 0x5f3   : > { %6901 = vmatpush2.bf16.xpose.msra.mxu0 %v19287_v31  ;;  %v19322_v31 = vld [vmem:[#allocation14 + $0x424] ss:$24 sps:$4 sm:$0xff]  }
 0x5f4   : > { %6954 = vmatpush2.bf16.xpose.msra.mxu1 %v19290_v12  ;;  %6902 = vmatprep.subr.bf16.mxu0 %v19295_v26  ;;  %v19317_v12 = vld [vmem:[#allocation14 + $0x130] ss:$24 sps:$4 sm:$0xff]   ;;  %v19320_v26 = vld [vmem:[#allocation14 + $0x420] ss:$24 sps:$4 sm:$0xff]  }
 0x5f5   : > { %6955 = vmatprep.subr.bf16.mxu1 %v19298_v7  ;;  %v19325_v7 = vld [vmem:[#allocation14 + $0x104] ss:$24 sps:$4 sm:$0xff]  }
 0x5fb   : > { %6903 = vmatpush2.bf16.xpose.msra.mxu0 %v19293_v23  ;;  %v19328_v23 = vld [vmem:[#allocation14 + $0x3f4] ss:$24 sps:$4 sm:$0xff]  }
 0x5fc   : > { %6956 = vmatpush2.bf16.xpose.msra.mxu1 %v19296_v61  ;;  %6904 = vmatprep.subr.bf16.mxu0 %v19301_v55  ;;  %v19323_v61 = vld [vmem:[#allocation14 + $0x100] ss:$24 sps:$4 sm:$0xff]   ;;  %v19326_v55 = vld [vmem:[#allocation14 + $0x3f0] ss:$24 sps:$4 sm:$0xff]  }
 0x5fd   : > { %6957 = vmatprep.subr.bf16.mxu1 %v19304_v25  ;;  %v19331_v25 = vld [vmem:[#allocation14 + $0xd4] ss:$24 sps:$4 sm:$0xff]  }
 0x603   : > { %6905 = vmatpush2.bf16.xpose.msra.mxu0 %v19299_v0  ;;  %v19334_v0 = vld [vmem:[#allocation14 + $0x3c4] ss:$24 sps:$4 sm:$0xff]  }
 0x604   : > { %6958 = vmatpush2.bf16.xpose.msra.mxu1 %v19302_v36  ;;  %6906 = vmatprep.subr.bf16.mxu0 %v19307_v3  ;;  %v19329_v36 = vld [vmem:[#allocation14 + $0xd0] ss:$24 sps:$4 sm:$0xff]   ;;  %v19332_v3 = vld [vmem:[#allocation14 + $0x3c0] ss:$24 sps:$4 sm:$0xff]  }
 0x605   : > { %6959 = vmatprep.subr.bf16.mxu1 %v19310_v32  ;;  %v19337_v32 = vld [vmem:[#allocation14 + $0xa4] ss:$24 sps:$4 sm:$0xff]  }
 0x60b   : > { %6907 = vmatpush2.bf16.xpose.msra.mxu0 %v19305_v6  ;;  %v19340_v6 = vld [vmem:[#allocation14 + $0x394] ss:$24 sps:$4 sm:$0xff]  }
 0x60c   : > { %6960 = vmatpush2.bf16.xpose.msra.mxu1 %v19308_v22  ;;  %6982 = vmatprep.subr.bf16.mxu0 %v19313_v43  ;;  %v19335_v22 = vld [vmem:[#allocation14 + $0xa0] ss:$24 sps:$4 sm:$0xff]   ;;  %v19338_v43 = vld [vmem:[#allocation14 + $0x390] ss:$24 sps:$4 sm:$0xff]  }
 0x60d   : > { %7035 = vmatprep.subr.bf16.mxu1 %v19316_v53  ;;  %v19343_v53 = vld [vmem:[#allocation14 + $0x74] ss:$24 sps:$4 sm:$0xff]  }
 0x612   : > { %6909 = vmatmul.mubr.bf16.vlgmr.msra.gmra.mxu0 %v21196_v8 }
 0x613   : > { %6962 = vmatmul.mubr.bf16.vlgmr.msra.gmra.mxu1 %v21247_v13  ;;  %6983 = vmatpush1.bf16.xpose.msra.mxu0 %v19311_v54  ;;  %v19346_v54 = vld [vmem:[#allocation14 + $0x364] ss:$24 sps:$4 sm:$0xff]  }
 0x614   : > { %7036 = vmatpush1.bf16.xpose.msra.mxu1 %v19314_v62  ;;  %6984 = vmatprep.subr.bf16.mxu0 %v19319_v58  ;;  %v19341_v62 = vld [vmem:[#allocation14 + $0x70] ss:$24 sps:$4 sm:$0xff]   ;;  %v19344_v58 = vld [vmem:[#allocation14 + $0x360] ss:$24 sps:$4 sm:$0xff]  }
 0x615   : > { %7037 = vmatprep.subr.bf16.mxu1 %v19322_v31  ;;  %6918 = vmatprep.mubr.bf16.mxu0 %v21201_v27  ;;  %v19349_v31 = vld [vmem:[#allocation14 + $0x44] ss:$24 sps:$4 sm:$0xff]  }
 0x616   : > { %6971 = vmatprep.mubr.bf16.mxu1 %v21253_v11 }
 0x61a   : > { %6919 = vmatmul.mubr.bf16.gmra.mxu0 %v21211_v35 }
 0x61b   : > { %6972 = vmatmul.mubr.bf16.gmra.mxu1 %v21265_v4  ;;  %6985 = vmatpush1.bf16.xpose.msra.mxu0 %v19317_v12  ;;  %v19352_v12 = vld [vmem:[#allocation14 + $0x334] ss:$24 sps:$4 sm:$0xff]  }
 0x61c   : > { %7038 = vmatpush1.bf16.xpose.msra.mxu1 %v19320_v26  ;;  %6986 = vmatprep.subr.bf16.mxu0 %v19325_v7  ;;  %v19347_v26 = vld [vmem:[#allocation14 + $0x40] ss:$24 sps:$4 sm:$0xff]   ;;  %v19350_v7 = vld [vmem:[#allocation14 + $0x330] ss:$24 sps:$4 sm:$0xff]  }
 0x61d   : > { %7039 = vmatprep.subr.bf16.mxu1 %v19328_v23  ;;  %7014 = vmatprep.mubr.bf16.mxu0 %v21215_v42  ;;  %v19355_v23 = vld [vmem:[#allocation14 + $0x14] ss:$24 sps:$4 sm:$0xff]  }
 0x61e   : > { %7067 = vmatprep.mubr.bf16.mxu1 %v21123_v63 }
 0x623   : > { %6987 = vmatpush1.bf16.xpose.msra.mxu0 %v19323_v61  ;;  %v19358_v61 = vld [vmem:[#allocation14 + $0x304] ss:$24 sps:$4 sm:$0xff]  }
 0x624   : > { %7040 = vmatpush1.bf16.xpose.msra.mxu1 %v19326_v55  ;;  %6988 = vmatprep.subr.bf16.mxu0 %v19331_v25  ;;  %v19353_v55 = vld [vmem:[#allocation14 + $0x10] ss:$24 sps:$4 sm:$0xff]   ;;  %v19356_v25 = vld [vmem:[#allocation14 + $0x300] ss:$24 sps:$4 sm:$0xff]  }
 0x625   : > { %7041 = vmatprep.subr.bf16.mxu1 %v19334_v0  ;;  %v10619_v0 = vrot.slane %v21510_v49, 4  ;;  %v23705_v49 = vld [vmem:[#allocation46_spill] sm:$0xff] }
 0x62b   : > { %6989 = vmatpush1.bf16.xpose.msra.mxu0 %v19329_v36  ;;  %v19361_v36 = vld [vmem:[#allocation14 + $0x2e4] ss:$24 sps:$4 sm:$0xff]  }
 0x62c   : > { %7042 = vmatpush1.bf16.xpose.msra.mxu1 %v19332_v3  ;;  %6990 = vmatprep.subr.bf16.mxu0 %v19337_v32  ;;  %v19364_v3 = vld [vmem:[#allocation14 + $0x5d4] ss:$24 sps:$4 sm:$0xff]   ;;  %v10615_v32 = vrot.slane %v21501_v19, 4 }
 0x62d   : > { %7043 = vmatprep.subr.bf16.mxu1 %v19340_v6  ;;  %v20650_v6 = vmov 1934713408  }
 0x633   : > { %6991 = vmatpush1.bf16.xpose.msra.mxu0 %v19335_v22  ;;  %v7438_v22 = vunpack.c.l.s4 %v20650_v6 }
 0x634   : > { %7044 = vmatpush1.bf16.xpose.msra.mxu1 %v19338_v43  ;;  %6992 = vmatprep.subr.bf16.mxu0 %v19343_v53  ;;  %v10617_v43 = vrot.slane %v21370_v16, 4  ;;  %v10623_v53 = vrot.slane %v21516_v17, 4  ;;  %v7427_v16 = vrot.slane %v21377_v51, %v23705_v49 }
 0x635   : > { %7045 = vmatprep.subr.bf16.mxu1 %v19346_v54  ;;  %v10613_v54 = vrot.slane %v21358_v45, 4  ;;  %v19359_v45 = vld [vmem:[#allocation14 + $0x2e0] ss:$24 sps:$4 sm:$0xff]  }
 0x637   : > { %v10633_v19 = vcombine.low %v10613_v54, %v10617_v43 }
 0x63b   : > { %6993 = vmatpush1.bf16.xpose.msra.mxu0 %v19341_v62  ;;  %v10641_v62 = vcombine.low %v10615_v32, %v10619_v0  ;;  %v10640_v32 = vrot.slane %v10633_v19, %v23705_v49 }
 0x63c   : > { %7046 = vmatpush1.bf16.xpose.msra.mxu1 %v19344_v58  ;;  %6994 = vmatprep.subr.bf16.mxu0 %v19349_v31  ;;  %v10621_v58 = vrot.slane %v21377_v51, 4  ;;  %v7434_v31 = vrot.slane %v21516_v17, %v23705_v49  ;;  %v19370_v17 = vld [vmem:[#allocation14 + $0x5a4] ss:$24 sps:$4 sm:$0xff]  }
 0x63d   : > { %7047 = vmatprep.subr.bf16.mxu1 %v19352_v12  ;;  %v7439_v12 = vunpack.c.0.s8 %v7438_v22 }
 0x63e   : > { %v10656_v0 = vrot.slane %v10621_v58, %v23705_v49  ;;  %v7452_v6 = vcombine.high %v7427_v16, %v7434_v31 }
 0x643   : > { %6995 = vmatpush1.bf16.xpose.msra.mxu0 %v19347_v26 }
 0x644   : > { %7048 = vmatpush1.bf16.xpose.msra.mxu1 %v19350_v7  ;;  %6996 = vmatprep.subr.bf16.mxu0 %v19355_v23  ;;  %v10664_v7 = vrot.slane %v10623_v53, %v23705_v49  ;;  %v21541_v23 = vpop.f32.mrf.mxu1  ;;  %v4992_v53 = vadd.f32 %v21446_v59, %v21464_v46 }
 0x645   : > { %7049 = vmatprep.subr.bf16.mxu1 %v19358_v61  ;;  %v10648_v61 = vrot.slane %v10641_v62, %v23705_v49 }
 0x646   : > { %v10681_v43 = vcombine.low %v10656_v0, %v10664_v7  ;;  %v10682_v9 = vcombine.high %v10656_v0, %v10664_v7  ;;  %v4998_v0 = vadd.f32 %v21461_v18, %v21470_v41 }
 0x647   : > { %v10665_v62 = vcombine.low %v10640_v32, %v10648_v61 }
 0x64b   : > { %6997 = vmatpush1.bf16.xpose.msra.mxu0 %v19353_v55  ;;  %v19362_v55 = vld [vmem:[#allocation14 + $0x5d0] ss:$24 sps:$4 sm:$0xff]  }
 0x64c   : > { %7050 = vmatpush1.bf16.xpose.msra.mxu1 %v19356_v25  ;;  %6998 = vmatprep.subr.bf16.mxu0 %v19361_v36  ;;  %v19367_v25 = vld [vmem:[#allocation14 + $0x2b4] ss:$24 sps:$4 sm:$0xff]   ;;  %v7451_v36 = vcombine.low %v7427_v16, %v7434_v31 }
 0x64d   : > { %7051 = vmatprep.subr.bf16.mxu1 %v19364_v3  ;;  %v21536_v26 = vpop.permute.xlu1 %7732  ;;  %v21546_v3 = vsub.s32 %v7439_v12, %v21093_v60  ;;  %v4996_v12 = vadd.f32 %v21456_v34, %v21464_v46  ;;  %v23706_v16 = vld [vmem:[#allocation48_spill] sm:$0xff] }
 0x64e   : > { %v23708_v2 = vcombine.low %v23706_v16, %v23707_v5 }
 0x64f   : > { %v7459_v60 = vrot.slane %v7451_v36, %v21546_v3  ;;  %v19365_v36 = vld [vmem:[#allocation14 + $0x2b0] ss:$24 sps:$4 sm:$0xff]  }
 0x650   : > { %v7443_v59 = vrot.slane %v23708_v2, %v21546_v3  ;;  %v10673_v2 = vrot.slane %v10665_v62, %v21546_v3 }
 0x651   : > { %v21549_v51 = vpop.permute.xlu1 %7735 }
 0x652   : > { %v5044_v22 = vpop.f32.mrf.mxu0  ;;  %v21574_v37 = vcombine.low %v7443_v59, %v7459_v60 }
 0x653   : > { %v5097_v54 = vpop.f32.mrf.mxu1  ;;  %6999 = vmatpush2.bf16.xpose.msra.mxu0 %v19359_v45  ;;  %v5045_v31 = vadd.f32 %v5044_v22, %v4992_v53  ;;  %v7466_v45 = vrot.slane %v7452_v6, %v21546_v3  ;;  %v10696_v6 = vrot.slane %v10682_v9, %v21546_v3  ;;  %v7401_v53 = vpop.permute.xlu0 %7400 }
 0x654   : > { %7052 = vmatpush2.bf16.xpose.msra.mxu1 %v19362_v55  ;;  %v5046_v58 = vpop.f32.mrf.mxu0  ;;  %7000 = vmatprep.subr.bf16.mxu0 %v19367_v25  ;;  %v10666_v55 = vcombine.high %v10640_v32, %v10648_v61  ;;  %v10689_v25 = vrot.slane %v10681_v43, %v21546_v3  ;;  %v4994_v61 = vadd.f32 %v21450_v50, %v21470_v41  ;;  %v19368_v43 = vld [vmem:[#allocation14 + $0x5a0] ss:$24 sps:$4 sm:$0xff]  }
 0x655   : > { %v5099_v19 = vpop.f32.mrf.mxu1  ;;  %7053 = vmatprep.subr.bf16.mxu1 %v19370_v17  ;;  %v21561_v28 = vpop.permute.xlu1 %7388  ;;  %v23709_v17 = vcombine.high %v23706_v16, %v23707_v5  ;;  %v5098_v57 = vadd.f32 %v5097_v54, %v5045_v31  ;;  %v21576_v16 = vcombine.high %v7443_v59, %v7459_v60  ;;  %v7471_v54 = vcombine.low %v21405_v29, %v21419_v10 }
 0x656   : > { %v5048_v7 = vpop.f32.mrf.mxu0  ;;  %v5047_v24 = vadd.f32 %v5046_v58, %v4994_v61  ;;  %v10680_v50 = vrot.slane %v10666_v55, %v21546_v3  ;;  %v19376_v58 = vld [vmem:[#allocation14 + $0x574] ss:$24 sps:$4 sm:$0xff]   ;;  %v10622_v59 = vrot.slane %v7401_v53, 4 }
 0x657   : > { %v5049_v34 = vadd.f32 %v5048_v7, %v4996_v12  ;;  %v5101_v46 = vpop.f32.mrf.mxu1  ;;  %v7450_v22 = vrot.slane %v23709_v17, %v21546_v3  ;;  %v19373_v17 = vld [vmem:[#allocation14 + $0x284] ss:$24 sps:$4 sm:$0xff]  }
 0x658   : > { %v5050_v32 = vpop.f32.mrf.mxu0  ;;  %v21592_v61 = vcombine.low %v10680_v50, %v10696_v6  ;;  %v5100_v10 = vadd.f32 %v5099_v19, %v5047_v24 }
 0x659   : > { %v5102_v18 = vadd.f32 %v5101_v46, %v5049_v34  ;;  %v5051_v12 = vadd.f32 %v5050_v32, %v4998_v0  ;;  %v5103_v7 = vpop.f32.mrf.mxu1  ;;  %v7397_v20 = vpop.permute.xlu1 %7396  ;;  %v21578_v62 = vcombine.low %v7450_v22, %v7466_v45  ;;  %v21580_v9 = vcombine.high %v7450_v22, %v7466_v45 }
 0x65a   : > { %v5054_v5 = vpop.f32.mrf.mxu0  ;;  %v21587_v34 = vcombine.low %v10673_v2, %v10689_v25  ;;  %v21590_v22 = vcombine.high %v10673_v2, %v10689_v25  ;;  %v10616_v25 = vrot.slane %v21561_v28, 4  ;;  %v21601_v2 = vcombine.high %v10680_v50, %v10696_v6 }
 0x65b   : > { %v21585_v31 = vpack.c.bf16 %v5102_v18, %v5098_v57  ;;  %7001 = vmatpush2.bf16.xpose.msra.mxu0 %v19365_v36  ;;  %v5107_v0 = vpop.f32.mrf.mxu1  ;;  %v5104_v46 = vadd.f32 %v5103_v7, %v5051_v12  ;;  %v19371_v12 = vld [vmem:[#allocation14 + $0x280] ss:$24 sps:$4 sm:$0xff]   ;;  %v7479_v24 = vcombine.low %v21561_v28, %v7397_v20  ;;  %v10620_v19 = vrot.slane %v7397_v20, 4  ;;  %v19382_v18 = vld [vmem:[#allocation14 + $0x544] ss:$24 sps:$4 sm:$0xff]  }
 0x65c   : > { %7054 = vmatpush2.bf16.xpose.msra.mxu1 %v19368_v43  ;;  %v5056_v60 = vpop.f32.mrf.mxu0  ;;  %7002 = vmatprep.subr.bf16.mxu0 %v19373_v17  ;;  %v7478_v43 = vrot.slane %v7471_v54, %v23705_v49  ;;  %v5055_v55 = vadd.f32 %v5054_v5, %v21475_v48  ;;  %v19374_v17 = vld [vmem:[#allocation14 + $0x570] ss:$24 sps:$4 sm:$0xff]   ;;  %v10708_v54 = vrot.slane %v21427_v15, %v23705_v49 }
 0x65d   : > { %23710 = vst [vmem:[#allocation45_spill] sm:$0xff] %v21585_v31  ;;  %7738 = vrot.lane.b32.xlu0 %v21585_v31, %s20649_s3  ;;  %v5109_v29 = vpop.f32.mrf.mxu1  ;;  %7055 = vmatprep.subr.bf16.mxu1 %v19376_v58  ;;  %v21604_v7 = vpack.c.bf16 %v5104_v46, %v5100_v10  ;;  %v7404_v36 = vpop.permute.xlu1 %7403  ;;  %v7494_v6 = vrot.slane %v7401_v53, %v23705_v49  ;;  %v19379_v10 = vld [vmem:[#allocation14 + $0x254] ss:$24 sps:$4 sm:$0xff]  }
 0x65e   : > { %v5058_v32 = vpop.f32.mrf.mxu0  ;;  %v10724_v50 = vrot.slane %v10622_v59, %v23705_v49  ;;  %v5008_v58 = vadd.f32 %v21541_v23, %v21470_v41  ;;  %v7486_v28 = vrot.slane %v7479_v24, %v23705_v49  ;;  %v10709_v20 = vcombine.low %v10616_v25, %v10620_v19 }
 0x65f   : > { %v5111_v46 = vpop.f32.mrf.mxu1  ;;  %v5057_v48 = vadd.f32 %v5056_v60, %v21484_v33  ;;  %v5108_v5 = vadd.f32 %v5107_v0, %v5055_v55  ;;  %7741 = vrot.lane.b32.xlu1 %v21604_v7, %s20649_s3  ;;  %v7502_v15 = vrot.slane %v7404_v36, %v23705_v49  ;;  %v10624_v53 = vrot.slane %v7404_v36, 4 }
 0x660   : > { %v5060_v57 = vpop.f32.mrf.mxu0  ;;  %v5059_v59 = vadd.f32 %v5058_v32, %v21492_v40  ;;  %v7503_v41 = vcombine.low %v7478_v43, %v7486_v28  ;;  %v7504_v23 = vcombine.high %v7478_v43, %v7486_v28  ;;  %v10716_v31 = vrot.slane %v10709_v20, %v23705_v49  ;;  %v19380_v28 = vld [vmem:[#allocation14 + $0x540] ss:$24 sps:$4 sm:$0xff]   ;;  %v19385_v20 = vld [vmem:[#allocation14 + $0x224] ss:$24 sps:$4 sm:$0xff]  }
 0x661   : > { %v5061_v45 = vadd.f32 %v5060_v57, %v5008_v58  ;;  %v5110_v24 = vadd.f32 %v5109_v29, %v5057_v48  ;;  %v7519_v25 = vcombine.low %v7494_v6, %v7502_v15  ;;  %v7520_v33 = vcombine.high %v7494_v6, %v7502_v15  ;;  %v5113_v55 = vpop.f32.mrf.mxu1 }
 0x662   : > { %v10732_v0 = vrot.slane %v10624_v53, %v23705_v49  ;;  %v5112_v60 = vadd.f32 %v5111_v46, %v5059_v59  ;;  %v7511_v19 = vrot.slane %v7503_v41, %v21546_v3  ;;  %v7518_v36 = vrot.slane %v7504_v23, %v21546_v3 }
 0x663   : > { %7003 = vmatpush2.bf16.xpose.msra.mxu0 %v19371_v12  ;;  %v10733_v40 = vcombine.low %v10708_v54, %v10716_v31  ;;  %v10734_v57 = vcombine.high %v10708_v54, %v10716_v31  ;;  %v7527_v32 = vrot.slane %v7519_v25, %v21546_v3  ;;  %v7534_v43 = vrot.slane %v7520_v33, %v21546_v3  ;;  %v19388_v54 = vld [vmem:[#allocation14 + $0x514] ss:$24 sps:$4 sm:$0xff]  }
 0x664   : > { %7056 = vmatpush2.bf16.xpose.msra.mxu1 %v19374_v17  ;;  %7004 = vmatprep.subr.bf16.mxu0 %v19379_v10  ;;  %v10749_v29 = vcombine.low %v10724_v50, %v10732_v0  ;;  %v10750_v12 = vcombine.high %v10724_v50, %v10732_v0  ;;  %v19377_v17 = vld [vmem:[#allocation14 + $0x250] ss:$24 sps:$4 sm:$0xff]   ;;  %v10781_v58 = vshrl.u32 %v21590_v22, 16  ;;  %v21628_v46 = vpack.c.bf16 %v5112_v60, %v5108_v5 }
 0x665   : > { %7057 = vmatprep.subr.bf16.mxu1 %v19382_v18  ;;  %v10741_v6 = vrot.slane %v10733_v40, %v21546_v3  ;;  %v5114_v10 = vadd.f32 %v5113_v55, %v5061_v45  ;;  %v7535_v48 = vcombine.low %v7511_v19, %v7527_v32  ;;  %v7536_v15 = vcombine.high %v7511_v19, %v7527_v32 }
 0x666   : > { %23711 = vst [vmem:[#allocation44_spill] sm:$0xff] %v21628_v46  ;;  %v7537_v31 = vcombine.low %v7518_v36, %v7534_v43  ;;  %v7538_v18 = vcombine.high %v7518_v36, %v7534_v43  ;;  %v10748_v53 = vrot.slane %v10734_v57, %v21546_v3  ;;  %v10757_v59 = vrot.slane %v10749_v29, %v21546_v3  ;;  %v19467_v46 = vld [vmem:[#allocation14 + $0x578] ss:$24 sps:$4 sm:$0xff]  }
 0x667   : > { %v10764_v50 = vrot.slane %v10750_v12, %v21546_v3  ;;  %v21633_v41 = vpack.c.bf16 %v5114_v10, %v5110_v24  ;;  %v7541_v23 = vpack.i.b16 %v7535_v48, %v21574_v37  ;;  %v7544_v5 = vshrl.u32 %v7535_v48, 16 }
 0x668   : > { %v7549_v45 = vpack.i.b16 %v7536_v15, %v21576_v16  ;;  %v7552_v25 = vshrl.u32 %v7536_v15, 16  ;;  %v7557_v33 = vpack.i.b16 %v7537_v31, %v21578_v62  ;;  %v7560_v0 = vshrl.u32 %v7537_v31, 16 }
 0x669   : > { %23712 = vst [vmem:[#allocation51_spill] sm:$0xff] %v21633_v41  ;;  %v7565_v60 = vpack.i.b16 %v7538_v18, %v21580_v9  ;;  %v7568_v55 = vshrl.u32 %v7538_v18, 16  ;;  %v23713_v19 = vshrl.u32 %v21574_v37, 16  ;;  %v23714_v24 = vshrl.u32 %v21576_v16, 16  ;;  %v19383_v37 = vld [vmem:[#allocation14 + $0x220] ss:$24 sps:$4 sm:$0xff]  }
 0x66a   : > { %v10765_v57 = vcombine.low %v10741_v6, %v10757_v59  ;;  %v10766_v32 = vcombine.high %v10741_v6, %v10757_v59  ;;  %v23715_v43 = vshrl.u32 %v21578_v62, 16  ;;  %v23716_v12 = vshrl.u32 %v21580_v9, 16  ;;  %v19386_v62 = vld [vmem:[#allocation14 + $0x510] ss:$24 sps:$4 sm:$0xff]   ;;  %v19391_v59 = vld [vmem:[#allocation14 + $0x1f4] ss:$24 sps:$4 sm:$0xff]  }
 0x66b   : > { %7005 = vmatpush2.bf16.xpose.msra.mxu0 %v19377_v17  ;;  %v7545_v36 = vpack.i.b16 %v7544_v5, %v23713_v19  ;;  %v7553_v40 = vpack.i.b16 %v7552_v25, %v23714_v24  ;;  %v7571_v10 = vcombine.low %v7541_v23, %v7557_v33  ;;  %v7572_v48 = vcombine.high %v7541_v23, %v7557_v33 }
 0x66c   : > { %7058 = vmatpush2.bf16.xpose.msra.mxu1 %v19380_v28  ;;  %7006 = vmatprep.subr.bf16.mxu0 %v19385_v20  ;;  %v7561_v29 = vpack.i.b16 %v7560_v0, %v23715_v43  ;;  %v7569_v17 = vpack.i.b16 %v7568_v55, %v23716_v12  ;;  %v7587_v15 = vcombine.low %v7549_v45, %v7565_v60  ;;  %v10774_v0 = vshrl.u32 %v10765_v57, 16 }
 0x66d   : > { %7059 = vmatprep.subr.bf16.mxu1 %v19388_v54  ;;  %v7588_v28 = vcombine.high %v7549_v45, %v7565_v60  ;;  %v10767_v20 = vcombine.low %v10748_v53, %v10764_v50  ;;  %v10768_v31 = vcombine.high %v10748_v53, %v10764_v50  ;;  %v21648_v18 = vrot.slane %v7571_v10, %v23705_v49  ;;  %v19394_v53 = vld [vmem:[#allocation14 + $0x4e4] ss:$24 sps:$4 sm:$0xff]  }
 0x66e   : > { %v21651_v16 = vrot.slane %v7572_v48, %v23705_v49  ;;  %v7630_v6 = vcombine.low %v7545_v36, %v7561_v29  ;;  %v7631_v54 = vcombine.high %v7545_v36, %v7561_v29  ;;  %v21654_v9 = vrot.slane %v7587_v15, %v23705_v49 }
 0x66f   : > { %v21657_v23 = vrot.slane %v7588_v28, %v23705_v49  ;;  %v7646_v5 = vcombine.low %v7553_v40, %v7569_v17  ;;  %v7647_v45 = vcombine.high %v7553_v40, %v7569_v17  ;;  %v10771_v33 = vpack.i.b16 %v10765_v57, %v21587_v34 }
 0x670   : > { %v21660_v50 = vrot.slane %v7630_v6, %v23705_v49  ;;  %v21663_v25 = vrot.slane %v7631_v54, %v23705_v49  ;;  %v7603_v60 = vcombine.low %v21648_v18, %v21654_v9  ;;  %v7604_v55 = vcombine.high %v21648_v18, %v21654_v9 }
 0x671   : > { %v21673_v36 = vrot.slane %v7646_v5, %v23705_v49  ;;  %v21676_v24 = vrot.slane %v7647_v45, %v23705_v49  ;;  %v10779_v40 = vpack.i.b16 %v10766_v32, %v21590_v22  ;;  %v10782_v43 = vshrl.u32 %v10766_v32, 16  ;;  %v19389_v5 = vld [vmem:[#allocation14 + $0x1f0] ss:$24 sps:$4 sm:$0xff]  }
 0x672   : > { %v10789_v57 = vshrl.u32 %v21592_v61, 16  ;;  %v10787_v17 = vpack.i.b16 %v10767_v20, %v21592_v61  ;;  %v10797_v10 = vshrl.u32 %v21601_v2, 16  ;;  %v23717_v32 = vshrl.u32 %v21587_v34, 16 }
 0x673   : > { %7007 = vmatpush2.bf16.xpose.msra.mxu0 %v19383_v37  ;;  %v7662_v29 = vcombine.low %v21660_v50, %v21673_v36  ;;  %v10790_v28 = vshrl.u32 %v10767_v20, 16  ;;  %v10795_v37 = vpack.i.b16 %v10768_v31, %v21601_v2  ;;  %v10783_v6 = vpack.i.b16 %v10782_v43, %v10781_v58  ;;  %v19397_v20 = vld [vmem:[#allocation14 + $0x1c4] ss:$24 sps:$4 sm:$0xff]   ;;  %v19400_v2 = vld [vmem:[#allocation14 + $0x4b4] ss:$24 sps:$4 sm:$0xff]  }
 0x674   : > { %7060 = vmatpush2.bf16.xpose.msra.mxu1 %v19386_v62  ;;  %7008 = vmatprep.subr.bf16.mxu0 %v19391_v59  ;;  %v10775_v15 = vpack.i.b16 %v10774_v0, %v23717_v32  ;;  %v10798_v54 = vshrl.u32 %v10768_v31, 16  ;;  %v10801_v62 = vcombine.low %v10771_v33, %v10787_v17  ;;  %v10802_v59 = vcombine.high %v10771_v33, %v10787_v17 }
 0x675   : > { %7061 = vmatprep.subr.bf16.mxu1 %v19394_v53  ;;  %v10791_v61 = vpack.i.b16 %v10790_v28, %v10789_v57  ;;  %v10817_v45 = vcombine.low %v10779_v40, %v10795_v37  ;;  %v10818_v19 = vcombine.high %v10779_v40, %v10795_v37  ;;  %v19392_v53 = vld [vmem:[#allocation14 + $0x4e0] ss:$24 sps:$4 sm:$0xff]  }
 0x676   : > { %v10799_v12 = vpack.i.b16 %v10798_v54, %v10797_v10  ;;  %v21694_v48 = vrot.slane %v10801_v62, %v23705_v49  ;;  %v21697_v34 = vrot.slane %v10802_v59, %v23705_v49  ;;  %v19395_v37 = vld [vmem:[#allocation14 + $0x1c0] ss:$24 sps:$4 sm:$0xff]   ;;  %v19403_v54 = vld [vmem:[#allocation14 + $0x194] ss:$24 sps:$4 sm:$0xff]   ;;  %v19406_v62 = vld [vmem:[#allocation14 + $0x484] ss:$24 sps:$4 sm:$0xff]   ;;  %v21728_v59 = vrot.slane %v7603_v60, %v21546_v3 }
 0x677   : > { %v21700_v22 = vrot.slane %v10817_v45, %v23705_v49  ;;  %v21703_v58 = vrot.slane %v10818_v19, %v23705_v49  ;;  %v10860_v31 = vcombine.low %v10775_v15, %v10791_v61  ;;  %v10861_v33 = vcombine.high %v10775_v15, %v10791_v61 }
 0x678   : > { %v10876_v0 = vcombine.low %v10783_v6, %v10799_v12  ;;  %v10877_v40 = vcombine.high %v10783_v6, %v10799_v12  ;;  %v19398_v6 = vld [vmem:[#allocation14 + $0x4b0] ss:$24 sps:$4 sm:$0xff]   ;;  %v7692_v45 = vshrl.u32 %v21728_v59, 16 }
 0x679   : > { %v10833_v43 = vcombine.low %v21694_v48, %v21700_v22  ;;  %v10834_v57 = vcombine.high %v21694_v48, %v21700_v22  ;;  %v10849_v17 = vcombine.low %v21697_v34, %v21703_v58  ;;  %v21712_v10 = vrot.slane %v10860_v31, %v23705_v49  ;;  %v19416_v22 = vld [vmem:[#allocation14 + $0x430] ss:$24 sps:$4 sm:$0xff]  }
 0x67a   : > { %v21715_v19 = vrot.slane %v10861_v33, %v23705_v49  ;;  %v21718_v32 = vrot.slane %v10876_v0, %v23705_v49  ;;  %v21721_v12 = vrot.slane %v10877_v40, %v23705_v49  ;;  %v19404_v0 = vld [vmem:[#allocation14 + $0x480] ss:$24 sps:$4 sm:$0xff]   ;;  %v19409_v40 = vld [vmem:[#allocation14 + $0x45c] ss:$24 sps:$4 sm:$0xff]  }
 0x67b   : > { %7009 = vmatpush2.bf16.xpose.msra.mxu0 %v19389_v5  ;;  %v21731_v5 = vrot.slane %v7662_v29, %v21546_v3  ;;  %v19401_v29 = vld [vmem:[#allocation14 + $0x190] ss:$24 sps:$4 sm:$0xff]   ;;  %v21838_v58 = vrot.slane %v10833_v43, %v21546_v3  ;;  %v19421_v43 = vld [vmem:[#allocation14 + $0x3fc] ss:$24 sps:$4 sm:$0xff]  }
 0x67c   : > { %7062 = vmatpush2.bf16.xpose.msra.mxu1 %v19392_v53  ;;  %7010 = vmatprep.subr.bf16.mxu0 %v19397_v20  ;;  %v10893_v15 = vcombine.high %v21712_v10, %v21718_v32  ;;  %v10908_v28 = vcombine.low %v21715_v19, %v21721_v12  ;;  %v23592_v20 = vmov 0   ;;  %v19412_v19 = vld [vmem:[#allocation14 + $0x464] ss:$24 sps:$4 sm:$0xff]  }
 0x67d   : > { %7063 = vmatprep.subr.bf16.mxu1 %v19400_v2  ;;  %v7693_v53 = vshrl.u32 %v21731_v5, 16  ;;  %v21739_v2 = vcombine.high %v21728_v59, %v23592_v20  ;;  %v21743_v60 = vcombine.high %v21731_v5, %v23592_v20  ;;  %23733 = vst [vmem:[#allocation64_spill] sm:$0xff] %v21838_v58 }
 0x67f   : > { %v21745_v31 = vpack.i.b16 %v7693_v53, %v7692_v45  ;;  %v7698_v12 = vshrl.u32 %v21739_v2, 16  ;;  %v23719_v53 = vcombine.low %v21651_v16, %v21657_v23  ;;  %v19410_v23 = vld [vmem:[#allocation14 + $0x460] ss:$24 sps:$4 sm:$0xff]  }
 0x683   : > { %7011 = vmatpush2.bf16.xpose.msra.mxu0 %v19395_v37  ;;  %v7699_v37 = vshrl.u32 %v21743_v60, 16 }
 0x684   : > { %7064 = vmatpush2.bf16.xpose.msra.mxu1 %v19398_v6  ;;  %7012 = vmatprep.subr.bf16.mxu0 %v19403_v54  ;;  %v21757_v54 = vrot.slane %v7604_v55, %v21546_v3 }
 0x685   : > { %7065 = vmatprep.subr.bf16.mxu1 %v19406_v62  ;;  %v21751_v6 = vpack.i.b16 %v7699_v37, %v7698_v12  ;;  %v23718_v62 = vcombine.high %v21660_v50, %v21673_v36  ;;  %v19407_v36 = vld [vmem:[#allocation14 + $0x458] ss:$24 sps:$4 sm:$0xff]   ;;  %v19418_v12 = vld [vmem:[#allocation14 + $0x434] ss:$24 sps:$4 sm:$0xff]  }
 0x686   : > { %v7704_v50 = vshrl.u32 %v21757_v54, 16  ;;  %v21783_v16 = vcombine.high %v21757_v54, %v23592_v20 }
 0x687   : > { %v21763_v45 = vrot.slane %v23718_v62, %v21546_v3  ;;  %v21796_v62 = vrot.slane %v10893_v15, %v21546_v3 }
 0x688   : > { %23723 = vst [vmem:[#allocation38_spill] sm:$0xff] %v21783_v16 }
 0x689   : > { %v7705_v55 = vshrl.u32 %v21763_v45, 16  ;;  %23726 = vst [vmem:[#allocation47_spill] sm:$0xff] %v21796_v62 }
 0x68b   : > { %7013 = vmatpush2.bf16.xpose.msra.mxu0 %v19401_v29  ;;  %v21769_v29 = vrot.slane %v23719_v53, %v21546_v3  ;;  %v21822_v53 = vrot.slane %v10908_v28, %v21546_v3 }
 0x68c   : > { %7066 = vmatpush2.bf16.xpose.msra.mxu1 %v19404_v0  ;;  %7088 = vmatprep.subr.bf16.mxu0 %v19409_v40  ;;  %v23721_v0 = vcombine.low %v21663_v25, %v21676_v24  ;;  %v21785_v40 = vpack.i.b16 %v7705_v55, %v7704_v50  ;;  %v21789_v25 = vcombine.high %v21763_v45, %v23592_v20 }
 0x68d   : > { %23720 = vst [vmem:[#allocation53_spill] sm:$0xff] %v21769_v29  ;;  %7141 = vmatprep.subr.bf16.mxu1 %v19412_v19  ;;  %v21792_v24 = vrot.slane %v10834_v57, %v21546_v3  ;;  %v19415_v19 = vld [vmem:[#allocation14 + $0x42c] ss:$24 sps:$4 sm:$0xff]   ;;  %v7716_v37 = vshrl.u32 %v21769_v29, 16  ;;  %v21805_v50 = vcombine.high %v21769_v29, %v23592_v20  ;;  %v7710_v57 = vshrl.u32 %v21783_v16, 16  ;;  %23730 = vst [vmem:[#allocation48_spill] sm:$0xff] %v21822_v53 }
 0x68e   : > { %v21775_v18 = vrot.slane %v23721_v0, %v21546_v3  ;;  %23724 = vst [vmem:[#allocation52_spill] sm:$0xff] %v21789_v25  ;;  %v7711_v15 = vshrl.u32 %v21789_v25, 16  ;;  %v21819_v0 = vrot.slane %v10849_v17, %v21546_v3  ;;  %v10892_v17 = vcombine.low %v21712_v10, %v21718_v32  ;;  %v19481_v16 = vld [vmem:[#allocation14 + $0x51c] ss:$24 sps:$4 sm:$0xff]  }
 0x68f   : > { %23725 = vst [vmem:[#allocation55_spill] sm:$0xff] %v21792_v24  ;;  %23727 = vst [vmem:[#allocation57_spill] sm:$0xff] %v21805_v50  ;;  %v19484_v25 = vld [vmem:[#allocation14 + $0x524] ss:$24 sps:$4 sm:$0xff]  }
 0x690   : > { %23722 = vst [vmem:[#allocation54_spill] sm:$0xff] %v21775_v18  ;;  %v7717_v55 = vshrl.u32 %v21775_v18, 16  ;;  %v21813_v9 = vcombine.high %v21775_v18, %v23592_v20  ;;  %23729 = vst [vmem:[#allocation46_spill] sm:$0xff] %v21819_v0  ;;  %v21826_v33 = vpack.i.b16 %v7711_v15, %v7710_v57  ;;  %v23735_v57 = vmov 0  }
 0x691   : > { %v21850_v15 = vcombine.high %v21792_v24, %v23735_v57  ;;  %v21854_v48 = vcombine.high %v21796_v62, %v23735_v57  ;;  %v21857_v10 = vrot.slane %v10892_v17, %v21546_v3  ;;  %v21861_v32 = vcombine.high %v21838_v58, %v23735_v57 }
 0x692   : > { %7015 = vmatmul.mubr.bf16.vlgmr.msra.gmra.mxu0 %v21249_v14  ;;  %23728 = vst [vmem:[#allocation56_spill] sm:$0xff] %v21813_v9  ;;  %23731 = vst [vmem:[#allocation49_spill] sm:$0xff] %v21826_v33  ;;  %v21828_v61 = vpack.i.b16 %v7717_v55, %v7716_v37  ;;  %v7723_v34 = vshrl.u32 %v21813_v9, 16  ;;  %v10935_v37 = vshrl.u32 %v21796_v62, 16  ;;  %v10922_v55 = vshrl.u32 %v21838_v58, 16 }
 0x693   : > { %7068 = vmatmul.mubr.bf16.vlgmr.msra.gmra.mxu1 %v21196_v8  ;;  %7089 = vmatpush1.bf16.xpose.msra.mxu0 %v19407_v36  ;;  %v7722_v36 = vshrl.u32 %v21805_v50, 16  ;;  %23736 = vst [vmem:[#allocation66_spill] sm:$0xff] %v21850_v15  ;;  %23737 = vst [vmem:[#allocation67_spill] sm:$0xff] %v21854_v48  ;;  %v10940_v20 = vshrl.u32 %v21850_v15, 16  ;;  %v21876_v62 = vcombine.high %v21857_v10, %v23735_v57  ;;  %v10923_v28 = vshrl.u32 %v21857_v10, 16 }
 0x694   : > { %7142 = vmatpush1.bf16.xpose.msra.mxu1 %v19410_v23  ;;  %7024 = vmatprep.mubr.bf16.mxu0 %v21255_v56  ;;  %23732 = vst [vmem:[#allocation63_spill] sm:$0xff] %v21828_v61  ;;  %v10934_v23 = vshrl.u32 %v21792_v24, 16  ;;  %23738 = vst [vmem:[#allocation68_spill] sm:$0xff] %v21857_v10  ;;  %v10941_v24 = vshrl.u32 %v21854_v48, 16  ;;  %v10928_v48 = vshrl.u32 %v21861_v32, 16  ;;  %v23750_v10 = vld [vmem:[#allocation37_spill] sm:$0xff] }
 0x695   : > { %7090 = vmatprep.subr.bf16.mxu0 %v19415_v19  ;;  %7143 = vmatprep.subr.bf16.mxu1 %v19418_v12  ;;  %v19413_v19 = vld [vmem:[#allocation14 + $0x428] ss:$24 sps:$4 sm:$0xff]   ;;  %v21845_v12 = vpack.i.b16 %v7723_v34, %v7722_v36  ;;  %23739 = vst [vmem:[#allocation69_spill] sm:$0xff] %v21861_v32  ;;  %v19424_v36 = vld [vmem:[#allocation14 + $0x404] ss:$24 sps:$4 sm:$0xff]   ;;  %23741 = vst [vmem:[#allocation71_spill] sm:$0xff] %v21876_v62 }
 0x696   : > { %7077 = vmatprep.mubr.bf16.mxu1 %v21201_v27  ;;  %v21865_v34 = vpack.i.b16 %v10935_v37, %v10934_v23  ;;  %v21880_v23 = vcombine.high %v21819_v0, %v23735_v57  ;;  %v21884_v37 = vcombine.high %v21822_v53, %v23735_v57  ;;  %v21889_v17 = vpack.i.b16 %v10941_v24, %v10940_v20  ;;  %v19419_v15 = vld [vmem:[#allocation14 + $0x3f8] ss:$24 sps:$4 sm:$0xff]   ;;  %v19430_v32 = vld [vmem:[#allocation14 + $0x3d4] ss:$24 sps:$4 sm:$0xff]  }
 0x697   : > { %23734 = vst [vmem:[#allocation65_spill] sm:$0xff] %v21845_v12  ;;  %v10929_v58 = vshrl.u32 %v21876_v62, 16  ;;  %v10946_v20 = vshrl.u32 %v21819_v0, 16  ;;  %v10947_v24 = vshrl.u32 %v21822_v53, 16  ;;  %v19425_v0 = vld [vmem:[#allocation14 + $0x3c8] ss:$24 sps:$4 sm:$0xff]  }
 0x698   : > { %23740 = vst [vmem:[#allocation70_spill] sm:$0xff] %v21865_v34  ;;  %23742 = vst [vmem:[#allocation72_spill] sm:$0xff] %v21880_v23  ;;  %v19422_v34 = vld [vmem:[#allocation14 + $0x400] ss:$24 sps:$4 sm:$0xff]   ;;  %v19428_v53 = vld [vmem:[#allocation14 + $0x3d0] ss:$24 sps:$4 sm:$0xff]  }
 0x699   : > { %23743 = vst [vmem:[#allocation73_spill] sm:$0xff] %v21884_v37  ;;  %23744 = vst [vmem:[#allocation74_spill] sm:$0xff] %v21889_v17  ;;  %v21905_v17 = vpack.i.b16 %v10929_v58, %v10928_v48  ;;  %v19433_v62 = vld [vmem:[#allocation14 + $0x39c] ss:$24 sps:$4 sm:$0xff]   ;;  %v19431_v58 = vld [vmem:[#allocation14 + $0x398] ss:$24 sps:$4 sm:$0xff]  }
 0x69a   : > { %7025 = vmatmul.mubr.bf16.gmra.mxu0 %v21267_v1  ;;  %v19434_v48 = vld [vmem:[#allocation14 + $0x3a0] ss:$24 sps:$4 sm:$0xff]   ;;  %v19475_v50 = vld [vmem:[#allocation14 + $0x54c] ss:$24 sps:$4 sm:$0xff]   ;;  %v19476_v33 = vld [vmem:[#allocation14 + $0x550] ss:$24 sps:$4 sm:$0xff]  }
 0x69b   : > { %7091 = vmatpush1.bf16.xpose.msra.mxu0 %v19413_v19  ;;  %7078 = vmatmul.mubr.bf16.gmra.mxu1 %v21211_v35  ;;  %v21897_v19 = vpack.i.b16 %v10923_v28, %v10922_v55  ;;  %23746 = vst [vmem:[#allocation76_spill] sm:$0xff] %v21905_v17  ;;  %v19427_v28 = vld [vmem:[#allocation14 + $0x3cc] ss:$24 sps:$4 sm:$0xff]   ;;  %v23749_v17 = vld [vmem:[#allocation40_spill] sm:$0xff]  ;;  %v19470_v12 = vld [vmem:[#allocation14 + $0x580] ss:$24 sps:$4 sm:$0xff]  }
 0x69c   : > { %7144 = vmatpush1.bf16.xpose.msra.mxu1 %v19416_v22  ;;  %7092 = vmatprep.subr.bf16.mxu0 %v19421_v43  ;;  %v10952_v22 = vshrl.u32 %v21880_v23, 16  ;;  %v10953_v43 = vshrl.u32 %v21884_v37, 16  ;;  %v19436_v23 = vld [vmem:[#allocation14 + $0x3a4] ss:$24 sps:$4 sm:$0xff]   ;;  %v19478_v9 = vld [vmem:[#allocation14 + $0x554] ss:$24 sps:$4 sm:$0xff]  }
 0x69d   : > { %7145 = vmatprep.subr.bf16.mxu1 %v19424_v36  ;;  %7120 = vmatprep.mubr.bf16.mxu0 %v21203_v30  ;;  %23745 = vst [vmem:[#allocation75_spill] sm:$0xff] %v21897_v19  ;;  %v21907_v36 = vpack.i.b16 %v10947_v24, %v10946_v20  ;;  %v19439_v20 = vld [vmem:[#allocation14 + $0x36c] ss:$24 sps:$4 sm:$0xff]  }
 0x69e   : > { %7173 = vmatprep.mubr.bf16.mxu1 %v21215_v42  ;;  %v21909_v55 = vpack.i.b16 %v10953_v43, %v10952_v22  ;;  %v19442_v24 = vld [vmem:[#allocation14 + $0x374] ss:$24 sps:$4 sm:$0xff]   ;;  %v19449_v43 = vld [vmem:[#allocation14 + $0x308] ss:$24 sps:$4 sm:$0xff]   ;;  %v19472_v37 = vld [vmem:[#allocation14 + $0x584] ss:$24 sps:$4 sm:$0xff]  }
 0x69f   : > { %23747 = vst [vmem:[#allocation77_spill] sm:$0xff] %v21907_v36  ;;  %v19445_v22 = vld [vmem:[#allocation14 + $0x33c] ss:$24 sps:$4 sm:$0xff]   ;;  %v21927_v36 = vld [vmem:[#allocation16] sm:$0x3f] }
 0x6a0   : > { %23748 = vst [vmem:[#allocation78_spill] sm:$0xff] %v21909_v55  ;;  %v19469_v55 = vld [vmem:[#allocation14 + $0x57c] ss:$24 sps:$4 sm:$0xff]   ;;  %v21931_v19 = vrot.slane %v21927_v36, %v23749_v17  ;;  %v21935_v41 = vrot.slane %v21927_v36, %v23750_v10  ;;  %v19473_v10 = vld [vmem:[#allocation14 + $0x548] ss:$24 sps:$4 sm:$0xff]  }
 0x6a3   : > { %7093 = vmatpush1.bf16.xpose.msra.mxu0 %v19419_v15  ;;  %v19437_v15 = vld [vmem:[#allocation14 + $0x368] ss:$24 sps:$4 sm:$0xff]  }
 0x6a4   : > { %7146 = vmatpush1.bf16.xpose.msra.mxu1 %v19422_v34  ;;  %7094 = vmatprep.subr.bf16.mxu0 %v19427_v28  ;;  %v19440_v34 = vld [vmem:[#allocation14 + $0x370] ss:$24 sps:$4 sm:$0xff]  }
 0x6a5   : > { %7147 = vmatprep.subr.bf16.mxu1 %v19430_v32  ;;  %v19448_v32 = vld [vmem:[#allocation14 + $0x344] ss:$24 sps:$4 sm:$0xff]   ;;  %v19452_v28 = vld [vmem:[#allocation14 + $0x310] ss:$24 sps:$4 sm:$0xff]  }
 0x6ab   : > { %7095 = vmatpush1.bf16.xpose.msra.mxu0 %v19425_v0  ;;  %v19443_v0 = vld [vmem:[#allocation14 + $0x338] ss:$24 sps:$4 sm:$0xff]  }
 0x6ac   : > { %7148 = vmatpush1.bf16.xpose.msra.mxu1 %v19428_v53  ;;  %7096 = vmatprep.subr.bf16.mxu0 %v19433_v62  ;;  %v19446_v53 = vld [vmem:[#allocation14 + $0x340] ss:$24 sps:$4 sm:$0xff]   ;;  %v19451_v62 = vld [vmem:[#allocation14 + $0x30c] ss:$24 sps:$4 sm:$0xff]  }
 0x6ad   : > { %7149 = vmatprep.subr.bf16.mxu1 %v19436_v23  ;;  %v19454_v23 = vld [vmem:[#allocation14 + $0x314] ss:$24 sps:$4 sm:$0xff]  }
 0x6b3   : > { %7097 = vmatpush1.bf16.xpose.msra.mxu0 %v19431_v58  ;;  %v19457_v58 = vld [vmem:[#allocation14 + $0x5dc] ss:$24 sps:$4 sm:$0xff]  }
 0x6b4   : > { %7150 = vmatpush1.bf16.xpose.msra.mxu1 %v19434_v48  ;;  %7098 = vmatprep.subr.bf16.mxu0 %v19439_v20  ;;  %v19460_v48 = vld [vmem:[#allocation14 + $0x5e4] ss:$24 sps:$4 sm:$0xff]   ;;  %v19455_v20 = vld [vmem:[#allocation14 + $0x5d8] ss:$24 sps:$4 sm:$0xff]  }
 0x6b5   : > { %7151 = vmatprep.subr.bf16.mxu1 %v19442_v24  ;;  %v19458_v24 = vld [vmem:[#allocation14 + $0x5e0] ss:$24 sps:$4 sm:$0xff]  }
 0x6bb   : > { %7099 = vmatpush1.bf16.xpose.msra.mxu0 %v19437_v15  ;;  %v19463_v15 = vld [vmem:[#allocation14 + $0x5ac] ss:$24 sps:$4 sm:$0xff]  }
 0x6bc   : > { %7152 = vmatpush1.bf16.xpose.msra.mxu1 %v19440_v34  ;;  %7100 = vmatprep.subr.bf16.mxu0 %v19445_v22  ;;  %v19466_v34 = vld [vmem:[#allocation14 + $0x5b4] ss:$24 sps:$4 sm:$0xff]  }
 0x6bd   : > { %7153 = vmatprep.subr.bf16.mxu1 %v19448_v32 }
 0x6c3   : > { %7101 = vmatpush1.bf16.xpose.msra.mxu0 %v19443_v0 }
 0x6c4   : > { %7154 = vmatpush1.bf16.xpose.msra.mxu1 %v19446_v53  ;;  %7102 = vmatprep.subr.bf16.mxu0 %v19451_v62 }
 0x6c5   : > { %7155 = vmatprep.subr.bf16.mxu1 %v19454_v23 }
 0x6cb   : > { %7103 = vmatpush1.bf16.xpose.msra.mxu0 %v19449_v43  ;;  %v19461_v43 = vld [vmem:[#allocation14 + $0x5a8] ss:$24 sps:$4 sm:$0xff]  }
 0x6cc   : > { %7156 = vmatpush1.bf16.xpose.msra.mxu1 %v19452_v28  ;;  %7104 = vmatprep.subr.bf16.mxu0 %v19457_v58  ;;  %v19464_v58 = vld [vmem:[#allocation14 + $0x5b0] ss:$24 sps:$4 sm:$0xff]  }
 0x6cd   : > { %7157 = vmatprep.subr.bf16.mxu1 %v19460_v48 }
 0x6d2   : > { %v21911_v22 = vpop.f32.mrf.mxu0 }
 0x6d3   : > { %v21913_v32 = vpop.f32.mrf.mxu1  ;;  %7105 = vmatpush2.bf16.xpose.msra.mxu0 %v19455_v20 }
 0x6d4   : > { %7158 = vmatpush2.bf16.xpose.msra.mxu1 %v19458_v24  ;;  %v21915_v0 = vpop.f32.mrf.mxu0  ;;  %7106 = vmatprep.subr.bf16.mxu0 %v19463_v15 }
 0x6d5   : > { %v21917_v53 = vpop.f32.mrf.mxu1  ;;  %7159 = vmatprep.subr.bf16.mxu1 %v19466_v34 }
 0x6d6   : > { %v21919_v62 = vpop.f32.mrf.mxu0 }
 0x6d7   : > { %v21921_v23 = vpop.f32.mrf.mxu1 }
 0x6d8   : > { %v21923_v28 = vpop.f32.mrf.mxu0 }
 0x6d9   : > { %v21925_v48 = vpop.f32.mrf.mxu1 }
 0x6da   : > { %v6920_v20 = vpop.f32.mrf.mxu0 }
 0x6db   : > { %7107 = vmatpush2.bf16.xpose.msra.mxu0 %v19461_v43  ;;  %v6973_v24 = vpop.f32.mrf.mxu1  ;;  %v6921_v61 = vadd.f32 %v6920_v20, %v21931_v19  ;;  %v19479_v20 = vld [vmem:[#allocation14 + $0x518] ss:$24 sps:$4 sm:$0xff]  }
 0x6dc   : > { %7160 = vmatpush2.bf16.xpose.msra.mxu1 %v19464_v58  ;;  %v6922_v15 = vpop.f32.mrf.mxu0  ;;  %7108 = vmatprep.subr.bf16.mxu0 %v19469_v55 }
 0x6dd   : > { %7161 = vmatprep.subr.bf16.mxu1 %v19472_v37  ;;  %v6975_v34 = vpop.f32.mrf.mxu1  ;;  %v6923_v58 = vadd.f32 %v6922_v15, %v21935_v41  ;;  %v21940_v29 = vadd.f32 %v6973_v24, %v6921_v61  ;;  %v19482_v15 = vld [vmem:[#allocation14 + $0x520] ss:$24 sps:$4 sm:$0xff]   ;;  %v19490_v61 = vld [vmem:[#allocation14 + $0x4f4] ss:$24 sps:$4 sm:$0xff]  }
 0x6de   : > { %v6924_v43 = vpop.f32.mrf.mxu0  ;;  %v19485_v24 = vld [vmem:[#allocation14 + $0x4e8] ss:$24 sps:$4 sm:$0xff]  }
 0x6df   : > { %v6925_v37 = vadd.f32 %v6924_v43, %v21931_v19  ;;  %v6977_v55 = vpop.f32.mrf.mxu1  ;;  %v21942_v17 = vadd.f32 %v6975_v34, %v6923_v58  ;;  %v19497_v34 = vld [vmem:[#allocation14 + $0x488] ss:$24 sps:$4 sm:$0xff]   ;;  %v19505_v58 = vld [vmem:[#allocation14 + $0x754] ss:$24 sps:$4 sm:$0xff]  }
 0x6e0   : > { %v19500_v43 = vld [vmem:[#allocation14 + $0x490] ss:$24 sps:$4 sm:$0xff]  }
 0x6e1   : > { %v21944_v18 = vadd.f32 %v6977_v55, %v6925_v37  ;;  %v19508_v37 = vld [vmem:[#allocation14 + $0x75c] ss:$24 sps:$4 sm:$0xff]   ;;  %v19503_v55 = vld [vmem:[#allocation14 + $0x750] ss:$24 sps:$4 sm:$0xff]  }
 0x6e3   : > { %7109 = vmatpush2.bf16.xpose.msra.mxu0 %v19467_v46  ;;  %v19487_v46 = vld [vmem:[#allocation14 + $0x4ec] ss:$24 sps:$4 sm:$0xff]  }
 0x6e4   : > { %7162 = vmatpush2.bf16.xpose.msra.mxu1 %v19470_v12  ;;  %7110 = vmatprep.subr.bf16.mxu0 %v19475_v50  ;;  %v19488_v12 = vld [vmem:[#allocation14 + $0x4f0] ss:$24 sps:$4 sm:$0xff]   ;;  %v19493_v50 = vld [vmem:[#allocation14 + $0x4bc] ss:$24 sps:$4 sm:$0xff]  }
 0x6e5   : > { %7163 = vmatprep.subr.bf16.mxu1 %v19478_v9  ;;  %v19496_v9 = vld [vmem:[#allocation14 + $0x4c4] ss:$24 sps:$4 sm:$0xff]  }
 0x6eb   : > { %7111 = vmatpush2.bf16.xpose.msra.mxu0 %v19473_v10  ;;  %v19491_v10 = vld [vmem:[#allocation14 + $0x4b8] ss:$24 sps:$4 sm:$0xff]  }
 0x6ec   : > { %7164 = vmatpush2.bf16.xpose.msra.mxu1 %v19476_v33  ;;  %7112 = vmatprep.subr.bf16.mxu0 %v19481_v16  ;;  %v19494_v33 = vld [vmem:[#allocation14 + $0x4c0] ss:$24 sps:$4 sm:$0xff]   ;;  %v19499_v16 = vld [vmem:[#allocation14 + $0x48c] ss:$24 sps:$4 sm:$0xff]  }
 0x6ed   : > { %7165 = vmatprep.subr.bf16.mxu1 %v19484_v25  ;;  %v19502_v25 = vld [vmem:[#allocation14 + $0x494] ss:$24 sps:$4 sm:$0xff]  }
 0x6f3   : > { %7113 = vmatpush2.bf16.xpose.msra.mxu0 %v19479_v20  ;;  %v19506_v20 = vld [vmem:[#allocation14 + $0x758] ss:$24 sps:$4 sm:$0xff]  }
 0x6f4   : > { %7166 = vmatpush2.bf16.xpose.msra.mxu1 %v19482_v15  ;;  %7114 = vmatprep.subr.bf16.mxu0 %v19487_v46  ;;  %v19511_v15 = vld [vmem:[#allocation14 + $0x724] ss:$24 sps:$4 sm:$0xff]  }
 0x6f5   : > { %7167 = vmatprep.subr.bf16.mxu1 %v19490_v61  ;;  %v19514_v46 = vld [vmem:[#allocation14 + $0x72c] ss:$24 sps:$4 sm:$0xff]   ;;  %v19509_v61 = vld [vmem:[#allocation14 + $0x720] ss:$24 sps:$4 sm:$0xff]  }
 0x6fb   : > { %7115 = vmatpush2.bf16.xpose.msra.mxu0 %v19485_v24  ;;  %v19512_v24 = vld [vmem:[#allocation14 + $0x728] ss:$24 sps:$4 sm:$0xff]  }
 0x6fc   : > { %7168 = vmatpush2.bf16.xpose.msra.mxu1 %v19488_v12  ;;  %7116 = vmatprep.subr.bf16.mxu0 %v19493_v50  ;;  %v19517_v12 = vld [vmem:[#allocation14 + $0x6f4] ss:$24 sps:$4 sm:$0xff]  }
 0x6fd   : > { %7169 = vmatprep.subr.bf16.mxu1 %v19496_v9  ;;  %v19520_v50 = vld [vmem:[#allocation14 + $0x6fc] ss:$24 sps:$4 sm:$0xff]   ;;  %v19515_v9 = vld [vmem:[#allocation14 + $0x6f0] ss:$24 sps:$4 sm:$0xff]  }
 0x703   : > { %7117 = vmatpush2.bf16.xpose.msra.mxu0 %v19491_v10  ;;  %v19518_v10 = vld [vmem:[#allocation14 + $0x6f8] ss:$24 sps:$4 sm:$0xff]  }
 0x704   : > { %7170 = vmatpush2.bf16.xpose.msra.mxu1 %v19494_v33  ;;  %7118 = vmatprep.subr.bf16.mxu0 %v19499_v16  ;;  %v19523_v33 = vld [vmem:[#allocation14 + $0x6c4] ss:$24 sps:$4 sm:$0xff]  }
 0x705   : > { %7171 = vmatprep.subr.bf16.mxu1 %v19502_v25  ;;  %v19526_v16 = vld [vmem:[#allocation14 + $0x6cc] ss:$24 sps:$4 sm:$0xff]   ;;  %v19521_v25 = vld [vmem:[#allocation14 + $0x6c0] ss:$24 sps:$4 sm:$0xff]  }
 0x70b   : > { %7119 = vmatpush2.bf16.xpose.msra.mxu0 %v19497_v34  ;;  %v19524_v34 = vld [vmem:[#allocation14 + $0x6c8] ss:$24 sps:$4 sm:$0xff]  }
 0x70c   : > { %7172 = vmatpush2.bf16.xpose.msra.mxu1 %v19500_v43  ;;  %7194 = vmatprep.subr.bf16.mxu0 %v19505_v58  ;;  %v19529_v43 = vld [vmem:[#allocation14 + $0x694] ss:$24 sps:$4 sm:$0xff]  }
 0x70d   : > { %7247 = vmatprep.subr.bf16.mxu1 %v19508_v37  ;;  %v19532_v58 = vld [vmem:[#allocation14 + $0x69c] ss:$24 sps:$4 sm:$0xff]   ;;  %v19527_v37 = vld [vmem:[#allocation14 + $0x690] ss:$24 sps:$4 sm:$0xff]  }
 0x712   : > { %7121 = vmatmul.mubr.bf16.vlgmr.msra.gmra.mxu0 %v21247_v13 }
 0x713   : > { %7174 = vmatmul.mubr.bf16.vlgmr.msra.gmra.mxu1 %v21249_v14  ;;  %7195 = vmatpush1.bf16.xpose.msra.mxu0 %v19503_v55  ;;  %v19535_v55 = vld [vmem:[#allocation14 + $0x664] ss:$24 sps:$4 sm:$0xff]  }
 0x714   : > { %7248 = vmatpush1.bf16.xpose.msra.mxu1 %v19506_v20  ;;  %7130 = vmatprep.mubr.bf16.mxu0 %v21253_v11  ;;  %v19533_v20 = vld [vmem:[#allocation14 + $0x660] ss:$24 sps:$4 sm:$0xff]  }
 0x715   : > { %7196 = vmatprep.subr.bf16.mxu0 %v19511_v15  ;;  %7249 = vmatprep.subr.bf16.mxu1 %v19514_v46  ;;  %v19536_v15 = vld [vmem:[#allocation14 + $0x668] ss:$24 sps:$4 sm:$0xff]   ;;  %v19541_v46 = vld [vmem:[#allocation14 + $0x634] ss:$24 sps:$4 sm:$0xff]  }
 0x716   : > { %7183 = vmatprep.mubr.bf16.mxu1 %v21255_v56 }
 0x71a   : > { %7131 = vmatmul.mubr.bf16.gmra.mxu0 %v21265_v4 }
 0x71b   : > { %7197 = vmatpush1.bf16.xpose.msra.mxu0 %v19509_v61  ;;  %7184 = vmatmul.mubr.bf16.gmra.mxu1 %v21267_v1  ;;  %v19544_v61 = vld [vmem:[#allocation14 + $0x63c] ss:$24 sps:$4 sm:$0xff]  }
 0x71c   : > { %7250 = vmatpush1.bf16.xpose.msra.mxu1 %v19512_v24  ;;  %7198 = vmatprep.subr.bf16.mxu0 %v19517_v12  ;;  %v19539_v24 = vld [vmem:[#allocation14 + $0x630] ss:$24 sps:$4 sm:$0xff]  }
 0x71d   : > { %7251 = vmatprep.subr.bf16.mxu1 %v19520_v50  ;;  %7226 = vmatprep.mubr.bf16.mxu0 %v21123_v63  ;;  %v19530_v63 = vld [vmem:[#allocation14 + $0x698] ss:$24 sps:$4 sm:$0xff]   ;;  %v19547_v50 = vld [vmem:[#allocation14 + $0x604] ss:$24 sps:$4 sm:$0xff]  }
 0x71e   : > { %7279 = vmatprep.mubr.bf16.mxu1 %v21203_v30  ;;  %v19538_v30 = vld [vmem:[#allocation14 + $0x66c] ss:$24 sps:$4 sm:$0xff]   ;;  %v19542_v12 = vld [vmem:[#allocation14 + $0x638] ss:$24 sps:$4 sm:$0xff]  }
 0x723   : > { %7199 = vmatpush1.bf16.xpose.msra.mxu0 %v19515_v9  ;;  %v19550_v9 = vld [vmem:[#allocation14 + $0x60c] ss:$24 sps:$4 sm:$0xff]  }
 0x724   : > { %7252 = vmatpush1.bf16.xpose.msra.mxu1 %v19518_v10  ;;  %7200 = vmatprep.subr.bf16.mxu0 %v19523_v33  ;;  %v19545_v10 = vld [vmem:[#allocation14 + $0x600] ss:$24 sps:$4 sm:$0xff]  }
 0x725   : > { %7253 = vmatprep.subr.bf16.mxu1 %v19526_v16  ;;  %v19548_v33 = vld [vmem:[#allocation14 + $0x608] ss:$24 sps:$4 sm:$0xff]   ;;  %v19553_v16 = vld [vmem:[#allocation14 + $0x8d4] ss:$24 sps:$4 sm:$0xff]  }
 0x72b   : > { %7201 = vmatpush1.bf16.xpose.msra.mxu0 %v19521_v25  ;;  %v19556_v25 = vld [vmem:[#allocation14 + $0x8dc] ss:$24 sps:$4 sm:$0xff]  }
 0x72c   : > { %7254 = vmatpush1.bf16.xpose.msra.mxu1 %v19524_v34  ;;  %7202 = vmatprep.subr.bf16.mxu0 %v19529_v43  ;;  %v19551_v34 = vld [vmem:[#allocation14 + $0x8d0] ss:$24 sps:$4 sm:$0xff]   ;;  %v6926_v43 = vpop.f32.mrf.mxu0 }
 0x72d   : > { %7255 = vmatprep.subr.bf16.mxu1 %v19532_v58  ;;  %v19554_v58 = vld [vmem:[#allocation14 + $0x8d8] ss:$24 sps:$4 sm:$0xff]  }
 0x733   : > { %7203 = vmatpush1.bf16.xpose.msra.mxu0 %v19527_v37  ;;  %v19559_v37 = vld [vmem:[#allocation14 + $0x8a4] ss:$24 sps:$4 sm:$0xff]  }
 0x734   : > { %7256 = vmatpush1.bf16.xpose.msra.mxu1 %v19530_v63  ;;  %7204 = vmatprep.subr.bf16.mxu0 %v19535_v55  ;;  %v6911_v63 = vadd.f32 %v21911_v22, %v21931_v19  ;;  %v6915_v55 = vadd.f32 %v21919_v62, %v21931_v19  ;;  %v6913_v22 = vadd.f32 %v21915_v0, %v21935_v41 }
 0x735   : > { %7257 = vmatprep.subr.bf16.mxu1 %v19538_v30  ;;  %v6979_v30 = vpop.f32.mrf.mxu1 }
 0x73b   : > { %7205 = vmatpush1.bf16.xpose.msra.mxu0 %v19533_v20  ;;  %v19562_v20 = vld [vmem:[#allocation14 + $0x8ac] ss:$24 sps:$4 sm:$0xff]  }
 0x73c   : > { %7258 = vmatpush1.bf16.xpose.msra.mxu1 %v19536_v15  ;;  %7206 = vmatprep.subr.bf16.mxu0 %v19541_v46  ;;  %v6917_v46 = vadd.f32 %v21923_v28, %v21935_v41 }
 0x73d   : > { %7259 = vmatprep.subr.bf16.mxu1 %v19544_v61 }
 0x743   : > { %7207 = vmatpush1.bf16.xpose.msra.mxu0 %v19539_v24 }
 0x744   : > { %7260 = vmatpush1.bf16.xpose.msra.mxu1 %v19542_v12  ;;  %7208 = vmatprep.subr.bf16.mxu0 %v19547_v50  ;;  %v6964_v12 = vadd.f32 %v21913_v32, %v6911_v63  ;;  %v6968_v50 = vadd.f32 %v21921_v23, %v6915_v55  ;;  %v6966_v32 = vadd.f32 %v21917_v53, %v6913_v22  ;;  %v19568_v63 = vld [vmem:[#allocation14 + $0x87c] ss:$24 sps:$4 sm:$0xff]  }
 0x745   : > { %7261 = vmatprep.subr.bf16.mxu1 %v19550_v9  ;;  %v6970_v9 = vadd.f32 %v21925_v48, %v6917_v46  ;;  %v21978_v55 = vrot.slane %v21927_v36, %v21137_v44 }
 0x74b   : > { %7209 = vmatpush1.bf16.xpose.msra.mxu0 %v19545_v10 }
 0x74c   : > { %7262 = vmatpush1.bf16.xpose.msra.mxu1 %v19548_v33  ;;  %7210 = vmatprep.subr.bf16.mxu0 %v19553_v16  ;;  %v19557_v16 = vld [vmem:[#allocation14 + $0x8a0] ss:$24 sps:$4 sm:$0xff]  }
 0x74d   : > { %7263 = vmatprep.subr.bf16.mxu1 %v19556_v25 }
 0x752   : > { %v7016_v15 = vpop.f32.mrf.mxu0 }
 0x753   : > { %v21960_v61 = vpop.f32.mrf.mxu1  ;;  %7211 = vmatpush2.bf16.xpose.msra.mxu0 %v19551_v34  ;;  %v7017_v28 = vadd.f32 %v7016_v15, %v6964_v12  ;;  %v19560_v34 = vld [vmem:[#allocation14 + $0x8a8] ss:$24 sps:$4 sm:$0xff]   ;;  %v21986_v12 = vrot.slane %v21927_v36, %v21146_v47 }
 0x754   : > { %7264 = vmatpush2.bf16.xpose.msra.mxu1 %v19554_v58  ;;  %v7018_v24 = vpop.f32.mrf.mxu0  ;;  %7212 = vmatprep.subr.bf16.mxu0 %v19559_v37  ;;  %v19565_v58 = vld [vmem:[#allocation14 + $0x874] ss:$24 sps:$4 sm:$0xff]  }
 0x755   : > { %v21966_v19 = vpop.f32.mrf.mxu1  ;;  %7265 = vmatprep.subr.bf16.mxu1 %v19562_v20  ;;  %v6927_v20 = vadd.f32 %v6926_v43, %v21935_v41  ;;  %v7019_v15 = vadd.f32 %v7018_v24, %v6966_v32 }
 0x756   : > { %v7020_v62 = vpop.f32.mrf.mxu0 }
 0x757   : > { %v7021_v10 = vadd.f32 %v7020_v62, %v6968_v50  ;;  %v21969_v33 = vpop.f32.mrf.mxu1 }
 0x758   : > { %v7022_v25 = vpop.f32.mrf.mxu0 }
 0x759   : > { %v21972_v37 = vpack.c.bf16 %v7021_v10, %v7017_v28  ;;  %v7023_v0 = vadd.f32 %v7022_v25, %v6970_v9  ;;  %v21974_v23 = vpop.f32.mrf.mxu1  ;;  %v6980_v9 = vadd.f32 %v6979_v30, %v6927_v20  ;;  %v19563_v28 = vld [vmem:[#allocation14 + $0x870] ss:$24 sps:$4 sm:$0xff]   ;;  %v19580_v20 = vld [vmem:[#allocation14 + $0x81c] ss:$24 sps:$4 sm:$0xff]  }
 0x75a   : > { %v7026_v48 = vpop.f32.mrf.mxu0  ;;  %v19566_v25 = vld [vmem:[#allocation14 + $0x878] ss:$24 sps:$4 sm:$0xff]   ;;  %v19572_v30 = vld [vmem:[#allocation14 + $0x848] ss:$24 sps:$4 sm:$0xff]  }
 0x75b   : > { %v7027_v46 = vadd.f32 %v7026_v48, %v21940_v29  ;;  %7213 = vmatpush2.bf16.xpose.msra.mxu0 %v19557_v16  ;;  %8338 = vrot.lane.b32.xlu1 %v21972_v37, %s20649_s3  ;;  %v7079_v53 = vpop.f32.mrf.mxu1  ;;  %v21991_v62 = vpack.c.bf16 %v7023_v0, %v7019_v15  ;;  %v19574_v0 = vld [vmem:[#allocation14 + $0x84c] ss:$24 sps:$4 sm:$0xff]   ;;  %v19575_v15 = vld [vmem:[#allocation14 + $0x810] ss:$24 sps:$4 sm:$0xff]  }
 0x75c   : > { %7266 = vmatpush2.bf16.xpose.msra.mxu1 %v19560_v34  ;;  %v7028_v22 = vpop.f32.mrf.mxu0  ;;  %7214 = vmatprep.subr.bf16.mxu0 %v19565_v58  ;;  %v21989_v50 = vadd.f32 %v7079_v53, %v21978_v55  ;;  %v19571_v34 = vld [vmem:[#allocation14 + $0x844] ss:$24 sps:$4 sm:$0xff]   ;;  %v19577_v48 = vld [vmem:[#allocation14 + $0x814] ss:$24 sps:$4 sm:$0xff]   ;;  %v19578_v53 = vld [vmem:[#allocation14 + $0x818] ss:$24 sps:$4 sm:$0xff]  }
 0x75d   : > { %v7029_v41 = vadd.f32 %v7028_v22, %v21942_v17  ;;  %7267 = vmatprep.subr.bf16.mxu1 %v19568_v63  ;;  %v7081_v29 = vpop.f32.mrf.mxu1  ;;  %v19586_v22 = vld [vmem:[#allocation14 + $0x7ec] ss:$24 sps:$4 sm:$0xff]  }
 0x75e   : > { %v7030_v43 = vpop.f32.mrf.mxu0  ;;  %v21995_v24 = vadd.f32 %v7081_v29, %v21986_v12  ;;  %v19584_v29 = vld [vmem:[#allocation14 + $0x7e8] ss:$24 sps:$4 sm:$0xff]  }
 0x75f   : > { %v7031_v36 = vadd.f32 %v7030_v43, %v21944_v18  ;;  %8341 = vrot.lane.b32.xlu1 %v21991_v62, %s20649_s3  ;;  %v7083_v10 = vpop.f32.mrf.mxu1  ;;  %v19569_v18 = vld [vmem:[#allocation14 + $0x840] ss:$24 sps:$4 sm:$0xff]   ;;  %v19589_v43 = vld [vmem:[#allocation14 + $0x7b4] ss:$24 sps:$4 sm:$0xff]  }
 0x760   : > { %v7032_v16 = vpop.f32.mrf.mxu0  ;;  %v22001_v58 = vadd.f32 %v7083_v10, %v21978_v55  ;;  %v19595_v10 = vld [vmem:[#allocation14 + $0x784] ss:$24 sps:$4 sm:$0xff]  }
 0x761   : > { %v22003_v17 = vpack.c.bf16 %v7031_v36, %v7027_v46  ;;  %v7033_v32 = vadd.f32 %v7032_v16, %v6980_v9  ;;  %v19583_v46 = vld [vmem:[#allocation14 + $0x7e4] ss:$24 sps:$4 sm:$0xff]   ;;  %v19587_v36 = vld [vmem:[#allocation14 + $0x7b0] ss:$24 sps:$4 sm:$0xff]  }
 0x762   : > { %v19592_v9 = vld [vmem:[#allocation14 + $0x7bc] ss:$24 sps:$4 sm:$0xff]   ;;  %v19598_v16 = vld [vmem:[#allocation14 + $0x78c] ss:$24 sps:$4 sm:$0xff]  }
 0x763   : > { %v22005_v63 = vpack.c.bf16 %v7033_v32, %v7029_v41  ;;  %7215 = vmatpush2.bf16.xpose.msra.mxu0 %v19563_v28  ;;  %v19581_v41 = vld [vmem:[#allocation14 + $0x7e0] ss:$24 sps:$4 sm:$0xff]   ;;  %v19601_v32 = vld [vmem:[#allocation14 + $0x764] ss:$24 sps:$4 sm:$0xff]  }
 0x764   : > { %7268 = vmatpush2.bf16.xpose.msra.mxu1 %v19566_v25  ;;  %7216 = vmatprep.subr.bf16.mxu0 %v19571_v34  ;;  %v19590_v28 = vld [vmem:[#allocation14 + $0x7b8] ss:$24 sps:$4 sm:$0xff]   ;;  %v19596_v34 = vld [vmem:[#allocation14 + $0x788] ss:$24 sps:$4 sm:$0xff]  }
 0x765   : > { %7269 = vmatprep.subr.bf16.mxu1 %v19574_v0  ;;  %v19593_v25 = vld [vmem:[#allocation14 + $0x780] ss:$24 sps:$4 sm:$0xff]  }
 0x766   : > { %v19599_v0 = vld [vmem:[#allocation14 + $0x760] ss:$24 sps:$4 sm:$0xff]  }
 0x76b   : > { %7217 = vmatpush2.bf16.xpose.msra.mxu0 %v19569_v18  ;;  %v19604_v18 = vld [vmem:[#allocation14 + $0x734] ss:$24 sps:$4 sm:$0xff]  }
 0x76c   : > { %7270 = vmatpush2.bf16.xpose.msra.mxu1 %v19572_v30  ;;  %7218 = vmatprep.subr.bf16.mxu0 %v19577_v48  ;;  %v19602_v30 = vld [vmem:[#allocation14 + $0x730] ss:$24 sps:$4 sm:$0xff]   ;;  %v19607_v48 = vld [vmem:[#allocation14 + $0x704] ss:$24 sps:$4 sm:$0xff]  }
 0x76d   : > { %7271 = vmatprep.subr.bf16.mxu1 %v19580_v20  ;;  %v19617_v20 = vld [vmem:[#allocation14 + $0x640] ss:$24 sps:$4 sm:$0xff]  }
 0x773   : > { %7219 = vmatpush2.bf16.xpose.msra.mxu0 %v19575_v15  ;;  %v19622_v15 = vld [vmem:[#allocation14 + $0x614] ss:$24 sps:$4 sm:$0xff]  }
 0x774   : > { %7272 = vmatpush2.bf16.xpose.msra.mxu1 %v19578_v53  ;;  %7220 = vmatprep.subr.bf16.mxu0 %v19583_v46  ;;  %v19620_v53 = vld [vmem:[#allocation14 + $0x610] ss:$24 sps:$4 sm:$0xff]   ;;  %v19625_v46 = vld [vmem:[#allocation14 + $0x8e4] ss:$24 sps:$4 sm:$0xff]  }
 0x775   : > { %7273 = vmatprep.subr.bf16.mxu1 %v19586_v22  ;;  %v7085_v22 = vpop.f32.mrf.mxu1 }
 0x77b   : > { %7221 = vmatpush2.bf16.xpose.msra.mxu0 %v19581_v41  ;;  %v19623_v41 = vld [vmem:[#allocation14 + $0x8e0] ss:$24 sps:$4 sm:$0xff]  }
 0x77c   : > { %7274 = vmatpush2.bf16.xpose.msra.mxu1 %v19584_v29  ;;  %7222 = vmatprep.subr.bf16.mxu0 %v19589_v43  ;;  %v19628_v29 = vld [vmem:[#allocation14 + $0x8b4] ss:$24 sps:$4 sm:$0xff]  }
 0x77d   : > { %7275 = vmatprep.subr.bf16.mxu1 %v19592_v9  ;;  %v7070_v9 = vadd.f32 %v21960_v61, %v21978_v55 }
 0x783   : > { %7223 = vmatpush2.bf16.xpose.msra.mxu0 %v19587_v36 }
 0x784   : > { %7276 = vmatpush2.bf16.xpose.msra.mxu1 %v19590_v28  ;;  %7224 = vmatprep.subr.bf16.mxu0 %v19595_v10  ;;  %v7074_v10 = vadd.f32 %v21969_v33, %v21978_v55 }
 0x785   : > { %7277 = vmatprep.subr.bf16.mxu1 %v19598_v16 }
 0x78b   : > { %7225 = vmatpush2.bf16.xpose.msra.mxu0 %v19593_v25 }
 0x78c   : > { %7278 = vmatpush2.bf16.xpose.msra.mxu1 %v19596_v34  ;;  %7300 = vmatprep.subr.bf16.mxu0 %v19601_v32 }
 0x78d   : > { %18111 = vmatprep.subr.bf16.mxu1 %v19601_v32  ;;  %v7072_v32 = vadd.f32 %v21966_v19, %v21986_v12 }
 0x792   : > { %7227 = vmatmul.mubr.bf16.vlgmr.msra.gmra.mxu0 %v21196_v8  ;;  %v19605_v8 = vld [vmem:[#allocation14 + $0x700] ss:$24 sps:$4 sm:$0xff]  }
 0x793   : > { %7280 = vmatmul.mubr.bf16.vlgmr.msra.gmra.mxu1 %v21247_v13  ;;  %7301 = vmatpush1.bf16.xpose.msra.mxu0 %v19599_v0  ;;  %v19610_v13 = vld [vmem:[#allocation14 + $0x6d4] ss:$24 sps:$4 sm:$0xff]  }
 0x794   : > { %18127 = vmatpush1.bf16.xpose.msra.mxu1 %v19599_v0  ;;  %7302 = vmatprep.subr.bf16.mxu0 %v19604_v18  ;;  %v7076_v0 = vadd.f32 %v21974_v23, %v21986_v12 }
 0x795   : > { %18112 = vmatprep.subr.bf16.mxu1 %v19604_v18  ;;  %7236 = vmatprep.mubr.bf16.mxu0 %v21201_v27  ;;  %v19608_v27 = vld [vmem:[#allocation14 + $0x6d0] ss:$24 sps:$4 sm:$0xff]  }
 0x796   : > { %7289 = vmatprep.mubr.bf16.mxu1 %v21253_v11  ;;  %v19613_v11 = vld [vmem:[#allocation14 + $0x6a4] ss:$24 sps:$4 sm:$0xff]  }
 0x79a   : > { %7237 = vmatmul.mubr.bf16.gmra.mxu0 %v21211_v35  ;;  %v19611_v35 = vld [vmem:[#allocation14 + $0x6a0] ss:$24 sps:$4 sm:$0xff]  }
 0x79b   : > { %7303 = vmatpush1.bf16.xpose.msra.mxu0 %v19602_v30  ;;  %7290 = vmatmul.mubr.bf16.gmra.mxu1 %v21265_v4  ;;  %v19616_v4 = vld [vmem:[#allocation14 + $0x674] ss:$24 sps:$4 sm:$0xff]  }
 0x79c   : > { %18128 = vmatpush1.bf16.xpose.msra.mxu1 %v19602_v30  ;;  %7304 = vmatprep.subr.bf16.mxu0 %v19607_v48  ;;  %v19626_v30 = vld [vmem:[#allocation14 + $0x8b0] ss:$24 sps:$4 sm:$0xff]  }
 0x79d   : > { %18113 = vmatprep.subr.bf16.mxu1 %v19607_v48  ;;  %7332 = vmatprep.mubr.bf16.mxu0 %v21215_v42  ;;  %v19614_v42 = vld [vmem:[#allocation14 + $0x670] ss:$24 sps:$4 sm:$0xff]  }
 0x79e   : > { %7342 = vmatprep.mubr.bf16.mxu1 %v21255_v56  ;;  %v19619_v56 = vld [vmem:[#allocation14 + $0x644] ss:$24 sps:$4 sm:$0xff]  }
 0x7a3   : > { %7305 = vmatpush1.bf16.xpose.msra.mxu0 %v19605_v8 }
 0x7a4   : > { %18129 = vmatpush1.bf16.xpose.msra.mxu1 %v19605_v8  ;;  %7306 = vmatprep.subr.bf16.mxu0 %v19610_v13  ;;  %v19631_v8 = vld [vmem:[#allocation14 + $0x884] ss:$24 sps:$4 sm:$0xff]  }
 0x7a5   : > { %18114 = vmatprep.subr.bf16.mxu1 %v19610_v13 }
 0x7ab   : > { %7307 = vmatpush1.bf16.xpose.msra.mxu0 %v19608_v27 }
 0x7ac   : > { %18130 = vmatpush1.bf16.xpose.msra.mxu1 %v19608_v27  ;;  %7308 = vmatprep.subr.bf16.mxu0 %v19613_v11 }
 0x7ad   : > { %18115 = vmatprep.subr.bf16.mxu1 %v19613_v11 }
 0x7b3   : > { %7309 = vmatpush1.bf16.xpose.msra.mxu0 %v19611_v35 }
 0x7b4   : > { %18131 = vmatpush1.bf16.xpose.msra.mxu1 %v19611_v35  ;;  %7310 = vmatprep.subr.bf16.mxu0 %v19616_v4 }
 0x7b5   : > { %18116 = vmatprep.subr.bf16.mxu1 %v19616_v4 }
 0x7bb   : > { %7311 = vmatpush1.bf16.xpose.msra.mxu0 %v19614_v42 }
 0x7bc   : > { %18132 = vmatpush1.bf16.xpose.msra.mxu1 %v19614_v42  ;;  %7312 = vmatprep.subr.bf16.mxu0 %v19619_v56 }
 0x7bd   : > { %18117 = vmatprep.subr.bf16.mxu1 %v19619_v56 }
 0x7c3   : > { %7313 = vmatpush1.bf16.xpose.msra.mxu0 %v19617_v20 }
 0x7c4   : > { %18133 = vmatpush1.bf16.xpose.msra.mxu1 %v19617_v20  ;;  %7314 = vmatprep.subr.bf16.mxu0 %v19622_v15 }
 0x7c5   : > { %18118 = vmatprep.subr.bf16.mxu1 %v19622_v15 }
 0x7cb   : > { %7315 = vmatpush1.bf16.xpose.msra.mxu0 %v19620_v53 }
 0x7cc   : > { %18134 = vmatpush1.bf16.xpose.msra.mxu1 %v19620_v53  ;;  %7316 = vmatprep.subr.bf16.mxu0 %v19625_v46 }
 0x7cd   : > { %18119 = vmatprep.subr.bf16.mxu1 %v19625_v46 }
 0x7d2   : > { %v7122_v43 = vpop.f32.mrf.mxu0 }
 0x7d3   : > { %v7175_v36 = vpop.f32.mrf.mxu1  ;;  %7317 = vmatpush2.bf16.xpose.msra.mxu0 %v19623_v41  ;;  %v7123_v16 = vadd.f32 %v7122_v43, %v7070_v9 }
 0x7d4   : > { %18135 = vmatpush2.bf16.xpose.msra.mxu1 %v19623_v41  ;;  %v7124_v28 = vpop.f32.mrf.mxu0  ;;  %7318 = vmatprep.subr.bf16.mxu0 %v19628_v29 }
 0x7d5   : > { %v7177_v25 = vpop.f32.mrf.mxu1  ;;  %18120 = vmatprep.subr.bf16.mxu1 %v19628_v29  ;;  %v7176_v13 = vadd.f32 %v7175_v36, %v7123_v16  ;;  %v7125_v27 = vadd.f32 %v7124_v28, %v7072_v32  ;;  %v7086_v29 = vadd.f32 %v7085_v22, %v21986_v12  ;;  %v19629_v28 = vld [vmem:[#allocation14 + $0x880] ss:$24 sps:$4 sm:$0xff]   ;;  %v19634_v16 = vld [vmem:[#allocation14 + $0x854] ss:$24 sps:$4 sm:$0xff]   ;;  %v7772_v32 = vshrl.u32 %v21549_v51, 16 }
 0x7d6   : > { %v7126_v34 = vpop.f32.mrf.mxu0  ;;  %v7764_v22 = vshrl.u32 %v21536_v26, 16 }
 0x7d7   : > { %v7127_v18 = vadd.f32 %v7126_v34, %v7074_v10  ;;  %v7179_v61 = vpop.f32.mrf.mxu1  ;;  %v7178_v20 = vadd.f32 %v7177_v25, %v7125_v27 }
 0x7d8   : > { %v7128_v48 = vpop.f32.mrf.mxu0 }
 0x7d9   : > { %v7180_v11 = vadd.f32 %v7179_v61, %v7127_v18  ;;  %v7129_v35 = vadd.f32 %v7128_v48, %v7076_v0  ;;  %v7181_v33 = vpop.f32.mrf.mxu1  ;;  %v7771_v18 = vshrl.u32 %v21488_v21, 16  ;;  %v7755_v48 = vshrl.u32 %v21351_v52, 16 }
 0x7da   : > { %v7132_v55 = vpop.f32.mrf.mxu0 }
 0x7db   : > { %v22023_v4 = vpack.c.bf16 %v7180_v11, %v7176_v13  ;;  %v7182_v42 = vadd.f32 %v7181_v33, %v7129_v35  ;;  %v7133_v56 = vadd.f32 %v7132_v55, %v21989_v50  ;;  %7319 = vmatpush2.bf16.xpose.msra.mxu0 %v19626_v30  ;;  %v7185_v19 = vpop.f32.mrf.mxu1  ;;  %v7773_v27 = vpack.i.b16 %v7772_v32, %v7771_v18  ;;  %v19632_v11 = vld [vmem:[#allocation14 + $0x850] ss:$24 sps:$4 sm:$0xff]   ;;  %v19637_v35 = vld [vmem:[#allocation14 + $0x824] ss:$24 sps:$4 sm:$0xff]  }
 0x7dc   : > { %18136 = vmatpush2.bf16.xpose.msra.mxu1 %v19626_v30  ;;  %v7134_v23 = vpop.f32.mrf.mxu0  ;;  %7320 = vmatprep.subr.bf16.mxu0 %v19631_v8  ;;  %v7748_v30 = vshrl.u32 %v21389_v39, 16  ;;  %v23752_v33 = vld [vmem:[#allocation59_spill] sm:$0xff] }
 0x7dd   : > { %v7135_v15 = vadd.f32 %v7134_v23, %v21995_v24  ;;  %v7186_v53 = vadd.f32 %v7185_v19, %v7133_v56  ;;  %8344 = vrot.lane.b32.xlu1 %v22023_v4, %s20649_s3  ;;  %v7187_v46 = vpop.f32.mrf.mxu1  ;;  %18121 = vmatprep.subr.bf16.mxu1 %v19631_v8  ;;  %v22030_v43 = vpack.c.bf16 %v7182_v42, %v7178_v20  ;;  %v23751_v8 = vld [vmem:[#allocation62_spill] sm:$0xff]  ;;  %v7747_v55 = vshrl.u32 %v23752_v33, 16 }
 0x7de   : > { %v7136_v41 = vpop.f32.mrf.mxu0  ;;  %v7763_v13 = vshrl.u32 %v23751_v8, 16  ;;  %v7769_v19 = vpack.i.b16 %v21549_v51, %v21488_v21  ;;  %v7761_v23 = vpack.i.b16 %v21536_v26, %v23751_v8 }
 0x7df   : > { %v7137_v50 = vadd.f32 %v7136_v41, %v22001_v58  ;;  %v7188_v9 = vadd.f32 %v7187_v46, %v7135_v15  ;;  %v7189_v36 = vpop.f32.mrf.mxu1  ;;  %v7756_v58 = vshrl.u32 %v21395_v38, 16  ;;  %v7749_v20 = vpack.i.b16 %v7748_v30, %v7747_v55  ;;  %v19643_v55 = vld [vmem:[#allocation14 + $0x7c4] ss:$24 sps:$4 sm:$0xff]  }
 0x7e0   : > { %v7138_v10 = vpop.f32.mrf.mxu0  ;;  %v7765_v56 = vpack.i.b16 %v7764_v22, %v7763_v13  ;;  %v7753_v15 = vpack.i.b16 %v21395_v38, %v21351_v52  ;;  %v7745_v41 = vpack.i.b16 %v21389_v39, %v23752_v33  ;;  %v19635_v52 = vld [vmem:[#allocation14 + $0x820] ss:$24 sps:$4 sm:$0xff]   ;;  %v19640_v38 = vld [vmem:[#allocation14 + $0x7f4] ss:$24 sps:$4 sm:$0xff]   ;;  %v19638_v33 = vld [vmem:[#allocation14 + $0x7f0] ss:$24 sps:$4 sm:$0xff]  }
 0x7e1   : > { %v7139_v25 = vadd.f32 %v7138_v10, %v7086_v29  ;;  %v7190_v24 = vadd.f32 %v7189_v36, %v7137_v50  ;;  %8347 = vrot.lane.b32.xlu1 %v22030_v43, %s20649_s3  ;;  %v7191_v34 = vpop.f32.mrf.mxu1  ;;  %v7757_v42 = vpack.i.b16 %v7756_v58, %v7755_v48 }
 0x7e2   : > { %v7931_v29 = vcombine.low %v7749_v20, %v7765_v56  ;;  %v7932_v50 = vcombine.high %v7749_v20, %v7765_v56  ;;  %v7814_v36 = vcombine.high %v7753_v15, %v7769_v19  ;;  %v7797_v21 = vcombine.low %v7745_v41, %v7761_v23 }
 0x7e3   : > { %v22036_v0 = vpack.c.bf16 %v7190_v24, %v7186_v53  ;;  %v7192_v12 = vadd.f32 %v7191_v34, %v7139_v25  ;;  %7321 = vmatpush2.bf16.xpose.msra.mxu0 %v19629_v28  ;;  %v7947_v53 = vcombine.low %v7757_v42, %v7773_v27  ;;  %v7948_v46 = vcombine.high %v7757_v42, %v7773_v27 }
 0x7e4   : > { %18137 = vmatpush2.bf16.xpose.msra.mxu1 %v19629_v28  ;;  %7322 = vmatprep.subr.bf16.mxu0 %v19634_v16  ;;  %v7798_v51 = vcombine.high %v7745_v41, %v7761_v23  ;;  %v7939_v10 = vrot.slane %v7931_v29, %v23705_v49  ;;  %v7828_v25 = vrot.slane %v7814_v36, %v23705_v49  ;;  %v19641_v36 = vld [vmem:[#allocation14 + $0x7c0] ss:$24 sps:$4 sm:$0xff]  }
 0x7e5   : > { %v22041_v61 = vpack.c.bf16 %v7192_v12, %v7188_v9  ;;  %18122 = vmatprep.subr.bf16.mxu1 %v19634_v16  ;;  %v7813_v9 = vcombine.low %v7753_v15, %v7769_v19  ;;  %v7955_v26 = vrot.slane %v7947_v53, %v23705_v49  ;;  %v7962_v28 = vrot.slane %v7948_v46, %v23705_v49 }
 0x7e6   : > { %v7946_v16 = vrot.slane %v7932_v50, %v23705_v49  ;;  %v7805_v24 = vrot.slane %v7797_v21, %v23705_v49  ;;  %v7812_v34 = vrot.slane %v7798_v51, %v23705_v49 }
 0x7e7   : > { %v7821_v39 = vrot.slane %v7813_v9, %v23705_v49  ;;  %v7993_v32 = vcombine.low %v7939_v10, %v7955_v26  ;;  %v7994_v12 = vcombine.high %v7939_v10, %v7955_v26 }
 0x7e8   : > { %v8009_v58 = vcombine.low %v7946_v16, %v7962_v28  ;;  %v8010_v22 = vcombine.high %v7946_v16, %v7962_v28  ;;  %v7875_v48 = vcombine.low %v7812_v34, %v7828_v25  ;;  %v7876_v8 = vcombine.high %v7812_v34, %v7828_v25 }
 0x7e9   : > { %v7859_v18 = vcombine.low %v7805_v24, %v7821_v39  ;;  %v7860_v30 = vcombine.high %v7805_v24, %v7821_v39  ;;  %v8001_v13 = vrot.slane %v7993_v32, %v21546_v3  ;;  %v8008_v27 = vrot.slane %v7994_v12, %v21546_v3  ;;  %v19644_v12 = vld [vmem:[#allocation14 + $0x790] ss:$24 sps:$4 sm:$0xff]  }
 0x7ea   : > { %v7883_v19 = vrot.slane %v7875_v48, %v21546_v3  ;;  %v7890_v23 = vrot.slane %v7876_v8, %v21546_v3  ;;  %v23614_v8 = vmov 0.0  }
 0x7eb   : > { %7323 = vmatpush2.bf16.xpose.msra.mxu0 %v19632_v11  ;;  %v7867_v42 = vrot.slane %v7859_v18, %v21546_v3  ;;  %v7874_v56 = vrot.slane %v7860_v30, %v21546_v3  ;;  %v17307_v20 = vcombine.low %v8001_v13, %v8008_v27  ;;  %v17309_v15 = vcombine.high %v8001_v13, %v8008_v27 }
 0x7ec   : > { %18138 = vmatpush2.bf16.xpose.msra.mxu1 %v19632_v11  ;;  %7324 = vmatprep.subr.bf16.mxu0 %v19637_v35  ;;  %v8017_v11 = vrot.slane %v8009_v58, %v21546_v3  ;;  %v17303_v50 = vcombine.low %v7883_v19, %v7890_v23  ;;  %v17305_v9 = vcombine.high %v7883_v19, %v7890_v23  ;;  %v7742_v23 = vpop.permute.xlu1 %7741 }
 0x7ed   : > { %18123 = vmatprep.subr.bf16.mxu1 %v19637_v35  ;;  %v8024_v35 = vrot.slane %v8010_v22, %v21546_v3  ;;  %v17299_v41 = vcombine.low %v7867_v42, %v7874_v56  ;;  %v17301_v29 = vcombine.high %v7867_v42, %v7874_v56  ;;  %v22072_v21 = vrot.slane %v17307_v20, %v23705_v49  ;;  %v7739_v20 = vpop.permute.xlu0 %7738 }
 0x7ee   : > { %v22075_v51 = vrot.slane %v17309_v15, %v23705_v49  ;;  %v22090_v16 = vrot.slane %v17303_v50, %v23705_v49  ;;  %v22093_v39 = vrot.slane %v17305_v9, %v23705_v49  ;;  %v7780_v50 = vshrl.u32 %v7739_v20, 16 }
 0x7ef   : > { %v17311_v53 = vcombine.low %v8017_v11, %v8024_v35  ;;  %v17313_v46 = vcombine.high %v8017_v11, %v8024_v35  ;;  %v22087_v10 = vrot.slane %v17301_v29, %v23705_v49  ;;  %v7787_v9 = vshrl.u32 %v21604_v7, 16 }
 0x7f0   : > { %v8247_v25 = vcombine.low %v22072_v21, %v22075_v51  ;;  %v8153_v32 = vcombine.low %v22090_v16, %v22093_v39  ;;  %v8248_v15 = vcombine.high %v22072_v21, %v22075_v51  ;;  %v8154_v29 = vcombine.high %v22090_v16, %v22093_v39  ;;  %v23754_v51 = vld [vmem:[#allocation45_spill] sm:$0xff] }
 0x7f1   : > { %v22078_v26 = vrot.slane %v17311_v53, %v23705_v49  ;;  %v22081_v28 = vrot.slane %v17313_v46, %v23705_v49  ;;  %v7785_v39 = vpack.i.b16 %v7742_v23, %v21604_v7 }
 0x7f2   : > { %v8255_v58 = vrot.slane %v8247_v25, %v21546_v3  ;;  %v8161_v30 = vrot.slane %v8153_v32, %v21546_v3 }
 0x7f3   : > { %7325 = vmatpush2.bf16.xpose.msra.mxu0 %v19635_v52  ;;  %v8271_v24 = vcombine.low %v22078_v26, %v22081_v28 }
 0x7f4   : > { %18139 = vmatpush2.bf16.xpose.msra.mxu1 %v19635_v52  ;;  %7326 = vmatprep.subr.bf16.mxu0 %v19640_v38  ;;  %v19646_v52 = vld [vmem:[#allocation14 + $0x794] ss:$24 sps:$4 sm:$0xff]  }
 0x7f5   : > { %18124 = vmatprep.subr.bf16.mxu1 %v19640_v38  ;;  %v22084_v38 = vrot.slane %v17299_v41, %v23705_v49  ;;  %v8279_v22 = vrot.slane %v8271_v24, %v21546_v3  ;;  %v7777_v24 = vpack.i.b16 %v7739_v20, %v23754_v51 }
 0x7f7   : > { %v8129_v34 = vcombine.low %v22084_v38, %v22087_v10  ;;  %v8295_v48 = vcombine.low %v8255_v58, %v8279_v22  ;;  %v8296_v42 = vcombine.high %v8255_v58, %v8279_v22  ;;  %v8130_v41 = vcombine.high %v22084_v38, %v22087_v10 }
 0x7f8   : > { %v8168_v38 = vrot.slane %v8154_v29, %v21546_v3  ;;  %v22147_v10 = vpack.i.b16 %v23735_v57, %v23735_v57 }
 0x7f9   : > { %v8137_v18 = vrot.slane %v8129_v34, %v21546_v3  ;;  %v8305_v35 = vshrl.u32 %v8295_v48, 16  ;;  %v8311_v46 = vshrl.u32 %v8296_v42, 16  ;;  %v8144_v25 = vrot.slane %v8130_v41, %v21546_v3 }
 0x7fa   : > { %v7844_v7 = vcombine.high %v7785_v39, %v22147_v10 }
 0x7fb   : > { %7327 = vmatpush2.bf16.xpose.msra.mxu0 %v19638_v33  ;;  %v8177_v13 = vcombine.low %v8137_v18, %v8161_v30  ;;  %v8178_v56 = vcombine.high %v8137_v18, %v8161_v30  ;;  %v8179_v57 = vcombine.low %v8144_v25, %v8168_v38  ;;  %v7829_v18 = vcombine.high %v7777_v24, %v22147_v10 }
 0x7fc   : > { %18140 = vmatpush2.bf16.xpose.msra.mxu1 %v19638_v33  ;;  %7328 = vmatprep.subr.bf16.mxu0 %v19643_v55 }
 0x7fd   : > { %18125 = vmatprep.subr.bf16.mxu1 %v19643_v55  ;;  %v8303_v27 = vpack.i.b16 %v8295_v48, %v8177_v13  ;;  %v8304_v33 = vshrl.u32 %v8177_v13, 16  ;;  %v8309_v19 = vpack.i.b16 %v8296_v42, %v8178_v56  ;;  %v7858_v48 = vrot.slane %v7844_v7, %v23705_v49 }
 0x7fe   : > { %v7836_v42 = vrot.slane %v7777_v24, %v23705_v49  ;;  %v8180_v24 = vcombine.high %v8144_v25, %v8168_v38 }
 0x7ff   : > { %v8966_v11 = vsel %vm8961_vm0, %v8303_v27, 0  ;;  %v8306_v55 = vpack.i.b16 %v8305_v35, %v8304_v33  ;;  %v9058_v53 = vsel %vm8961_vm0, %v8309_v19, 0  ;;  %v7843_v27 = vrot.slane %v7829_v18, %v23705_v49 }
 0x801   : > { %v7907_v19 = vcombine.low %v7843_v27, %v7858_v48 }
 0x803   : > { %7329 = vmatpush2.bf16.xpose.msra.mxu0 %v19641_v36  ;;  %v7915_v41 = vrot.slane %v7907_v19, %v21546_v3  ;;  %v23758_v19 = vld [vmem:[#allocation38_spill] sm:$0xff] }
 0x804   : > { %18141 = vmatpush2.bf16.xpose.msra.mxu1 %v19641_v36  ;;  %7330 = vmatprep.subr.bf16.mxu0 %v19646_v52  ;;  %v8310_v36 = vshrl.u32 %v8178_v56, 16  ;;  %v8316_v56 = vshrl.u32 %v8179_v57, 16 }
 0x805   : > { %18126 = vmatprep.subr.bf16.mxu1 %v19646_v52 }
 0x806   : > { %v8312_v52 = vpack.i.b16 %v8311_v46, %v8310_v36 }
 0x808   : > { %v9104_v58 = vsel %vm8961_vm0, %v8312_v52, 0 }
 0x80b   : > { %7331 = vmatpush2.bf16.xpose.msra.mxu0 %v19644_v12 }
 0x80c   : > { %18142 = vmatpush2.bf16.xpose.msra.mxu1 %v19644_v12  ;;  %17919 = vmatprep.subr.bf16.mxu0 %v23614_v8  ;;  %v23755_v12 = vpack.i.b16 %v21743_v60, %v21739_v2 }
 0x80d   : > { %17823 = vmatprep.subr.bf16.mxu1 %v23614_v8 }
 0x812   : > { %7333 = vmatmul.mubr.bf16.vlgmr.msra.gmra.mxu0 %v21249_v14  ;;  %v23753_v14 = vpack.i.b16 %v21731_v5, %v21728_v59  ;;  %v8272_v59 = vcombine.high %v22078_v26, %v22081_v28  ;;  %v7788_v5 = vshrl.u32 %v7742_v23, 16  ;;  %v7779_v26 = vshrl.u32 %v23754_v51, 16 }
 0x813   : > { %7343 = vmatmul.mubr.bf16.vlgmr.msra.gmra.mxu1 %v21267_v1  ;;  %17921 = vmatprep.mubr.msk.bf16.mxu0 %vm20653_vm1, %v23614_v8  ;;  %v9012_v1 = vsel %vm8961_vm0, %v8306_v55, 0  ;;  %v7851_v55 = vrot.slane %v7785_v39, %v23705_v49  ;;  %v7908_v23 = vcombine.high %v7843_v27, %v7858_v48  ;;  %v23756_v39 = vpack.i.b16 %v21763_v45, %v21757_v54 }
 0x814   : > { %17824 = vmatpush3.bf16.xpose.msra.mxu1 %v8966_v11  ;;  %17825 = vmatprep.mubr.msk.bf16.mxu1 %vm20653_vm1, %v23614_v8  ;;  %v8286_v21 = vrot.slane %v8272_v59, %v21546_v3  ;;  %v7789_v28 = vpack.i.b16 %v7788_v5, %v7787_v9  ;;  %v7781_v16 = vpack.i.b16 %v7780_v50, %v7779_v26  ;;  %v8322_v27 = vshrl.u32 %v8180_v24, 16 }
 0x815   : > { %17829 = vmatprep.subr.bf16.mxu1 %v23614_v8  ;;  %v7891_v5 = vcombine.low %v7836_v42, %v7851_v55  ;;  %v7922_v29 = vrot.slane %v7908_v23, %v21546_v3 }
 0x816   : > { %v7978_v32 = vcombine.high %v7789_v28, %v22147_v10  ;;  %v7963_v22 = vcombine.high %v7781_v16, %v22147_v10  ;;  %v7985_v13 = vrot.slane %v7789_v28, %v23705_v49  ;;  %v7970_v33 = vrot.slane %v7781_v16, %v23705_v49 }
 0x817   : > { %v7899_v26 = vrot.slane %v7891_v5, %v21546_v3 }
 0x818   : > { %v7992_v2 = vrot.slane %v7978_v32, %v23705_v49  ;;  %v7977_v60 = vrot.slane %v7963_v22, %v23705_v49  ;;  %v8025_v20 = vcombine.low %v7970_v33, %v7985_v13  ;;  %v17306_v32 = vcombine.high %v7915_v41, %v7922_v29 }
 0x81a   : > { %v8033_v50 = vrot.slane %v8025_v20, %v21546_v3  ;;  %v8128_v7 = vrot.slane %v17306_v32, %v23705_v49 }
 0x81b   : > { %17826 = vmatmul.mubr.msk.bf16.vlgmr.msra.gmra.mxu1 %vm8961_vm0, %v23753_v14  ;;  %v8041_v14 = vcombine.low %v7977_v60, %v7992_v2 }
 0x81c   : > { %17830 = vmatpush3.bf16.xpose.msra.mxu1 %v9012_v1  ;;  %17831 = vmatprep.mubr.msk.bf16.mxu1 %vm20653_vm1, %v23614_v8  ;;  %v8042_v1 = vcombine.high %v7977_v60, %v7992_v2 }
 0x81d   : > { %17835 = vmatprep.subr.bf16.mxu1 %v23614_v8  ;;  %v8049_v46 = vrot.slane %v8041_v14, %v21546_v3 }
 0x823   : > { %17832 = vmatmul.mubr.msk.bf16.vlgmr.msra.gmra.mxu1 %vm8961_vm0, %v21745_v31  ;;  %v8262_v31 = vrot.slane %v8248_v15, %v21546_v3  ;;  %v8026_v15 = vcombine.high %v7970_v33, %v7985_v13  ;;  %v8339_v13 = vpop.permute.xlu1 %8338 }
 0x824   : > { %17836 = vmatpush3.bf16.xpose.msra.mxu1 %v9058_v53  ;;  %17837 = vmatprep.mubr.msk.bf16.mxu1 %vm20653_vm1, %v23614_v8  ;;  %v7892_v53 = vcombine.high %v7836_v42, %v7851_v55 }
 0x825   : > { %17841 = vmatprep.subr.bf16.mxu1 %v23614_v8  ;;  %v8297_v34 = vcombine.low %v8262_v31, %v8286_v21  ;;  %v8040_v9 = vrot.slane %v8026_v15, %v21546_v3  ;;  %v8298_v51 = vcombine.high %v8262_v31, %v8286_v21 }
 0x826   : > { %v7906_v28 = vrot.slane %v7892_v53, %v21546_v3 }
 0x827   : > { %v8315_v30 = vpack.i.b16 %v8297_v34, %v8179_v57  ;;  %v8317_v35 = vshrl.u32 %v8297_v34, 16  ;;  %v17304_v34 = vcombine.low %v7915_v41, %v7922_v29  ;;  %v17310_v31 = vcombine.high %v8033_v50, %v8040_v9  ;;  %v8342_v42 = vpop.permute.xlu1 %8341 }
 0x828   : > { %v8321_v21 = vpack.i.b16 %v8298_v51, %v8180_v24  ;;  %v17302_v57 = vcombine.high %v7899_v26, %v7906_v28  ;;  %v8323_v38 = vshrl.u32 %v8298_v51, 16  ;;  %v8360_v41 = vshrl.u32 %v8339_v13, 16  ;;  %v23760_v24 = vld [vmem:[#allocation49_spill] sm:$0xff] }
 0x829   : > { %v9150_v11 = vsel %vm8961_vm0, %v8315_v30, 0  ;;  %v8318_v59 = vpack.i.b16 %v8317_v35, %v8316_v56  ;;  %v8112_v45 = vrot.slane %v17304_v34, %v23705_v49  ;;  %v8214_v25 = vrot.slane %v17310_v31, %v23705_v49  ;;  %v23757_v56 = vld [vmem:[#allocation52_spill] sm:$0xff] }
 0x82a   : > { %v8096_v2 = vrot.slane %v17302_v57, %v23705_v49  ;;  %v9242_v60 = vsel %vm8961_vm0, %v8321_v21, 0  ;;  %v8324_v33 = vpack.i.b16 %v8323_v38, %v8322_v27  ;;  %v23759_v23 = vpack.i.b16 %v23757_v56, %v23758_v19  ;;  %v20182_v56 = vld [vmem:[#allocation16] sm:$0x3f] }
 0x82b   : > { %17838 = vmatmul.mubr.msk.bf16.vlgmr.msra.gmra.mxu1 %vm8961_vm0, %v23755_v12  ;;  %v9196_v36 = vsel %vm8961_vm0, %v8318_v59, 0  ;;  %v17308_v12 = vcombine.low %v8033_v50, %v8040_v9  ;;  %v8375_v29 = vshrl.u32 %v22023_v4, 16  ;;  %v8359_v51 = vshrl.u32 %v21972_v37, 16  ;;  %v23761_v19 = vld [vmem:[#allocation58_spill] sm:$0xff] }
 0x82c   : > { %17842 = vmatpush3.bf16.xpose.msra.mxu1 %v9104_v58  ;;  %17843 = vmatprep.mubr.msk.bf16.mxu1 %vm20653_vm1, %v23614_v8  ;;  %v17300_v58 = vcombine.low %v7899_v26, %v7906_v28  ;;  %v9288_v20 = vsel %vm8961_vm0, %v8324_v33, 0  ;;  %v8357_v26 = vpack.i.b16 %v8339_v13, %v21972_v37  ;;  %v8367_v21 = vshrl.u32 %v21991_v62, 16 }
 0x82d   : > { %17847 = vmatprep.subr.bf16.mxu1 %v23614_v8  ;;  %v8198_v18 = vrot.slane %v17308_v12, %v23705_v49  ;;  %v8361_v31 = vpack.i.b16 %v8360_v41, %v8359_v51 }
 0x82e   : > { %v8080_v30 = vrot.slane %v17300_v58, %v23705_v49 }
 0x82f   : > { %v8263_v35 = vcombine.low %v8198_v18, %v8214_v25 }
 0x830   : > { %v8145_v55 = vcombine.low %v8080_v30, %v8096_v2 }
 0x832   : > { %v8152_v15 = vrot.slane %v8145_v55, %v21546_v3 }
 0x833   : > { %17844 = vmatmul.mubr.msk.bf16.vlgmr.msra.gmra.mxu1 %vm8961_vm0, %v21751_v6  ;;  %v8056_v6 = vrot.slane %v8042_v1, %v21546_v3 }
 0x834   : > { %17848 = vmatpush3.bf16.xpose.msra.mxu1 %v9150_v11  ;;  %17849 = vmatprep.mubr.msk.bf16.mxu1 %vm20653_vm1, %v23614_v8  ;;  %v8169_v11 = vcombine.low %v8112_v45, %v8128_v7 }
 0x835   : > { %17853 = vmatprep.subr.bf16.mxu1 %v23614_v8  ;;  %v17312_v52 = vcombine.low %v8049_v46, %v8056_v6  ;;  %v17314_v16 = vcombine.high %v8049_v46, %v8056_v6 }
 0x836   : > { %v8176_v1 = vrot.slane %v8169_v11, %v21546_v3 }
 0x837   : > { %v8230_v22 = vrot.slane %v17312_v52, %v23705_v49  ;;  %v8246_v54 = vrot.slane %v17314_v16, %v23705_v49 }
 0x838   : > { %v8181_v5 = vcombine.low %v8152_v15, %v8176_v1 }
 0x839   : > { %v8287_v48 = vcombine.low %v8230_v22, %v8246_v54  ;;  %v8365_v22 = vpack.i.b16 %v8342_v42, %v21991_v62  ;;  %v8383_v54 = vshrl.u32 %v22030_v43, 16 }
 0x83a   : > { %v8328_v12 = vshrl.u32 %v8181_v5, 16 }
 0x83b   : > { %17850 = vmatmul.mubr.msk.bf16.vlgmr.msra.gmra.mxu1 %vm8961_vm0, %v23756_v39  ;;  %v8294_v14 = vrot.slane %v8287_v48, %v21546_v3  ;;  %v8368_v39 = vshrl.u32 %v8342_v42, 16 }
 0x83c   : > { %17854 = vmatpush3.bf16.xpose.msra.mxu1 %v9196_v36  ;;  %17855 = vmatprep.mubr.msk.bf16.mxu1 %vm20653_vm1, %v23614_v8  ;;  %v8182_v36 = vcombine.high %v8152_v15, %v8176_v1 }
 0x83d   : > { %17859 = vmatprep.subr.bf16.mxu1 %v23614_v8 }
 0x83e   : > { %v8334_v2 = vshrl.u32 %v8182_v36, 16 }
 0x843   : > { %17856 = vmatmul.mubr.msk.bf16.vlgmr.msra.gmra.mxu1 %vm8961_vm0, %v21785_v40  ;;  %v8270_v40 = vrot.slane %v8263_v35, %v21546_v3 }
 0x844   : > { %17860 = vmatpush3.bf16.xpose.msra.mxu1 %v9242_v60  ;;  %17861 = vmatprep.mubr.msk.bf16.mxu1 %vm20653_vm1, %v23614_v8  ;;  %v8369_v60 = vpack.i.b16 %v8368_v39, %v8367_v21 }
 0x845   : > { %17865 = vmatprep.subr.bf16.mxu1 %v23614_v8  ;;  %v8299_v59 = vcombine.low %v8270_v40, %v8294_v14  ;;  %v22219_v6 = vcombine.high %v8270_v40, %v8294_v14 }
 0x847   : > { %v8327_v46 = vpack.i.b16 %v8299_v59, %v8181_v5  ;;  %v8329_v16 = vshrl.u32 %v8299_v59, 16  ;;  %v8333_v30 = vpack.i.b16 %v22219_v6, %v8182_v36 }
 0x849   : > { %v9334_v32 = vsel %vm8961_vm0, %v8327_v46, 0  ;;  %v8330_v38 = vpack.i.b16 %v8329_v16, %v8328_v12  ;;  %v9426_v16 = vsel %vm8961_vm0, %v8333_v30, 0 }
 0x84b   : > { %17862 = vmatmul.mubr.msk.bf16.vlgmr.msra.gmra.mxu1 %vm8961_vm0, %v23759_v23  ;;  %v22253_v23 = vrot.slane %v20182_v56, %v23761_v19  ;;  %v9380_v5 = vsel %vm8961_vm0, %v8330_v38, 0 }
 0x84c   : > { %17866 = vmatpush3.bf16.xpose.msra.mxu1 %v9288_v20  ;;  %17867 = vmatprep.mubr.msk.bf16.mxu1 %vm20653_vm1, %v23614_v8  ;;  %v23762_v20 = vld [vmem:[#allocation50_spill] sm:$0xff] }
 0x84d   : > { %17871 = vmatprep.subr.bf16.mxu1 %v23614_v8  ;;  %v22256_v15 = vrot.slane %v20182_v56, %v23762_v20 }
 0x84f   : > { %v8345_v53 = vpop.permute.xlu1 %8344 }
 0x850   : > { %v8373_v50 = vpack.i.b16 %v8345_v53, %v22023_v4  ;;  %v8376_v9 = vshrl.u32 %v8345_v53, 16  ;;  %v8335_v4 = vshrl.u32 %v22219_v6, 16 }
 0x852   : > { %v8377_v28 = vpack.i.b16 %v8376_v9, %v8375_v29  ;;  %v22225_v52 = vpop.f32.mrf.mxu0  ;;  %v8403_v58 = vcombine.low %v8357_v26, %v8373_v50  ;;  %v8404_v57 = vcombine.high %v8357_v26, %v8373_v50  ;;  %v22247_v33 = vpack.i.b16 %v8335_v4, %v8334_v2  ;;  %v23763_v29 = vld [vmem:[#allocation54_spill] sm:$0xff]  ;;  %v23764_v50 = vld [vmem:[#allocation53_spill] sm:$0xff] }
 0x853   : > { %17868 = vmatmul.mubr.msk.bf16.vlgmr.msra.gmra.mxu1 %vm8961_vm0, %v23760_v24  ;;  %v8348_v34 = vpop.permute.xlu1 %8347  ;;  %v22232_v37 = vpop.f32.mrf.mxu1  ;;  %v23765_v9 = vpack.i.b16 %v23763_v29, %v23764_v50 }
 0x854   : > { %17872 = vmatpush3.bf16.xpose.msra.mxu1 %v9334_v32  ;;  %v8381_v45 = vpack.i.b16 %v8348_v34, %v22030_v43  ;;  %v8384_v7 = vshrl.u32 %v8348_v34, 16  ;;  %17873 = vmatprep.mubr.msk.bf16.mxu1 %vm20653_vm1, %v23614_v8  ;;  %v8537_v18 = vcombine.low %v8361_v31, %v8377_v28  ;;  %v22240_v25 = vpop.f32.mrf.mxu0  ;;  %v8411_v27 = vrot.slane %v8403_v58, %v23705_v49 }
 0x855   : > { %17877 = vmatprep.subr.bf16.mxu1 %v23614_v8  ;;  %v8418_v43 = vrot.slane %v8404_v57, %v23705_v49  ;;  %v8538_v11 = vcombine.high %v8361_v31, %v8377_v28  ;;  %v22245_v35 = vpop.f32.mrf.mxu1 }
 0x856   : > { %v8385_v48 = vpack.i.b16 %v8384_v7, %v8383_v54  ;;  %v8419_v62 = vcombine.low %v8365_v22, %v8381_v45  ;;  %v8420_v13 = vcombine.high %v8365_v22, %v8381_v45  ;;  %v8545_v42 = vrot.slane %v8537_v18, %v23705_v49  ;;  %v22258_v59 = vpop.f32.mrf.mxu0 }
 0x857   : > { %v8552_v36 = vrot.slane %v8538_v11, %v23705_v49  ;;  %v22268_v28 = vpop.f32.mrf.mxu1 }
 0x858   : > { %v8427_v55 = vrot.slane %v8419_v62, %v23705_v49  ;;  %v8434_v14 = vrot.slane %v8420_v13, %v23705_v49  ;;  %v8553_v1 = vcombine.low %v8369_v60, %v8385_v48  ;;  %v8554_v40 = vcombine.high %v8369_v60, %v8385_v48  ;;  %v22278_v58 = vpop.f32.mrf.mxu0 }
 0x859   : > { %v22284_v2 = vpop.f32.mrf.mxu1 }
 0x85a   : > { %v8465_v53 = vcombine.low %v8411_v27, %v8427_v55  ;;  %v8466_v46 = vcombine.high %v8411_v27, %v8427_v55  ;;  %v8481_v6 = vcombine.low %v8418_v43, %v8434_v14  ;;  %v8482_v41 = vcombine.high %v8418_v43, %v8434_v14  ;;  %v7238_v60 = vpop.f32.mrf.mxu0 }
 0x85b   : > { %17874 = vmatmul.mubr.msk.bf16.vlgmr.msra.gmra.mxu1 %vm8961_vm0, %v23765_v9  ;;  %v8561_v51 = vrot.slane %v8553_v1, %v23705_v49  ;;  %v8568_v26 = vrot.slane %v8554_v40, %v23705_v49  ;;  %v7291_v1 = vpop.f32.mrf.mxu1  ;;  %v23766_v40 = vld [vmem:[#allocation63_spill] sm:$0xff] }
 0x85c   : > { %17878 = vmatpush3.bf16.xpose.msra.mxu1 %v9380_v5  ;;  %17879 = vmatprep.mubr.msk.bf16.mxu1 %vm20653_vm1, %v23614_v8  ;;  %v8473_v39 = vrot.slane %v8465_v53, %v21546_v3  ;;  %v8480_v24 = vrot.slane %v8466_v46, %v21546_v3  ;;  %v8489_v34 = vrot.slane %v8481_v6, %v21546_v3  ;;  %v7240_v29 = vpop.f32.mrf.mxu0 }
 0x85d   : > { %v8496_v32 = vrot.slane %v8482_v41, %v21546_v3  ;;  %17883 = vmatprep.subr.bf16.mxu1 %v23614_v8  ;;  %v8599_v12 = vcombine.low %v8545_v42, %v8561_v51  ;;  %v8600_v4 = vcombine.high %v8545_v42, %v8561_v51  ;;  %v8615_v31 = vcombine.low %v8552_v36, %v8568_v26 }
 0x85e   : > { %v8616_v21 = vcombine.high %v8552_v36, %v8568_v26  ;;  %v17315_v57 = vcombine.low %v8473_v39, %v8480_v24  ;;  %v17317_v22 = vcombine.high %v8473_v39, %v8480_v24  ;;  %v7239_v24 = vadd.f32 %v7238_v60, %v22253_v23 }
 0x85f   : > { %v17319_v54 = vcombine.low %v8489_v34, %v8496_v32  ;;  %v17321_v45 = vcombine.high %v8489_v34, %v8496_v32  ;;  %v8607_v7 = vrot.slane %v8599_v12, %v21546_v3  ;;  %v8614_v18 = vrot.slane %v8600_v4, %v21546_v3  ;;  %v7293_v34 = vpop.f32.mrf.mxu1 }
 0x860   : > { %v8623_v38 = vrot.slane %v8615_v31, %v21546_v3  ;;  %v8630_v30 = vrot.slane %v8616_v21, %v21546_v3  ;;  %v8679_v48 = vrot.slane %v17315_v57, %v23705_v49  ;;  %v8695_v62 = vrot.slane %v17317_v22, %v23705_v49 }
 0x861   : > { %v8711_v13 = vrot.slane %v17319_v54, %v23705_v49  ;;  %v8727_v27 = vrot.slane %v17321_v45, %v23705_v49  ;;  %v17323_v43 = vcombine.low %v8607_v7, %v8614_v18  ;;  %v17325_v11 = vcombine.high %v8607_v7, %v8614_v18  ;;  %v7242_v54 = vpop.f32.mrf.mxu0 }
 0x862   : > { %v17327_v55 = vcombine.low %v8623_v38, %v8630_v30  ;;  %v17329_v14 = vcombine.high %v8623_v38, %v8630_v30  ;;  %v8736_v42 = vcombine.high %v8679_v48, %v8695_v62  ;;  %v8735_v5 = vcombine.low %v8679_v48, %v8695_v62  ;;  %v7295_v48 = vpop.f32.mrf.mxu1 }
 0x863   : > { %17880 = vmatmul.mubr.msk.bf16.vlgmr.msra.gmra.mxu1 %vm8961_vm0, %v23766_v40  ;;  %v8760_v56 = vcombine.high %v8711_v13, %v8727_v27  ;;  %v8759_v53 = vcombine.low %v8711_v13, %v8727_v27  ;;  %v8797_v46 = vrot.slane %v17323_v43, %v23705_v49  ;;  %v8813_v6 = vrot.slane %v17325_v11, %v23705_v49  ;;  %v23767_v27 = vld [vmem:[#allocation56_spill] sm:$0xff]  ;;  %v23768_v43 = vld [vmem:[#allocation57_spill] sm:$0xff] }
 0x864   : > { %17884 = vmatpush3.bf16.xpose.msra.mxu1 %v9426_v16  ;;  %17885 = vmatprep.mubr.msk.bf16.mxu1 %vm20653_vm1, %v23614_v8  ;;  %v8829_v41 = vrot.slane %v17327_v55, %v23705_v49  ;;  %v8750_v50 = vrot.slane %v8736_v42, %v21546_v3  ;;  %v8845_v36 = vrot.slane %v17329_v14, %v23705_v49  ;;  %v9472_v30 = vsel %vm8961_vm0, %v22247_v33, 0 }
 0x865   : > { %17889 = vmatprep.subr.bf16.mxu1 %v23614_v8  ;;  %v8774_v9 = vrot.slane %v8760_v56, %v21546_v3  ;;  %v8743_v51 = vrot.slane %v8735_v5, %v21546_v3  ;;  %v8854_v26 = vcombine.high %v8797_v46, %v8813_v6  ;;  %v8767_v16 = vrot.slane %v8759_v53, %v21546_v3 }
 0x866   : > { %v8853_v39 = vcombine.low %v8797_v46, %v8813_v6  ;;  %v8878_v32 = vcombine.high %v8829_v41, %v8845_v36  ;;  %v8877_v12 = vcombine.low %v8829_v41, %v8845_v36  ;;  %v7241_v4 = vadd.f32 %v7240_v29, %v22256_v15 }
 0x867   : > { %v8868_v31 = vrot.slane %v8854_v26, %v21546_v3  ;;  %v8783_v21 = vcombine.low %v8743_v51, %v8767_v16  ;;  %v7292_v22 = vadd.f32 %v7291_v1, %v7239_v24  ;;  %v7243_v18 = vadd.f32 %v7242_v54, %v22253_v23 }
 0x868   : > { %v8861_v57 = vrot.slane %v8853_v39, %v21546_v3  ;;  %v8892_v45 = vrot.slane %v8878_v32, %v21546_v3  ;;  %v8885_v7 = vrot.slane %v8877_v12, %v21546_v3  ;;  %v7294_v38 = vadd.f32 %v7293_v34, %v7241_v4  ;;  %v23770_v34 = vld [vmem:[#allocation65_spill] sm:$0xff]  ;;  %v7244_v32 = vpop.f32.mrf.mxu0 }
 0x869   : > { %v8785_v60 = vcombine.low %v8750_v50, %v8774_v9  ;;  %v22312_v62 = vcombine.high %v8743_v51, %v8767_v16  ;;  %v22314_v13 = vcombine.high %v8750_v50, %v8774_v9  ;;  %v23769_v11 = vpack.i.b16 %v23767_v27, %v23768_v43 }
 0x86a   : > { %v8903_v55 = vcombine.low %v8868_v31, %v8892_v45  ;;  %v8901_v14 = vcombine.low %v8861_v57, %v8885_v7  ;;  %v7296_v1 = vadd.f32 %v7295_v48, %v7243_v18  ;;  %v22320_v40 = vcombine.high %v8861_v57, %v8885_v7 }
 0x86b   : > { %17886 = vmatmul.mubr.msk.bf16.vlgmr.msra.gmra.mxu1 %vm8961_vm0, %v23769_v11  ;;  %v8911_v33 = vshrl.u32 %v8783_v21, 16  ;;  %v22324_v42 = vcombine.high %v8868_v31, %v8892_v45  ;;  %v8919_v46 = vshrl.u32 %v22312_v62, 16  ;;  %v8927_v29 = vshrl.u32 %v8785_v60, 16  ;;  %v7297_v31 = vpop.f32.mrf.mxu1 }
 0x86c   : > { %17890 = vmatpush3.bf16.xpose.msra.mxu1 %v9472_v30  ;;  %17891 = vmatprep.mubr.msk.bf16.mxu1 %vm20653_vm1, %v23614_v8  ;;  %v8925_v56 = vpack.i.b16 %v8903_v55, %v8785_v60  ;;  %v8912_v5 = vshrl.u32 %v8901_v14, 16  ;;  %v8920_v41 = vshrl.u32 %v22320_v40, 16  ;;  %v8928_v50 = vshrl.u32 %v8903_v55, 16 }
 0x86d   : > { %17895 = vmatprep.subr.bf16.mxu1 %v23614_v8  ;;  %v8935_v36 = vshrl.u32 %v22314_v13, 16  ;;  %v8936_v51 = vshrl.u32 %v22324_v42, 16  ;;  %v8909_v24 = vpack.i.b16 %v8901_v14, %v8783_v21  ;;  %v7229_v12 = vadd.f32 %v22225_v52, %v22253_v23 }
 0x86e   : > { %17920 = vmatpush3.bf16.msra.mxu0 %v8925_v56  ;;  %v22333_v9 = vpack.i.b16 %v8912_v5, %v8911_v33  ;;  %v22338_v26 = vpack.i.b16 %v8920_v41, %v8919_v46  ;;  %v22340_v16 = vpack.i.b16 %v8928_v50, %v8927_v29  ;;  %v7233_v4 = vadd.f32 %v22258_v59, %v22253_v23 }
 0x86f   : > { %17931 = vmatprep.subr.bf16.mxu0 %v23614_v8  ;;  %v22342_v39 = vpack.i.b16 %v8936_v51, %v8935_v36  ;;  %v7231_v21 = vadd.f32 %v22240_v25, %v22256_v15  ;;  %v7235_v54 = vadd.f32 %v22278_v58, %v22256_v15  ;;  %v7245_v7 = vadd.f32 %v7244_v32, %v22256_v15 }
 0x870   : > { %v7282_v60 = vadd.f32 %v22232_v37, %v7229_v12  ;;  %v7286_v52 = vadd.f32 %v22268_v28, %v7233_v4 }
 0x871   : > { %v7284_v59 = vadd.f32 %v22245_v35, %v7231_v21  ;;  %v7288_v43 = vadd.f32 %v22284_v2, %v7235_v54  ;;  %v7298_v58 = vadd.f32 %v7297_v31, %v7245_v7  ;;  %v22375_v31 = vld [vmem:[%s21037_s9] ss:$0 sm:$0xff] }
 0x873   : > { %17892 = vmatmul.mubr.msk.bf16.vlgmr.msra.gmra.mxu1 %vm8961_vm0, %v23770_v34 }
 0x874   : > { %17896 = vmatpush3.bf16.msra.mxu1 %v8909_v24  ;;  %17897 = vmatprep.mubr.msk.bf16.mxu1 %vm20653_vm1, %v23614_v8 }
 0x875   : > { %17901 = vmatprep.subr.bf16.mxu1 %v23614_v8 }
 0x8d2   : > { %v7334_v57 = vpop.f32.mrf.mxu0 }
 0x8d3   : > { %v7344_v45 = vpop.f32.mrf.mxu1  ;;  %v7335_v25 = vadd.f32 %v7334_v57, %v7282_v60 }
 0x8d4   : > { %v7345_v18 = vadd.f32 %v7344_v45, %v7292_v22  ;;  %v7336_v30 = vpop.f32.mrf.mxu0 }
 0x8d5   : > { %v7346_v48 = vpop.f32.mrf.mxu1  ;;  %v7337_v15 = vadd.f32 %v7336_v30, %v7284_v59 }
 0x8d6   : > { %v7347_v27 = vadd.f32 %v7346_v48, %v7294_v38  ;;  %v7338_v23 = vpop.f32.mrf.mxu0 }
 0x8d7   : > { %v7339_v11 = vadd.f32 %v7338_v23, %v7286_v52  ;;  %v7348_v55 = vpop.f32.mrf.mxu1 }
 0x8d8   : > { %v7349_v14 = vadd.f32 %v7348_v55, %v7296_v1  ;;  %v7340_v33 = vpop.f32.mrf.mxu0 }
 0x8d9   : > { %v22362_v22 = vpack.c.bf16 %v7339_v11, %v7335_v25  ;;  %v7341_v56 = vadd.f32 %v7340_v33, %v7288_v43  ;;  %v7350_v37 = vpop.f32.mrf.mxu1 }
 0x8da   : > { %v22364_v5 = vpack.c.bf16 %v7349_v14, %v7345_v18  ;;  %v7351_v28 = vadd.f32 %v7350_v37, %v7298_v58 }
 0x8db   : > { %v22366_v38 = vpack.c.bf16 %v7341_v56, %v7337_v15  ;;  %v9002_v46 = vpop.f32.mrf.mxu1  ;;  %8350 = vrot.lane.b32.xlu1 %v22362_v22, %s20649_s3 }
 0x8dc   : > { %v22370_v35 = vpack.c.bf16 %v7351_v28, %v7347_v27  ;;  %v22378_v21 = vadd.f32 %v22375_v31, %v9002_v46 }
 0x8dd   : > { %v17827_v2 = vpop.f32.mrf.mxu1  ;;  %8353 = vrot.lane.b32.xlu0 %v22366_v38, %s20649_s3 }
 0x8de   : > { %v9515_v60 = vsel %vm9514_vm2, %v22378_v21, -inf }
 0x8df   : > { %v9005_v1 = vpop.f32.mrf.mxu1 }
 0x8e1   : > { %v17828_v41 = vpop.f32.mrf.mxu1 }
 0x8e3   : > { %v9048_v29 = vpop.f32.mrf.mxu1 }
 0x8e4   : > { %v22381_v7 = vadd.f32 %v22375_v31, %v9048_v29  ;;  %v23771_v29 = vld [vmem:[#allocation60_spill] sm:$0xff] }
 0x8e5   : > { %v17833_v50 = vpop.f32.mrf.mxu1 }
 0x8e6   : > { %v9518_v48 = vsel %vm9514_vm2, %v22381_v7, -inf }
 0x8e7   : > { %v9051_v36 = vpop.f32.mrf.mxu1 }
 0x8e9   : > { %v17834_v51 = vpop.f32.mrf.mxu1 }
 0x8eb   : > { %v9094_v24 = vpop.f32.mrf.mxu1 }
 0x8ec   : > { %v22384_v18 = vadd.f32 %v22375_v31, %v9094_v24 }
 0x8ed   : > { %v17839_v34 = vpop.f32.mrf.mxu1 }
 0x8ee   : > { %v9521_v59 = vsel %vm9514_vm2, %v22384_v18, -inf }
 0x8ef   : > { %v9097_v32 = vpop.f32.mrf.mxu1 }
 0x8f1   : > { %v17840_v12 = vpop.f32.mrf.mxu1 }
 0x8f3   : > { %v9140_v4 = vpop.f32.mrf.mxu1 }
 0x8f4   : > { %v22391_v27 = vadd.f32 %v22375_v31, %v9140_v4 }
 0x8f5   : > { %v17845_v57 = vpop.f32.mrf.mxu1 }
 0x8f6   : > { %v9524_v55 = vsel %vm9514_vm2, %v22391_v27, -inf }
 0x8f7   : > { %v9143_v54 = vpop.f32.mrf.mxu1 }
 0x8f9   : > { %v17846_v45 = vpop.f32.mrf.mxu1 }
 0x8fb   : > { %v9186_v30 = vpop.f32.mrf.mxu1 }
 0x8fc   : > { %9516 = vmax.xlane.f32.xlu0 %v9515_v60  ;;  %v22396_v25 = vadd.f32 %v22375_v31, %v9186_v30 }
 0x8fd   : > { %v17851_v52 = vpop.f32.mrf.mxu1 }
 0x8fe   : > { %v9527_v15 = vsel %vm9514_vm2, %v22396_v25, -inf }
 0x8ff   : > { %v9189_v23 = vpop.f32.mrf.mxu1  ;;  %9519 = vmax.xlane.f32.xlu1 %v9518_v48 }
 0x900   : > { %9522 = vmax.xlane.f32.xlu0 %v9521_v59 }
 0x901   : > { %v17852_v43 = vpop.f32.mrf.mxu1 }
 0x903   : > { %v9232_v11 = vpop.f32.mrf.mxu1 }
 0x904   : > { %9525 = vmax.xlane.f32.xlu0 %v9524_v55  ;;  %v22401_v14 = vadd.f32 %v22375_v31, %v9232_v11 }
 0x905   : > { %v17857_v58 = vpop.f32.mrf.mxu1 }
 0x906   : > { %v9530_v28 = vsel %vm9514_vm2, %v22401_v14, -inf }
 0x907   : > { %v9235_v33 = vpop.f32.mrf.mxu1 }
 0x908   : > { %9528 = vmax.xlane.f32.xlu0 %v9527_v15 }
 0x909   : > { %v17858_v56 = vpop.f32.mrf.mxu1 }
 0x90b   : > { %v9278_v37 = vpop.f32.mrf.mxu1 }
 0x90c   : > { %v22408_v46 = vadd.f32 %v22375_v31, %v9278_v37  ;;  %9531 = vmax.xlane.f32.xlu0 %v9530_v28 }
 0x90d   : > { %v17863_v2 = vpop.f32.mrf.mxu1 }
 0x90e   : > { %v9533_v41 = vsel %vm9514_vm2, %v22408_v46, -inf }
 0x90f   : > { %v9281_v1 = vpop.f32.mrf.mxu1 }
 0x910   : > { %10956 = vrot.lane.b32.xlu1 %v23771_v29, %s20649_s3  ;;  %9534 = vmax.xlane.f32.xlu0 %v9533_v41 }
 0x911   : > { %v17864_v50 = vpop.f32.mrf.mxu1 }
 0x913   : > { %v9324_v36 = vpop.f32.mrf.mxu1 }
 0x914   : > { %v22415_v51 = vadd.f32 %v22375_v31, %v9324_v36 }
 0x915   : > { %v17869_v24 = vpop.f32.mrf.mxu1 }
 0x916   : > { %v9536_v34 = vsel %vm9514_vm2, %v22415_v51, -inf  ;;  %v23772_v24 = vld [vmem:[#allocation39_spill] sm:$0xff] }
 0x917   : > { %9537 = vmax.xlane.f32.xlu0 %v9536_v34  ;;  %v9327_v32 = vpop.f32.mrf.mxu1  ;;  %v23773_v34 = vld [vmem:[#allocation61_spill] sm:$0xff] }
 0x918   : > { %v23775_v32 = vld [vmem:[#allocation44_spill] sm:$0xff] }
 0x919   : > { %v17870_v12 = vpop.f32.mrf.mxu1 }
 0x91a   : > { %v23776_v12 = vld [vmem:[#allocation51_spill] sm:$0xff] }
 0x91b   : > { %v9370_v4 = vpop.f32.mrf.mxu1 }
 0x91c   : > { %v22425_v55 = vadd.f32 %v22375_v31, %v9370_v4 }
 0x91d   : > { %v17875_v57 = vpop.f32.mrf.mxu1 }
 0x91e   : > { %v9539_v37 = vsel %vm9514_vm2, %v22425_v55, -inf }
 0x91f   : > { %v9373_v54 = vpop.f32.mrf.mxu1 }
 0x921   : > { %v17876_v45 = vpop.f32.mrf.mxu1 }
 0x923   : > { %v9416_v30 = vpop.f32.mrf.mxu1 }
 0x924   : > { %v22420_v60 = vadd.f32 %v22375_v31, %v9416_v30  ;;  %v8399_v30 = vshrl.u32 %v22366_v38, 16 }
 0x925   : > { %v17881_v52 = vpop.f32.mrf.mxu1 }
 0x926   : > { %v9542_v48 = vsel %vm9514_vm2, %v22420_v60, -inf  ;;  %v8391_v52 = vshrl.u32 %v22362_v22, 16 }
 0x927   : > { %9543 = vmax.xlane.f32.xlu0 %v9542_v48  ;;  %v9419_v23 = vpop.f32.mrf.mxu1 }
 0x929   : > { %v17882_v59 = vpop.f32.mrf.mxu1 }
 0x92b   : > { %v9462_v43 = vpop.f32.mrf.mxu1 }
 0x92c   : > { %v22428_v15 = vadd.f32 %v22375_v31, %v9462_v43 }
 0x92d   : > { %v17887_v11 = vpop.f32.mrf.mxu1 }
 0x92e   : > { %v9545_v50 = vsel %vm9514_vm2, %v22428_v15, -inf }
 0x92f   : > { %v9465_v58 = vpop.f32.mrf.mxu1 }
 0x931   : > { %v17888_v33 = vpop.f32.mrf.mxu1 }
 0x933   : > { %v9508_v56 = vpop.f32.mrf.mxu1 }
 0x934   : > { %v22433_v28 = vadd.f32 %v22375_v31, %v9508_v56  ;;  %9540 = vmax.xlane.f32.xlu1 %v9539_v37  ;;  %v23774_v31 = vld [vmem:[#allocation43_spill] sm:$0xff] }
 0x935   : > { %v17893_v2 = vpop.f32.mrf.mxu1 }
 0x936   : > { %v9548_v1 = vsel %vm9514_vm2, %v22433_v28, -inf }
 0x937   : > { %9549 = vmax.xlane.f32.xlu0 %v9548_v1  ;;  %v9511_v41 = vpop.f32.mrf.mxu1 }
 0x938   : > { %9546 = vmax.xlane.f32.xlu1 %v9545_v50 }
 0x939   : > { %v17894_v36 = vpop.f32.mrf.mxu1 }
 0x949   : > { %10962 = vrot.lane.b32.xlu1 %v23772_v24, %s20649_s3 }
 0x94d   : > { %10959 = vrot.lane.b32.xlu0 %v23773_v34, %s20649_s3  ;;  %10965 = vrot.lane.b32.xlu1 %v23774_v31, %s20649_s3  ;;  %v8351_v57 = vpop.permute.xlu1 %8350 }
 0x94e   : > { %v8392_v45 = vshrl.u32 %v8351_v57, 16  ;;  %v8389_v58 = vpack.i.b16 %v8351_v57, %v22362_v22 }
 0x94f   : > { %v8354_v4 = vpop.permute.xlu0 %8353 }
 0x950   : > { %v8400_v54 = vshrl.u32 %v8354_v4, 16  ;;  %v8397_v59 = vpack.i.b16 %v8354_v4, %v22366_v38  ;;  %v8393_v11 = vpack.i.b16 %v8392_v45, %v8391_v52  ;;  %v8435_v36 = vcombine.high %v8389_v58, %v22147_v10 }
 0x951   : > { %10968 = vrot.lane.b32.xlu0 %v23775_v32, %s20649_s3  ;;  %10971 = vrot.lane.b32.xlu1 %v23776_v12, %s20649_s3 }
 0x952   : > { %v8401_v48 = vpack.i.b16 %v8400_v54, %v8399_v30  ;;  %v8450_v41 = vcombine.high %v8397_v59, %v22147_v10  ;;  %v8569_v50 = vcombine.high %v8393_v11, %v22147_v10  ;;  %v8576_v30 = vrot.slane %v8393_v11, %v23705_v49 }
 0x953   : > { %v8457_v52 = vrot.slane %v8397_v59, %v23705_v49 }
 0x954   : > { %v8584_v37 = vcombine.high %v8401_v48, %v22147_v10  ;;  %v8464_v22 = vrot.slane %v8450_v41, %v23705_v49  ;;  %v8583_v57 = vrot.slane %v8569_v50, %v23705_v49  ;;  %v8591_v54 = vrot.slane %v8401_v48, %v23705_v49 }
 0x955   : > { %11562 = vrot.lane.b32.xlu0 %v22003_v17, %s20649_s3  ;;  %11565 = vrot.lane.b32.xlu1 %v22005_v63, %s20649_s3  ;;  %v8442_v41 = vrot.slane %v8389_v58, %v23705_v49 }
 0x956   : > { %v8631_v50 = vcombine.low %v8576_v30, %v8591_v54  ;;  %v8632_v48 = vcombine.high %v8576_v30, %v8591_v54 }
 0x957   : > { %v8498_v53 = vcombine.high %v8442_v41, %v8457_v52 }
 0x958   : > { %v8646_v58 = vrot.slane %v8632_v48, %v21546_v3 }
 0x985   : > { %v9517_v23 = vpop.xlane.xlu0 %9516 }
 0x986   : > { %v9551_v43 = vsub.f32 %v22378_v21, %v9517_v23  ;;  %v8598_v21 = vrot.slane %v8584_v37, %v23705_v49 }
 0x988   : > { %v9563_v33 = vmul.f32 1.442695, %v9551_v43  ;;  %v9520_v56 = vpop.xlane.xlu1 %9519  ;;  %v8647_v23 = vcombine.low %v8583_v57, %v8598_v21  ;;  %v8648_v43 = vcombine.high %v8583_v57, %v8598_v21 }
 0x989   : > { %v9552_v2 = vsub.f32 %v22381_v7, %v9520_v56  ;;  %v9523_v1 = vpop.xlane.xlu0 %9522  ;;  %v8449_v7 = vrot.slane %v8435_v36, %v23705_v49 }
 0x98a   : > { %20079 = vpow2.f32 %v9563_v33  ;;  %v9553_v45 = vsub.f32 %v22384_v18, %v9523_v1  ;;  %v8655_v18 = vrot.slane %v8647_v23, %v21546_v3  ;;  %v8662_v11 = vrot.slane %v8648_v43, %v21546_v3 }
 0x98b   : > { %v9565_v38 = vmul.f32 1.442695, %v9552_v2  ;;  %v8513_v56 = vcombine.low %v8449_v7, %v8464_v22  ;;  %v8514_v37 = vcombine.high %v8449_v7, %v8464_v22 }
 0x98c   : > { %v9567_v6 = vmul.f32 1.442695, %v9553_v45  ;;  %v8512_v45 = vrot.slane %v8498_v53, %v21546_v3  ;;  %v17328_v30 = vcombine.low %v8655_v18, %v8662_v11 }
 0x98d   : > { %v9526_v4 = vpop.xlane.xlu0 %9525  ;;  %20081 = vpow2.f32 %v9565_v38  ;;  %v8497_v38 = vcombine.low %v8442_v41, %v8457_v52  ;;  %v8521_v1 = vrot.slane %v8513_v56, %v21546_v3  ;;  %v8528_v21 = vrot.slane %v8514_v37, %v21546_v3 }
 0x98e   : > { %v9554_v54 = vsub.f32 %v22391_v27, %v9526_v4  ;;  %v17330_v52 = vcombine.high %v8655_v18, %v8662_v11 }
 0x98f   : > { %v8505_v7 = vrot.slane %v8497_v38, %v21546_v3  ;;  %v17320_v43 = vcombine.low %v8521_v1, %v8528_v21  ;;  %v17322_v56 = vcombine.high %v8521_v1, %v8528_v21 }
 0x991   : > { %v9529_v33 = vpop.xlane.xlu0 %9528  ;;  %v17316_v4 = vcombine.low %v8505_v7, %v8512_v45  ;;  %v17318_v41 = vcombine.high %v8505_v7, %v8512_v45  ;;  %v8718_v48 = vrot.slane %v17320_v43, %v23705_v49 }
 0x992   : > { %v9555_v2 = vsub.f32 %v22396_v25, %v9529_v33  ;;  %v8639_v25 = vrot.slane %v8631_v50, %v21546_v3  ;;  %v8852_v50 = vrot.slane %v17330_v52, %v23705_v49 }
 0x993   : > { %v8686_v1 = vrot.slane %v17316_v4, %v23705_v49  ;;  %v8702_v21 = vrot.slane %v17318_v41, %v23705_v49 }
 0x994   : > { %v9571_v36 = vmul.f32 1.442695, %v9555_v2  ;;  %v17324_v37 = vcombine.low %v8639_v25, %v8646_v58  ;;  %v17326_v2 = vcombine.high %v8639_v25, %v8646_v58 }
 0x995   : > { %v9532_v59 = vpop.xlane.xlu0 %9531  ;;  %v8751_v52 = vcombine.low %v8686_v1, %v8702_v21 }
 0x996   : > { %20083 = vpow2.f32 %v9571_v36  ;;  %v8804_v36 = vrot.slane %v17324_v37, %v23705_v49  ;;  %v8820_v38 = vrot.slane %v17326_v2, %v23705_v49  ;;  %v9556_v11 = vsub.f32 %v22401_v14, %v9532_v59 }
 0x997   : > { %v22477_v22 = vpop.eup %20079  ;;  %20085 = vpow2.f32 %v9567_v6  ;;  %v9569_v6 = vmul.f32 1.442695, %v9554_v54  ;;  %v8758_v37 = vrot.slane %v8751_v52, %v21546_v3 }
 0x998   : > { %v9623_v57 = vpack.c.bf16 %v22477_v22, %v22477_v22  ;;  %v8869_v7 = vcombine.low %v8804_v36, %v8820_v38  ;;  %v9573_v45 = vmul.f32 1.442695, %v9556_v11  ;;  %v10957_v36 = vpop.permute.xlu1 %10956 }
 0x999   : > { %v9535_v23 = vpop.xlane.xlu0 %9534 }
 0x99a   : > { %v9557_v33 = vsub.f32 %v22408_v46, %v9535_v23  ;;  %17898 = vmatmul.mubr.msk.bf16.vlgmr.msra.gmra.mxu1 %vm9514_vm2, %v9623_v57  ;;  %v22492_v53 = vpop.eup %20081  ;;  %v8836_v46 = vrot.slane %v17328_v30, %v23705_v49  ;;  %v23777_v57 = vpack.i.b16 %v22320_v40, %v22312_v62  ;;  %v23778_v62 = vpack.i.b16 %v22324_v42, %v22314_v13 }
 0x99b   : > { %17902 = vmatpush3.bf16.msra.mxu1 %v22333_v9  ;;  %17903 = vmatprep.mubr.msk.bf16.mxu1 %vm20653_vm1, %v23614_v8  ;;  %v8734_v9 = vrot.slane %v17322_v56, %v23705_v49  ;;  %v9624_v18 = vpack.c.bf16 %v22492_v53, %v22492_v53  ;;  %v8876_v43 = vrot.slane %v8869_v7, %v21546_v3 }
 0x99c   : > { %v9575_v27 = vmul.f32 1.442695, %v9557_v33  ;;  %17907 = vmatprep.subr.bf16.mxu1 %v23614_v8  ;;  %v8893_v25 = vcombine.low %v8836_v46, %v8852_v50 }
 0x99d   : > { %v8775_v54 = vcombine.low %v8718_v48, %v8734_v9 }
 0x99e   : > { %20087 = vpow2.f32 %v9575_v27  ;;  %v8900_v23 = vrot.slane %v8893_v25, %v21546_v3 }
 0x99f   : > { %20089 = vpow2.f32 %v9569_v6  ;;  %v8782_v40 = vrot.slane %v8775_v54, %v21546_v3 }
 0x9a0   : > { %v9538_v30 = vpop.xlane.xlu0 %9537  ;;  %20091 = vpow2.f32 %v9573_v45  ;;  %v8905_v2 = vcombine.low %v8876_v43, %v8900_v23  ;;  %v22569_v54 = vcombine.high %v8876_v43, %v8900_v23 }
 0x9a1   : > { %v9558_v56 = vsub.f32 %v22415_v51, %v9538_v30  ;;  %v8787_v42 = vcombine.low %v8758_v37, %v8782_v40  ;;  %v22575_v45 = vcombine.high %v8758_v37, %v8782_v40  ;;  %v10993_v40 = vshrl.u32 %v23772_v24, 16 }
 0x9a2   : > { %17904 = vmatmul.mubr.msk.bf16.vlgmr.msra.gmra.mxu1 %vm9514_vm2, %v9624_v18  ;;  %v8944_v38 = vshrl.u32 %v8905_v2, 16  ;;  %v8952_v30 = vshrl.u32 %v22569_v54, 16 }
 0x9a3   : > { %v22506_v58 = vpop.eup %20083  ;;  %17908 = vmatpush3.bf16.msra.mxu1 %v23777_v57  ;;  %17909 = vmatprep.mubr.msk.bf16.mxu1 %vm20653_vm1, %v23614_v8  ;;  %v9577_v6 = vmul.f32 1.442695, %v9558_v56  ;;  %v8941_v4 = vpack.i.b16 %v8905_v2, %v8787_v42  ;;  %v8943_v18 = vshrl.u32 %v8787_v42, 16  ;;  %v10977_v2 = vshrl.u32 %v23771_v29, 16 }
 0x9a4   : > { %v9627_v14 = vpack.c.bf16 %v22506_v58, %v22506_v58  ;;  %17913 = vmatprep.subr.bf16.mxu1 %v23614_v8  ;;  %v22516_v59 = vpop.eup %20085 }
 0x9a5   : > { %v9625_v33 = vpack.c.bf16 %v22516_v59, %v22516_v59  ;;  %20093 = vpow2.f32 %v9577_v6  ;;  %v8945_v57 = vpack.i.b16 %v8944_v38, %v8943_v18 }
 0x9a6   : > { %17922 = vmatmul.mubr.msk.bf16.vlgmr.msra.gmra.mxu0 %vm9514_vm2, %v9627_v14 }
 0x9a7   : > { %17932 = vmatpush3.bf16.msra.mxu0 %v23778_v62  ;;  %17933 = vmatprep.mubr.msk.bf16.mxu0 %vm20653_vm1, %v23614_v8  ;;  %v8951_v62 = vshrl.u32 %v22575_v45, 16 }
 0x9a8   : > { %17943 = vmatprep.subr.bf16.mxu0 %v23614_v8 }
 0x9a9   : > { %v8953_v37 = vpack.i.b16 %v8952_v30, %v8951_v62 }
 0x9aa   : > { %17910 = vmatmul.mubr.msk.bf16.vlgmr.msra.gmra.mxu1 %vm9514_vm2, %v9625_v33  ;;  %v10978_v33 = vshrl.u32 %v10957_v36, 16 }
 0x9ab   : > { %v22533_v13 = vpop.eup %20087  ;;  %17914 = vmatpush3.bf16.msra.mxu1 %v22338_v26  ;;  %17915 = vmatprep.mubr.msk.bf16.mxu1 %vm20653_vm1, %v23614_v8 }
 0x9ac   : > { %v9629_v27 = vpack.c.bf16 %v22533_v13, %v22533_v13  ;;  %17925 = vmatprep.subr.bf16.mxu1 %v23614_v8  ;;  %v22541_v51 = vpop.eup %20089 }
 0x9ad   : > { %v9626_v26 = vpack.c.bf16 %v22541_v51, %v22541_v51  ;;  %v22555_v48 = vpop.eup %20091 }
 0x9ae   : > { %17934 = vmatmul.mubr.msk.bf16.vlgmr.msra.gmra.mxu0 %vm9514_vm2, %v9629_v27  ;;  %v9628_v9 = vpack.c.bf16 %v22555_v48, %v22555_v48 }
 0x9af   : > { %17944 = vmatpush3.bf16.msra.mxu0 %v8941_v4  ;;  %17945 = vmatprep.mubr.msk.bf16.mxu0 %vm20653_vm1, %v23614_v8 }
 0x9b0   : > { %v9544_v41 = vpop.xlane.xlu0 %9543  ;;  %17955 = vmatprep.subr.bf16.mxu0 %v23614_v8 }
 0x9b1   : > { %v9560_v46 = vsub.f32 %v22420_v60, %v9544_v41 }
 0x9b2   : > { %17916 = vmatmul.mubr.msk.bf16.vlgmr.msra.gmra.mxu1 %vm9514_vm2, %v9626_v26 }
 0x9b3   : > { %17926 = vmatpush3.bf16.msra.mxu1 %v22340_v16  ;;  %17927 = vmatprep.mubr.msk.bf16.mxu1 %vm20653_vm1, %v23614_v8  ;;  %v9581_v50 = vmul.f32 1.442695, %v9560_v46  ;;  %v22564_v16 = vpop.eup %20093  ;;  %v10975_v46 = vpack.i.b16 %v10957_v36, %v23771_v29 }
 0x9b4   : > { %17937 = vmatprep.subr.bf16.mxu1 %v23614_v8  ;;  %v9630_v11 = vpack.c.bf16 %v22564_v16, %v22564_v16 }
 0x9b5   : > { %20095 = vpow2.f32 %v9581_v50  ;;  %v10985_v50 = vshrl.u32 %v23773_v34, 16 }
 0x9ba   : > { %17928 = vmatmul.mubr.msk.bf16.vlgmr.msra.gmra.mxu1 %vm9514_vm2, %v9628_v9  ;;  %v11001_v9 = vshrl.u32 %v23774_v31, 16 }
 0x9bb   : > { %17938 = vmatpush3.bf16.msra.mxu1 %v22342_v39  ;;  %17939 = vmatprep.mubr.msk.bf16.mxu1 %vm20653_vm1, %v23614_v8 }
 0x9bc   : > { %17949 = vmatprep.subr.bf16.mxu1 %v23614_v8 }
 0x9bd   : > { %v9541_v60 = vpop.xlane.xlu1 %9540 }
 0x9be   : > { %v9559_v39 = vsub.f32 %v22425_v55, %v9541_v60 }
 0x9c0   : > { %v9550_v1 = vpop.xlane.xlu0 %9549  ;;  %v9579_v52 = vmul.f32 1.442695, %v9559_v39 }
 0x9c1   : > { %v9562_v21 = vsub.f32 %v22433_v28, %v9550_v1  ;;  %v9547_v25 = vpop.xlane.xlu1 %9546 }
 0x9c2   : > { %17940 = vmatmul.mubr.msk.bf16.vlgmr.msra.gmra.mxu1 %vm9514_vm2, %v9630_v11  ;;  %v22578_v14 = vpop.eup %20095  ;;  %v9561_v27 = vsub.f32 %v22428_v15, %v9547_v25 }
 0x9c3   : > { %v9585_v7 = vmul.f32 1.442695, %v9562_v21  ;;  %17950 = vmatpush3.bf16.msra.mxu1 %v8945_v57  ;;  %17951 = vmatprep.mubr.msk.bf16.mxu1 %vm20653_vm1, %v23614_v8  ;;  %v9632_v43 = vpack.c.bf16 %v22578_v14, %v22578_v14 }
 0x9c4   : > { %17961 = vmatprep.subr.bf16.mxu1 %v23614_v8  ;;  %v10960_v23 = vpop.permute.xlu0 %10959  ;;  %v9583_v21 = vmul.f32 1.442695, %v9561_v27 }
 0x9c5   : > { %20097 = vpow2.f32 %v9585_v7  ;;  %v10963_v28 = vpop.permute.xlu1 %10962  ;;  %v10986_v42 = vshrl.u32 %v10960_v23, 16  ;;  %v10983_v4 = vpack.i.b16 %v10960_v23, %v23773_v34 }
 0x9c6   : > { %v10994_v55 = vshrl.u32 %v10963_v28, 16  ;;  %20099 = vpow2.f32 %v9579_v52  ;;  %v10991_v6 = vpack.i.b16 %v10963_v28, %v23772_v24  ;;  %v10979_v24 = vpack.i.b16 %v10978_v33, %v10977_v2 }
 0x9c7   : > { %v10987_v38 = vpack.i.b16 %v10986_v42, %v10985_v50  ;;  %20101 = vpow2.f32 %v9583_v21 }
 0x9c8   : > { %v10995_v26 = vpack.i.b16 %v10994_v55, %v10993_v40  ;;  %v11021_v18 = vcombine.low %v10975_v46, %v10991_v6  ;;  %v11022_v25 = vcombine.high %v10975_v46, %v10991_v6  ;;  %v10969_v50 = vpop.permute.xlu0 %10968 }
 0x9c9   : > { %v10966_v56 = vpop.permute.xlu1 %10965 }
 0x9ca   : > { %17952 = vmatmul.mubr.msk.bf16.vlgmr.msra.gmra.mxu1 %vm9514_vm2, %v9632_v43  ;;  %v10999_v41 = vpack.i.b16 %v10966_v56, %v23774_v31  ;;  %v11002_v60 = vshrl.u32 %v10966_v56, 16  ;;  %v11155_v57 = vcombine.low %v10979_v24, %v10995_v26  ;;  %v11156_v29 = vcombine.high %v10979_v24, %v10995_v26 }
 0x9cb   : > { %17962 = vmatpush3.bf16.msra.mxu1 %v8953_v37  ;;  %17963 = vmatprep.mubr.msk.bf16.mxu1 %vm20653_vm1, %v23614_v8  ;;  %v11029_v28 = vrot.slane %v11021_v18, %v23705_v49  ;;  %v11036_v55 = vrot.slane %v11022_v25, %v23705_v49  ;;  %v11009_v25 = vshrl.u32 %v23775_v32, 16 }
 0x9cc   : > { %17973 = vmatprep.subr.bf16.mxu1 %v23614_v8  ;;  %v11037_v15 = vcombine.low %v10983_v4, %v10999_v41  ;;  %v11003_v11 = vpack.i.b16 %v11002_v60, %v11001_v9  ;;  %v11038_v1 = vcombine.high %v10983_v4, %v10999_v41  ;;  %v11163_v62 = vrot.slane %v11155_v57, %v23705_v49 }
 0x9cd   : > { %v11170_v43 = vrot.slane %v11156_v29, %v23705_v49  ;;  %v10972_v4 = vpop.permute.xlu1 %10971  ;;  %v11010_v57 = vshrl.u32 %v10969_v50, 16 }
 0x9ce   : > { %v11045_v34 = vrot.slane %v11037_v15, %v23705_v49  ;;  %v11171_v36 = vcombine.low %v10987_v38, %v11003_v11  ;;  %v11172_v31 = vcombine.high %v10987_v38, %v11003_v11  ;;  %v11052_v39 = vrot.slane %v11038_v1, %v23705_v49 }
 0x9cf   : > { %v11018_v24 = vshrl.u32 %v10972_v4, 16  ;;  %v11017_v1 = vshrl.u32 %v23776_v12, 16 }
 0x9d0   : > { %v11179_v30 = vrot.slane %v11171_v36, %v23705_v49  ;;  %v11186_v52 = vrot.slane %v11172_v31, %v23705_v49  ;;  %v11083_v33 = vcombine.low %v11029_v28, %v11045_v34  ;;  %v11084_v40 = vcombine.high %v11029_v28, %v11045_v34 }
 0x9d1   : > { %v11099_v56 = vcombine.low %v11036_v55, %v11052_v39  ;;  %v11100_v37 = vcombine.high %v11036_v55, %v11052_v39  ;;  %v8949_v34 = vpack.i.b16 %v22569_v54, %v22575_v45  ;;  %v11015_v39 = vpack.i.b16 %v10972_v4, %v23776_v12 }
 0x9d2   : > { %v22599_v7 = vpop.eup %20097  ;;  %v11217_v2 = vcombine.low %v11163_v62, %v11179_v30  ;;  %v11218_v42 = vcombine.high %v11163_v62, %v11179_v30  ;;  %v11233_v6 = vcombine.low %v11170_v43, %v11186_v52  ;;  %v11234_v27 = vcombine.high %v11170_v43, %v11186_v52 }
 0x9d3   : > { %v9634_v23 = vpack.c.bf16 %v22599_v7, %v22599_v7  ;;  %v22612_v26 = vpop.eup %20099  ;;  %v11091_v41 = vrot.slane %v11083_v33, %v21546_v3  ;;  %v11098_v46 = vrot.slane %v11084_v40, %v21546_v3  ;;  %v11107_v9 = vrot.slane %v11099_v56, %v21546_v3 }
 0x9d4   : > { %v11114_v60 = vrot.slane %v11100_v37, %v21546_v3  ;;  %v11225_v15 = vrot.slane %v11217_v2, %v21546_v3  ;;  %v11232_v38 = vrot.slane %v11218_v42, %v21546_v3  ;;  %v11241_v18 = vrot.slane %v11233_v6, %v21546_v3  ;;  %v22633_v33 = vpop.eup %20101 }
 0x9d5   : > { %17964 = vmatmul.mubr.msk.bf16.vlgmr.msra.gmra.mxu1 %vm9514_vm2, %v9634_v23  ;;  %v11248_v11 = vrot.slane %v11234_v27, %v21546_v3  ;;  %v9631_v21 = vpack.c.bf16 %v22612_v26, %v22612_v26  ;;  %v17366_v29 = vcombine.low %v11091_v41, %v11098_v46  ;;  %v17368_v36 = vcombine.high %v11091_v41, %v11098_v46 }
 0x9d6   : > { %17975 = vmatprep.mubr.msk.bf16.mxu1 %vm20653_vm1, %v23614_v8  ;;  %v17370_v31 = vcombine.low %v11107_v9, %v11114_v60  ;;  %v11019_v28 = vpack.i.b16 %v11018_v24, %v11017_v1  ;;  %v17372_v30 = vcombine.high %v11107_v9, %v11114_v60  ;;  %v17374_v52 = vcombine.low %v11225_v15, %v11232_v38 }
 0x9d7   : > { %17946 = vmatmul.mubr.msk.bf16.vlgmr.msra.gmra.mxu0 %vm9514_vm2, %v9631_v21  ;;  %v17376_v23 = vcombine.high %v11225_v15, %v11232_v38  ;;  %v17378_v55 = vcombine.low %v11241_v18, %v11248_v11  ;;  %v11007_v62 = vpack.i.b16 %v10969_v50, %v23775_v32  ;;  %v17380_v43 = vcombine.high %v11241_v18, %v11248_v11 }
 0x9d8   : > { %17956 = vmatpush3.bf16.msra.mxu0 %v8949_v34  ;;  %17957 = vmatprep.mubr.msk.bf16.mxu0 %vm20653_vm1, %v23614_v8  ;;  %v11011_v54 = vpack.i.b16 %v11010_v57, %v11009_v25  ;;  %v22637_v12 = vrot.slane %v17366_v29, %v23705_v49  ;;  %v11068_v45 = vcombine.high %v11015_v39, %v22147_v10 }
 0x9d9   : > { %17967 = vmatprep.subr.bf16.mxu0 %v23614_v8  ;;  %v11202_v40 = vcombine.high %v11019_v28, %v22147_v10  ;;  %v22642_v56 = vrot.slane %v17368_v36, %v23705_v49  ;;  %v22645_v32 = vrot.slane %v17370_v31, %v23705_v49  ;;  %v22648_v37 = vrot.slane %v17372_v30, %v23705_v49 }
 0x9da   : > { %v11415_v2 = vrot.slane %v17374_v52, %v23705_v49  ;;  %v11431_v42 = vrot.slane %v17376_v23, %v23705_v49  ;;  %v11447_v6 = vrot.slane %v17378_v55, %v23705_v49  ;;  %v11053_v27 = vcombine.high %v11007_v62, %v22147_v10 }
 0x9db   : > { %v9633_v4 = vpack.c.bf16 %v22633_v33, %v22633_v33  ;;  %v11353_v41 = vcombine.low %v22637_v12, %v22642_v56  ;;  %v11463_v46 = vrot.slane %v17380_v43, %v23705_v49  ;;  %v11187_v50 = vcombine.high %v11011_v54, %v22147_v10 }
 0x9dc   : > { %v11377_v9 = vcombine.low %v22645_v32, %v22648_v37  ;;  %v11471_v60 = vcombine.low %v11415_v2, %v11431_v42  ;;  %v11082_v24 = vrot.slane %v11068_v45, %v23705_v49  ;;  %v11216_v18 = vrot.slane %v11202_v40, %v23705_v49 }
 0x9dd   : > { %v11361_v15 = vrot.slane %v11353_v41, %v21546_v3  ;;  %v11495_v38 = vcombine.low %v11447_v6, %v11463_v46  ;;  %v11067_v21 = vrot.slane %v11053_v27, %v23705_v49  ;;  %v11060_v57 = vrot.slane %v11007_v62, %v23705_v49 }
 0x9de   : > { %v11385_v11 = vrot.slane %v11377_v9, %v21546_v3  ;;  %v11479_v1 = vrot.slane %v11471_v60, %v21546_v3  ;;  %v11201_v29 = vrot.slane %v11187_v50, %v23705_v49  ;;  %v11209_v34 = vrot.slane %v11019_v28, %v23705_v49 }
 0x9df   : > { %17958 = vmatmul.mubr.msk.bf16.vlgmr.msra.gmra.mxu0 %vm9514_vm2, %v9633_v4  ;;  %v11503_v25 = vrot.slane %v11495_v38, %v21546_v3  ;;  %v11194_v31 = vrot.slane %v11011_v54, %v23705_v49  ;;  %v11075_v30 = vrot.slane %v11015_v39, %v23705_v49  ;;  %v11131_v52 = vcombine.low %v11067_v21, %v11082_v24 }
 0x9e0   : > { %17969 = vmatprep.mubr.msk.bf16.mxu0 %vm20653_vm1, %v23614_v8  ;;  %v11401_v36 = vcombine.low %v11361_v15, %v11385_v11  ;;  %v11265_v55 = vcombine.low %v11201_v29, %v11216_v18  ;;  %v11266_v43 = vcombine.high %v11201_v29, %v11216_v18  ;;  %v11472_v45 = vcombine.high %v11415_v2, %v11431_v42 }
 0x9e1   : > { %v11519_v23 = vcombine.low %v11479_v1, %v11503_v25  ;;  %v11496_v40 = vcombine.high %v11447_v6, %v11463_v46  ;;  %v11520_v9 = vcombine.high %v11479_v1, %v11503_v25  ;;  %v11132_v62 = vcombine.high %v11067_v21, %v11082_v24 }
 0x9e2   : > { %v11528_v4 = vshrl.u32 %v11401_v36, 16  ;;  %v11249_v60 = vcombine.low %v11194_v31, %v11209_v34  ;;  %v11250_v50 = vcombine.high %v11194_v31, %v11209_v34  ;;  %v11354_v28 = vcombine.high %v22637_v12, %v22642_v56 }
 0x9e3   : > { %v11527_v27 = vpack.i.b16 %v11519_v23, %v11401_v36  ;;  %v11529_v41 = vshrl.u32 %v11519_v23, 16  ;;  %v11402_v39 = vcombine.high %v11361_v15, %v11385_v11  ;;  %v11378_v8 = vcombine.high %v22645_v32, %v22648_v37 }
 0x9e4   : > { %v11115_v18 = vcombine.low %v11060_v57, %v11075_v30  ;;  %v11116_v2 = vcombine.high %v11060_v57, %v11075_v30  ;;  %v11273_v42 = vrot.slane %v11265_v55, %v21546_v3  ;;  %v11280_v6 = vrot.slane %v11266_v43, %v21546_v3 }
 0x9e5   : > { %v12189_v54 = vsel %vm8961_vm0, %v11527_v27, 0  ;;  %v11530_v38 = vpack.i.b16 %v11529_v41, %v11528_v4  ;;  %v23779_v24 = vmov 0.0   ;;  %v11535_v1 = vshrl.u32 %v11520_v9, 16  ;;  %v23780_v27 = vld [vmem:[#allocation68_spill] sm:$0xff] }
 0x9e6   : > { %17968 = vmatpush3.bf16.xpose.msra.mxu0 %v12189_v54  ;;  %v11486_v12 = vrot.slane %v11472_v45, %v21546_v3  ;;  %v11510_v56 = vrot.slane %v11496_v40, %v21546_v3  ;;  %v11139_v15 = vrot.slane %v11131_v52, %v21546_v3  ;;  %v11146_v32 = vrot.slane %v11132_v62, %v21546_v3  ;;  %v23781_v4 = vld [vmem:[#allocation64_spill] sm:$0xff] }
 0x9e7   : > { %v12235_v46 = vsel %vm8961_vm0, %v11530_v38, 0  ;;  %17979 = vmatprep.subr.bf16.mxu0 %v23779_v24  ;;  %v11257_v37 = vrot.slane %v11249_v60, %v21546_v3  ;;  %v11264_v11 = vrot.slane %v11250_v50, %v21546_v3  ;;  %v11533_v21 = vpack.i.b16 %v11520_v9, %v11402_v39  ;;  %v23783_v50 = vld [vmem:[#allocation75_spill] sm:$0xff] }
 0x9e8   : > { %17974 = vmatpush3.bf16.xpose.msra.mxu1 %v12235_v46  ;;  %v11534_v25 = vshrl.u32 %v11402_v39, 16  ;;  %v11368_v57 = vrot.slane %v11354_v28, %v21546_v3  ;;  %v11392_v29 = vrot.slane %v11378_v8, %v21546_v3  ;;  %v11123_v34 = vrot.slane %v11115_v18, %v21546_v3 }
 0x9e9   : > { %17985 = vmatprep.subr.bf16.mxu1 %v23779_v24  ;;  %v11130_v36 = vrot.slane %v11116_v2, %v21546_v3  ;;  %v17379_v31 = vcombine.low %v11273_v42, %v11280_v6  ;;  %v17381_v30 = vcombine.high %v11273_v42, %v11280_v6  ;;  %v11521_v23 = vcombine.low %v11486_v12, %v11510_v56 }
 0x9ea   : > { %v11536_v52 = vpack.i.b16 %v11535_v1, %v11534_v25  ;;  %v17371_v55 = vcombine.low %v11139_v15, %v11146_v32  ;;  %v17373_v43 = vcombine.high %v11139_v15, %v11146_v32  ;;  %v17375_v45 = vcombine.low %v11257_v37, %v11264_v11  ;;  %v23784_v25 = vld [vmem:[#allocation71_spill] sm:$0xff] }
 0x9eb   : > { %v17377_v40 = vcombine.high %v11257_v37, %v11264_v11  ;;  %v23782_v41 = vpack.i.b16 %v23780_v27, %v23781_v4  ;;  %v12281_v9 = vsel %vm8961_vm0, %v11533_v21, 0  ;;  %v11403_v8 = vcombine.low %v11368_v57, %v11392_v29 }
 0x9ec   : > { %v17367_v62 = vcombine.low %v11123_v34, %v11130_v36  ;;  %v17369_v60 = vcombine.high %v11123_v34, %v11130_v36  ;;  %v12327_v28 = vsel %vm8961_vm0, %v11536_v52, 0  ;;  %v11541_v54 = vshrl.u32 %v11521_v23, 16  ;;  %v23785_v34 = vld [vmem:[#allocation69_spill] sm:$0xff] }
 0x9ed   : > { %17970 = vmatmul.mubr.msk.bf16.vlgmr.msra.gmra.mxu0 %vm8961_vm0, %v23782_v41  ;;  %v11454_v38 = vrot.slane %v17379_v31, %v23705_v49  ;;  %v11470_v39 = vrot.slane %v17381_v30, %v23705_v49  ;;  %v11336_v18 = vrot.slane %v17371_v55, %v23705_v49  ;;  %v11352_v2 = vrot.slane %v17373_v43, %v23705_v49  ;;  %v23787_v55 = vld [vmem:[#allocation76_spill] sm:$0xff] }
 0x9ee   : > { %17980 = vmatpush3.bf16.xpose.msra.mxu0 %v12281_v9  ;;  %17981 = vmatprep.mubr.msk.bf16.mxu0 %vm20653_vm1, %v23779_v24  ;;  %v11539_v42 = vpack.i.b16 %v11521_v23, %v11403_v8  ;;  %v11540_v6 = vshrl.u32 %v11403_v8, 16  ;;  %v11422_v46 = vrot.slane %v17375_v45, %v23705_v49  ;;  %v11438_v1 = vrot.slane %v17377_v40, %v23705_v49  ;;  %v23788_v8 = vld [vmem:[#allocation47_spill] sm:$0xff] }
 0x9ef   : > { %17976 = vmatmul.mubr.msk.bf16.vlgmr.msra.gmra.mxu1 %vm8961_vm0, %v23783_v50  ;;  %17991 = vmatprep.subr.bf16.mxu0 %v23779_v24  ;;  %v11304_v15 = vrot.slane %v17367_v62, %v23705_v49  ;;  %v11320_v32 = vrot.slane %v17369_v60, %v23705_v49  ;;  %v11522_v11 = vcombine.high %v11486_v12, %v11510_v56  ;;  %v23789_v62 = vld [vmem:[#allocation55_spill] sm:$0xff] }
 0x9f0   : > { %17986 = vmatpush3.bf16.xpose.msra.mxu1 %v12327_v28  ;;  %17987 = vmatprep.mubr.msk.bf16.mxu1 %vm20653_vm1, %v23779_v24  ;;  %v11542_v37 = vpack.i.b16 %v11541_v54, %v11540_v6  ;;  %v11511_v21 = vcombine.low %v11454_v38, %v11470_v39  ;;  %v23786_v36 = vpack.i.b16 %v23784_v25, %v23785_v34  ;;  %v12373_v31 = vsel %vm8961_vm0, %v11539_v42, 0  ;;  %v23791_v54 = vld [vmem:[#allocation70_spill] sm:$0xff] }
 0x9f1   : > { %17997 = vmatprep.subr.bf16.mxu1 %v23779_v24  ;;  %v11404_v30 = vcombine.high %v11368_v57, %v11392_v29  ;;  %v11393_v52 = vcombine.low %v11336_v18, %v11352_v2  ;;  %v11487_v23 = vcombine.low %v11422_v46, %v11438_v1  ;;  %v11547_v56 = vshrl.u32 %v11522_v11, 16  ;;  %v23792_v46 = vld [vmem:[#allocation67_spill] sm:$0xff]  ;;  %v23793_v1 = vld [vmem:[#allocation66_spill] sm:$0xff] }
 0x9f2   : > { %v12419_v12 = vsel %vm8961_vm0, %v11542_v37, 0  ;;  %v11369_v43 = vcombine.low %v11304_v15, %v11320_v32  ;;  %v11518_v45 = vrot.slane %v11511_v21, %v21546_v3  ;;  %v23790_v60 = vpack.i.b16 %v23788_v8, %v23789_v62 }
 0x9f3   : > { %v11545_v57 = vpack.i.b16 %v11522_v11, %v11404_v30  ;;  %v11546_v29 = vshrl.u32 %v11404_v30, 16  ;;  %v11400_v40 = vrot.slane %v11393_v52, %v21546_v3  ;;  %v11494_v27 = vrot.slane %v11487_v23, %v21546_v3  ;;  %v23795_v11 = vld [vmem:[#allocation74_spill] sm:$0xff]  ;;  %v23796_v30 = vld [vmem:[#allocation48_spill] sm:$0xff] }
 0x9f4   : > { %v11376_v41 = vrot.slane %v11369_v43, %v21546_v3  ;;  %v23794_v15 = vpack.i.b16 %v23792_v46, %v23793_v1  ;;  %v23797_v52 = vld [vmem:[#allocation46_spill] sm:$0xff]  ;;  %v23800_v43 = vld [vmem:[#allocation73_spill] sm:$0xff] }
 0x9f5   : > { %17982 = vmatmul.mubr.msk.bf16.vlgmr.msra.gmra.mxu0 %vm8961_vm0, %v23786_v36  ;;  %v11548_v4 = vpack.i.b16 %v11547_v56, %v11546_v29  ;;  %v11523_v9 = vcombine.low %v11494_v27, %v11518_v45  ;;  %v12465_v50 = vsel %vm8961_vm0, %v11545_v57, 0  ;;  %v11524_v6 = vcombine.high %v11494_v27, %v11518_v45  ;;  %v23801_v45 = vld [vmem:[#allocation72_spill] sm:$0xff]  ;;  %v23803_v29 = vld [vmem:[#allocation78_spill] sm:$0xff] }
 0x9f6   : > { %17992 = vmatpush3.bf16.xpose.msra.mxu0 %v12373_v31  ;;  %17993 = vmatprep.mubr.msk.bf16.mxu0 %vm20653_vm1, %v23779_v24  ;;  %v11405_v28 = vcombine.low %v11376_v41, %v11400_v40  ;;  %v11406_v37 = vcombine.high %v11376_v41, %v11400_v40  ;;  %v23798_v23 = vpack.i.b16 %v23796_v30, %v23797_v52 }
 0x9f7   : > { %17988 = vmatmul.mubr.msk.bf16.vlgmr.msra.gmra.mxu1 %vm8961_vm0, %v23787_v55  ;;  %18003 = vmatprep.subr.bf16.mxu0 %v23779_v24  ;;  %v12511_v38 = vsel %vm8961_vm0, %v11548_v4, 0  ;;  %v11553_v39 = vshrl.u32 %v11523_v9, 16  ;;  %v11559_v25 = vshrl.u32 %v11524_v6, 16  ;;  %v23802_v57 = vpack.i.b16 %v23800_v43, %v23801_v45 }
 0x9f8   : > { %17998 = vmatpush3.bf16.xpose.msra.mxu1 %v12419_v12  ;;  %17999 = vmatprep.mubr.msk.bf16.mxu1 %vm20653_vm1, %v23779_v24  ;;  %v11551_v18 = vpack.i.b16 %v11523_v9, %v11405_v28  ;;  %v11552_v2 = vshrl.u32 %v11405_v28, 16  ;;  %v11557_v34 = vpack.i.b16 %v11524_v6, %v11406_v37  ;;  %v11558_v36 = vshrl.u32 %v11406_v37, 16  ;;  %v23799_v12 = vld [vmem:[#allocation77_spill] sm:$0xff] }
 0x9f9   : > { %18009 = vmatprep.subr.bf16.mxu1 %v23779_v24 }
 0x9fa   : > { %v11554_v42 = vpack.i.b16 %v11553_v39, %v11552_v2  ;;  %v12557_v32 = vsel %vm8961_vm0, %v11551_v18, 0  ;;  %v11560_v31 = vpack.i.b16 %v11559_v25, %v11558_v36  ;;  %v12649_v55 = vsel %vm8961_vm0, %v11557_v34, 0 }
 0x9fc   : > { %v12603_v21 = vsel %vm8961_vm0, %v11554_v42, 0  ;;  %v12695_v56 = vsel %vm8961_vm0, %v11560_v31, 0 }
 0x9fd   : > { %17994 = vmatmul.mubr.msk.bf16.vlgmr.msra.gmra.mxu0 %vm8961_vm0, %v23790_v60 }
 0x9fe   : > { %18004 = vmatpush3.bf16.xpose.msra.mxu0 %v12465_v50  ;;  %18005 = vmatprep.mubr.msk.bf16.mxu0 %vm20653_vm1, %v23779_v24 }
 0x9ff   : > { %18000 = vmatmul.mubr.msk.bf16.vlgmr.msra.gmra.mxu1 %vm8961_vm0, %v23791_v54  ;;  %18015 = vmatprep.subr.bf16.mxu0 %v23779_v24 }
 0xa00   : > { %18010 = vmatpush3.bf16.xpose.msra.mxu1 %v12511_v38  ;;  %18011 = vmatprep.mubr.msk.bf16.mxu1 %vm20653_vm1, %v23779_v24 }
 0xa01   : > { %18021 = vmatprep.subr.bf16.mxu1 %v23779_v24 }
 0xa05   : > { %18006 = vmatmul.mubr.msk.bf16.vlgmr.msra.gmra.mxu0 %vm8961_vm0, %v23794_v15 }
 0xa06   : > { %18016 = vmatpush3.bf16.xpose.msra.mxu0 %v12557_v32  ;;  %18017 = vmatprep.mubr.msk.bf16.mxu0 %vm20653_vm1, %v23779_v24 }
 0xa07   : > { %18012 = vmatmul.mubr.msk.bf16.vlgmr.msra.gmra.mxu1 %vm8961_vm0, %v23795_v11  ;;  %18027 = vmatprep.subr.bf16.mxu0 %v23779_v24 }
 0xa08   : > { %18022 = vmatpush3.bf16.xpose.msra.mxu1 %v12603_v21  ;;  %18023 = vmatprep.mubr.msk.bf16.mxu1 %vm20653_vm1, %v23779_v24 }
 0xa09   : > { %18033 = vmatprep.subr.bf16.mxu1 %v23779_v24 }
 0xa0d   : > { %18018 = vmatmul.mubr.msk.bf16.vlgmr.msra.gmra.mxu0 %vm8961_vm0, %v23798_v23 }
 0xa0e   : > { %18028 = vmatpush3.bf16.xpose.msra.mxu0 %v12649_v55  ;;  %18029 = vmatprep.mubr.msk.bf16.mxu0 %vm20653_vm1, %v23779_v24 }
 0xa0f   : > { %18024 = vmatmul.mubr.msk.bf16.vlgmr.msra.gmra.mxu1 %vm8961_vm0, %v23799_v12  ;;  %18039 = vmatprep.subr.bf16.mxu0 %v23779_v24 }
 0xa10   : > { %18034 = vmatpush3.bf16.xpose.msra.mxu1 %v12695_v56  ;;  %18035 = vmatprep.mubr.msk.bf16.mxu1 %vm20653_vm1, %v23779_v24 }
 0xa11   : > { %18045 = vmatprep.subr.bf16.mxu1 %v23779_v24 }
 0xa15   : > { %18030 = vmatmul.mubr.msk.bf16.vlgmr.msra.gmra.mxu0 %vm8961_vm0, %v23802_v57 }
 0xa16   : > { %18041 = vmatprep.mubr.msk.bf16.mxu0 %vm20653_vm1, %v23779_v24 }
 0xa17   : > { %18036 = vmatmul.mubr.msk.bf16.vlgmr.msra.gmra.mxu1 %vm8961_vm0, %v23803_v29 }
 0xa18   : > { %18047 = vmatprep.mubr.msk.bf16.mxu1 %vm20653_vm1, %v23779_v24 }
 0xa5a   : > { %v22789_v40 = vpop.f32.mrf.mxu1 }
 0xa5c   : > { %v17899_v27 = vpop.f32.mrf.mxu1 }
 0xa5e   : > { %v9675_v4 = vpop.f32.mrf.mxu1 }
 0xa60   : > { %v17900_v41 = vpop.f32.mrf.mxu1 }
 0xa62   : > { %v22791_v9 = vpop.f32.mrf.mxu1 }
 0xa64   : > { %v17905_v8 = vpop.f32.mrf.mxu1 }
 0xa66   : > { %v9718_v62 = vpop.f32.mrf.mxu1  ;;  %v22793_v60 = vpop.f32.mrf.mxu0 }
 0xa68   : > { %v17906_v50 = vpop.f32.mrf.mxu1  ;;  %v17923_v28 = vpop.f32.mrf.mxu0 }
 0xa6a   : > { %v22795_v54 = vpop.f32.mrf.mxu1  ;;  %v9847_v38 = vpop.f32.mrf.mxu0 }
 0xa6c   : > { %v17911_v39 = vpop.f32.mrf.mxu1  ;;  %v17924_v18 = vpop.f32.mrf.mxu0 }
 0xa6e   : > { %v9761_v2 = vpop.f32.mrf.mxu1  ;;  %v22797_v42 = vpop.f32.mrf.mxu0 }
 0xa6f   : > { %v22814_v2 = vld [vmem:[%s21037_s9 + $0x1] ss:$0 sm:$0xff] }
 0xa70   : > { %v17912_v6 = vpop.f32.mrf.mxu1  ;;  %v17935_v46 = vpop.f32.mrf.mxu0 }
 0xa72   : > { %v22799_v1 = vpop.f32.mrf.mxu1  ;;  %v9933_v15 = vpop.f32.mrf.mxu0 }
 0xa74   : > { %v17917_v32 = vpop.f32.mrf.mxu1  ;;  %v17936_v37 = vpop.f32.mrf.mxu0 }
 0xa76   : > { %v9804_v11 = vpop.f32.mrf.mxu1 }
 0xa78   : > { %v17918_v21 = vpop.f32.mrf.mxu1 }
 0xa7a   : > { %v22801_v25 = vpop.f32.mrf.mxu1 }
 0xa7c   : > { %v17929_v34 = vpop.f32.mrf.mxu1 }
 0xa7e   : > { %v9890_v36 = vpop.f32.mrf.mxu1 }
 0xa80   : > { %v17930_v31 = vpop.f32.mrf.mxu1 }
 0xa82   : > { %v22803_v30 = vpop.f32.mrf.mxu1 }
 0xa84   : > { %v17941_v52 = vpop.f32.mrf.mxu1 }
 0xa86   : > { %v9976_v23 = vpop.f32.mrf.mxu1 }
 0xa88   : > { %v17942_v55 = vpop.f32.mrf.mxu1 }
 0xa8a   : > { %v22805_v12 = vpop.f32.mrf.mxu1 }
 0xa8c   : > { %v17953_v56 = vpop.f32.mrf.mxu1 }
 0xa8e   : > { %v10062_v43 = vpop.f32.mrf.mxu1 }
 0xa90   : > { %v17954_v45 = vpop.f32.mrf.mxu1 }
 0xa95   : > { %v22807_v57 = vpop.f32.mrf.mxu1 }
 0xa97   : > { %v17965_v29 = vpop.f32.mrf.mxu1  ;;  %v22809_v41 = vpop.f32.mrf.mxu0 }
 0xa99   : > { %v10148_v27 = vpop.f32.mrf.mxu1  ;;  %v17947_v8 = vpop.f32.mrf.mxu0 }
 0xa9b   : > { %v17966_v4 = vpop.f32.mrf.mxu1  ;;  %v10019_v62 = vpop.f32.mrf.mxu0 }
 0xa9d   : > { %v17948_v50 = vpop.f32.mrf.mxu0 }
 0xa9f   : > { %v22811_v28 = vpop.f32.mrf.mxu0 }
 0xaa0   : > { %23804 = vst [vmem:[#allocation62_spill] sm:$0xff] %v22811_v28 }
 0xaa1   : > { %v17959_v38 = vpop.f32.mrf.mxu0 }
 0xaa3   : > { %v10105_v39 = vpop.f32.mrf.mxu0 }
 0xaa5   : > { %v17960_v18 = vpop.f32.mrf.mxu0 }
 0xaad   : > { %v12225_v6 = vpop.f32.mrf.mxu0 }
 0xaae   : > { %v22817_v46 = vadd.f32 %v22814_v2, %v12225_v6 }
 0xaaf   : > { %v17971_v15 = vpop.f32.mrf.mxu0  ;;  %v12271_v32 = vpop.f32.mrf.mxu1 }
 0xab0   : > { %v22820_v37 = vadd.f32 %v22814_v2, %v12271_v32  ;;  %v12737_v11 = vsel %vm9514_vm2, %v22817_v46, -inf }
 0xab1   : > { %v17977_v21 = vpop.f32.mrf.mxu1  ;;  %12738 = vmax.xlane.f32.xlu0 %v12737_v11  ;;  %v12228_v34 = vpop.f32.mrf.mxu0 }
 0xab2   : > { %v12740_v36 = vsel %vm9514_vm2, %v22820_v37, -inf }
 0xab3   : > { %12741 = vmax.xlane.f32.xlu1 %v12740_v36  ;;  %v17972_v31 = vpop.f32.mrf.mxu0  ;;  %v12274_v52 = vpop.f32.mrf.mxu1 }
 0xab5   : > { %v17978_v23 = vpop.f32.mrf.mxu1  ;;  %v12317_v55 = vpop.f32.mrf.mxu0 }
 0xab7   : > { %v17983_v56 = vpop.f32.mrf.mxu0  ;;  %v12363_v43 = vpop.f32.mrf.mxu1 }
 0xab9   : > { %v12320_v45 = vpop.f32.mrf.mxu0  ;;  %v17989_v29 = vpop.f32.mrf.mxu1 }
 0xabb   : > { %v17984_v27 = vpop.f32.mrf.mxu0  ;;  %v12366_v4 = vpop.f32.mrf.mxu1 }
 0xabd   : > { %v17990_v8 = vpop.f32.mrf.mxu1  ;;  %v12409_v62 = vpop.f32.mrf.mxu0 }
 0xabf   : > { %v17995_v50 = vpop.f32.mrf.mxu0  ;;  %v12455_v38 = vpop.f32.mrf.mxu1 }
 0xac1   : > { %v12412_v39 = vpop.f32.mrf.mxu0  ;;  %v18001_v18 = vpop.f32.mrf.mxu1 }
 0xac3   : > { %v17996_v6 = vpop.f32.mrf.mxu0  ;;  %v12458_v15 = vpop.f32.mrf.mxu1 }
 0xac4   : > { %11571 = vrot.lane.b32.xlu1 %v22041_v61, %s20649_s3 }
 0xac5   : > { %v18002_v32 = vpop.f32.mrf.mxu1  ;;  %v12501_v11 = vpop.f32.mrf.mxu0 }
 0xac7   : > { %11568 = vrot.lane.b32.xlu0 %v22036_v0, %s20649_s3  ;;  %v18007_v21 = vpop.f32.mrf.mxu0  ;;  %v12547_v34 = vpop.f32.mrf.mxu1 }
 0xac9   : > { %v12504_v36 = vpop.f32.mrf.mxu0  ;;  %v18013_v31 = vpop.f32.mrf.mxu1 }
 0xacb   : > { %v18008_v52 = vpop.f32.mrf.mxu0  ;;  %v12550_v23 = vpop.f32.mrf.mxu1 }
 0xacd   : > { %v18014_v56 = vpop.f32.mrf.mxu1  ;;  %v12593_v45 = vpop.f32.mrf.mxu0 }
 0xacf   : > { %v18019_v29 = vpop.f32.mrf.mxu0  ;;  %v12639_v27 = vpop.f32.mrf.mxu1 }
 0xad1   : > { %v12596_v4 = vpop.f32.mrf.mxu0  ;;  %v18025_v8 = vpop.f32.mrf.mxu1 }
 0xad2   : > { %v22837_v4 = vadd.f32 %v22814_v2, %v12317_v55  ;;  %v22840_v8 = vadd.f32 %v22814_v2, %v12363_v43  ;;  %v22853_v55 = vadd.f32 %v22814_v2, %v12455_v38 }
 0xad3   : > { %v18020_v50 = vpop.f32.mrf.mxu0  ;;  %v12642_v39 = vpop.f32.mrf.mxu1 }
 0xad4   : > { %v22843_v50 = vadd.f32 %v22814_v2, %v12409_v62  ;;  %v12743_v39 = vsel %vm9514_vm2, %v22837_v4, -inf  ;;  %v22858_v62 = vadd.f32 %v22814_v2, %v12593_v45 }
 0xad5   : > { %v18026_v18 = vpop.f32.mrf.mxu1  ;;  %v12685_v6 = vpop.f32.mrf.mxu0 }
 0xad6   : > { %v22831_v15 = vadd.f32 %v22814_v2, %v12685_v6  ;;  %v22848_v18 = vadd.f32 %v22814_v2, %v12501_v11  ;;  %v12746_v6 = vsel %vm9514_vm2, %v22840_v8, -inf  ;;  %v12749_v43 = vsel %vm9514_vm2, %v22843_v50, -inf }
 0xad7   : > { %v18031_v32 = vpop.f32.mrf.mxu0  ;;  %v12731_v21 = vpop.f32.mrf.mxu1  ;;  %v22863_v11 = vadd.f32 %v22814_v2, %v12547_v34  ;;  %v12761_v38 = vsel %vm9514_vm2, %v22858_v62, -inf }
 0xad8   : > { %v22834_v36 = vadd.f32 %v22814_v2, %v12731_v21  ;;  %v12755_v32 = vsel %vm9514_vm2, %v22848_v18, -inf  ;;  %v12752_v21 = vsel %vm9514_vm2, %v22853_v55, -inf  ;;  %v12767_v34 = vsel %vm9514_vm2, %v22831_v15, -inf }
 0xad9   : > { %v12688_v31 = vpop.f32.mrf.mxu0  ;;  %v18037_v52 = vpop.f32.mrf.mxu1  ;;  %v12758_v45 = vsel %vm9514_vm2, %v22863_v11, -inf }
 0xada   : > { %v22870_v31 = vadd.f32 %v22814_v2, %v12639_v27  ;;  %v9587_v2 = vsel %vm9514_vm2, %v22477_v22, 0.0  ;;  %v12770_v27 = vsel %vm9514_vm2, %v22834_v36, -inf }
 0xadb   : > { %v18032_v23 = vpop.f32.mrf.mxu0  ;;  %v12734_v56 = vpop.f32.mrf.mxu1 }
 0xadc   : > { %v12764_v52 = vsel %vm9514_vm2, %v22870_v31, -inf  ;;  %v9593_v23 = vsel %vm9514_vm2, %v22516_v59, 0.0  ;;  %v9590_v56 = vsel %vm9514_vm2, %v22492_v53, 0.0 }
 0xadd   : > { %v18038_v29 = vpop.f32.mrf.mxu1 }
 0xade   : > { %v9596_v29 = vsel %vm9514_vm2, %v22541_v51, 0.0 }
 0xae6   : > { %12744 = vmax.xlane.f32.xlu0 %v12743_v39  ;;  %v11563_v39 = vpop.permute.xlu0 %11562 }
 0xae7   : > { %v11581_v59 = vpack.i.b16 %v11563_v39, %v22003_v17  ;;  %v11584_v53 = vshrl.u32 %v11563_v39, 16 }
 0xae8   : > { %12747 = vmax.xlane.f32.xlu1 %v12746_v6  ;;  %v11566_v6 = vpop.permute.xlu1 %11565 }
 0xaea   : > { %12750 = vmax.xlane.f32.xlu0 %v12749_v43 }
 0xaec   : > { %12756 = vmax.xlane.f32.xlu1 %v12755_v32 }
 0xaee   : > { %12753 = vmax.xlane.f32.xlu0 %v12752_v21 }
 0xaf0   : > { %12762 = vmax.xlane.f32.xlu1 %v12761_v38 }
 0xaf2   : > { %12759 = vmax.xlane.f32.xlu0 %v12758_v45  ;;  %v11599_v45 = vshrl.u32 %v22036_v0, 16 }
 0xaf6   : > { %12765 = vmax.xlane.f32.xlu0 %v12764_v52 }
 0xb01   : > { %11574 = vrot.lane.b32.xlu1 %v22364_v5, %s20649_s3 }
 0xb0c   : > { %11577 = vrot.lane.b32.xlu0 %v22370_v35, %s20649_s3 }
 0xb25   : > { %12768 = vmax.xlane.f32.xlu1 %v12767_v34 }
 0xb29   : > { %9588 = vadd.xlane.f32.xlu1 %v9587_v2 }
 0xb2b   : > { %12771 = vmax.xlane.f32.xlu0 %v12770_v27  ;;  %v11583_v27 = vshrl.u32 %v22003_v17, 16 }
 0xb2d   : > { %9594 = vadd.xlane.f32.xlu1 %v9593_v23  ;;  %v11591_v23 = vshrl.u32 %v22005_v63, 16 }
 0xb2f   : > { %9591 = vadd.xlane.f32.xlu0 %v9590_v56  ;;  %v11592_v56 = vshrl.u32 %v11566_v6, 16 }
 0xb33   : > { %9597 = vadd.xlane.f32.xlu0 %v9596_v29 }
 0xb3a   : > { %v12739_v22 = vpop.xlane.xlu0 %12738 }
 0xb3b   : > { %v12773_v43 = vsub.f32 %v22817_v46, %v12739_v22 }
 0xb3c   : > { %v12742_v32 = vpop.xlane.xlu1 %12741 }
 0xb3d   : > { %v12785_v21 = vmul.f32 1.442695, %v12773_v43  ;;  %v12774_v38 = vsub.f32 %v22820_v37, %v12742_v32  ;;  %v11589_v43 = vpack.i.b16 %v11566_v6, %v22005_v63  ;;  %v11607_v32 = vshrl.u32 %v22041_v61, 16 }
 0xb3e   : > { %v11569_v52 = vpop.permute.xlu0 %11568 }
 0xb3f   : > { %v12787_v34 = vmul.f32 1.442695, %v12774_v38  ;;  %v11597_v2 = vpack.i.b16 %v11569_v52, %v22036_v0  ;;  %v11600_v51 = vshrl.u32 %v11569_v52, 16  ;;  %20103 = vpow2.f32 %v12785_v21 }
 0xb40   : > { %v11572_v46 = vpop.permute.xlu1 %11571  ;;  %v11585_v0 = vpack.i.b16 %v11584_v53, %v11583_v27  ;;  %v11593_v52 = vpack.i.b16 %v11592_v56, %v11591_v23 }
 0xb41   : > { %20105 = vpow2.f32 %v12787_v34  ;;  %v11601_v29 = vpack.i.b16 %v11600_v51, %v11599_v45  ;;  %v11627_v37 = vcombine.low %v11581_v59, %v11597_v2  ;;  %v11628_v22 = vcombine.high %v11581_v59, %v11597_v2 }
 0xb42   : > { %v11605_v39 = vpack.i.b16 %v11572_v46, %v22041_v61  ;;  %v11608_v38 = vshrl.u32 %v11572_v46, 16 }
 0xb43   : > { %v11635_v47 = vrot.slane %v11627_v37, %v23705_v49  ;;  %v11642_v21 = vrot.slane %v11628_v22, %v23705_v49  ;;  %v11761_v34 = vcombine.low %v11585_v0, %v11601_v29  ;;  %v11762_v45 = vcombine.high %v11585_v0, %v11601_v29 }
 0xb44   : > { %v11609_v20 = vpack.i.b16 %v11608_v38, %v11607_v32  ;;  %v11643_v17 = vcombine.low %v11589_v43, %v11605_v39  ;;  %v11644_v19 = vcombine.high %v11589_v43, %v11605_v39 }
 0xb45   : > { %v11769_v27 = vrot.slane %v11761_v34, %v23705_v49  ;;  %v11776_v23 = vrot.slane %v11762_v45, %v23705_v49 }
 0xb46   : > { %v11651_v59 = vrot.slane %v11643_v17, %v23705_v49  ;;  %v11658_v63 = vrot.slane %v11644_v19, %v23705_v49  ;;  %v11777_v6 = vcombine.low %v11593_v52, %v11609_v20  ;;  %v11778_v2 = vcombine.high %v11593_v52, %v11609_v20 }
 0xb48   : > { %v11689_v51 = vcombine.low %v11635_v47, %v11651_v59  ;;  %v11690_v61 = vcombine.high %v11635_v47, %v11651_v59  ;;  %v11705_v46 = vcombine.low %v11642_v21, %v11658_v63  ;;  %v11706_v53 = vcombine.high %v11642_v21, %v11658_v63 }
 0xb49   : > { %v11785_v56 = vrot.slane %v11777_v6, %v23705_v49  ;;  %v11792_v37 = vrot.slane %v11778_v2, %v23705_v49 }
 0xb4a   : > { %v11697_v29 = vrot.slane %v11689_v51, %v21546_v3  ;;  %v11704_v22 = vrot.slane %v11690_v61, %v21546_v3  ;;  %v11713_v19 = vrot.slane %v11705_v46, %v21546_v3  ;;  %v11720_v20 = vrot.slane %v11706_v53, %v21546_v3 }
 0xb4b   : > { %v11823_v43 = vcombine.low %v11769_v27, %v11785_v56  ;;  %v11824_v47 = vcombine.high %v11769_v27, %v11785_v56  ;;  %v11839_v32 = vcombine.low %v11776_v23, %v11792_v37  ;;  %v11840_v39 = vcombine.high %v11776_v23, %v11792_v37 }
 0xb4c   : > { %v17382_v38 = vcombine.low %v11697_v29, %v11704_v22  ;;  %v17384_v0 = vcombine.high %v11697_v29, %v11704_v22  ;;  %v17386_v52 = vcombine.low %v11713_v19, %v11720_v20  ;;  %v17388_v17 = vcombine.high %v11713_v19, %v11720_v20  ;;  %v20104_v21 = vpop.eup %20103 }
 0xb4d   : > { %v11831_v34 = vrot.slane %v11823_v43, %v21546_v3  ;;  %v11838_v45 = vrot.slane %v11824_v47, %v21546_v3  ;;  %v11847_v59 = vrot.slane %v11839_v32, %v21546_v3  ;;  %v11854_v6 = vrot.slane %v11840_v39, %v21546_v3 }
 0xb4e   : > { %v20106_v63 = vpop.eup %20105  ;;  %v22919_v2 = vrot.slane %v17382_v38, %v23705_v49  ;;  %v22922_v51 = vrot.slane %v17384_v0, %v23705_v49  ;;  %v22925_v61 = vrot.slane %v17386_v52, %v23705_v49  ;;  %v22928_v46 = vrot.slane %v17388_v17, %v23705_v49 }
 0xb4f   : > { %v17390_v53 = vcombine.low %v11831_v34, %v11838_v45  ;;  %v17392_v27 = vcombine.high %v11831_v34, %v11838_v45  ;;  %v17394_v23 = vcombine.low %v11847_v59, %v11854_v6  ;;  %v17396_v56 = vcombine.high %v11847_v59, %v11854_v6 }
 0xb50   : > { %v12809_v37 = vsel %vm9514_vm2, %v20104_v21, 0.0  ;;  %v12812_v29 = vsel %vm9514_vm2, %v20106_v63, 0.0  ;;  %v11959_v22 = vcombine.low %v22919_v2, %v22922_v51  ;;  %v11983_v19 = vcombine.low %v22925_v61, %v22928_v46 }
 0xb51   : > { %12810 = vadd.xlane.f32.xlu1 %v12809_v37  ;;  %12813 = vadd.xlane.f32.xlu0 %v12812_v29  ;;  %v12021_v20 = vrot.slane %v17390_v53, %v23705_v49  ;;  %v12037_v43 = vrot.slane %v17392_v27, %v23705_v49  ;;  %v12053_v47 = vrot.slane %v17394_v23, %v23705_v49 }
 0xb52   : > { %v12069_v32 = vrot.slane %v17396_v56, %v23705_v49  ;;  %v11967_v39 = vrot.slane %v11959_v22, %v21546_v3  ;;  %v11991_v38 = vrot.slane %v11983_v19, %v21546_v3  ;;  %v12845_v44 = vpack.c.bf16 %v20104_v21, %v20104_v21 }
 0xb53   : > { %v12077_v0 = vcombine.low %v12021_v20, %v12037_v43  ;;  %v12846_v28 = vpack.c.bf16 %v20106_v63, %v20106_v63 }
 0xb54   : > { %v12101_v52 = vcombine.low %v12053_v47, %v12069_v32  ;;  %v12007_v17 = vcombine.low %v11967_v39, %v11991_v38  ;;  %v12008_v29 = vcombine.high %v11967_v39, %v11991_v38 }
 0xb55   : > { %v12085_v34 = vrot.slane %v12077_v0, %v21546_v3 }
 0xb56   : > { %v12109_v45 = vrot.slane %v12101_v52, %v21546_v3  ;;  %v12135_v37 = vshrl.u32 %v12007_v17, 16  ;;  %v12143_v19 = vshrl.u32 %v12008_v29, 16 }
 0xb58   : > { %v12125_v59 = vcombine.low %v12085_v34, %v12109_v45  ;;  %v12126_v6 = vcombine.high %v12085_v34, %v12109_v45  ;;  %v12102_v45 = vcombine.high %v12053_v47, %v12069_v32 }
 0xb5a   : > { %v12133_v53 = vpack.i.b16 %v12125_v59, %v12007_v17  ;;  %v12136_v27 = vshrl.u32 %v12125_v59, 16  ;;  %v12144_v56 = vshrl.u32 %v12126_v6, 16  ;;  %v12141_v22 = vpack.i.b16 %v12126_v6, %v12008_v29 }
 0xb5b   : > { %v12078_v17 = vcombine.high %v12021_v20, %v12037_v43  ;;  %v12116_v43 = vrot.slane %v12102_v45, %v21546_v3 }
 0xb5c   : > { %18040 = vmatpush3.bf16.msra.mxu0 %v12133_v53  ;;  %v12137_v23 = vpack.i.b16 %v12136_v27, %v12135_v37  ;;  %v12145_v0 = vpack.i.b16 %v12144_v56, %v12143_v19  ;;  %v11960_v53 = vcombine.high %v22919_v2, %v22922_v51 }
 0xb5d   : > { %18051 = vmatprep.subr.bf16.mxu0 %v23779_v24  ;;  %v12092_v20 = vrot.slane %v12078_v17, %v21546_v3 }
 0xb5e   : > { %18046 = vmatpush3.bf16.msra.mxu1 %v12137_v23  ;;  %v11974_v32 = vrot.slane %v11960_v53, %v21546_v3 }
 0xb5f   : > { %18042 = vmatmul.mubr.msk.bf16.vlgmr.msra.gmra.mxu0 %vm9514_vm2, %v12845_v44  ;;  %18057 = vmatprep.subr.bf16.mxu1 %v23779_v24  ;;  %v12127_v23 = vcombine.low %v12092_v20, %v12116_v43  ;;  %v22968_v56 = vcombine.high %v12092_v20, %v12116_v43 }
 0xb60   : > { %18052 = vmatpush3.bf16.msra.mxu0 %v12141_v22  ;;  %18053 = vmatprep.mubr.msk.bf16.mxu0 %vm20653_vm1, %v23779_v24  ;;  %v11615_v22 = vshrl.u32 %v22364_v5, 16 }
 0xb61   : > { %18048 = vmatmul.mubr.msk.bf16.vlgmr.msra.gmra.mxu1 %vm9514_vm2, %v12846_v28  ;;  %18063 = vmatprep.subr.bf16.mxu0 %v23779_v24 }
 0xb62   : > { %18058 = vmatpush3.bf16.msra.mxu1 %v12145_v0  ;;  %18059 = vmatprep.mubr.msk.bf16.mxu1 %vm20653_vm1, %v23779_v24 }
 0xb63   : > { %18069 = vmatprep.subr.bf16.mxu1 %v23779_v24 }
 0xb6f   : > { %v12745_v21 = vpop.xlane.xlu0 %12744 }
 0xb70   : > { %v12775_v44 = vsub.f32 %v22837_v4, %v12745_v21  ;;  %v11984_v4 = vcombine.high %v22925_v61, %v22928_v46  ;;  %v11623_v21 = vshrl.u32 %v22370_v35, 16 }
 0xb71   : > { %v12748_v63 = vpop.xlane.xlu1 %12747 }
 0xb72   : > { %v12789_v39 = vmul.f32 1.442695, %v12775_v44  ;;  %v12776_v38 = vsub.f32 %v22840_v8, %v12748_v63  ;;  %v11998_v29 = vrot.slane %v11984_v4, %v21546_v3  ;;  %v12152_v63 = vshrl.u32 %v12127_v23, 16 }
 0xb73   : > { %v12751_v52 = vpop.xlane.xlu0 %12750 }
 0xb74   : > { %20107 = vpow2.f32 %v12789_v39  ;;  %v12791_v34 = vmul.f32 1.442695, %v12776_v38  ;;  %v12777_v28 = vsub.f32 %v22843_v50, %v12751_v52  ;;  %v22975_v44 = vcombine.high %v11974_v32, %v11998_v29 }
 0xb75   : > { %v12757_v59 = vpop.xlane.xlu1 %12756  ;;  %v9602_v39 = vsel %vm9514_vm2, %v22555_v48, 0.0 }
 0xb76   : > { %20109 = vpow2.f32 %v12791_v34  ;;  %v12793_v6 = vmul.f32 1.442695, %v12777_v28  ;;  %v12779_v27 = vsub.f32 %v22848_v18, %v12757_v59 }
 0xb77   : > { %v12754_v37 = vpop.xlane.xlu0 %12753 }
 0xb78   : > { %v12778_v8 = vsub.f32 %v22853_v55, %v12754_v37  ;;  %20111 = vpow2.f32 %v12793_v6  ;;  %v12797_v51 = vmul.f32 1.442695, %v12779_v27  ;;  %v12009_v55 = vcombine.low %v11974_v32, %v11998_v29 }
 0xb79   : > { %v12763_v50 = vpop.xlane.xlu1 %12762  ;;  %v12157_v6 = vpack.i.b16 %v22968_v56, %v22975_v44  ;;  %v12160_v37 = vshrl.u32 %v22968_v56, 16 }
 0xb7a   : > { %v12795_v47 = vmul.f32 1.442695, %v12778_v8  ;;  %v12781_v52 = vsub.f32 %v22858_v62, %v12763_v50  ;;  %v12149_v45 = vpack.i.b16 %v12127_v23, %v12009_v55  ;;  %v12151_v59 = vshrl.u32 %v12009_v55, 16 }
 0xb7b   : > { %v12760_v2 = vpop.xlane.xlu0 %12759  ;;  %v12159_v62 = vshrl.u32 %v22975_v44, 16 }
 0xb7c   : > { %v12780_v61 = vsub.f32 %v22863_v11, %v12760_v2  ;;  %20113 = vpow2.f32 %v12795_v47  ;;  %v9599_v11 = vsel %vm9514_vm2, %v22506_v58, 0.0  ;;  %v12153_v20 = vpack.i.b16 %v12152_v63, %v12151_v59 }
 0xb7d   : > { %v11575_v46 = vpop.permute.xlu1 %11574  ;;  %20115 = vpow2.f32 %v12797_v51  ;;  %v12801_v43 = vmul.f32 1.442695, %v12781_v52 }
 0xb7e   : > { %v11616_v18 = vshrl.u32 %v11575_v46, 16  ;;  %v11613_v19 = vpack.i.b16 %v11575_v46, %v22364_v5  ;;  %v12799_v17 = vmul.f32 1.442695, %v12780_v61  ;;  %v22984_v5 = vsel %vm9514_vm2, %v22533_v13, 0.0 }
 0xb7f   : > { %v22972_v0 = vpop.xlane.xlu0 %12765  ;;  %v9608_v46 = vsel %vm9514_vm2, %v22564_v16, 0.0 }
 0xb80   : > { %v11617_v34 = vpack.i.b16 %v11616_v18, %v11615_v22  ;;  %v11659_v58 = vcombine.high %v11613_v19, %v22147_v10  ;;  %20117 = vpow2.f32 %v12799_v17  ;;  %v11666_v32 = vrot.slane %v11613_v19, %v23705_v49 }
 0xb81   : > { %v20108_v38 = vpop.eup %20107  ;;  %v12782_v61 = vsub.f32 %v22870_v31, %v22972_v0  ;;  %v12161_v18 = vpack.i.b16 %v12160_v37, %v12159_v62  ;;  %20119 = vpow2.f32 %v12801_v43 }
 0xb82   : > { %v12847_v28 = vpack.c.bf16 %v20108_v38, %v20108_v38  ;;  %v12815_v48 = vsel %vm9514_vm2, %v20108_v38, 0.0  ;;  %v11793_v50 = vcombine.high %v11617_v34, %v22147_v10  ;;  %v11673_v23 = vrot.slane %v11659_v58, %v23705_v49 }
 0xb83   : > { %v20110_v53 = vpop.eup %20109  ;;  %v11578_v4 = vpop.permute.xlu0 %11577  ;;  %12816 = vadd.xlane.f32.xlu1 %v12815_v48  ;;  %v11800_v55 = vrot.slane %v11617_v34, %v23705_v49 }
 0xb84   : > { %v12848_v27 = vpack.c.bf16 %v20110_v53, %v20110_v53  ;;  %v11621_v13 = vpack.i.b16 %v11578_v4, %v22370_v35  ;;  %v11624_v8 = vshrl.u32 %v11578_v4, 16  ;;  %18054 = vmatmul.mubr.msk.bf16.vlgmr.msra.gmra.mxu0 %vm9514_vm2, %v12847_v28  ;;  %v12818_v47 = vsel %vm9514_vm2, %v20110_v53, 0.0 }
 0xb85   : > { %18064 = vmatpush3.bf16.msra.mxu0 %v12149_v45  ;;  %18065 = vmatprep.mubr.msk.bf16.mxu0 %vm20653_vm1, %v23779_v24  ;;  %v23001_v51 = vpop.eup %20111  ;;  %v11807_v63 = vrot.slane %v11793_v50, %v23705_v49 }
 0xb86   : > { %v11625_v29 = vpack.i.b16 %v11624_v8, %v11623_v21  ;;  %v11674_v35 = vcombine.high %v11621_v13, %v22147_v10  ;;  %v11681_v2 = vrot.slane %v11621_v13, %v23705_v49  ;;  %12819 = vadd.xlane.f32.xlu0 %v12818_v47  ;;  %18060 = vmatmul.mubr.msk.bf16.vlgmr.msra.gmra.mxu1 %vm9514_vm2, %v12848_v27 }
 0xb87   : > { %18075 = vmatprep.subr.bf16.mxu0 %v23779_v24  ;;  %18070 = vmatpush3.bf16.msra.mxu1 %v12153_v20  ;;  %v12849_v16 = vpack.c.bf16 %v23001_v51, %v23001_v51 }
 0xb88   : > { %v11688_v22 = vrot.slane %v11674_v35, %v23705_v49  ;;  %v11721_v19 = vcombine.low %v11666_v32, %v11681_v2  ;;  %v11722_v21 = vcombine.high %v11666_v32, %v11681_v2  ;;  %v11808_v31 = vcombine.high %v11625_v29, %v22147_v10  ;;  %9600 = vadd.xlane.f32.xlu1 %v9599_v11 }
 0xb89   : > { %v11815_v0 = vrot.slane %v11625_v29, %v23705_v49  ;;  %18071 = vmatprep.mubr.msk.bf16.mxu1 %vm20653_vm1, %v23779_v24  ;;  %v20114_v34 = vpop.eup %20113  ;;  %18081 = vmatprep.subr.bf16.mxu1 %v23779_v24  ;;  %v12803_v11 = vmul.f32 1.442695, %v12782_v61 }
 0xb8a   : > { %v11729_v38 = vrot.slane %v11721_v19, %v21546_v3  ;;  %v11736_v52 = vrot.slane %v11722_v21, %v21546_v3  ;;  %v11737_v17 = vcombine.low %v11673_v23, %v11688_v22  ;;  %9603 = vadd.xlane.f32.xlu0 %v9602_v39  ;;  %v11738_v28 = vcombine.high %v11673_v23, %v11688_v22  ;;  %v20116_v48 = vpop.eup %20115 }
 0xb8b   : > { %v11822_v45 = vrot.slane %v11808_v31, %v23705_v49  ;;  %v11855_v10 = vcombine.low %v11800_v55, %v11815_v0  ;;  %v11856_v59 = vcombine.high %v11800_v55, %v11815_v0  ;;  %v12850_v13 = vpack.c.bf16 %v20114_v34, %v20114_v34 }
 0xb8c   : > { %v11745_v53 = vrot.slane %v11737_v17, %v21546_v3  ;;  %v17383_v58 = vcombine.low %v11729_v38, %v11736_v52  ;;  %v17385_v4 = vcombine.high %v11729_v38, %v11736_v52  ;;  %18066 = vmatmul.mubr.msk.bf16.vlgmr.msra.gmra.mxu0 %vm9514_vm2, %v12849_v16  ;;  %v11752_v62 = vrot.slane %v11738_v28, %v21546_v3 }
 0xb8d   : > { %v11863_v39 = vrot.slane %v11855_v10, %v21546_v3  ;;  %v11870_v37 = vrot.slane %v11856_v59, %v21546_v3  ;;  %v11871_v27 = vcombine.low %v11807_v63, %v11822_v45  ;;  %9606 = vadd.xlane.f32.xlu1 %v22984_v5  ;;  %v11872_v8 = vcombine.high %v11807_v63, %v11822_v45  ;;  %v20118_v61 = vpop.eup %20117 }
 0xb8e   : > { %v11910_v20 = vrot.slane %v17383_v58, %v23705_v49  ;;  %v11926_v43 = vrot.slane %v17385_v4, %v23705_v49  ;;  %18076 = vmatpush3.bf16.msra.mxu0 %v12157_v6  ;;  %v17387_v47 = vcombine.low %v11745_v53, %v11752_v62  ;;  %v17389_v32 = vcombine.high %v11745_v53, %v11752_v62  ;;  %v23059_v16 = vpop.eup %20119 }
 0xb8f   : > { %v11879_v50 = vrot.slane %v11871_v27, %v21546_v3  ;;  %v17391_v29 = vcombine.low %v11863_v39, %v11870_v37  ;;  %9609 = vadd.xlane.f32.xlu0 %v9608_v46  ;;  %v12851_v35 = vpack.c.bf16 %v20116_v48, %v20116_v48  ;;  %v11886_v2 = vrot.slane %v11872_v8, %v21546_v3 }
 0xb90   : > { %v17393_v5 = vcombine.high %v11863_v39, %v11870_v37  ;;  %18072 = vmatmul.mubr.msk.bf16.vlgmr.msra.gmra.mxu1 %vm9514_vm2, %v12850_v13  ;;  %v9611_v23 = vsel %vm9514_vm2, %v22612_v26, 0.0  ;;  %18077 = vmatprep.mubr.msk.bf16.mxu0 %vm20653_vm1, %v23779_v24  ;;  %20121 = vpow2.f32 %v12803_v11  ;;  %v11942_v56 = vrot.slane %v17387_v47, %v23705_v49 }
 0xb91   : > { %v11958_v44 = vrot.slane %v17389_v32, %v23705_v49  ;;  %v12028_v6 = vrot.slane %v17391_v29, %v23705_v49  ;;  %18082 = vmatpush3.bf16.msra.mxu1 %v12161_v18  ;;  %9612 = vadd.xlane.f32.xlu1 %v9611_v23  ;;  %v17395_v55 = vcombine.low %v11879_v50, %v11886_v2  ;;  %v9614_v26 = vsel %vm9514_vm2, %v22578_v14, 0.0 }
 0xb92   : > { %v12044_v46 = vrot.slane %v17393_v5, %v23705_v49  ;;  %v17397_v22 = vcombine.high %v11879_v50, %v11886_v2  ;;  %18083 = vmatprep.mubr.msk.bf16.mxu1 %vm20653_vm1, %v23779_v24  ;;  %18087 = vmatprep.subr.bf16.mxu0 %v23779_v24  ;;  %v11975_v19 = vcombine.low %v11910_v20, %v11926_v43  ;;  %v12821_v18 = vsel %vm9514_vm2, %v23001_v51, 0.0 }
 0xb93   : > { %9615 = vadd.xlane.f32.xlu0 %v9614_v26  ;;  %v11999_v21 = vcombine.low %v11942_v56, %v11958_v44  ;;  %18093 = vmatprep.subr.bf16.mxu1 %v23779_v24  ;;  %v12060_v63 = vrot.slane %v17395_v55, %v23705_v49  ;;  %v12852_v38 = vpack.c.bf16 %v20118_v61, %v20118_v61  ;;  %v12824_v52 = vsel %vm9514_vm2, %v20114_v34, 0.0 }
 0xb94   : > { %18078 = vmatmul.mubr.msk.bf16.vlgmr.msra.gmra.mxu0 %vm9514_vm2, %v12851_v35  ;;  %v12076_v31 = vrot.slane %v17397_v22, %v23705_v49  ;;  %v12093_v14 = vcombine.low %v12028_v6, %v12044_v46  ;;  %v11982_v51 = vrot.slane %v11975_v19, %v21546_v3  ;;  %v12827_v28 = vsel %vm9514_vm2, %v20116_v48, 0.0 }
 0xb95   : > { %12822 = vadd.xlane.f32.xlu1 %v12821_v18  ;;  %v12006_v0 = vrot.slane %v11999_v21, %v21546_v3  ;;  %18089 = vmatprep.mubr.msk.bf16.mxu0 %vm20653_vm1, %v23779_v24  ;;  %v12830_v11 = vsel %vm9514_vm2, %v20118_v61, 0.0  ;;  %v9620_v48 = vsel %vm9514_vm2, %v22599_v7, 0.0  ;;  %v12853_v8 = vpack.c.bf16 %v23059_v16, %v23059_v16 }
 0xb96   : > { %v12117_v17 = vcombine.low %v12060_v63, %v12076_v31  ;;  %v12100_v10 = vrot.slane %v12093_v14, %v21546_v3 }
 0xb97   : > { %12825 = vadd.xlane.f32.xlu0 %v12824_v52  ;;  %v12011_v45 = vcombine.low %v11982_v51, %v12006_v0  ;;  %v12012_v39 = vcombine.high %v11982_v51, %v12006_v0 }
 0xb98   : > { %18084 = vmatmul.mubr.msk.bf16.vlgmr.msra.gmra.mxu1 %vm9514_vm2, %v12852_v38  ;;  %v12124_v59 = vrot.slane %v12117_v17, %v21546_v3 }
 0xb99   : > { %12828 = vadd.xlane.f32.xlu1 %v12827_v28  ;;  %18095 = vmatprep.mubr.msk.bf16.mxu1 %vm20653_vm1, %v23779_v24  ;;  %v12167_v4 = vshrl.u32 %v12011_v45, 16  ;;  %v12175_v43 = vshrl.u32 %v12012_v39, 16 }
 0xb9a   : > { %v12129_v34 = vcombine.low %v12100_v10, %v12124_v59  ;;  %v12130_v53 = vcombine.high %v12100_v10, %v12124_v59 }
 0xb9b   : > { %12831 = vadd.xlane.f32.xlu0 %v12830_v11 }
 0xb9c   : > { %v12165_v58 = vpack.i.b16 %v12129_v34, %v12011_v45  ;;  %v12168_v62 = vshrl.u32 %v12129_v34, 16  ;;  %v12176_v13 = vshrl.u32 %v12130_v53, 16  ;;  %v12173_v20 = vpack.i.b16 %v12130_v53, %v12012_v39 }
 0xb9d   : > { %v23070_v37 = vpop.eup %20121 }
 0xb9e   : > { %18088 = vmatpush3.bf16.msra.mxu0 %v12165_v58  ;;  %v12169_v27 = vpack.i.b16 %v12168_v62, %v12167_v4  ;;  %v12854_v50 = vpack.c.bf16 %v23070_v37, %v23070_v37  ;;  %v12177_v7 = vpack.i.b16 %v12176_v13, %v12175_v43 }
 0xb9f   : > { %9621 = vadd.xlane.f32.xlu0 %v9620_v48  ;;  %18099 = vmatprep.subr.bf16.mxu0 %v23779_v24 }
 0xba0   : > { %18094 = vmatpush3.bf16.msra.mxu1 %v12169_v27 }
 0xba1   : > { %18090 = vmatmul.mubr.msk.bf16.vlgmr.msra.gmra.mxu0 %vm9514_vm2, %v12853_v8  ;;  %18105 = vmatprep.subr.bf16.mxu1 %v23779_v24 }
 0xba2   : > { %18100 = vmatpush3.bf16.msra.mxu0 %v12173_v20  ;;  %18101 = vmatprep.mubr.msk.bf16.mxu0 %vm20653_vm1, %v23779_v24 }
 0xba3   : > { %18096 = vmatmul.mubr.msk.bf16.vlgmr.msra.gmra.mxu1 %vm9514_vm2, %v12854_v50 }
 0xba4   : > { %18106 = vmatpush3.bf16.msra.mxu1 %v12177_v7  ;;  %18107 = vmatprep.mubr.msk.bf16.mxu1 %vm20653_vm1, %v23779_v24 }
 0xbae   : > { %v12769_v47 = vpop.xlane.xlu1 %12768 }
 0xbaf   : > { %v12783_v32 = vsub.f32 %v22831_v15, %v12769_v47 }
 0xbb1   : > { %v12805_v29 = vmul.f32 1.442695, %v12783_v32 }
 0xbb2   : > { %v9589_v35 = vpop.xlane.xlu1 %9588 }
 0xbb3   : > { %20123 = vpow2.f32 %v12805_v29 }
 0xbb4   : > { %v12772_v2 = vpop.xlane.xlu0 %12771 }
 0xbb5   : > { %v12784_v5 = vsub.f32 %v22834_v36, %v12772_v2  ;;  %v19647_v2 = vld [vmem:[#allocation17 + $0x150] ss:$24 sps:$4 sm:$0xff]  }
 0xbb6   : > { %v9595_v23 = vpop.xlane.xlu1 %9594 }
 0xbb7   : > { %v12807_v56 = vmul.f32 1.442695, %v12784_v5  ;;  %20125 = vrcp.f32 %v9595_v23  ;;  %v19649_v5 = vld [vmem:[#allocation17 + $0x154] ss:$24 sps:$4 sm:$0xff]   ;;  %v19652_v23 = vld [vmem:[#allocation17 + $0x124] ss:$24 sps:$4 sm:$0xff]  }
 0xbb8   : > { %20127 = vrcp.f32 %v9589_v35  ;;  %v9592_v44 = vpop.xlane.xlu0 %9591  ;;  %15601 = vmatprep.subr.bf16.mxu0 %v19649_v5 }
 0xbb9   : > { %20129 = vpow2.f32 %v12807_v56  ;;  %v19650_v56 = vld [vmem:[#allocation17 + $0x120] ss:$24 sps:$4 sm:$0xff]  }
 0xbba   : > { %20131 = vrcp.f32 %v9592_v44  ;;  %v19655_v44 = vld [vmem:[#allocation17 + $0xf4] ss:$24 sps:$4 sm:$0xff]  }
 0xbbc   : > { %v9598_v6 = vpop.xlane.xlu0 %9597 }
 0xbbd   : > { %20133 = vrcp.f32 %v9598_v6  ;;  %v19653_v6 = vld [vmem:[#allocation17 + $0xf0] ss:$24 sps:$4 sm:$0xff]  }
 0xbc0   : > { %v23088_v61 = vpop.eup %20123 }
 0xbc1   : > { %v12855_v24 = vpack.c.bf16 %v23088_v61, %v23088_v61 }
 0xbc3   : > { %18102 = vmatmul.mubr.msk.bf16.vlgmr.msra.gmra.mxu0 %vm9514_vm2, %v12855_v24  ;;  %v19658_v24 = vld [vmem:[#allocation17 + $0xc4] ss:$24 sps:$4 sm:$0xff]  }
 0xbc4   : > { %v20126_v15 = vpop.eup %20125  ;;  %15602 = vmatpush1.bf16.xpose.msra.mxu0 %v19647_v2 }
 0xbc5   : > { %v20128_v46 = vpop.eup %20127  ;;  %v10165_v22 = vmul.f32 %v20126_v15, %v22795_v54  ;;  %15603 = vmatprep.subr.bf16.mxu0 %v19652_v23  ;;  %v19656_v15 = vld [vmem:[#allocation17 + $0xc0] ss:$24 sps:$4 sm:$0xff]  }
 0xbc6   : > { %v23093_v55 = vpop.eup %20129  ;;  %v10163_v19 = vmul.f32 %v20128_v46, %v22789_v40  ;;  %v19661_v46 = vld [vmem:[#allocation17 + $0x94] ss:$24 sps:$4 sm:$0xff]  }
 0xbc7   : > { %v12856_v36 = vpack.c.bf16 %v23093_v55, %v23093_v55  ;;  %v20132_v26 = vpop.eup %20131 }
 0xbc8   : > { %v10175_v18 = vcombine.low %v10163_v19, %v10165_v22  ;;  %v10176_v63 = vcombine.high %v10163_v19, %v10165_v22  ;;  %v10164_v31 = vmul.f32 %v20132_v26, %v22791_v9  ;;  %v19664_v22 = vld [vmem:[#allocation17 + $0x64] ss:$24 sps:$4 sm:$0xff]   ;;  %v19662_v19 = vld [vmem:[#allocation17 + $0x60] ss:$24 sps:$4 sm:$0xff]  }
 0xbc9   : > { %18108 = vmatmul.mubr.msk.bf16.vlgmr.msra.gmra.mxu1 %vm9514_vm2, %v12856_v36  ;;  %v19659_v36 = vld [vmem:[#allocation17 + $0x90] ss:$24 sps:$4 sm:$0xff]  }
 0xbca   : > { %v20134_v21 = vpop.eup %20133  ;;  %v10183_v52 = vrot.slane %v10175_v18, %v23705_v49  ;;  %v10190_v51 = vrot.slane %v10176_v63, %v23705_v49  ;;  %v19667_v18 = vld [vmem:[#allocation17 + $0x34] ss:$24 sps:$4 sm:$0xff]  }
 0xbcb   : > { %v10166_v14 = vmul.f32 %v20134_v21, %v22799_v1 }
 0xbcc   : > { %15604 = vmatpush1.bf16.xpose.msra.mxu0 %v19650_v56 }
 0xbcd   : > { %v10191_v0 = vcombine.low %v10164_v31, %v10166_v14  ;;  %v10192_v38 = vcombine.high %v10164_v31, %v10166_v14  ;;  %15605 = vmatprep.subr.bf16.mxu0 %v19655_v44 }
 0xbcf   : > { %v10199_v54 = vrot.slane %v10191_v0, %v23705_v49  ;;  %v10206_v17 = vrot.slane %v10192_v38, %v23705_v49  ;;  %v19665_v0 = vld [vmem:[#allocation17 + $0x30] ss:$24 sps:$4 sm:$0xff]  }
 0xbd1   : > { %v10239_v40 = vcombine.low %v10183_v52, %v10199_v54  ;;  %v10240_v28 = vcombine.high %v10183_v52, %v10199_v54  ;;  %v10255_v45 = vcombine.low %v10190_v51, %v10206_v17  ;;  %v10256_v10 = vcombine.high %v10190_v51, %v10206_v17  ;;  %v19670_v52 = vld [vmem:[#allocation17 + $0x4] ss:$24 sps:$4 sm:$0xff]   ;;  %v19668_v17 = vld [vmem:[#allocation17] ss:$24 sps:$4 sm:$0xff]  }
 0xbd3   : > { %v10247_v59 = vrot.slane %v10239_v40, %v21546_v3  ;;  %v10254_v9 = vrot.slane %v10240_v28, %v21546_v3  ;;  %v10263_v1 = vrot.slane %v10255_v45, %v21546_v3  ;;  %v10270_v11 = vrot.slane %v10256_v10, %v21546_v3  ;;  %v19673_v40 = vld [vmem:[#allocation17 + $0x2d4] ss:$24 sps:$4 sm:$0xff]   ;;  %v19674_v28 = vld [vmem:[#allocation17 + $0x158] ss:$24 sps:$4 sm:$0xff]  }
 0xbd4   : > { %15606 = vmatpush1.bf16.xpose.msra.mxu0 %v19653_v6  ;;  %v19676_v45 = vld [vmem:[#allocation17 + $0x15c] ss:$24 sps:$4 sm:$0xff]   ;;  %v19682_v10 = vld [vmem:[#allocation17 + $0x12c] ss:$24 sps:$4 sm:$0xff]  }
 0xbd5   : > { %v17356_v34 = vcombine.low %v10247_v59, %v10254_v9  ;;  %v17358_v53 = vcombine.high %v10247_v59, %v10254_v9  ;;  %v17360_v58 = vcombine.low %v10263_v1, %v10270_v11  ;;  %v17362_v4 = vcombine.high %v10263_v1, %v10270_v11  ;;  %15607 = vmatprep.subr.bf16.mxu0 %v19658_v24 }
 0xbd6   : > { %15644 = vmatprep.subr.bf16.mxu1 %v19676_v45 }
 0xbd7   : > { %v10387_v62 = vrot.slane %v17356_v34, %v23705_v49  ;;  %v10403_v39 = vrot.slane %v17358_v53, %v23705_v49  ;;  %v10419_v48 = vrot.slane %v17360_v58, %v23705_v49  ;;  %v10435_v27 = vrot.slane %v17362_v4, %v23705_v49  ;;  %15645 = vmatpush1.bf16.xpose.msra.mxu1 %v19674_v28  ;;  %v19671_v34 = vld [vmem:[#allocation17 + $0x2d0] ss:$24 sps:$4 sm:$0xff]  }
 0xbd8   : > { %15646 = vmatprep.subr.bf16.mxu1 %v19682_v10  ;;  %v19680_v53 = vld [vmem:[#allocation17 + $0x128] ss:$24 sps:$4 sm:$0xff]  }
 0xbd9   : > { %v10444_v13 = vcombine.high %v10387_v62, %v10403_v39  ;;  %v10476_v8 = vcombine.high %v10419_v48, %v10435_v27  ;;  %v10443_v20 = vcombine.low %v10387_v62, %v10403_v39  ;;  %v10475_v43 = vcombine.low %v10419_v48, %v10435_v27  ;;  %v19679_v39 = vld [vmem:[#allocation17 + $0x2a4] ss:$24 sps:$4 sm:$0xff]  }
 0xbda   : > { %v23130_v26 = vpop.xlane.xlu1 %12810  ;;  %v23132_v21 = vpop.xlane.xlu0 %12813  ;;  %v19688_v48 = vld [vmem:[#allocation17 + $0xfc] ss:$24 sps:$4 sm:$0xff]  }
 0xbdb   : > { %v23115_v50 = vrot.slane %v10444_v13, %v21546_v3  ;;  %v23118_v7 = vrot.slane %v10476_v8, %v21546_v3  ;;  %v23121_v47 = vrot.slane %v10443_v20, %v21546_v3  ;;  %v23124_v32 = vrot.slane %v10475_v43, %v21546_v3 }
 0xbdc   : > { %15608 = vmatpush1.bf16.xpose.msra.mxu0 %v19656_v15 }
 0xbdd   : > { %v10509_v29 = vcombine.low %v23115_v50, %v23118_v7  ;;  %v10507_v35 = vcombine.low %v23121_v47, %v23124_v32  ;;  %15609 = vmatprep.subr.bf16.mxu0 %v19661_v46  ;;  %v19677_v46 = vld [vmem:[#allocation17 + $0x2a0] ss:$24 sps:$4 sm:$0xff]  }
 0xbdf   : > { %15647 = vmatpush1.bf16.xpose.msra.mxu1 %v19680_v53 }
 0xbe0   : > { %15648 = vmatprep.subr.bf16.mxu1 %v19688_v48 }
 0xbe4   : > { %15610 = vmatpush1.bf16.xpose.msra.mxu0 %v19659_v36 }
 0xbe5   : > { %15611 = vmatprep.subr.bf16.mxu0 %v19664_v22 }
 0xbec   : > { %15612 = vmatpush1.bf16.xpose.msra.mxu0 %v19662_v19  ;;  %v19685_v19 = vld [vmem:[#allocation17 + $0x274] ss:$24 sps:$4 sm:$0xff]  }
 0xbed   : > { %15613 = vmatprep.subr.bf16.mxu0 %v19667_v18  ;;  %v19694_v18 = vld [vmem:[#allocation17 + $0xcc] ss:$24 sps:$4 sm:$0xff]  }
 0xbf4   : > { %15614 = vmatpush1.bf16.xpose.msra.mxu0 %v19665_v0 }
 0xbf5   : > { %15615 = vmatprep.subr.bf16.mxu0 %v19670_v52 }
 0xbfc   : > { %15616 = vmatpush1.bf16.xpose.msra.mxu0 %v19668_v17 }
 0xbfd   : > { %15617 = vmatprep.subr.bf16.mxu0 %v19673_v40 }
 0xc04   : > { %15618 = vmatpush2.bf16.xpose.msra.mxu0 %v19671_v34 }
 0xc05   : > { %15619 = vmatprep.subr.bf16.mxu0 %v19679_v39  ;;  %v19700_v39 = vld [vmem:[#allocation17 + $0x9c] ss:$24 sps:$4 sm:$0xff]  }
 0xc0c   : > { %v23134_v63 = vpop.xlane.xlu1 %12816  ;;  %15620 = vmatpush2.bf16.xpose.msra.mxu0 %v19677_v46 }
 0xc0d   : > { %15621 = vmatprep.subr.bf16.mxu0 %v19685_v19 }
 0xc0f   : > { %v23136_v31 = vpop.xlane.xlu0 %12819 }
 0xc11   : > { %v9601_v14 = vpop.xlane.xlu1 %9600 }
 0xc12   : > { %20135 = vrcp.f32 %v9601_v14 }
 0xc13   : > { %v9604_v38 = vpop.xlane.xlu0 %9603 }
 0xc14   : > { %20137 = vrcp.f32 %v9604_v38 }
 0xc16   : > { %v9607_v51 = vpop.xlane.xlu1 %9606 }
 0xc17   : > { %20139 = vrcp.f32 %v9607_v51 }
 0xc18   : > { %v9610_v54 = vpop.xlane.xlu0 %9609 }
 0xc19   : > { %20141 = vrcp.f32 %v9610_v54 }
 0xc1a   : > { %20143 = vrcp.f32 %v23134_v63 }
 0xc1b   : > { %20145 = vrcp.f32 %v23130_v26 }
 0xc1c   : > { %20147 = vrcp.f32 %v23132_v21  ;;  %v23180_v46 = vpop.xlane.xlu0 %9615 }
 0xc1d   : > { %20149 = vrcp.f32 %v23136_v31 }
 0xc1f   : > { %v23138_v59 = vpop.f32.mrf.mxu0  ;;  %v20136_v11 = vpop.eup %20135 }
 0xc20   : > { %v10167_v13 = vmul.f32 %v20136_v11, %v22793_v60  ;;  %v19686_v60 = vld [vmem:[#allocation17 + $0xf8] ss:$24 sps:$4 sm:$0xff]   ;;  %v19692_v11 = vld [vmem:[#allocation17 + $0xc8] ss:$24 sps:$4 sm:$0xff]   ;;  %v12826_v21 = vpop.xlane.xlu0 %12825 }
 0xc21   : > { %v23140_v9 = vpop.f32.mrf.mxu1  ;;  %v18043_v1 = vpop.f32.mrf.mxu0  ;;  %15649 = vmatpush1.bf16.xpose.msra.mxu1 %v19686_v60  ;;  %v19695_v60 = vld [vmem:[#allocation17 + $0x210] ss:$24 sps:$4 sm:$0xff]  }
 0xc22   : > { %v20138_v58 = vpop.eup %20137  ;;  %15650 = vmatprep.subr.bf16.mxu1 %v19694_v18  ;;  %v19683_v1 = vld [vmem:[#allocation17 + $0x270] ss:$24 sps:$4 sm:$0xff]  }
 0xc23   : > { %v18049_v4 = vpop.f32.mrf.mxu1  ;;  %v12897_v62 = vpop.f32.mrf.mxu0  ;;  %v10168_v5 = vmul.f32 %v20138_v58, %v22801_v25  ;;  %15622 = vmatpush2.bf16.xpose.msra.mxu0 %v19683_v1 }
 0xc24   : > { %v20140_v27 = vpop.eup %20139  ;;  %v19691_v62 = vld [vmem:[#allocation17 + $0x244] ss:$24 sps:$4 sm:$0xff]  }
 0xc25   : > { %v10169_v8 = vmul.f32 %v20140_v27, %v22797_v42  ;;  %v12940_v20 = vpop.f32.mrf.mxu1  ;;  %v18044_v43 = vpop.f32.mrf.mxu0  ;;  %15623 = vmatprep.subr.bf16.mxu0 %v19691_v62  ;;  %v19710_v62 = vld [vmem:[#allocation17 + $0x38] ss:$24 sps:$4 sm:$0xff]  }
 0xc26   : > { %v20142_v2 = vpop.eup %20141 }
 0xc27   : > { %v10207_v23 = vcombine.low %v10167_v13, %v10169_v8  ;;  %v10208_v56 = vcombine.high %v10167_v13, %v10169_v8  ;;  %v10170_v44 = vmul.f32 %v20142_v2, %v22803_v30  ;;  %v18050_v6 = vpop.f32.mrf.mxu1 }
 0xc28   : > { %v19698_v6 = vld [vmem:[#allocation17 + $0x98] ss:$24 sps:$4 sm:$0xff]  }
 0xc29   : > { %v10223_v24 = vcombine.low %v10168_v5, %v10170_v44  ;;  %v10224_v15 = vcombine.high %v10168_v5, %v10170_v44  ;;  %v10215_v42 = vrot.slane %v10207_v23, %v23705_v49  ;;  %v10222_v36 = vrot.slane %v10208_v56, %v23705_v49  ;;  %15651 = vmatpush1.bf16.xpose.msra.mxu1 %v19692_v11  ;;  %v23172_v23 = vpop.xlane.xlu1 %9612  ;;  %v19689_v44 = vld [vmem:[#allocation17 + $0x240] ss:$24 sps:$4 sm:$0xff]  }
 0xc2a   : > { %15652 = vmatprep.subr.bf16.mxu1 %v19700_v39 }
 0xc2b   : > { %v10231_v22 = vrot.slane %v10223_v24, %v23705_v49  ;;  %v10238_v25 = vrot.slane %v10224_v15, %v23705_v49  ;;  %v19697_v24 = vld [vmem:[#allocation17 + $0x214] ss:$24 sps:$4 sm:$0xff]   ;;  %15624 = vmatpush2.bf16.xpose.msra.mxu0 %v19689_v44 }
 0xc2c   : > { %v19706_v15 = vld [vmem:[#allocation17 + $0x6c] ss:$24 sps:$4 sm:$0xff]   ;;  %15625 = vmatprep.subr.bf16.mxu0 %v19697_v24 }
 0xc2d   : > { %v10271_v14 = vcombine.low %v10215_v42, %v10231_v22  ;;  %v10272_v0 = vcombine.high %v10215_v42, %v10231_v22  ;;  %v10287_v30 = vcombine.low %v10222_v36, %v10238_v25  ;;  %v10288_v38 = vcombine.high %v10222_v36, %v10238_v25  ;;  %v12823_v26 = vpop.xlane.xlu1 %12822  ;;  %v19704_v42 = vld [vmem:[#allocation17 + $0x68] ss:$24 sps:$4 sm:$0xff]   ;;  %v20144_v36 = vpop.eup %20143  ;;  %v19703_v22 = vld [vmem:[#allocation17 + $0x1e4] ss:$24 sps:$4 sm:$0xff]  }
 0xc2e   : > { %v19712_v25 = vld [vmem:[#allocation17 + $0x3c] ss:$24 sps:$4 sm:$0xff]   ;;  %v20146_v31 = vpop.eup %20145 }
 0xc2f   : > { %v10279_v52 = vrot.slane %v10271_v14, %v21546_v3  ;;  %v10286_v51 = vrot.slane %v10272_v0, %v21546_v3  ;;  %v10295_v54 = vrot.slane %v10287_v30, %v21546_v3  ;;  %v10302_v17 = vrot.slane %v10288_v38, %v21546_v3  ;;  %v20148_v0 = vpop.eup %20147 }
 0xc30   : > { %v13385_v30 = vmul.f32 %v20146_v31, %v23138_v59 }
 0xc31   : > { %v17357_v40 = vcombine.low %v10279_v52, %v10286_v51  ;;  %v17359_v28 = vcombine.high %v10279_v52, %v10286_v51  ;;  %v17361_v45 = vcombine.low %v10295_v54, %v10302_v17  ;;  %v17363_v10 = vcombine.high %v10295_v54, %v10302_v17  ;;  %15653 = vmatpush1.bf16.xpose.msra.mxu1 %v19698_v6  ;;  %v12829_v19 = vpop.xlane.xlu1 %12828  ;;  %v20150_v52 = vpop.eup %20149 }
 0xc32   : > { %15654 = vmatprep.subr.bf16.mxu1 %v19706_v15  ;;  %20151 = vrcp.f32 %v12829_v19  ;;  %v13386_v54 = vmul.f32 %v20148_v0, %v23140_v9  ;;  %v12832_v17 = vpop.xlane.xlu0 %12831 }
 0xc33   : > { %v10394_v34 = vrot.slane %v17357_v40, %v23705_v49  ;;  %v10410_v53 = vrot.slane %v17359_v28, %v23705_v49  ;;  %v10426_v58 = vrot.slane %v17361_v45, %v23705_v49  ;;  %v10442_v4 = vrot.slane %v17363_v10, %v23705_v49  ;;  %15626 = vmatpush2.bf16.xpose.msra.mxu0 %v19695_v60 }
 0xc34   : > { %15627 = vmatprep.subr.bf16.mxu0 %v19703_v22  ;;  %20153 = vrcp.f32 %v12823_v26 }
 0xc35   : > { %v10459_v48 = vcombine.low %v10394_v34, %v10410_v53  ;;  %v10491_v27 = vcombine.low %v10426_v58, %v10442_v4  ;;  %v10460_v13 = vcombine.high %v10394_v34, %v10410_v53  ;;  %v10492_v8 = vcombine.high %v10426_v58, %v10442_v4  ;;  %v19701_v53 = vld [vmem:[#allocation17 + $0x1e0] ss:$24 sps:$4 sm:$0xff]   ;;  %v19709_v4 = vld [vmem:[#allocation17 + $0x1b4] ss:$24 sps:$4 sm:$0xff]  }
 0xc36   : > { %20155 = vrcp.f32 %v12826_v21 }
 0xc37   : > { %v23160_v20 = vrot.slane %v10459_v48, %v21546_v3  ;;  %v23163_v43 = vrot.slane %v10491_v27, %v21546_v3  ;;  %v23166_v2 = vrot.slane %v10460_v13, %v21546_v3  ;;  %v23169_v5 = vrot.slane %v10492_v8, %v21546_v3 }
 0xc38   : > { %20157 = vrcp.f32 %v12832_v17 }
 0xc39   : > { %v10511_v63 = vcombine.low %v23160_v20, %v23163_v43  ;;  %v10513_v56 = vcombine.low %v23166_v2, %v23169_v5  ;;  %15655 = vmatpush1.bf16.xpose.msra.mxu1 %v19704_v42 }
 0xc3a   : > { %15656 = vmatprep.subr.bf16.mxu1 %v19712_v25 }
 0xc3b   : > { %15628 = vmatpush2.bf16.xpose.msra.mxu0 %v19701_v53 }
 0xc3c   : > { %15629 = vmatprep.subr.bf16.mxu0 %v19709_v4 }
 0xc41   : > { %15657 = vmatpush1.bf16.xpose.msra.mxu1 %v19710_v62 }
 0xc44   : > { %v12980_v18 = vpop.f32.mrf.mxu0 }
 0xc45   : > { %v13387_v14 = vmul.f32 %v20144_v36, %v12980_v18 }
 0xc46   : > { %v18055_v38 = vpop.f32.mrf.mxu0  ;;  %v13023_v51 = vpop.f32.mrf.mxu1 }
 0xc47   : > { %v13397_v40 = vcombine.low %v13385_v30, %v13387_v14  ;;  %v13398_v28 = vcombine.high %v13385_v30, %v13387_v14  ;;  %v13388_v45 = vmul.f32 %v20150_v52, %v13023_v51  ;;  %v19707_v38 = vld [vmem:[#allocation17 + $0x1b0] ss:$24 sps:$4 sm:$0xff]   ;;  %v19715_v52 = vld [vmem:[#allocation17 + $0x184] ss:$24 sps:$4 sm:$0xff]   ;;  %v20152_v51 = vpop.eup %20151 }
 0xc48   : > { %v12983_v10 = vpop.f32.mrf.mxu0  ;;  %v18061_v1 = vpop.f32.mrf.mxu1  ;;  %15630 = vmatpush2.bf16.xpose.msra.mxu0 %v19707_v38 }
 0xc49   : > { %v13413_v11 = vcombine.low %v13386_v54, %v13388_v45  ;;  %v13414_v59 = vcombine.high %v13386_v54, %v13388_v45  ;;  %v13405_v39 = vrot.slane %v13397_v40, %v23705_v49  ;;  %v13412_v9 = vrot.slane %v13398_v28, %v23705_v49  ;;  %v19716_v1 = vld [vmem:[#allocation17 + $0x8] ss:$24 sps:$4 sm:$0xff]   ;;  %15631 = vmatprep.subr.bf16.mxu0 %v19715_v52 }
 0xc4a   : > { %v18056_v34 = vpop.f32.mrf.mxu0  ;;  %v13026_v58 = vpop.f32.mrf.mxu1 }
 0xc4b   : > { %v13421_v48 = vrot.slane %v13413_v11, %v23705_v49  ;;  %v13428_v27 = vrot.slane %v13414_v59, %v23705_v49  ;;  %v19718_v11 = vld [vmem:[#allocation17 + $0xc] ss:$24 sps:$4 sm:$0xff]   ;;  %v20154_v34 = vpop.eup %20153 }
 0xc4c   : > { %v13066_v13 = vpop.f32.mrf.mxu0  ;;  %v18062_v8 = vpop.f32.mrf.mxu1  ;;  %15658 = vmatprep.subr.bf16.mxu1 %v19718_v11 }
 0xc4d   : > { %v13461_v44 = vcombine.low %v13405_v39, %v13421_v48  ;;  %v13462_v6 = vcombine.high %v13405_v39, %v13421_v48  ;;  %v13477_v24 = vcombine.low %v13412_v9, %v13428_v27  ;;  %v13478_v15 = vcombine.high %v13412_v9, %v13428_v27  ;;  %v20156_v48 = vpop.eup %20155  ;;  %15659 = vmatpush1.bf16.xpose.msra.mxu1 %v19716_v1 }
 0xc4e   : > { %v18067_v26 = vpop.f32.mrf.mxu0  ;;  %v13389_v27 = vmul.f32 %v20154_v34, %v13066_v13  ;;  %v10510_v8 = vcombine.high %v23115_v50, %v23118_v7  ;;  %v19724_v34 = vld [vmem:[#allocation17 + $0x2ac] ss:$24 sps:$4 sm:$0xff]   ;;  %v19758_v50 = vld [vmem:[#allocation17 + $0x130] ss:$24 sps:$4 sm:$0xff]  }
 0xc4f   : > { %v13469_v21 = vrot.slane %v13461_v44, %v21546_v3  ;;  %v13476_v60 = vrot.slane %v13462_v6, %v21546_v3  ;;  %v13485_v42 = vrot.slane %v13477_v24, %v21546_v3  ;;  %v13492_v36 = vrot.slane %v13478_v15, %v21546_v3  ;;  %v19721_v6 = vld [vmem:[#allocation17 + $0x2dc] ss:$24 sps:$4 sm:$0xff]   ;;  %v20158_v24 = vpop.eup %20157 }
 0xc50   : > { %v13109_v22 = vpop.f32.mrf.mxu1  ;;  %v13069_v25 = vpop.f32.mrf.mxu0  ;;  %v10508_v44 = vcombine.high %v23121_v47, %v23124_v32  ;;  %15660 = vmatprep.subr.bf16.mxu1 %v19721_v6  ;;  %v19752_v32 = vld [vmem:[#allocation17 + $0x160] ss:$24 sps:$4 sm:$0xff]   ;;  %v19766_v7 = vld [vmem:[#allocation17 + $0x104] ss:$24 sps:$4 sm:$0xff]  }
 0xc51   : > { %v17423_v19 = vcombine.low %v13469_v21, %v13476_v60  ;;  %v17425_v18 = vcombine.high %v13469_v21, %v13476_v60  ;;  %v17427_v31 = vcombine.low %v13485_v42, %v13492_v36  ;;  %v17429_v14 = vcombine.high %v13485_v42, %v13492_v36 }
 0xc52   : > { %v18073_v0 = vpop.f32.mrf.mxu1  ;;  %v18068_v30 = vpop.f32.mrf.mxu0  ;;  %v13390_v36 = vmul.f32 %v20156_v48, %v13109_v22 }
 0xc53   : > { %v13609_v40 = vrot.slane %v17423_v19, %v23705_v49  ;;  %v13625_v28 = vrot.slane %v17425_v18, %v23705_v49  ;;  %v13641_v45 = vrot.slane %v17427_v31, %v23705_v49  ;;  %v13657_v10 = vrot.slane %v17429_v14, %v23705_v49 }
 0xc54   : > { %v13112_v54 = vpop.f32.mrf.mxu1  ;;  %v13152_v17 = vpop.f32.mrf.mxu0 }
 0xc55   : > { %v13391_v59 = vmul.f32 %v20152_v51, %v13152_v17  ;;  %v13666_v4 = vcombine.high %v13609_v40, %v13625_v28  ;;  %v13698_v62 = vcombine.high %v13641_v45, %v13657_v10  ;;  %v13665_v39 = vcombine.low %v13609_v40, %v13625_v28  ;;  %v19713_v54 = vld [vmem:[#allocation17 + $0x180] ss:$24 sps:$4 sm:$0xff]  }
 0xc56   : > { %v18074_v53 = vpop.f32.mrf.mxu1  ;;  %v18079_v58 = vpop.f32.mrf.mxu0  ;;  %v13697_v9 = vcombine.low %v13641_v45, %v13657_v10  ;;  %v19719_v45 = vld [vmem:[#allocation17 + $0x2d8] ss:$24 sps:$4 sm:$0xff]   ;;  %15632 = vmatpush2.bf16.xpose.msra.mxu0 %v19713_v54 }
 0xc57   : > { %v23201_v21 = vrot.slane %v13666_v4, %v21546_v3  ;;  %v23204_v60 = vrot.slane %v13698_v62, %v21546_v3  ;;  %v23207_v13 = vrot.slane %v13665_v39, %v21546_v3  ;;  %v13429_v25 = vcombine.low %v13389_v27, %v13391_v59  ;;  %15661 = vmatpush2.bf16.xpose.msra.mxu1 %v19719_v45 }
 0xc58   : > { %v13195_v15 = vpop.f32.mrf.mxu1  ;;  %v13155_v26 = vpop.f32.mrf.mxu0  ;;  %v23210_v42 = vrot.slane %v13697_v9, %v21546_v3  ;;  %v13430_v19 = vcombine.high %v13389_v27, %v13391_v59  ;;  %15662 = vmatprep.subr.bf16.mxu1 %v19724_v34 }
 0xc59   : > { %v13392_v18 = vmul.f32 %v20158_v24, %v13195_v15  ;;  %v13732_v0 = vcombine.high %v23201_v21, %v23204_v60  ;;  %v13731_v52 = vcombine.low %v23201_v21, %v23204_v60  ;;  %v13437_v10 = vrot.slane %v13429_v25, %v23705_v49  ;;  %v19772_v21 = vld [vmem:[#allocation17 + $0xd4] ss:$24 sps:$4 sm:$0xff]   ;;  %v19770_v60 = vld [vmem:[#allocation17 + $0xd0] ss:$24 sps:$4 sm:$0xff]  }
 0xc5a   : > { %v18085_v31 = vpop.f32.mrf.mxu1  ;;  %v18080_v14 = vpop.f32.mrf.mxu0  ;;  %v13730_v30 = vcombine.high %v23207_v13, %v23210_v42  ;;  %v13729_v38 = vcombine.low %v23207_v13, %v23210_v42  ;;  %v13444_v1 = vrot.slane %v13430_v19, %v23705_v49  ;;  %v19722_v19 = vld [vmem:[#allocation17 + $0x2a8] ss:$24 sps:$4 sm:$0xff]   ;;  %v19778_v13 = vld [vmem:[#allocation17 + $0xa4] ss:$24 sps:$4 sm:$0xff]  }
 0xc5b   : > { %v13445_v51 = vcombine.low %v13390_v36, %v13392_v18  ;;  %v13446_v22 = vcombine.high %v13390_v36, %v13392_v18  ;;  %v18321_v40 = vpack.i.bf16 %v13732_v0, %v10510_v8  ;;  %v19776_v42 = vld [vmem:[#allocation17 + $0xa0] ss:$24 sps:$4 sm:$0xff]  }
 0xc5c   : > { %v13198_v17 = vpop.f32.mrf.mxu1  ;;  %v18326_v28 = vpack.i.bf16 %v13730_v30, %v10508_v44 }
 0xc5d   : > { %v13453_v11 = vrot.slane %v13445_v51, %v23705_v49  ;;  %v13460_v59 = vrot.slane %v13446_v22, %v23705_v49  ;;  %18322 = vrot.lane.b32.xlu1 %v18321_v40, %s20649_s3  ;;  %v19727_v22 = vld [vmem:[#allocation17 + $0x27c] ss:$24 sps:$4 sm:$0xff]  }
 0xc5e   : > { %v18086_v53 = vpop.f32.mrf.mxu1  ;;  %18327 = vrot.lane.b32.xlu0 %v18326_v28, %s20649_s3 }
 0xc5f   : > { %v13493_v58 = vcombine.low %v13437_v10, %v13453_v11  ;;  %v13494_v4 = vcombine.high %v13437_v10, %v13453_v11  ;;  %v13509_v62 = vcombine.low %v13444_v1, %v13460_v59  ;;  %v13510_v39 = vcombine.high %v13444_v1, %v13460_v59  ;;  %15663 = vmatpush2.bf16.xpose.msra.mxu1 %v19722_v19 }
 0xc60   : > { %15664 = vmatprep.subr.bf16.mxu1 %v19727_v22  ;;  %v12833_v19 = vsel %vm9514_vm2, %v23059_v16, 0.0  ;;  %v10512_v16 = vcombine.high %v23160_v20, %v23163_v43 }
 0xc61   : > { %v13501_v9 = vrot.slane %v13493_v58, %v21546_v3  ;;  %v13508_v48 = vrot.slane %v13494_v4, %v21546_v3  ;;  %v13517_v27 = vrot.slane %v13509_v62, %v21546_v3  ;;  %v13524_v8 = vrot.slane %v13510_v39, %v21546_v3  ;;  %v23230_v44 = vpop.f32.mrf.mxu0  ;;  %v19725_v62 = vld [vmem:[#allocation17 + $0x278] ss:$24 sps:$4 sm:$0xff]   ;;  %v19730_v39 = vld [vmem:[#allocation17 + $0x24c] ss:$24 sps:$4 sm:$0xff]  }
 0xc63   : > { %v17424_v6 = vcombine.low %v13501_v9, %v13508_v48  ;;  %v17426_v24 = vcombine.high %v13501_v9, %v13508_v48  ;;  %v17428_v15 = vcombine.low %v13517_v27, %v13524_v8  ;;  %v17430_v26 = vcombine.high %v13517_v27, %v13524_v8  ;;  %v18091_v36 = vpop.f32.mrf.mxu0  ;;  %v23232_v25 = vpop.f32.mrf.mxu1  ;;  %v19728_v9 = vld [vmem:[#allocation17 + $0x248] ss:$24 sps:$4 sm:$0xff]   ;;  %v19733_v48 = vld [vmem:[#allocation17 + $0x21c] ss:$24 sps:$4 sm:$0xff]   ;;  %v19731_v8 = vld [vmem:[#allocation17 + $0x218] ss:$24 sps:$4 sm:$0xff]  }
 0xc64   : > { %v12836_v27 = vsel %vm9514_vm2, %v23070_v37, 0.0  ;;  %v19734_v36 = vld [vmem:[#allocation17 + $0x1e8] ss:$24 sps:$4 sm:$0xff]  }
 0xc65   : > { %v13241_v18 = vpop.f32.mrf.mxu0  ;;  %v18097_v31 = vpop.f32.mrf.mxu1  ;;  %v13616_v14 = vrot.slane %v17424_v6, %v23705_v49  ;;  %v13632_v0 = vrot.slane %v17426_v24, %v23705_v49  ;;  %v13648_v30 = vrot.slane %v17428_v15, %v23705_v49  ;;  %v13664_v51 = vrot.slane %v17430_v26, %v23705_v49  ;;  %v19736_v6 = vld [vmem:[#allocation17 + $0x1ec] ss:$24 sps:$4 sm:$0xff]  }
 0xc66   : > { %v12842_v24 = vsel %vm9514_vm2, %v23093_v55, 0.0  ;;  %v9617_v15 = vsel %vm9514_vm2, %v22633_v33, 0.0  ;;  %v12839_v55 = vsel %vm9514_vm2, %v23088_v61, 0.0  ;;  %v10514_v61 = vcombine.high %v23166_v2, %v23169_v5 }
 0xc67   : > { %v18092_v54 = vpop.f32.mrf.mxu0  ;;  %v13284_v17 = vpop.f32.mrf.mxu1  ;;  %v13681_v40 = vcombine.low %v13616_v14, %v13632_v0  ;;  %v13713_v28 = vcombine.low %v13648_v30, %v13664_v51  ;;  %v13682_v45 = vcombine.high %v13616_v14, %v13632_v0  ;;  %v13714_v10 = vcombine.high %v13648_v30, %v13664_v51  ;;  %15665 = vmatpush2.bf16.xpose.msra.mxu1 %v19725_v62  ;;  %v19754_v62 = vld [vmem:[#allocation17 + $0x164] ss:$24 sps:$4 sm:$0xff]  }
 0xc68   : > { %15666 = vmatprep.subr.bf16.mxu1 %v19730_v39  ;;  %15687 = vmatprep.subr.bf16.mxu0 %v19754_v62  ;;  %v9622_v39 = vpop.xlane.xlu0 %9621  ;;  %v19800_v62 = vld [vmem:[#allocation17 + $0x2e0] ss:$24 sps:$4 sm:$0xff]  }
 0xc69   : > { %v18098_v1 = vpop.f32.mrf.mxu1  ;;  %v23239_v11 = vrot.slane %v13681_v40, %v21546_v3  ;;  %v23242_v59 = vrot.slane %v13713_v28, %v21546_v3  ;;  %v23245_v34 = vrot.slane %v13682_v45, %v21546_v3  ;;  %v23248_v53 = vrot.slane %v13714_v10, %v21546_v3  ;;  %v19737_v40 = vld [vmem:[#allocation17 + $0x1b8] ss:$24 sps:$4 sm:$0xff]   ;;  %v19739_v28 = vld [vmem:[#allocation17 + $0x1bc] ss:$24 sps:$4 sm:$0xff]   ;;  %v19740_v45 = vld [vmem:[#allocation17 + $0x188] ss:$24 sps:$4 sm:$0xff]  }
 0xc6a   : > { %v19742_v10 = vld [vmem:[#allocation17 + $0x18c] ss:$24 sps:$4 sm:$0xff]   ;;  %20159 = vrcp.f32 %v9622_v39 }
 0xc6b   : > { %v13733_v58 = vcombine.low %v23239_v11, %v23242_v59  ;;  %v13735_v4 = vcombine.low %v23245_v34, %v23248_v53  ;;  %v13734_v51 = vcombine.high %v23239_v11, %v23242_v59  ;;  %v13736_v54 = vcombine.high %v23245_v34, %v23248_v53  ;;  %v19745_v1 = vld [vmem:[#allocation17 + $0x454] ss:$24 sps:$4 sm:$0xff]  }
 0xc6c   : > { %20161 = vrcp.f32 %v23180_v46 }
 0xc6d   : > { %v18336_v22 = vpack.i.bf16 %v13734_v51, %v10512_v16  ;;  %v18331_v17 = vpack.i.bf16 %v13736_v54, %v10514_v61  ;;  %20163 = vrcp.f32 %v23172_v23  ;;  %v19794_v16 = vld [vmem:[#allocation17 + $0x10] ss:$24 sps:$4 sm:$0xff]  }
 0xc6f   : > { %15667 = vmatpush2.bf16.xpose.msra.mxu1 %v19728_v9 }
 0xc70   : > { %15668 = vmatprep.subr.bf16.mxu1 %v19733_v48 }
 0xc77   : > { %15669 = vmatpush2.bf16.xpose.msra.mxu1 %v19731_v8 }
 0xc78   : > { %15670 = vmatprep.subr.bf16.mxu1 %v19736_v6 }
 0xc7d   : > { %12837 = vadd.xlane.f32.xlu0 %v12836_v27 }
 0xc7f   : > { %15671 = vmatpush2.bf16.xpose.msra.mxu1 %v19734_v36 }
 0xc80   : > { %15672 = vmatprep.subr.bf16.mxu1 %v19739_v28  ;;  %v20160_v28 = vpop.eup %20159 }
 0xc81   : > { %12843 = vadd.xlane.f32.xlu0 %v12842_v24  ;;  %9618 = vadd.xlane.f32.xlu1 %v9617_v15  ;;  %v10174_v39 = vmul.f32 %v20160_v28, %v22807_v57 }
 0xc83   : > { %v23260_v26 = vpop.f32.mrf.mxu0 }
 0xc85   : > { %v18103_v37 = vpop.f32.mrf.mxu0  ;;  %12834 = vadd.xlane.f32.xlu1 %v12833_v19 }
 0xc87   : > { %v13327_v18 = vpop.f32.mrf.mxu0  ;;  %15673 = vmatpush2.bf16.xpose.msra.mxu1 %v19737_v40 }
 0xc88   : > { %15674 = vmatprep.subr.bf16.mxu1 %v19742_v10 }
 0xc89   : > { %v23264_v31 = vpop.f32.mrf.mxu1  ;;  %v18104_v14 = vpop.f32.mrf.mxu0  ;;  %12840 = vadd.xlane.f32.xlu1 %v12839_v55  ;;  %v19790_v55 = vld [vmem:[#allocation17 + $0x44] ss:$24 sps:$4 sm:$0xff]  }
 0xc8a   : > { %v19788_v14 = vld [vmem:[#allocation17 + $0x40] ss:$24 sps:$4 sm:$0xff]  }
 0xc8b   : > { %v18109_v33 = vpop.f32.mrf.mxu1 }
 0xc8c   : > { %v19796_v33 = vld [vmem:[#allocation17 + $0x14] ss:$24 sps:$4 sm:$0xff]  }
 0xc8d   : > { %v13370_v0 = vpop.f32.mrf.mxu1 }
 0xc8f   : > { %v18110_v30 = vpop.f32.mrf.mxu1  ;;  %15675 = vmatpush2.bf16.xpose.msra.mxu1 %v19740_v45 }
 0xc90   : > { %15730 = vmatprep.subr.bf16.mxu1 %v19745_v1  ;;  %v20162_v1 = vpop.eup %20161 }
 0xc91   : > { %v20164_v20 = vpop.eup %20163  ;;  %v10172_v43 = vmul.f32 %v20162_v1, %v22805_v12 }
 0xc97   : > { %18337 = vrot.lane.b32.xlu0 %v18336_v22, %s20649_s3  ;;  %v19802_v22 = vld [vmem:[#allocation17 + $0x2e4] ss:$24 sps:$4 sm:$0xff]  }
 0xc9a   : > { %18332 = vrot.lane.b32.xlu1 %v18331_v17, %s20649_s3 }
 0xccf   : > { %v18323_v9 = vpop.permute.xlu1 %18322 }
 0xcd0   : > { %v18328_v48 = vpop.permute.xlu0 %18327  ;;  %v18325_v27 = vunpack.i.h.bf16 %v18323_v9  ;;  %v18324_v8 = vunpack.i.l.bf16 %v18323_v9  ;;  %v19808_v9 = vld [vmem:[#allocation17 + $0x2b4] ss:$24 sps:$4 sm:$0xff]  }
 0xcd1   : > { %v18330_v6 = vunpack.i.h.bf16 %v18328_v48  ;;  %v18329_v24 = vunpack.i.l.bf16 %v18328_v48 }
 0xcd2   : > { %v10608_v19 = vsel %vm8961_vm0, %v10509_v29, %v18324_v8  ;;  %v13830_v37 = vsel %vm8961_vm0, %v13731_v52, %v18325_v27  ;;  %v19764_v29 = vld [vmem:[#allocation17 + $0x100] ss:$24 sps:$4 sm:$0xff]   ;;  %v19782_v52 = vld [vmem:[#allocation17 + $0x70] ss:$24 sps:$4 sm:$0xff]   ;;  %v10327_v27 = vcombine.low %v10172_v43, %v10174_v39 }
 0xcd3   : > { %v10607_v15 = vsel %vm8961_vm0, %v10507_v35, %v18329_v24  ;;  %v13829_v36 = vsel %vm8961_vm0, %v13729_v38, %v18330_v6  ;;  %v23296_v47 = vpack.c.bf16 %v13830_v37, %v10608_v19  ;;  %v19760_v35 = vld [vmem:[#allocation17 + $0x134] ss:$24 sps:$4 sm:$0xff]   ;;  %v10328_v6 = vcombine.high %v10172_v43, %v10174_v39  ;;  %v23805_v24 = vld [vmem:[#allocation62_spill] sm:$0xff]  ;;  %v19743_v19 = vld [vmem:[#allocation17 + $0x450] ss:$24 sps:$4 sm:$0xff]  }
 0xcd4   : > { %v23294_v18 = vpack.c.bf16 %v13829_v36, %v10607_v15  ;;  %v19784_v38 = vld [vmem:[#allocation17 + $0x74] ss:$24 sps:$4 sm:$0xff]   ;;  %v10335_v5 = vrot.slane %v10327_v27, %v23705_v49 }
 0xcd5   : > { %15633 = vmatprep.mubr.bf16.mxu0 %v23296_v47  ;;  %v19820_v39 = vld [vmem:[#allocation17 + $0x254] ss:$24 sps:$4 sm:$0xff]  }
 0xcd6   : > { %15634 = vmatmul.mubr.bf16.vlgmr.msra.gmra.mxu0 %v23294_v18 }
 0xcd7   : > { %15688 = vmatpush1.bf16.xpose.msra.mxu0 %v19752_v32 }
 0xcd8   : > { %15689 = vmatprep.subr.bf16.mxu0 %v19760_v35  ;;  %v19748_v35 = vld [vmem:[#allocation17 + $0x424] ss:$24 sps:$4 sm:$0xff]  }
 0xcdf   : > { %15690 = vmatpush1.bf16.xpose.msra.mxu0 %v19758_v50 }
 0xce0   : > { %15691 = vmatprep.subr.bf16.mxu0 %v19766_v7  ;;  %v19806_v7 = vld [vmem:[#allocation17 + $0x2b0] ss:$24 sps:$4 sm:$0xff]  }
 0xce7   : > { %15692 = vmatpush1.bf16.xpose.msra.mxu0 %v19764_v29 }
 0xce8   : > { %15693 = vmatprep.subr.bf16.mxu0 %v19772_v21 }
 0xcef   : > { %15694 = vmatpush1.bf16.xpose.msra.mxu0 %v19770_v60 }
 0xcf0   : > { %15695 = vmatprep.subr.bf16.mxu0 %v19778_v13 }
 0xcf7   : > { %15696 = vmatpush1.bf16.xpose.msra.mxu0 %v19776_v42 }
 0xcf8   : > { %15697 = vmatprep.subr.bf16.mxu0 %v19784_v38 }
 0xcff   : > { %15698 = vmatpush1.bf16.xpose.msra.mxu0 %v19782_v52 }
 0xd00   : > { %15699 = vmatprep.subr.bf16.mxu0 %v19790_v55 }
 0xd06   : > { %v12838_v0 = vpop.xlane.xlu0 %12837 }
 0xd07   : > { %15700 = vmatpush1.bf16.xpose.msra.mxu0 %v19788_v14 }
 0xd08   : > { %15701 = vmatprep.subr.bf16.mxu0 %v19796_v33 }
 0xd0a   : > { %v12844_v30 = vpop.xlane.xlu0 %12843  ;;  %v9619_v51 = vpop.xlane.xlu1 %9618 }
 0xd0b   : > { %20165 = vrcp.f32 %v9619_v51 }
 0xd0c   : > { %20167 = vrcp.f32 %v12844_v30  ;;  %v19746_v30 = vld [vmem:[#allocation17 + $0x420] ss:$24 sps:$4 sm:$0xff]  }
 0xd0d   : > { %20169 = vrcp.f32 %v12838_v0 }
 0xd0e   : > { %v18338_v54 = vpop.permute.xlu0 %18337  ;;  %v12835_v40 = vpop.xlane.xlu1 %12834 }
 0xd0f   : > { %v18340_v61 = vunpack.i.h.bf16 %v18338_v54  ;;  %v18339_v17 = vunpack.i.l.bf16 %v18338_v54  ;;  %15702 = vmatpush1.bf16.xpose.msra.mxu0 %v19794_v16  ;;  %20171 = vrcp.f32 %v12835_v40  ;;  %v19751_v54 = vld [vmem:[#allocation17 + $0x3f4] ss:$24 sps:$4 sm:$0xff]  }
 0xd10   : > { %15703 = vmatprep.subr.bf16.mxu0 %v19802_v22 }
 0xd11   : > { %v10609_v46 = vsel %vm8961_vm0, %v10511_v63, %v18339_v17  ;;  %v13831_v23 = vsel %vm8961_vm0, %v13733_v58, %v18340_v61  ;;  %v10171_v58 = vmul.f32 %v20164_v20, %v22809_v41 }
 0xd12   : > { %v23310_v45 = vpack.c.bf16 %v13831_v23, %v10609_v46  ;;  %v12841_v10 = vpop.xlane.xlu1 %12840  ;;  %v19812_v23 = vld [vmem:[#allocation17 + $0x280] ss:$24 sps:$4 sm:$0xff]  }
 0xd13   : > { %20173 = vrcp.f32 %v12841_v10 }
 0xd16   : > { %v18333_v63 = vpop.permute.xlu1 %18332 }
 0xd17   : > { %v18335_v48 = vunpack.i.h.bf16 %v18333_v63  ;;  %v18334_v11 = vunpack.i.l.bf16 %v18333_v63  ;;  %15704 = vmatpush2.bf16.xpose.msra.mxu0 %v19800_v62 }
 0xd18   : > { %v20166_v59 = vpop.eup %20165  ;;  %15705 = vmatprep.subr.bf16.mxu0 %v19808_v9 }
 0xd19   : > { %v20168_v8 = vpop.eup %20167  ;;  %v10173_v15 = vmul.f32 %v20166_v59, %v23805_v24  ;;  %v10610_v57 = vsel %vm8961_vm0, %v10513_v56, %v18334_v11  ;;  %v13832_v12 = vsel %vm8961_vm0, %v13735_v4, %v18335_v48  ;;  %v10342_v56 = vrot.slane %v10328_v6, %v23705_v49  ;;  %v19814_v4 = vld [vmem:[#allocation17 + $0x284] ss:$24 sps:$4 sm:$0xff]  }
 0xd1a   : > { %v23324_v36 = vpack.c.bf16 %v13832_v12, %v10610_v57  ;;  %v20170_v41 = vpop.eup %20169  ;;  %v13396_v50 = vmul.f32 %v20168_v8, %v23264_v31  ;;  %v19749_v12 = vld [vmem:[#allocation17 + $0x3f0] ss:$24 sps:$4 sm:$0xff]  }
 0xd1b   : > { %v10311_v37 = vcombine.low %v10171_v58, %v10173_v15  ;;  %v10312_v32 = vcombine.high %v10171_v58, %v10173_v15  ;;  %v13394_v29 = vmul.f32 %v20170_v41, %v23232_v25 }
 0xd1c   : > { %15676 = vmatprep.mubr.bf16.mxu1 %v23324_v36  ;;  %v20172_v2 = vpop.eup %20171 }
 0xd1d   : > { %v10319_v34 = vrot.slane %v10311_v37, %v23705_v49  ;;  %v10326_v53 = vrot.slane %v10312_v32, %v23705_v49  ;;  %15677 = vmatmul.mubr.bf16.vlgmr.msra.gmra.mxu1 %v23310_v45  ;;  %v13549_v38 = vcombine.low %v13394_v29, %v13396_v50  ;;  %v13550_v52 = vcombine.high %v13394_v29, %v13396_v50 }
 0xd1e   : > { %15731 = vmatpush1.bf16.xpose.msra.mxu1 %v19743_v19  ;;  %15762 = vmatprep.mubr.bf16.mxu1 %v23296_v47  ;;  %v13393_v55 = vmul.f32 %v20172_v2, %v23230_v44 }
 0xd1f   : > { %15732 = vmatprep.subr.bf16.mxu1 %v19748_v35  ;;  %v10343_v31 = vcombine.low %v10319_v34, %v10335_v5  ;;  %v10344_v21 = vcombine.high %v10319_v34, %v10335_v5  ;;  %v10359_v60 = vcombine.low %v10326_v53, %v10342_v56  ;;  %v10360_v13 = vcombine.high %v10326_v53, %v10342_v56  ;;  %v19757_v35 = vld [vmem:[#allocation17 + $0x3c4] ss:$24 sps:$4 sm:$0xff]   ;;  %v19818_v53 = vld [vmem:[#allocation17 + $0x250] ss:$24 sps:$4 sm:$0xff]  }
 0xd20   : > { %v20174_v42 = vpop.eup %20173  ;;  %15706 = vmatpush2.bf16.xpose.msra.mxu0 %v19806_v7  ;;  %v13557_v44 = vrot.slane %v13549_v38, %v23705_v49  ;;  %v13564_v40 = vrot.slane %v13550_v52, %v23705_v49 }
 0xd21   : > { %v13395_v14 = vmul.f32 %v20174_v42, %v23260_v26  ;;  %v10351_v33 = vrot.slane %v10343_v31, %v21546_v3  ;;  %v10358_v25 = vrot.slane %v10344_v21, %v21546_v3  ;;  %v10367_v0 = vrot.slane %v10359_v60, %v21546_v3  ;;  %15707 = vmatprep.subr.bf16.mxu0 %v19814_v4  ;;  %v19826_v21 = vld [vmem:[#allocation17 + $0x224] ss:$24 sps:$4 sm:$0xff]  }
 0xd22   : > { %v10374_v51 = vrot.slane %v10360_v13, %v21546_v3 }
 0xd23   : > { %v13533_v16 = vcombine.low %v13393_v55, %v13395_v14  ;;  %v13534_v22 = vcombine.high %v13393_v55, %v13395_v14  ;;  %v10515_v61 = vcombine.low %v10351_v33, %v10358_v25  ;;  %v17364_v17 = vcombine.high %v10351_v33, %v10358_v25 }
 0xd24   : > { %v10531_v26 = vcombine.low %v10367_v0, %v10374_v51  ;;  %v17365_v46 = vcombine.high %v10367_v0, %v10374_v51  ;;  %v19755_v0 = vld [vmem:[#allocation17 + $0x3c0] ss:$24 sps:$4 sm:$0xff]  }
 0xd25   : > { %v13541_v28 = vrot.slane %v13533_v16, %v23705_v49  ;;  %v13548_v10 = vrot.slane %v13534_v22, %v23705_v49  ;;  %v10522_v1 = vrot.slane %v10515_v61, %v23705_v49  ;;  %v10530_v62 = vrot.slane %v17364_v17, %v23705_v49  ;;  %v19832_v17 = vld [vmem:[#allocation17 + $0x1f4] ss:$24 sps:$4 sm:$0xff]  }
 0xd26   : > { %15733 = vmatpush1.bf16.xpose.msra.mxu1 %v19746_v30  ;;  %v10538_v9 = vrot.slane %v10531_v26, %v23705_v49  ;;  %v10546_v20 = vrot.slane %v17365_v46, %v23705_v49  ;;  %v19761_v26 = vld [vmem:[#allocation17 + $0x390] ss:$24 sps:$4 sm:$0xff]   ;;  %v19769_v46 = vld [vmem:[#allocation17 + $0x364] ss:$24 sps:$4 sm:$0xff]  }
 0xd27   : > { %15734 = vmatprep.subr.bf16.mxu1 %v19751_v54  ;;  %v10548_v43 = vcombine.high %v10522_v1, %v10530_v62  ;;  %v13565_v63 = vcombine.low %v13541_v28, %v13557_v44  ;;  %v13566_v48 = vcombine.high %v13541_v28, %v13557_v44  ;;  %v13581_v11 = vcombine.low %v13548_v10, %v13564_v40  ;;  %v19824_v54 = vld [vmem:[#allocation17 + $0x220] ss:$24 sps:$4 sm:$0xff]   ;;  %v19838_v28 = vld [vmem:[#allocation17 + $0x1c4] ss:$24 sps:$4 sm:$0xff]  }
 0xd28   : > { %v10564_v59 = vcombine.high %v10538_v9, %v10546_v20  ;;  %v13582_v58 = vcombine.high %v13548_v10, %v13564_v40  ;;  %v10547_v27 = vcombine.low %v10522_v1, %v10530_v62  ;;  %v10563_v8 = vcombine.low %v10538_v9, %v10546_v20  ;;  %15708 = vmatpush2.bf16.xpose.msra.mxu0 %v19812_v23  ;;  %v19830_v23 = vld [vmem:[#allocation17 + $0x1f0] ss:$24 sps:$4 sm:$0xff]   ;;  %v19767_v10 = vld [vmem:[#allocation17 + $0x360] ss:$24 sps:$4 sm:$0xff]   ;;  %v19775_v1 = vld [vmem:[#allocation17 + $0x334] ss:$24 sps:$4 sm:$0xff]  }
 0xd29   : > { %v23350_v6 = vrot.slane %v10548_v43, %v21546_v3  ;;  %v13573_v24 = vrot.slane %v13565_v63, %v21546_v3  ;;  %v13580_v15 = vrot.slane %v13566_v48, %v21546_v3  ;;  %v13589_v57 = vrot.slane %v13581_v11, %v21546_v3  ;;  %15709 = vmatprep.subr.bf16.mxu0 %v19820_v39  ;;  %v19836_v62 = vld [vmem:[#allocation17 + $0x1c0] ss:$24 sps:$4 sm:$0xff]   ;;  %v19844_v39 = vld [vmem:[#allocation17 + $0x194] ss:$24 sps:$4 sm:$0xff]   ;;  %v19773_v9 = vld [vmem:[#allocation17 + $0x330] ss:$24 sps:$4 sm:$0xff]  }
 0xd2a   : > { %v23356_v19 = vrot.slane %v10564_v59, %v21546_v3  ;;  %v13596_v41 = vrot.slane %v13582_v58, %v21546_v3  ;;  %v23360_v37 = vrot.slane %v10547_v27, %v21546_v3  ;;  %v23363_v32 = vrot.slane %v10563_v8, %v21546_v3  ;;  %v19781_v20 = vld [vmem:[#allocation17 + $0x304] ss:$24 sps:$4 sm:$0xff]   ;;  %v19842_v43 = vld [vmem:[#allocation17 + $0x190] ss:$24 sps:$4 sm:$0xff]   ;;  %v19779_v48 = vld [vmem:[#allocation17 + $0x300] ss:$24 sps:$4 sm:$0xff]  }
 0xd2b   : > { %v13737_v50 = vcombine.low %v13573_v24, %v13580_v15  ;;  %v17431_v7 = vcombine.high %v13573_v24, %v13580_v15  ;;  %v19850_v63 = vld [vmem:[#allocation17 + $0x45c] ss:$24 sps:$4 sm:$0xff]   ;;  %v19785_v59 = vld [vmem:[#allocation17 + $0x5d0] ss:$24 sps:$4 sm:$0xff]   ;;  %v19791_v27 = vld [vmem:[#allocation17 + $0x5a0] ss:$24 sps:$4 sm:$0xff]  }
 0xd2c   : > { %v10582_v2 = vcombine.high %v23350_v6, %v23356_v19  ;;  %v13753_v5 = vcombine.low %v13589_v57, %v13596_v41  ;;  %v17432_v56 = vcombine.high %v13589_v57, %v13596_v41  ;;  %v10579_v34 = vcombine.low %v23360_v37, %v23363_v32  ;;  %v19787_v11 = vld [vmem:[#allocation17 + $0x5d4] ss:$24 sps:$4 sm:$0xff]   ;;  %v19793_v58 = vld [vmem:[#allocation17 + $0x5a4] ss:$24 sps:$4 sm:$0xff]   ;;  %v19797_v24 = vld [vmem:[#allocation17 + $0x570] ss:$24 sps:$4 sm:$0xff]  }
 0xd2d   : > { %v13744_v4 = vrot.slane %v13737_v50, %v23705_v49  ;;  %v13752_v29 = vrot.slane %v17431_v7, %v23705_v49  ;;  %v10580_v31 = vcombine.high %v23360_v37, %v23363_v32  ;;  %v10581_v60 = vcombine.low %v23350_v6, %v23356_v19  ;;  %v19799_v8 = vld [vmem:[#allocation17 + $0x574] ss:$24 sps:$4 sm:$0xff]   ;;  %v19805_v15 = vld [vmem:[#allocation17 + $0x544] ss:$24 sps:$4 sm:$0xff]   ;;  %v19803_v57 = vld [vmem:[#allocation17 + $0x540] ss:$24 sps:$4 sm:$0xff]  }
 0xd2e   : > { %15735 = vmatpush1.bf16.xpose.msra.mxu1 %v19749_v12  ;;  %v13760_v13 = vrot.slane %v13753_v5, %v23705_v49  ;;  %v13768_v42 = vrot.slane %v17432_v56, %v23705_v49  ;;  %v19763_v49 = vld [vmem:[#allocation17 + $0x394] ss:$24 sps:$4 sm:$0xff]   ;;  %v19809_v41 = vld [vmem:[#allocation17 + $0x510] ss:$24 sps:$4 sm:$0xff]   ;;  %v19815_v50 = vld [vmem:[#allocation17 + $0x4e0] ss:$24 sps:$4 sm:$0xff]  }
 0xd2f   : > { %15736 = vmatprep.subr.bf16.mxu1 %v19757_v35  ;;  %v13770_v38 = vcombine.high %v13744_v4, %v13752_v29  ;;  %v13769_v52 = vcombine.low %v13744_v4, %v13752_v29  ;;  %v19811_v12 = vld [vmem:[#allocation17 + $0x514] ss:$24 sps:$4 sm:$0xff]   ;;  %v19817_v35 = vld [vmem:[#allocation17 + $0x4e4] ss:$24 sps:$4 sm:$0xff]   ;;  %v19827_v56 = vld [vmem:[#allocation17 + $0x480] ss:$24 sps:$4 sm:$0xff]  }
 0xd30   : > { %v13786_v55 = vcombine.high %v13760_v13, %v13768_v42  ;;  %v13785_v14 = vcombine.low %v13760_v13, %v13768_v42  ;;  %15710 = vmatpush2.bf16.xpose.msra.mxu0 %v19818_v53  ;;  %v19823_v7 = vld [vmem:[#allocation17 + $0x4b4] ss:$24 sps:$4 sm:$0xff]   ;;  %v19829_v5 = vld [vmem:[#allocation17 + $0x484] ss:$24 sps:$4 sm:$0xff]   ;;  %v19833_v4 = vld [vmem:[#allocation17 + $0x460] ss:$24 sps:$4 sm:$0xff]  }
 0xd31   : > { %v23378_v33 = vrot.slane %v13770_v38, %v21546_v3  ;;  %v23381_v25 = vrot.slane %v13769_v52, %v21546_v3  ;;  %15711 = vmatprep.subr.bf16.mxu0 %v19826_v21  ;;  %v19835_v53 = vld [vmem:[#allocation17 + $0x464] ss:$24 sps:$4 sm:$0xff]   ;;  %v19841_v29 = vld [vmem:[#allocation17 + $0x434] ss:$24 sps:$4 sm:$0xff]   ;;  %v19845_v42 = vld [vmem:[#allocation17 + $0x400] ss:$24 sps:$4 sm:$0xff]  }
 0xd32   : > { %v23384_v30 = vrot.slane %v13786_v55, %v21546_v3  ;;  %v23387_v51 = vrot.slane %v13785_v14, %v21546_v3  ;;  %v19847_v21 = vld [vmem:[#allocation17 + $0x404] ss:$24 sps:$4 sm:$0xff]   ;;  %v19853_v55 = vld [vmem:[#allocation17 + $0x3d4] ss:$24 sps:$4 sm:$0xff]   ;;  %v19854_v37 = vld [vmem:[#allocation17 + $0x428] ss:$24 sps:$4 sm:$0xff]  }
 0xd33   : > { %v19857_v32 = vld [vmem:[#allocation17 + $0x3a0] ss:$24 sps:$4 sm:$0xff]  }
 0xd34   : > { %v13804_v16 = vcombine.high %v23378_v33, %v23384_v30  ;;  %v13801_v22 = vcombine.low %v23381_v25, %v23387_v51  ;;  %v13803_v61 = vcombine.low %v23378_v33, %v23384_v30  ;;  %v13802_v40 = vcombine.high %v23381_v25, %v23387_v51  ;;  %v19851_v30 = vld [vmem:[#allocation17 + $0x3d0] ss:$24 sps:$4 sm:$0xff]   ;;  %v19865_v25 = vld [vmem:[#allocation17 + $0x374] ss:$24 sps:$4 sm:$0xff]  }
 0xd35   : > { %v19860_v51 = vld [vmem:[#allocation17 + $0x3f8] ss:$24 sps:$4 sm:$0xff]  }
 0xd36   : > { %15737 = vmatpush1.bf16.xpose.msra.mxu1 %v19755_v0  ;;  %v18341_v44 = vpack.i.bf16 %v13804_v16, %v10582_v2  ;;  %v18346_v3 = vpack.i.bf16 %v13802_v40, %v10580_v31  ;;  %v19821_v2 = vld [vmem:[#allocation17 + $0x4b0] ss:$24 sps:$4 sm:$0xff]   ;;  %v19868_v40 = vld [vmem:[#allocation17 + $0x3cc] ss:$24 sps:$4 sm:$0xff]  }
 0xd37   : > { %15738 = vmatprep.subr.bf16.mxu1 %v19763_v49  ;;  %v19839_v31 = vld [vmem:[#allocation17 + $0x430] ss:$24 sps:$4 sm:$0xff]  }
 0xd38   : > { %18342 = vrot.lane.b32.xlu1 %v18341_v44, %s20649_s3  ;;  %15712 = vmatpush2.bf16.xpose.msra.mxu0 %v19824_v54  ;;  %v19859_v44 = vld [vmem:[#allocation17 + $0x3a4] ss:$24 sps:$4 sm:$0xff]  }
 0xd39   : > { %15713 = vmatprep.subr.bf16.mxu0 %v19832_v17 }
 0xd3c   : > { %18347 = vrot.lane.b32.xlu1 %v18346_v3, %s20649_s3  ;;  %v19871_v3 = vld [vmem:[#allocation17 + $0x344] ss:$24 sps:$4 sm:$0xff]  }
 0xd3e   : > { %15739 = vmatpush1.bf16.xpose.msra.mxu1 %v19761_v26  ;;  %v19866_v26 = vld [vmem:[#allocation17 + $0x3c8] ss:$24 sps:$4 sm:$0xff]  }
 0xd3f   : > { %15740 = vmatprep.subr.bf16.mxu1 %v19769_v46  ;;  %v19869_v46 = vld [vmem:[#allocation17 + $0x340] ss:$24 sps:$4 sm:$0xff]  }
 0xd40   : > { %15714 = vmatpush2.bf16.xpose.msra.mxu0 %v19830_v23  ;;  %v19874_v23 = vld [vmem:[#allocation17 + $0x39c] ss:$24 sps:$4 sm:$0xff]  }
 0xd41   : > { %15715 = vmatprep.subr.bf16.mxu0 %v19838_v28  ;;  %v19877_v28 = vld [vmem:[#allocation17 + $0x314] ss:$24 sps:$4 sm:$0xff]  }
 0xd46   : > { %15741 = vmatpush1.bf16.xpose.msra.mxu1 %v19767_v10  ;;  %v19872_v10 = vld [vmem:[#allocation17 + $0x398] ss:$24 sps:$4 sm:$0xff]  }
 0xd47   : > { %15742 = vmatprep.subr.bf16.mxu1 %v19775_v1  ;;  %v19875_v1 = vld [vmem:[#allocation17 + $0x310] ss:$24 sps:$4 sm:$0xff]  }
 0xd48   : > { %15716 = vmatpush2.bf16.xpose.msra.mxu0 %v19836_v62  ;;  %v19880_v62 = vld [vmem:[#allocation17 + $0x36c] ss:$24 sps:$4 sm:$0xff]  }
 0xd49   : > { %15717 = vmatprep.subr.bf16.mxu0 %v19844_v39  ;;  %v19883_v39 = vld [vmem:[#allocation17 + $0x5e4] ss:$24 sps:$4 sm:$0xff]  }
 0xd4e   : > { %15743 = vmatpush1.bf16.xpose.msra.mxu1 %v19773_v9  ;;  %v19878_v9 = vld [vmem:[#allocation17 + $0x368] ss:$24 sps:$4 sm:$0xff]  }
 0xd4f   : > { %15744 = vmatprep.subr.bf16.mxu1 %v19781_v20  ;;  %v19881_v20 = vld [vmem:[#allocation17 + $0x5e0] ss:$24 sps:$4 sm:$0xff]  }
 0xd50   : > { %15718 = vmatpush2.bf16.xpose.msra.mxu0 %v19842_v43  ;;  %v19886_v43 = vld [vmem:[#allocation17 + $0x33c] ss:$24 sps:$4 sm:$0xff]  }
 0xd51   : > { %15773 = vmatprep.subr.bf16.mxu0 %v19850_v63  ;;  %v19889_v63 = vld [vmem:[#allocation17 + $0x5b4] ss:$24 sps:$4 sm:$0xff]  }
 0xd56   : > { %15745 = vmatpush1.bf16.xpose.msra.mxu1 %v19779_v48  ;;  %v19884_v48 = vld [vmem:[#allocation17 + $0x338] ss:$24 sps:$4 sm:$0xff]  }
 0xd57   : > { %15746 = vmatprep.subr.bf16.mxu1 %v19787_v11  ;;  %v19887_v11 = vld [vmem:[#allocation17 + $0x5b0] ss:$24 sps:$4 sm:$0xff]  }
 0xd5e   : > { %15747 = vmatpush2.bf16.xpose.msra.mxu1 %v19785_v59  ;;  %v19892_v59 = vld [vmem:[#allocation17 + $0x30c] ss:$24 sps:$4 sm:$0xff]  }
 0xd5f   : > { %15748 = vmatprep.subr.bf16.mxu1 %v19793_v58  ;;  %v19895_v58 = vld [vmem:[#allocation17 + $0x584] ss:$24 sps:$4 sm:$0xff]  }
 0xd66   : > { %15749 = vmatpush2.bf16.xpose.msra.mxu1 %v19791_v27  ;;  %v19890_v27 = vld [vmem:[#allocation17 + $0x308] ss:$24 sps:$4 sm:$0xff]  }
 0xd67   : > { %15750 = vmatprep.subr.bf16.mxu1 %v19799_v8  ;;  %v19893_v8 = vld [vmem:[#allocation17 + $0x580] ss:$24 sps:$4 sm:$0xff]  }
 0xd6e   : > { %15751 = vmatpush2.bf16.xpose.msra.mxu1 %v19797_v24  ;;  %v19898_v24 = vld [vmem:[#allocation17 + $0x5dc] ss:$24 sps:$4 sm:$0xff]  }
 0xd6f   : > { %15752 = vmatprep.subr.bf16.mxu1 %v19805_v15  ;;  %v19901_v15 = vld [vmem:[#allocation17 + $0x554] ss:$24 sps:$4 sm:$0xff]  }
 0xd76   : > { %15753 = vmatpush2.bf16.xpose.msra.mxu1 %v19803_v57  ;;  %v19896_v57 = vld [vmem:[#allocation17 + $0x5d8] ss:$24 sps:$4 sm:$0xff]  }
 0xd77   : > { %15754 = vmatprep.subr.bf16.mxu1 %v19811_v12  ;;  %v19899_v12 = vld [vmem:[#allocation17 + $0x550] ss:$24 sps:$4 sm:$0xff]  }
 0xd7e   : > { %15755 = vmatpush2.bf16.xpose.msra.mxu1 %v19809_v41  ;;  %v19904_v41 = vld [vmem:[#allocation17 + $0x5ac] ss:$24 sps:$4 sm:$0xff]  }
 0xd7f   : > { %15756 = vmatprep.subr.bf16.mxu1 %v19817_v35  ;;  %v19907_v35 = vld [vmem:[#allocation17 + $0x524] ss:$24 sps:$4 sm:$0xff]  }
 0xd86   : > { %15757 = vmatpush2.bf16.xpose.msra.mxu1 %v19815_v50  ;;  %v19902_v50 = vld [vmem:[#allocation17 + $0x5a8] ss:$24 sps:$4 sm:$0xff]  }
 0xd87   : > { %15758 = vmatprep.subr.bf16.mxu1 %v19823_v7  ;;  %v19905_v7 = vld [vmem:[#allocation17 + $0x520] ss:$24 sps:$4 sm:$0xff]  }
 0xd8e   : > { %15759 = vmatpush2.bf16.xpose.msra.mxu1 %v19821_v2  ;;  %v19910_v2 = vld [vmem:[#allocation17 + $0x57c] ss:$24 sps:$4 sm:$0xff]  }
 0xd8f   : > { %15760 = vmatprep.subr.bf16.mxu1 %v19829_v5  ;;  %v19913_v5 = vld [vmem:[#allocation17 + $0x4f4] ss:$24 sps:$4 sm:$0xff]  }
 0xd96   : > { %15761 = vmatpush2.bf16.xpose.msra.mxu1 %v19827_v56  ;;  %v19908_v56 = vld [vmem:[#allocation17 + $0x578] ss:$24 sps:$4 sm:$0xff]  }
 0xd97   : > { %15816 = vmatprep.subr.bf16.mxu1 %v19835_v53  ;;  %v19911_v53 = vld [vmem:[#allocation17 + $0x4f0] ss:$24 sps:$4 sm:$0xff]  }
 0xd9d   : > { %15763 = vmatmul.mubr.bf16.vlgmr.msra.gmra.mxu1 %v23294_v18 }
 0xd9e   : > { %15817 = vmatpush1.bf16.xpose.msra.mxu1 %v19833_v4  ;;  %v19916_v4 = vld [vmem:[#allocation17 + $0x54c] ss:$24 sps:$4 sm:$0xff]  }
 0xd9f   : > { %15818 = vmatprep.subr.bf16.mxu1 %v19841_v29  ;;  %v19919_v29 = vld [vmem:[#allocation17 + $0x4c4] ss:$24 sps:$4 sm:$0xff]  }
 0xda6   : > { %15819 = vmatpush1.bf16.xpose.msra.mxu1 %v19839_v31  ;;  %v19914_v31 = vld [vmem:[#allocation17 + $0x548] ss:$24 sps:$4 sm:$0xff]  }
 0xda7   : > { %15820 = vmatprep.subr.bf16.mxu1 %v19847_v21  ;;  %v19917_v21 = vld [vmem:[#allocation17 + $0x4c0] ss:$24 sps:$4 sm:$0xff]  }
 0xdaa   : > { %v18343_v13 = vpop.permute.xlu1 %18342 }
 0xdab   : > { %v18345_v38 = vunpack.i.h.bf16 %v18343_v13  ;;  %v18344_v52 = vunpack.i.l.bf16 %v18343_v13  ;;  %v19922_v13 = vld [vmem:[#allocation17 + $0x51c] ss:$24 sps:$4 sm:$0xff]  }
 0xdad   : > { %v10612_v14 = vsel %vm8961_vm0, %v10581_v60, %v18344_v52  ;;  %v13834_v0 = vsel %vm8961_vm0, %v13803_v61, %v18345_v38  ;;  %v19848_v60 = vld [vmem:[#allocation17 + $0x458] ss:$24 sps:$4 sm:$0xff]   ;;  %v19856_v61 = vld [vmem:[#allocation17 + $0x42c] ss:$24 sps:$4 sm:$0xff]  }
 0xdae   : > { %15821 = vmatpush1.bf16.xpose.msra.mxu1 %v19845_v42  ;;  %v18348_v49 = vpop.permute.xlu1 %18347  ;;  %v23408_v16 = vpack.c.bf16 %v13834_v0, %v10612_v14  ;;  %v19925_v42 = vld [vmem:[#allocation17 + $0x494] ss:$24 sps:$4 sm:$0xff]   ;;  %v19920_v38 = vld [vmem:[#allocation17 + $0x518] ss:$24 sps:$4 sm:$0xff]   ;;  %v19926_v0 = vld [vmem:[#allocation17 + $0x4e8] ss:$24 sps:$4 sm:$0xff]  }
 0xdaf   : > { %v18350_v54 = vunpack.i.h.bf16 %v18348_v49  ;;  %v18349_v17 = vunpack.i.l.bf16 %v18348_v49  ;;  %15822 = vmatprep.subr.bf16.mxu1 %v19853_v55  ;;  %v19923_v52 = vld [vmem:[#allocation17 + $0x490] ss:$24 sps:$4 sm:$0xff]   ;;  %v19928_v55 = vld [vmem:[#allocation17 + $0x4ec] ss:$24 sps:$4 sm:$0xff]   ;;  %v19931_v14 = vld [vmem:[#allocation17 + $0x75c] ss:$24 sps:$4 sm:$0xff]  }
 0xdb0   : > { %15719 = vmatprep.mubr.bf16.mxu0 %v23408_v16  ;;  %15848 = vmatprep.mubr.bf16.mxu1 %v23408_v16  ;;  %v19929_v49 = vld [vmem:[#allocation17 + $0x758] ss:$24 sps:$4 sm:$0xff]  }
 0xdb1   : > { %v10611_v6 = vsel %vm8961_vm0, %v10579_v34, %v18349_v17  ;;  %v13833_v19 = vsel %vm8961_vm0, %v13801_v22, %v18350_v54  ;;  %v19862_v34 = vld [vmem:[#allocation17 + $0x3fc] ss:$24 sps:$4 sm:$0xff]   ;;  %v19863_v22 = vld [vmem:[#allocation17 + $0x370] ss:$24 sps:$4 sm:$0xff]   ;;  %v19937_v17 = vld [vmem:[#allocation17 + $0x72c] ss:$24 sps:$4 sm:$0xff]  }
 0xdb2   : > { %v23420_v33 = vpack.c.bf16 %v13833_v19, %v10611_v6  ;;  %v19934_v54 = vld [vmem:[#allocation17 + $0x4bc] ss:$24 sps:$4 sm:$0xff]   ;;  %v19932_v6 = vld [vmem:[#allocation17 + $0x4b8] ss:$24 sps:$4 sm:$0xff]   ;;  %v19935_v19 = vld [vmem:[#allocation17 + $0x728] ss:$24 sps:$4 sm:$0xff]  }
 0xdb4   : > { %15720 = vmatmul.mubr.bf16.vlgmr.msra.gmra.mxu0 %v23420_v33 }
 0xdb5   : > { %15774 = vmatpush1.bf16.xpose.msra.mxu0 %v19848_v60  ;;  %15805 = vmatprep.mubr.bf16.mxu0 %v23324_v36  ;;  %v19940_v60 = vld [vmem:[#allocation17 + $0x48c] ss:$24 sps:$4 sm:$0xff]  }
 0xdb6   : > { %15823 = vmatpush1.bf16.xpose.msra.mxu1 %v19851_v30  ;;  %15775 = vmatprep.subr.bf16.mxu0 %v19856_v61  ;;  %v19943_v30 = vld [vmem:[#allocation17 + $0x6fc] ss:$24 sps:$4 sm:$0xff]   ;;  %v19938_v61 = vld [vmem:[#allocation17 + $0x488] ss:$24 sps:$4 sm:$0xff]  }
 0xdb7   : > { %15824 = vmatprep.subr.bf16.mxu1 %v19859_v44  ;;  %v19941_v44 = vld [vmem:[#allocation17 + $0x6f8] ss:$24 sps:$4 sm:$0xff]  }
 0xdbd   : > { %15776 = vmatpush1.bf16.xpose.msra.mxu0 %v19854_v37  ;;  %v19946_v37 = vld [vmem:[#allocation17 + $0x754] ss:$24 sps:$4 sm:$0xff]  }
 0xdbe   : > { %15825 = vmatpush1.bf16.xpose.msra.mxu1 %v19857_v32  ;;  %15777 = vmatprep.subr.bf16.mxu0 %v19862_v34  ;;  %v19949_v32 = vld [vmem:[#allocation17 + $0x6cc] ss:$24 sps:$4 sm:$0xff]   ;;  %v19944_v34 = vld [vmem:[#allocation17 + $0x750] ss:$24 sps:$4 sm:$0xff]  }
 0xdbf   : > { %15826 = vmatprep.subr.bf16.mxu1 %v19865_v25  ;;  %v19952_v25 = vld [vmem:[#allocation17 + $0x724] ss:$24 sps:$4 sm:$0xff]  }
 0xdc5   : > { %15778 = vmatpush1.bf16.xpose.msra.mxu0 %v19860_v51  ;;  %v19955_v51 = vld [vmem:[#allocation17 + $0x69c] ss:$24 sps:$4 sm:$0xff]  }
 0xdc6   : > { %15827 = vmatpush1.bf16.xpose.msra.mxu1 %v19863_v22  ;;  %15779 = vmatprep.subr.bf16.mxu0 %v19868_v40  ;;  %v19950_v22 = vld [vmem:[#allocation17 + $0x720] ss:$24 sps:$4 sm:$0xff]  }
 0xdc7   : > { %15828 = vmatprep.subr.bf16.mxu1 %v19871_v3  ;;  %v19953_v40 = vld [vmem:[#allocation17 + $0x698] ss:$24 sps:$4 sm:$0xff]   ;;  %v19958_v3 = vld [vmem:[#allocation17 + $0x6f4] ss:$24 sps:$4 sm:$0xff]  }
 0xdcd   : > { %15780 = vmatpush1.bf16.xpose.msra.mxu0 %v19866_v26  ;;  %v19961_v26 = vld [vmem:[#allocation17 + $0x66c] ss:$24 sps:$4 sm:$0xff]  }
 0xdce   : > { %15829 = vmatpush1.bf16.xpose.msra.mxu1 %v19869_v46  ;;  %15781 = vmatprep.subr.bf16.mxu0 %v19874_v23  ;;  %v19956_v46 = vld [vmem:[#allocation17 + $0x6f0] ss:$24 sps:$4 sm:$0xff]  }
 0xdcf   : > { %15830 = vmatprep.subr.bf16.mxu1 %v19877_v28  ;;  %v19959_v23 = vld [vmem:[#allocation17 + $0x668] ss:$24 sps:$4 sm:$0xff]   ;;  %v19964_v28 = vld [vmem:[#allocation17 + $0x6c4] ss:$24 sps:$4 sm:$0xff]  }
 0xdd5   : > { %15782 = vmatpush1.bf16.xpose.msra.mxu0 %v19872_v10  ;;  %v19967_v10 = vld [vmem:[#allocation17 + $0x63c] ss:$24 sps:$4 sm:$0xff]  }
 0xdd6   : > { %15831 = vmatpush1.bf16.xpose.msra.mxu1 %v19875_v1  ;;  %15783 = vmatprep.subr.bf16.mxu0 %v19880_v62  ;;  %v19965_v1 = vld [vmem:[#allocation17 + $0x638] ss:$24 sps:$4 sm:$0xff]   ;;  %v19970_v62 = vld [vmem:[#allocation17 + $0x694] ss:$24 sps:$4 sm:$0xff]  }
 0xdd7   : > { %15832 = vmatprep.subr.bf16.mxu1 %v19883_v39  ;;  %v19973_v39 = vld [vmem:[#allocation17 + $0x60c] ss:$24 sps:$4 sm:$0xff]  }
 0xddd   : > { %15784 = vmatpush1.bf16.xpose.msra.mxu0 %v19878_v9  ;;  %v19968_v9 = vld [vmem:[#allocation17 + $0x690] ss:$24 sps:$4 sm:$0xff]  }
 0xdde   : > { %15833 = vmatpush2.bf16.xpose.msra.mxu1 %v19881_v20  ;;  %15785 = vmatprep.subr.bf16.mxu0 %v19886_v43  ;;  %v19971_v20 = vld [vmem:[#allocation17 + $0x608] ss:$24 sps:$4 sm:$0xff]   ;;  %v19976_v43 = vld [vmem:[#allocation17 + $0x664] ss:$24 sps:$4 sm:$0xff]  }
 0xddf   : > { %15834 = vmatprep.subr.bf16.mxu1 %v19889_v63  ;;  %v19979_v63 = vld [vmem:[#allocation17 + $0x8dc] ss:$24 sps:$4 sm:$0xff]  }
 0xde5   : > { %15786 = vmatpush1.bf16.xpose.msra.mxu0 %v19884_v48  ;;  %v19974_v48 = vld [vmem:[#allocation17 + $0x660] ss:$24 sps:$4 sm:$0xff]  }
 0xde6   : > { %15835 = vmatpush2.bf16.xpose.msra.mxu1 %v19887_v11  ;;  %15787 = vmatprep.subr.bf16.mxu0 %v19892_v59  ;;  %v19977_v11 = vld [vmem:[#allocation17 + $0x8d8] ss:$24 sps:$4 sm:$0xff]   ;;  %v19982_v59 = vld [vmem:[#allocation17 + $0x634] ss:$24 sps:$4 sm:$0xff]  }
 0xde7   : > { %15836 = vmatprep.subr.bf16.mxu1 %v19895_v58  ;;  %v19985_v58 = vld [vmem:[#allocation17 + $0x8ac] ss:$24 sps:$4 sm:$0xff]  }
 0xded   : > { %15788 = vmatpush1.bf16.xpose.msra.mxu0 %v19890_v27  ;;  %v19980_v27 = vld [vmem:[#allocation17 + $0x630] ss:$24 sps:$4 sm:$0xff]  }
 0xdee   : > { %15837 = vmatpush2.bf16.xpose.msra.mxu1 %v19893_v8  ;;  %15789 = vmatprep.subr.bf16.mxu0 %v19898_v24  ;;  %v19983_v8 = vld [vmem:[#allocation17 + $0x8a8] ss:$24 sps:$4 sm:$0xff]   ;;  %v19988_v24 = vld [vmem:[#allocation17 + $0x604] ss:$24 sps:$4 sm:$0xff]  }
 0xdef   : > { %15838 = vmatprep.subr.bf16.mxu1 %v19901_v15  ;;  %v19991_v15 = vld [vmem:[#allocation17 + $0x87c] ss:$24 sps:$4 sm:$0xff]  }
 0xdf5   : > { %15790 = vmatpush2.bf16.xpose.msra.mxu0 %v19896_v57  ;;  %v19986_v57 = vld [vmem:[#allocation17 + $0x600] ss:$24 sps:$4 sm:$0xff]  }
 0xdf6   : > { %15839 = vmatpush2.bf16.xpose.msra.mxu1 %v19899_v12  ;;  %15791 = vmatprep.subr.bf16.mxu0 %v19904_v41  ;;  %v19989_v12 = vld [vmem:[#allocation17 + $0x878] ss:$24 sps:$4 sm:$0xff]   ;;  %v19994_v41 = vld [vmem:[#allocation17 + $0x8d4] ss:$24 sps:$4 sm:$0xff]  }
 0xdf7   : > { %15840 = vmatprep.subr.bf16.mxu1 %v19907_v35  ;;  %v19997_v35 = vld [vmem:[#allocation17 + $0x84c] ss:$24 sps:$4 sm:$0xff]  }
 0xdfd   : > { %15792 = vmatpush2.bf16.xpose.msra.mxu0 %v19902_v50  ;;  %v19992_v50 = vld [vmem:[#allocation17 + $0x8d0] ss:$24 sps:$4 sm:$0xff]  }
 0xdfe   : > { %15841 = vmatpush2.bf16.xpose.msra.mxu1 %v19905_v7  ;;  %15793 = vmatprep.subr.bf16.mxu0 %v19910_v2  ;;  %v19995_v7 = vld [vmem:[#allocation17 + $0x848] ss:$24 sps:$4 sm:$0xff]   ;;  %v20000_v2 = vld [vmem:[#allocation17 + $0x8a4] ss:$24 sps:$4 sm:$0xff]  }
 0xdff   : > { %15842 = vmatprep.subr.bf16.mxu1 %v19913_v5  ;;  %v20003_v5 = vld [vmem:[#allocation17 + $0x81c] ss:$24 sps:$4 sm:$0xff]  }
 0xe05   : > { %15794 = vmatpush2.bf16.xpose.msra.mxu0 %v19908_v56  ;;  %v19998_v56 = vld [vmem:[#allocation17 + $0x8a0] ss:$24 sps:$4 sm:$0xff]  }
 0xe06   : > { %15843 = vmatpush2.bf16.xpose.msra.mxu1 %v19911_v53  ;;  %15795 = vmatprep.subr.bf16.mxu0 %v19916_v4  ;;  %v20001_v53 = vld [vmem:[#allocation17 + $0x818] ss:$24 sps:$4 sm:$0xff]   ;;  %v20006_v4 = vld [vmem:[#allocation17 + $0x874] ss:$24 sps:$4 sm:$0xff]  }
 0xe07   : > { %15844 = vmatprep.subr.bf16.mxu1 %v19919_v29  ;;  %v20009_v29 = vld [vmem:[#allocation17 + $0x7ec] ss:$24 sps:$4 sm:$0xff]  }
 0xe0d   : > { %15796 = vmatpush2.bf16.xpose.msra.mxu0 %v19914_v31  ;;  %v20004_v31 = vld [vmem:[#allocation17 + $0x870] ss:$24 sps:$4 sm:$0xff]  }
 0xe0e   : > { %15845 = vmatpush2.bf16.xpose.msra.mxu1 %v19917_v21  ;;  %15797 = vmatprep.subr.bf16.mxu0 %v19922_v13  ;;  %v20007_v21 = vld [vmem:[#allocation17 + $0x7e8] ss:$24 sps:$4 sm:$0xff]   ;;  %v20012_v13 = vld [vmem:[#allocation17 + $0x844] ss:$24 sps:$4 sm:$0xff]  }
 0xe0f   : > { %15846 = vmatprep.subr.bf16.mxu1 %v19925_v42  ;;  %v20015_v42 = vld [vmem:[#allocation17 + $0x7bc] ss:$24 sps:$4 sm:$0xff]  }
 0xe15   : > { %15798 = vmatpush2.bf16.xpose.msra.mxu0 %v19920_v38  ;;  %v20010_v38 = vld [vmem:[#allocation17 + $0x840] ss:$24 sps:$4 sm:$0xff]  }
 0xe16   : > { %15847 = vmatpush2.bf16.xpose.msra.mxu1 %v19923_v52  ;;  %15799 = vmatprep.subr.bf16.mxu0 %v19928_v55  ;;  %v20013_v52 = vld [vmem:[#allocation17 + $0x7b8] ss:$24 sps:$4 sm:$0xff]   ;;  %v20018_v55 = vld [vmem:[#allocation17 + $0x814] ss:$24 sps:$4 sm:$0xff]  }
 0xe17   : > { %15902 = vmatprep.subr.bf16.mxu1 %v19931_v14  ;;  %v20021_v14 = vld [vmem:[#allocation17 + $0x78c] ss:$24 sps:$4 sm:$0xff]  }
 0xe1d   : > { %15800 = vmatpush2.bf16.xpose.msra.mxu0 %v19926_v0  ;;  %15849 = vmatmul.mubr.bf16.vlgmr.msra.gmra.mxu1 %v23420_v33  ;;  %v20016_v0 = vld [vmem:[#allocation17 + $0x810] ss:$24 sps:$4 sm:$0xff]  }
 0xe1e   : > { %15903 = vmatpush1.bf16.xpose.msra.mxu1 %v19929_v49  ;;  %15934 = vmatprep.mubr.bf16.mxu1 %v23324_v36  ;;  %v19947_v36 = vld [vmem:[#allocation17 + $0x6c8] ss:$24 sps:$4 sm:$0xff]  }
 0xe1f   : > { %15801 = vmatprep.subr.bf16.mxu0 %v19934_v54  ;;  %15904 = vmatprep.subr.bf16.mxu1 %v19937_v17  ;;  %v20019_v49 = vld [vmem:[#allocation17 + $0x788] ss:$24 sps:$4 sm:$0xff]   ;;  %v20024_v54 = vld [vmem:[#allocation17 + $0x7e4] ss:$24 sps:$4 sm:$0xff]  }
 0xe20   : > { %v20022_v17 = vld [vmem:[#allocation17 + $0x7e0] ss:$24 sps:$4 sm:$0xff]  }
 0xe25   : > { %15802 = vmatpush2.bf16.xpose.msra.mxu0 %v19932_v6  ;;  %v20027_v6 = vld [vmem:[#allocation17 + $0x7b4] ss:$24 sps:$4 sm:$0xff]  }
 0xe26   : > { %15905 = vmatpush1.bf16.xpose.msra.mxu1 %v19935_v19  ;;  %15803 = vmatprep.subr.bf16.mxu0 %v19940_v60  ;;  %v20025_v19 = vld [vmem:[#allocation17 + $0x7b0] ss:$24 sps:$4 sm:$0xff]   ;;  %v20030_v60 = vld [vmem:[#allocation17 + $0x784] ss:$24 sps:$4 sm:$0xff]  }
 0xe27   : > { %15906 = vmatprep.subr.bf16.mxu1 %v19943_v30  ;;  %v20028_v30 = vld [vmem:[#allocation17 + $0x780] ss:$24 sps:$4 sm:$0xff]  }
 0xe2d   : > { %15804 = vmatpush2.bf16.xpose.msra.mxu0 %v19938_v61  ;;  %v20033_v61 = vld [vmem:[#allocation17 + $0x764] ss:$24 sps:$4 sm:$0xff]  }
 0xe2e   : > { %15907 = vmatpush1.bf16.xpose.msra.mxu1 %v19941_v44  ;;  %15859 = vmatprep.subr.bf16.mxu0 %v19946_v37  ;;  %v20031_v44 = vld [vmem:[#allocation17 + $0x760] ss:$24 sps:$4 sm:$0xff]   ;;  %v20036_v37 = vld [vmem:[#allocation17 + $0x734] ss:$24 sps:$4 sm:$0xff]  }
 0xe2f   : > { %15908 = vmatprep.subr.bf16.mxu1 %v19949_v32  ;;  %v20034_v32 = vld [vmem:[#allocation17 + $0x730] ss:$24 sps:$4 sm:$0xff]  }
 0xe34   : > { %15806 = vmatmul.mubr.bf16.vlgmr.msra.gmra.mxu0 %v23310_v45 }
 0xe35   : > { %15860 = vmatpush1.bf16.xpose.msra.mxu0 %v19944_v34  ;;  %15891 = vmatprep.mubr.bf16.mxu0 %v23296_v47  ;;  %v19962_v47 = vld [vmem:[#allocation17 + $0x6c0] ss:$24 sps:$4 sm:$0xff]   ;;  %v20039_v34 = vld [vmem:[#allocation17 + $0x704] ss:$24 sps:$4 sm:$0xff]  }
 0xe36   : > { %15909 = vmatpush1.bf16.xpose.msra.mxu1 %v19947_v36  ;;  %15861 = vmatprep.subr.bf16.mxu0 %v19952_v25  ;;  %v20042_v36 = vld [vmem:[#allocation17 + $0x6d4] ss:$24 sps:$4 sm:$0xff]   ;;  %v20040_v25 = vld [vmem:[#allocation17 + $0x6d0] ss:$24 sps:$4 sm:$0xff]  }
 0xe37   : > { %15910 = vmatprep.subr.bf16.mxu1 %v19955_v51  ;;  %v20045_v51 = vld [vmem:[#allocation17 + $0x6a4] ss:$24 sps:$4 sm:$0xff]  }
 0xe3d   : > { %15862 = vmatpush1.bf16.xpose.msra.mxu0 %v19950_v22  ;;  %v20043_v22 = vld [vmem:[#allocation17 + $0x6a0] ss:$24 sps:$4 sm:$0xff]  }
 0xe3e   : > { %15911 = vmatpush1.bf16.xpose.msra.mxu1 %v19953_v40  ;;  %15863 = vmatprep.subr.bf16.mxu0 %v19958_v3  ;;  %v20048_v40 = vld [vmem:[#allocation17 + $0x674] ss:$24 sps:$4 sm:$0xff]   ;;  %v20051_v3 = vld [vmem:[#allocation17 + $0x644] ss:$24 sps:$4 sm:$0xff]  }
 0xe3f   : > { %15912 = vmatprep.subr.bf16.mxu1 %v19961_v26  ;;  %v20054_v26 = vld [vmem:[#allocation17 + $0x614] ss:$24 sps:$4 sm:$0xff]  }
 0xe45   : > { %15864 = vmatpush1.bf16.xpose.msra.mxu0 %v19956_v46  ;;  %v20052_v46 = vld [vmem:[#allocation17 + $0x610] ss:$24 sps:$4 sm:$0xff]  }
 0xe46   : > { %15913 = vmatpush1.bf16.xpose.msra.mxu1 %v19959_v23  ;;  %15865 = vmatprep.subr.bf16.mxu0 %v19964_v28  ;;  %v20057_v23 = vld [vmem:[#allocation17 + $0x8e4] ss:$24 sps:$4 sm:$0xff]   ;;  %v20055_v28 = vld [vmem:[#allocation17 + $0x8e0] ss:$24 sps:$4 sm:$0xff]  }
 0xe47   : > { %15914 = vmatprep.subr.bf16.mxu1 %v19967_v10  ;;  %v20060_v10 = vld [vmem:[#allocation17 + $0x8b4] ss:$24 sps:$4 sm:$0xff]  }
 0xe4d   : > { %15866 = vmatpush1.bf16.xpose.msra.mxu0 %v19962_v47  ;;  %v20058_v47 = vld [vmem:[#allocation17 + $0x8b0] ss:$24 sps:$4 sm:$0xff]  }
 0xe4e   : > { %15915 = vmatpush1.bf16.xpose.msra.mxu1 %v19965_v1  ;;  %15867 = vmatprep.subr.bf16.mxu0 %v19970_v62  ;;  %v20063_v1 = vld [vmem:[#allocation17 + $0x884] ss:$24 sps:$4 sm:$0xff]   ;;  %v20061_v62 = vld [vmem:[#allocation17 + $0x880] ss:$24 sps:$4 sm:$0xff]  }
 0xe4f   : > { %15916 = vmatprep.subr.bf16.mxu1 %v19973_v39  ;;  %v20066_v39 = vld [vmem:[#allocation17 + $0x854] ss:$24 sps:$4 sm:$0xff]  }
 0xe55   : > { %15868 = vmatpush1.bf16.xpose.msra.mxu0 %v19968_v9  ;;  %v20064_v9 = vld [vmem:[#allocation17 + $0x850] ss:$24 sps:$4 sm:$0xff]  }
 0xe56   : > { %15917 = vmatpush1.bf16.xpose.msra.mxu1 %v19971_v20  ;;  %15869 = vmatprep.subr.bf16.mxu0 %v19976_v43  ;;  %v20069_v20 = vld [vmem:[#allocation17 + $0x824] ss:$24 sps:$4 sm:$0xff]   ;;  %v20067_v43 = vld [vmem:[#allocation17 + $0x820] ss:$24 sps:$4 sm:$0xff]  }
 0xe57   : > { %15918 = vmatprep.subr.bf16.mxu1 %v19979_v63  ;;  %v20072_v63 = vld [vmem:[#allocation17 + $0x7f4] ss:$24 sps:$4 sm:$0xff]  }
 0xe5d   : > { %15870 = vmatpush1.bf16.xpose.msra.mxu0 %v19974_v48  ;;  %v20070_v48 = vld [vmem:[#allocation17 + $0x7f0] ss:$24 sps:$4 sm:$0xff]  }
 0xe5e   : > { %15919 = vmatpush2.bf16.xpose.msra.mxu1 %v19977_v11  ;;  %15871 = vmatprep.subr.bf16.mxu0 %v19982_v59  ;;  %v20075_v11 = vld [vmem:[#allocation17 + $0x7c4] ss:$24 sps:$4 sm:$0xff]   ;;  %v20073_v59 = vld [vmem:[#allocation17 + $0x7c0] ss:$24 sps:$4 sm:$0xff]  }
 0xe5f   : > { %15920 = vmatprep.subr.bf16.mxu1 %v19985_v58  ;;  %v20078_v58 = vld [vmem:[#allocation17 + $0x794] ss:$24 sps:$4 sm:$0xff]  }
 0xe65   : > { %15872 = vmatpush1.bf16.xpose.msra.mxu0 %v19980_v27  ;;  %v20076_v27 = vld [vmem:[#allocation17 + $0x790] ss:$24 sps:$4 sm:$0xff]  }
 0xe66   : > { %15921 = vmatpush2.bf16.xpose.msra.mxu1 %v19983_v8  ;;  %15873 = vmatprep.subr.bf16.mxu0 %v19988_v24  ;;  %v15635_v8 = vpop.f32.mrf.mxu0 }
 0xe67   : > { %15922 = vmatprep.subr.bf16.mxu1 %v19991_v15  ;;  %v15678_v15 = vpop.f32.mrf.mxu1 }
 0xe68   : > { %v15637_v24 = vpop.f32.mrf.mxu0 }
 0xe6d   : > { %15874 = vmatpush1.bf16.xpose.msra.mxu0 %v19986_v57  ;;  %v15639_v57 = vpop.f32.mrf.mxu0 }
 0xe6e   : > { %15923 = vmatpush2.bf16.xpose.msra.mxu1 %v19989_v12  ;;  %15875 = vmatprep.subr.bf16.mxu0 %v19994_v41  ;;  %v15680_v12 = vpop.f32.mrf.mxu1 }
 0xe6f   : > { %15924 = vmatprep.subr.bf16.mxu1 %v19997_v35  ;;  %v15641_v41 = vpop.f32.mrf.mxu0 }
 0xe70   : > { %v15682_v35 = vpop.f32.mrf.mxu1 }
 0xe75   : > { %15876 = vmatpush2.bf16.xpose.msra.mxu0 %v19992_v50  ;;  %v15721_v50 = vpop.f32.mrf.mxu0 }
 0xe76   : > { %15925 = vmatpush2.bf16.xpose.msra.mxu1 %v19995_v7  ;;  %15877 = vmatprep.subr.bf16.mxu0 %v20000_v2  ;;  %v15684_v7 = vpop.f32.mrf.mxu1 }
 0xe77   : > { %15926 = vmatprep.subr.bf16.mxu1 %v20003_v5  ;;  %v15723_v2 = vpop.f32.mrf.mxu0 }
 0xe78   : > { %v15764_v5 = vpop.f32.mrf.mxu1 }
 0xe7d   : > { %15878 = vmatpush2.bf16.xpose.msra.mxu0 %v19998_v56  ;;  %v15725_v56 = vpop.f32.mrf.mxu0 }
 0xe7e   : > { %15927 = vmatpush2.bf16.xpose.msra.mxu1 %v20001_v53  ;;  %15879 = vmatprep.subr.bf16.mxu0 %v20006_v4  ;;  %v15766_v53 = vpop.f32.mrf.mxu1 }
 0xe7f   : > { %15928 = vmatprep.subr.bf16.mxu1 %v20009_v29  ;;  %v15727_v4 = vpop.f32.mrf.mxu0 }
 0xe80   : > { %v15768_v29 = vpop.f32.mrf.mxu1 }
 0xe85   : > { %15880 = vmatpush2.bf16.xpose.msra.mxu0 %v20004_v31 }
 0xe86   : > { %15929 = vmatpush2.bf16.xpose.msra.mxu1 %v20007_v21  ;;  %15881 = vmatprep.subr.bf16.mxu0 %v20012_v13  ;;  %v15770_v21 = vpop.f32.mrf.mxu1 }
 0xe87   : > { %15930 = vmatprep.subr.bf16.mxu1 %v20015_v42  ;;  %v14129_v42 = vld [vmem:[#allocation19] sm:$0x3f] }
 0xe8d   : > { %15882 = vmatpush2.bf16.xpose.msra.mxu0 %v20010_v38  ;;  %v23806_v38 = vld [vmem:[#allocation37_spill] sm:$0xff] }
 0xe8e   : > { %15931 = vmatpush2.bf16.xpose.msra.mxu1 %v20013_v52  ;;  %15883 = vmatprep.subr.bf16.mxu0 %v20018_v55  ;;  %v14138_v52 = vrot.slane %v14129_v42, %v23806_v38  ;;  %v23807_v55 = vld [vmem:[#allocation41_spill] sm:$0xff] }
 0xe8f   : > { %15932 = vmatprep.subr.bf16.mxu1 %v20021_v14  ;;  %v14142_v14 = vrot.slane %v14129_v42, %v23807_v55 }
 0xe95   : > { %15884 = vmatpush2.bf16.xpose.msra.mxu0 %v20016_v0 }
 0xe96   : > { %15933 = vmatpush2.bf16.xpose.msra.mxu1 %v20019_v49  ;;  %15885 = vmatprep.subr.bf16.mxu0 %v20024_v54  ;;  %v23808_v49 = vld [vmem:[#allocation40_spill] sm:$0xff] }
 0xe97   : > { %v14134_v54 = vrot.slane %v14129_v42, %v23808_v49 }
 0xe9d   : > { %15886 = vmatpush2.bf16.xpose.msra.mxu0 %v20022_v17  ;;  %15935 = vmatmul.mubr.bf16.vlgmr.msra.gmra.mxu1 %v23310_v45  ;;  %v20037_v45 = vld [vmem:[#allocation17 + $0x700] ss:$24 sps:$4 sm:$0xff]  }
 0xe9e   : > { %15887 = vmatprep.subr.bf16.mxu0 %v20027_v6  ;;  %v15638_v6 = vadd.f32 %v15637_v24, %v14138_v52 }
 0xea5   : > { %15888 = vmatpush2.bf16.xpose.msra.mxu0 %v20025_v19  ;;  %v15765_v19 = vadd.f32 %v15764_v5, %v14142_v14 }
 0xea6   : > { %15889 = vmatprep.subr.bf16.mxu0 %v20030_v60  ;;  %v23809_v60 = vld [vmem:[#allocation42_spill] sm:$0xff] }
 0xead   : > { %15890 = vmatpush2.bf16.xpose.msra.mxu0 %v20028_v30  ;;  %v14146_v30 = vrot.slane %v14129_v42, %v23809_v60 }
 0xeae   : > { %15945 = vmatprep.subr.bf16.mxu0 %v20033_v61 }
 0xeb4   : > { %15892 = vmatmul.mubr.bf16.vlgmr.msra.gmra.mxu0 %v23294_v18  ;;  %v20046_v18 = vld [vmem:[#allocation17 + $0x670] ss:$24 sps:$4 sm:$0xff]  }
 0xeb5   : > { %15946 = vmatpush1.bf16.xpose.msra.mxu0 %v20031_v44  ;;  %15977 = vmatprep.mubr.bf16.mxu0 %v23408_v16  ;;  %v20049_v16 = vld [vmem:[#allocation17 + $0x640] ss:$24 sps:$4 sm:$0xff]   ;;  %v15636_v44 = vadd.f32 %v15635_v8, %v14134_v54 }
 0xeb6   : > { %15947 = vmatprep.subr.bf16.mxu0 %v20036_v37  ;;  %v15681_v37 = vadd.f32 %v15680_v12, %v15638_v6  ;;  %v20185_v8 = vld [vmem:[%s21022_s21 + $0x10] sm:$0xff] }
 0xebd   : > { %15948 = vmatpush1.bf16.xpose.msra.mxu0 %v20034_v32 }
 0xebe   : > { %15949 = vmatprep.subr.bf16.mxu0 %v20039_v34 }
 0xec5   : > { %15950 = vmatpush1.bf16.xpose.msra.mxu0 %v20037_v45 }
 0xec6   : > { %15951 = vmatprep.subr.bf16.mxu0 %v20042_v36  ;;  %v15679_v36 = vadd.f32 %v15678_v15, %v15636_v44 }
 0xecd   : > { %15952 = vmatpush1.bf16.xpose.msra.mxu0 %v20040_v25  ;;  %v15642_v25 = vadd.f32 %v15641_v41, %v14138_v52 }
 0xece   : > { %15953 = vmatprep.subr.bf16.mxu0 %v20045_v51  ;;  %v15767_v51 = vadd.f32 %v15766_v53, %v14146_v30 }
 0xed5   : > { %15954 = vmatpush1.bf16.xpose.msra.mxu0 %v20043_v22  ;;  %v15769_v22 = vadd.f32 %v15768_v29, %v14142_v14 }
 0xed6   : > { %15955 = vmatprep.subr.bf16.mxu0 %v20048_v40  ;;  %v15724_v40 = vadd.f32 %v15723_v2, %v15681_v37 }
 0xedd   : > { %15956 = vmatpush1.bf16.xpose.msra.mxu0 %v20046_v18  ;;  %v15640_v18 = vadd.f32 %v15639_v57, %v14134_v54 }
 0xede   : > { %15957 = vmatprep.subr.bf16.mxu0 %v20051_v3  ;;  %v15722_v3 = vadd.f32 %v15721_v50, %v15679_v36  ;;  %v20191_v36 = vld [vmem:[%s21022_s21 + $0x20] sm:$0xff] }
 0xee5   : > { %15958 = vmatpush1.bf16.xpose.msra.mxu0 %v20049_v16  ;;  %v15685_v16 = vadd.f32 %v15684_v7, %v15642_v25  ;;  %v20186_v7 = vld [vmem:[%s21022_s21 + $0x38] sm:$0xff] }
 0xee6   : > { %15959 = vmatprep.subr.bf16.mxu0 %v20054_v26 }
 0xeed   : > { %15960 = vmatpush1.bf16.xpose.msra.mxu0 %v20052_v46 }
 0xeee   : > { %15961 = vmatprep.subr.bf16.mxu0 %v20057_v23 }
 0xef4   : > { %v15807_v31 = vpop.f32.mrf.mxu0 }
 0xef5   : > { %15962 = vmatpush2.bf16.xpose.msra.mxu0 %v20055_v28  ;;  %v15808_v34 = vadd.f32 %v15807_v31, %v15765_v19 }
 0xef6   : > { %15963 = vmatprep.subr.bf16.mxu0 %v20060_v10  ;;  %v15809_v13 = vpop.f32.mrf.mxu0 }
 0xef7   : > { %v15810_v23 = vadd.f32 %v15809_v13, %v15767_v51  ;;  %v20189_v13 = vld [vmem:[%s21022_s21 + $0x40] sm:$0xff] }
 0xef8   : > { %v15811_v0 = vpop.f32.mrf.mxu0 }
 0xef9   : > { %v15812_v28 = vadd.f32 %v15811_v0, %v15769_v22 }
 0xefa   : > { %v15813_v61 = vpop.f32.mrf.mxu0 }
 0xefd   : > { %15964 = vmatpush2.bf16.xpose.msra.mxu0 %v20058_v47  ;;  %v23810_v47 = vld [vmem:[#allocation58_spill] sm:$0xff] }
 0xefe   : > { %15965 = vmatprep.subr.bf16.mxu0 %v20063_v1  ;;  %v14150_v1 = vrot.slane %v14129_v42, %v23810_v47 }
 0xf05   : > { %15966 = vmatpush2.bf16.xpose.msra.mxu0 %v20061_v62  ;;  %v15683_v62 = vadd.f32 %v15682_v35, %v15640_v18 }
 0xf06   : > { %15967 = vmatprep.subr.bf16.mxu0 %v20066_v39  ;;  %v20183_v39 = vld [vmem:[%s21022_s21 + $0x8] sm:$0xff] }
 0xf0d   : > { %15968 = vmatpush2.bf16.xpose.msra.mxu0 %v20064_v9  ;;  %v23438_v9 = vadd.f32 %v20183_v39, %v15724_v40 }
 0xf0e   : > { %15969 = vmatprep.subr.bf16.mxu0 %v20069_v20  ;;  %v15728_v20 = vadd.f32 %v15727_v4, %v15685_v16  ;;  %v20187_v4 = vld [vmem:[%s21022_s21 + $0x30] sm:$0xff] }
 0xf10   : > { %v15995_v2 = vadd.f32 %v20186_v7, %v15728_v20 }
 0xf15   : > { %15970 = vmatpush2.bf16.xpose.msra.mxu0 %v20067_v43 }
 0xf16   : > { %15971 = vmatprep.subr.bf16.mxu0 %v20072_v63  ;;  %v15771_v63 = vadd.f32 %v15770_v21, %v14146_v30  ;;  %v20188_v21 = vld [vmem:[%s21022_s21 + $0x18] sm:$0xff] }
 0xf18   : > { %v15814_v41 = vadd.f32 %v15813_v61, %v15771_v63 }
 0xf1d   : > { %15972 = vmatpush2.bf16.xpose.msra.mxu0 %v20070_v48  ;;  %v20184_v48 = vld [vmem:[%s21022_s21] sm:$0xff] }
 0xf1e   : > { %15973 = vmatprep.subr.bf16.mxu0 %v20075_v11  ;;  %v15988_v11 = vadd.f32 %v20184_v48, %v15722_v3  ;;  %v20192_v3 = vld [vmem:[%s21022_s21 + $0x28] sm:$0xff] }
 0xf20   : > { %v16000_v50 = vadd.f32 %v23438_v9, %v15988_v11 }
 0xf25   : > { %15974 = vmatpush2.bf16.xpose.msra.mxu0 %v20073_v59  ;;  %v23811_v59 = vld [vmem:[#allocation50_spill] sm:$0xff] }
 0xf26   : > { %15975 = vmatprep.subr.bf16.mxu0 %v20078_v58  ;;  %v14154_v58 = vrot.slane %v14129_v42, %v23811_v59 }
 0xf2d   : > { %15976 = vmatpush2.bf16.xpose.msra.mxu0 %v20076_v27  ;;  %v15726_v27 = vadd.f32 %v15725_v56, %v15683_v62 }
 0xf2f   : > { %v15994_v29 = vadd.f32 %v20187_v4, %v15726_v27 }
 0xf31   : > { %v16007_v54 = vadd.f32 %v15995_v2, %v15994_v29 }
 0xf34   : > { %15978 = vmatmul.mubr.bf16.vlgmr.msra.gmra.mxu0 %v23420_v33  ;;  %v15850_v33 = vpop.f32.mrf.mxu1 }
 0xf35   : > { %v15851_v46 = vadd.f32 %v15850_v33, %v15808_v34  ;;  %v20190_v34 = vld [vmem:[%s21022_s21 + $0x48] sm:$0xff] }
 0xf36   : > { %v15852_v17 = vpop.f32.mrf.mxu1 }
 0xf37   : > { %v15990_v24 = vadd.f32 %v20185_v8, %v15851_v46  ;;  %v15853_v15 = vadd.f32 %v15852_v17, %v15810_v23 }
 0xf38   : > { %v15854_v32 = vpop.f32.mrf.mxu1 }
 0xf39   : > { %v15855_v57 = vadd.f32 %v15854_v32, %v15812_v28  ;;  %v16001_v31 = vadd.f32 %v16000_v50, %v15990_v24  ;;  %v15991_v56 = vadd.f32 %v20188_v21, %v15853_v15 }
 0xf3a   : > { %v15856_v26 = vpop.f32.mrf.mxu1 }
 0xf3b   : > { %v15996_v42 = vadd.f32 %v20189_v13, %v15855_v57  ;;  %v15857_v52 = vadd.f32 %v15856_v26, %v15814_v41  ;;  %v16002_v32 = vadd.f32 %v16001_v31, %v15991_v56 }
 0xf3d   : > { %v16008_v44 = vadd.f32 %v16007_v54, %v15996_v42 }
 0xf5d   : > { %v15936_v43 = vpop.f32.mrf.mxu1 }
 0xf5f   : > { %v15938_v5 = vpop.f32.mrf.mxu1 }
 0xf61   : > { %v15940_v17 = vpop.f32.mrf.mxu1 }
 0xf63   : > { %v15942_v40 = vpop.f32.mrf.mxu1 }
 0xf74   : > { %v15893_v45 = vpop.f32.mrf.mxu0 }
 0xf75   : > { %v15894_v35 = vadd.f32 %v15893_v45, %v14150_v1  ;;  %v15997_v45 = vadd.f32 %v20190_v34, %v15857_v52 }
 0xf76   : > { %v15895_v10 = vpop.f32.mrf.mxu0 }
 0xf77   : > { %v15896_v53 = vadd.f32 %v15895_v10, %v14154_v58  ;;  %v15937_v0 = vadd.f32 %v15936_v43, %v15894_v35  ;;  %v20193_v10 = vld [vmem:[%s21022_s21 + $0x50] sm:$0xff]  ;;  %v16009_v20 = vadd.f32 %v16008_v44, %v15997_v45  ;;  %v20194_v43 = vld [vmem:[%s21022_s21 + $0x58] sm:$0xff] }
 0xf78   : > { %v15897_v12 = vpop.f32.mrf.mxu0 }
 0xf79   : > { %v15898_v14 = vadd.f32 %v15897_v12, %v14150_v1  ;;  %v15939_v61 = vadd.f32 %v15938_v5, %v15896_v53 }
 0xf7a   : > { %v15899_v33 = vpop.f32.mrf.mxu0 }
 0xf7b   : > { %v15900_v19 = vadd.f32 %v15899_v33, %v14154_v58  ;;  %v15941_v22 = vadd.f32 %v15940_v17, %v15898_v14 }
 0xf7d   : > { %v15943_v46 = vadd.f32 %v15942_v40, %v15900_v19 }
 0xff4   : > { %v15979_v6 = vpop.f32.mrf.mxu0 }
 0xff5   : > { %v15980_v30 = vadd.f32 %v15979_v6, %v15937_v0 }
 0xff6   : > { %v15981_v37 = vpop.f32.mrf.mxu0 }
 0xff7   : > { %v15992_v25 = vadd.f32 %v20191_v36, %v15980_v30  ;;  %v15982_v51 = vadd.f32 %v15981_v37, %v15939_v61 }
 0xff8   : > { %v15983_v18 = vpop.f32.mrf.mxu0 }
 0xff9   : > { %v15993_v16 = vadd.f32 %v20192_v3, %v15982_v51  ;;  %v15984_v26 = vadd.f32 %v15983_v18, %v15941_v22  ;;  %v16003_v23 = vadd.f32 %v16002_v32, %v15992_v25 }
 0xffa   : > { %v15985_v28 = vpop.f32.mrf.mxu0 }
 0xffb   : > { %v15998_v1 = vadd.f32 %v20193_v10, %v15984_v26  ;;  %v15986_v62 = vadd.f32 %v15985_v28, %v15943_v46  ;;  %v16004_v39 = vadd.f32 %v16003_v23, %v15993_v16  ;;  %v16117_v26 = vld [vmem:[#allocation22] sm:$0x3f] }
 0xffc   : > { %v16122_v28 = vrot.slane %v16117_v26, %v23808_v49  ;;  %v16126_v10 = vrot.slane %v16117_v26, %v23806_v38 }
 0xffd   : > { %v15999_v63 = vadd.f32 %v20194_v43, %v15986_v62  ;;  %16005 = vadd.xlane.f32.xlu0 %v16004_v39  ;;  %v16010_v48 = vadd.f32 %v16009_v20, %v15998_v1 }
 0xfff   : > { %v16011_v58 = vadd.f32 %v16010_v48, %v15999_v63 }
0x1001   : > { %16012 = vadd.xlane.f32.xlu1 %v16011_v58 }
0x1086   : > { %v16006_v27 = vpop.xlane.xlu0 %16005 }
0x1087   : > { %v16015_v8 = vmul.f32 0.0013020834, %v16006_v27 }
0x1089   : > { %v16017_v15 = vsub.f32 %v15988_v11, %v16015_v8  ;;  %v16018_v57 = vsub.f32 %v23438_v9, %v16015_v8  ;;  %v16019_v12 = vsub.f32 %v15990_v24, %v16015_v8  ;;  %v16020_v35 = vsub.f32 %v15991_v56, %v16015_v8 }
0x108a   : > { %v16013_v41 = vpop.xlane.xlu1 %16012  ;;  %v16021_v53 = vsub.f32 %v15992_v25, %v16015_v8  ;;  %v16022_v52 = vsub.f32 %v15993_v16, %v16015_v8  ;;  %v16073_v16 = vld [vmem:[#allocation20] sm:$0x3f]  ;;  %v16130_v8 = vrot.slane %v16117_v26, %v23807_v55 }
0x108b   : > { %v16016_v50 = vmul.f32 0.0013020834, %v16013_v41  ;;  %v16029_v7 = vmul.f32 %v16017_v15, %v16017_v15  ;;  %v16030_v5 = vmul.f32 %v16018_v57, %v16018_v57  ;;  %v16031_v4 = vmul.f32 %v16019_v12, %v16019_v12 }
0x108c   : > { %v16032_v14 = vmul.f32 %v16020_v35, %v16020_v35  ;;  %v16033_v56 = vmul.f32 %v16021_v53, %v16021_v53  ;;  %v16034_v6 = vmul.f32 %v16022_v52, %v16022_v52  ;;  %v16078_v46 = vrot.slane %v16073_v16, %v23808_v49 }
0x108d   : > { %v16041_v31 = vadd.f32 %v16030_v5, %v16029_v7  ;;  %v23454_v21 = vsub.f32 %v15994_v29, %v16016_v50  ;;  %v23456_v13 = vsub.f32 %v15995_v2, %v16016_v50  ;;  %v23458_v33 = vsub.f32 %v15996_v42, %v16016_v50 }
0x108e   : > { %v16026_v0 = vsub.f32 %v15997_v45, %v16016_v50  ;;  %v16027_v17 = vsub.f32 %v15998_v1, %v16016_v50  ;;  %v16028_v19 = vsub.f32 %v15999_v63, %v16016_v50  ;;  %v16082_v23 = vrot.slane %v16073_v16, %v23806_v38 }
0x108f   : > { %v16042_v11 = vadd.f32 %v16041_v31, %v16031_v4  ;;  %v16035_v9 = vmul.f32 %v23454_v21, %v23454_v21  ;;  %v16036_v24 = vmul.f32 %v23456_v13, %v23456_v13  ;;  %v16037_v29 = vmul.f32 %v23458_v33, %v23458_v33 }
0x1090   : > { %v16038_v30 = vmul.f32 %v16026_v0, %v16026_v0  ;;  %v16039_v37 = vmul.f32 %v16027_v17, %v16027_v17  ;;  %v16040_v34 = vmul.f32 %v16028_v19, %v16028_v19  ;;  %v16086_v62 = vrot.slane %v16073_v16, %v23807_v55 }
0x1091   : > { %v16043_v54 = vadd.f32 %v16042_v11, %v16032_v14  ;;  %v16048_v2 = vadd.f32 %v16036_v24, %v16035_v9  ;;  %v16094_v39 = vrot.slane %v16073_v16, %v23810_v47  ;;  %v16090_v20 = vrot.slane %v16073_v16, %v23809_v60 }
0x1092   : > { %v16098_v43 = vrot.slane %v16073_v16, %v23811_v59  ;;  %v16138_v41 = vrot.slane %v16117_v26, %v23810_v47  ;;  %v16134_v50 = vrot.slane %v16117_v26, %v23809_v60  ;;  %v16142_v7 = vrot.slane %v16117_v26, %v23811_v59 }
0x1093   : > { %v16044_v42 = vadd.f32 %v16043_v54, %v16033_v56  ;;  %v16049_v61 = vadd.f32 %v16048_v2, %v16037_v29 }
0x1095   : > { %v16045_v44 = vadd.f32 %v16044_v42, %v16034_v6  ;;  %v16050_v32 = vadd.f32 %v16049_v61, %v16038_v30 }
0x1097   : > { %16046 = vadd.xlane.f32.xlu0 %v16045_v44  ;;  %v16051_v45 = vadd.f32 %v16050_v32, %v16039_v37 }
0x1099   : > { %v16052_v36 = vadd.f32 %v16051_v45, %v16040_v34 }
0x109b   : > { %16053 = vadd.xlane.f32.xlu0 %v16052_v36 }
0x1120   : > { %v16047_v25 = vpop.xlane.xlu0 %16046 }
0x1121   : > { %v16055_v51 = vmul.f32 0.0013020834, %v16047_v25 }
0x1123   : > { %v16057_v22 = vadd.f32 1e-12, %v16055_v51 }
0x1124   : > { %v16054_v40 = vpop.xlane.xlu0 %16053 }
0x1125   : > { %20175 = vrsqrt.f32 %v16057_v22  ;;  %v16056_v18 = vmul.f32 0.0013020834, %v16054_v40 }
0x1127   : > { %v16058_v3 = vadd.f32 1e-12, %v16056_v18 }
0x1129   : > { %20177 = vrsqrt.f32 %v16058_v3 }
0x1132   : > { %v20176_v1 = vpop.eup %20175 }
0x1133   : > { %v16061_v63 = vmul.f32 %v20176_v1, %v16017_v15  ;;  %v16062_v48 = vmul.f32 %v20176_v1, %v16018_v57  ;;  %v16063_v58 = vmul.f32 %v20176_v1, %v16019_v12  ;;  %v16064_v27 = vmul.f32 %v20176_v1, %v16020_v35 }
0x1134   : > { %v16065_v49 = vmul.f32 %v20176_v1, %v16021_v53  ;;  %v16066_v38 = vmul.f32 %v20176_v1, %v16022_v52 }
0x1135   : > { %v16105_v5 = vmul.f32 %v16078_v46, %v16061_v63  ;;  %v16106_v4 = vmul.f32 %v16082_v23, %v16062_v48  ;;  %v16107_v14 = vmul.f32 %v16086_v62, %v16063_v58  ;;  %v16108_v11 = vmul.f32 %v16090_v20, %v16064_v27 }
0x1136   : > { %v20178_v31 = vpop.eup %20177  ;;  %v16109_v15 = vmul.f32 %v16094_v39, %v16065_v49  ;;  %v16110_v57 = vmul.f32 %v16098_v43, %v16066_v38 }
0x1137   : > { %v16067_v12 = vmul.f32 %v20178_v31, %v23454_v21  ;;  %v16068_v55 = vmul.f32 %v20178_v31, %v23456_v13  ;;  %v16069_v47 = vmul.f32 %v20178_v31, %v23458_v33  ;;  %v16070_v35 = vmul.f32 %v20178_v31, %v16026_v0 }
0x1138   : > { %v16071_v53 = vmul.f32 %v20178_v31, %v16027_v17  ;;  %v16072_v60 = vmul.f32 %v20178_v31, %v16028_v19  ;;  %v16149_v52 = vadd.f32 %v16122_v28, %v16105_v5  ;;  %v16150_v59 = vadd.f32 %v16126_v10, %v16106_v4 }
0x1139   : > { %v16111_v9 = vmul.f32 %v16078_v46, %v16067_v12  ;;  %v16112_v24 = vmul.f32 %v16082_v23, %v16068_v55  ;;  %v16113_v56 = vmul.f32 %v16086_v62, %v16069_v47  ;;  %v16114_v54 = vmul.f32 %v16090_v20, %v16070_v35 }
0x113a   : > { %v16115_v29 = vmul.f32 %v16094_v39, %v16071_v53  ;;  %v16116_v2 = vmul.f32 %v16098_v43, %v16072_v60  ;;  %v16151_v21 = vadd.f32 %v16130_v8, %v16107_v14  ;;  %v16152_v6 = vadd.f32 %v16134_v50, %v16108_v11  ;;  %16161 = vst [vmem:[%s670_s1] sm:$0xff] %v16149_v52 }
0x113b   : > { %16162 = vst [vmem:[%s670_s1 + $0x8] sm:$0xff] %v16150_v59  ;;  %v16153_v13 = vadd.f32 %v16138_v41, %v16109_v15  ;;  %v16154_v33 = vadd.f32 %v16142_v7, %v16110_v57  ;;  %v16155_v0 = vadd.f32 %v16122_v28, %v16111_v9  ;;  %v16156_v17 = vadd.f32 %v16126_v10, %v16112_v24 }
0x113c   : > { %v16157_v42 = vadd.f32 %v16130_v8, %v16113_v56  ;;  %v16158_v19 = vadd.f32 %v16134_v50, %v16114_v54  ;;  %v16159_v30 = vadd.f32 %v16138_v41, %v16115_v29  ;;  %v16160_v61 = vadd.f32 %v16142_v7, %v16116_v2  ;;  %16163 = vst [vmem:[%s670_s1 + $0x10] sm:$0xff] %v16151_v21 }
0x113d   : > { %16164 = vst [vmem:[%s670_s1 + $0x18] sm:$0xff] %v16152_v6  ;;  %16165 = vst [vmem:[%s670_s1 + $0x20] sm:$0xff] %v16153_v13 }
0x113e   : > { %16166 = vst [vmem:[%s670_s1 + $0x28] sm:$0xff] %v16154_v33  ;;  %16167 = vst [vmem:[%s670_s1 + $0x30] sm:$0xff] %v16155_v0 }
0x113f   : > { %16168 = vst [vmem:[%s670_s1 + $0x38] sm:$0xff] %v16156_v17  ;;  %16169 = vst [vmem:[%s670_s1 + $0x40] sm:$0xff] %v16157_v42 }
0x1140   : > { %16170 = vst [vmem:[%s670_s1 + $0x48] sm:$0xff] %v16158_v19  ;;  %16171 = vst [vmem:[%s670_s1 + $0x50] sm:$0xff] %v16159_v30 }
0x1141   : > { %16172 = vst [vmem:[%s670_s1 + $0x58] sm:$0xff] %v16160_v61 }
0x1142   : > { %20552 = shalt.err (!%p20549_p10)
}
0x1143   : > { %s20553_s21 = scalar_lea.hbm %s23487_s7, 1536  ;;  %s20557_s29 = scalar_lea.hbm %s23545_s13, 3072 }
0x1144   : > { %p20554_p8 = scmp.ne.s32.totalorder %s23487_s7, %s20553_s21  ;;  %p20558_p2 = scmp.lt.s32.totalorder %s23487_s7, %s23545_s13 }
0x1145   : > { %p20559_p4 = scmp.lt.s32.totalorder %s20557_s29, %s20553_s21 }
0x1146   : > { %p20555_p5 = pnand %p20554_p8, %p23812_p6 }
0x1147   : > { %p20560_p3 = por %p20559_p4, %p20558_p2 }
0x1148   : > { %p20556_p11 = pneg %p20555_p5 }
0x114a   : > { %p20561_p12 = pnand %p20560_p3, %p20556_p11 }
0x114c   : > { %20564 = shalt.err (!%p20561_p12)
}
0x114d   : > { %s20655_s9 = smov 768   ;;  %s20656_s3 = smov 48  }
0x114e   : > { %18196 = dma.vmem_to_hbm [thread:$0]  (%p23812_p6), %s23489_s19, 1536, %s23487_s7, %s16174_s22, %s20655_s9, %s20655_s9, %s20656_s3  }
0x114f PF: > { %s23813_s18 = sld [smem:[#allocation32_spill]]  ;;  %p23816_p7 = scmp.ge.s32.totalorder %s20627_s28, 2 }
0x1150   : > { %s23814_s1 = sld [smem:[#allocation36_spill]] }
0x1155   : > { %s16203_s14 = sand.u32 1, %s23813_s18  }
0x1156   : > { %p23815_p9 = scmp.ne.s32.totalorder %s23814_s1, 0  ;;  %s16204_s20 = scalar_lea.sflag [#allocation4], %s16203_s14 }
0x1158   : > { %p18240_p1 = pnand %p23816_p7, %p23815_p9 }
0x115a   : > { %p18241_p0 = pneg %p18240_p1 }
0x115c   : > { %20610 = dma.done.wait (%p18241_p0), %s16204_s20, 1536  }
0x115d   : > { %20612 = vsyncadd (%p18241_p0), %s16204_s20, 4294965760  ;;  %s23817_s28 = sld [smem:[#allocation34_spill]]  ;;  %s23820_s25 = smov %s20619_s26 }
0x115e   : > { %s23818_s24 = sld [smem:[#allocation33_spill]] }
0x115f   : > { %s23819_s27 = sld [smem:[#allocation35_spill]] }
0x1163   : > { %p34_p13 = scmp.ge.s32.totalorder %s23817_s28, 4  }
0x1164   : > { %s23821_s26 = smov %s23818_s24 }
0x1165   :  { %36 = sbr.rel (!%p34_p13) target bundleno = 19 (0x13), region = 181 }
0x116a   :  { %16209 = vsyncpa [#allocation3], 1 }
0x116b   :  { %16211 = vsyncpa [#allocation3 + $0x1], 1 }
0x116c   :  { %16212 = vsyncpa [#allocation6], 1 }
0x116d   :  { %16214 = vsyncpa [#allocation6 + $0x1], 1 }
0x116e   :  { %16215 = vsyncpa [#allocation9], 1 }
0x116f   :  { %16216 = vsyncpa [#allocation12], 1 }
0x1170   :  { %16217 = vsyncpa [#allocation15], 1 }
0x1171   :  { %16218 = vsyncpa [#allocation18], 1 }
0x1172   :  { %16219 = vsyncpa [#allocation21], 1 }
0x1173   :  { %16220 = vsyncpa [#allocation4], 1 }
0x1174   :  { %16222 = vsyncpa [#allocation4 + $0x1], 1 }

</bundles_post_ra>
